<compile_context>
chip_gen: v7x
topology: tpu7x:2x2x1
jax: 0.10.0
libtpu: 0.0.40
codegen_flags: <defaults>
</compile_context>

<pallas_src>
import math
import jax
import jax.numpy as jnp
from jax import lax
from jax.experimental import pallas as pl
from jax.experimental.pallas import tpu as pltpu


def _round_up(v, m):
    return (v + m - 1) // m * m


# ----------------------------------------------------------------------------
# Fused Pallas kernel
# ----------------------------------------------------------------------------

def make_fused_kernel(cfg):
    H, W = cfg['H'], cfg['W']
    HW = H * W
    B = cfg['B']
    BHW = B * HW
    L = cfg['L']
    num_blocks = cfg['num_blocks']
    block_has_ds = cfg['block_has_ds']
    convs = cfg['convs']                 # static per-conv descriptors
    cdt = cfg['compute_dtype']
    f32 = jnp.float32

    def conv_apply(x, desc, w_ref, b_ref, mask_ref):
        """'same' conv as `taps` accumulated MXU dots on a lane-dense slab."""
        cin, cout = desc['cin'], desc['cout']
        w_off, rpt, b_off = desc['w_off'], desc['rows_per_tap'], desc['b_off']
        dil, taps = desc['dil'], desc['taps']
        mrow0 = desc['dil_idx'] * 9
        acc = None
        for t in range(taps):
            dy = (t // 3 - 1) * dil if taps == 9 else 0
            dx = (t % 3 - 1) * dil if taps == 9 else 0
            s = dy * W + dx
            if s == 0:
                xs = x                                    # center tap: no shift/mask
            else:
                # out[i] = x[i + s] (masked): lane rotate on the XLU + f32 mask.
                xs = pltpu.roll(x, (-s) % BHW, axis=1)
                xs = xs * mask_ref[mrow0 + t:mrow0 + t + 1, :]
            r0 = w_off + t * rpt                          # 8-aligned sublane offset
            w_t = w_ref[r0:r0 + cout, 0:cin]              # (cout, cin), compute dtype
            d = jnp.dot(w_t, xs.astype(cdt), preferred_element_type=f32)
            acc = d if acc is None else acc + d
        return acc + b_ref[b_off:b_off + cout, :]         # fused BN bias

    def kernel(x_ref, w_ref, b_ref, up_ref, mask_ref, o_ref):
        x0 = x_ref[...]                                   # (Cin, B*HW) f32
        ci = 0

        # ---- sum over dilated branches: LeakyReLU(0.2)(BN(conv3x3_d(x))) ----
        x = None
        for _ in range(L):
            y = conv_apply(x0, convs[ci], w_ref, b_ref, mask_ref)
            ci += 1
            y = jnp.where(y > 0, y, 0.2 * y)
            x = y if x is None else x + y

        # ---- ResNet BasicBlocks (with optional 1x1+BN downsample) ----
        for bi in range(num_blocks):
            if block_has_ds[bi]:
                identity = conv_apply(x, convs[ci], w_ref, b_ref, mask_ref)
                ci += 1
            else:
                identity = x
            out = conv_apply(x, convs[ci], w_ref, b_ref, mask_ref)
            ci += 1
            out = jnp.maximum(out, 0.0)                   # BN1 + ReLU
            out = conv_apply(out, convs[ci], w_ref, b_ref, mask_ref)
            ci += 1
            x = jnp.maximum(out + identity, 0.0)          # add identity, ReLU

        # ---- bilinear 2x upsample: one matmul per image of the group ----
        xc = x.astype(cdt)
        up = up_ref[...]                                  # (HW, 4HW) compute dtype
        for b in range(B):
            yb = jnp.dot(xc[:, b * HW:(b + 1) * HW], up,
                         preferred_element_type=f32)      # (Cout, 4HW) f32
            o_ref[:, b * 4 * HW:(b + 1) * 4 * HW] = yb.astype(o_ref.dtype)

    return kernel


# ----------------------------------------------------------------------------
# Host-side parameter packing (BN folding, 8-aligned tap slabs, single slab)
# ----------------------------------------------------------------------------

def pack_params(params, dilation):
    """Pack every conv weight (BN scale folded) into one (rows, K_pad) slab and
    every BN bias into one (rows, 1) slab; per-tap row offsets are 8-aligned."""
    dil_w = params['dil_w']
    L = dil_w.shape[0]
    blocks = params['blocks']

    mask_dils = tuple(sorted(set(int(d) for d in dilation) | {1}))
    dmap = {d: i for i, d in enumerate(mask_dils)}

    raw = []                                              # (w4d_scaled, bias, dil)
    for l in range(L):
        w = dil_w[l] * params['dil_s'][l][:, None, None, None]
        raw.append((w, params['dil_b'][l], int(dilation[l])))
    for blk in blocks:
        if 'wd' in blk:
            raw.append((blk['wd'] * blk['sd'][:, None, None, None], blk['bd'], 1))
        raw.append((blk['w1'] * blk['s1'][:, None, None, None], blk['b1'], 1))
        raw.append((blk['w2'] * blk['s2'][:, None, None, None], blk['b2'], 1))

    K_pad = _round_up(max(int(w.shape[1]) for w, _, _ in raw), 8)
    w_rows = sum(int(w.shape[2] * w.shape[3]) * _round_up(int(w.shape[0]), 8)
                 for w, _, _ in raw)
    b_rows = sum(_round_up(int(w.shape[0]), 8) for w, _, _ in raw)

    w_all = jnp.zeros((w_rows, K_pad), jnp.float32)
    b_all = jnp.zeros((b_rows, 1), jnp.float32)
    convs = []
    w_off = b_off = 0
    for w, b, d in raw:
        cout, cin, kh, kw = (int(s) for s in w.shape)
        taps = kh * kw
        rpt = _round_up(cout, 8)
        for t in range(taps):
            ky, kx = t // kw, t % kw
            r0 = w_off + t * rpt
            w_all = w_all.at[r0:r0 + cout, 0:cin].set(w[:, :, ky, kx])
        b_all = b_all.at[b_off:b_off + cout, 0].set(b)
        convs.append(dict(cin=cin, cout=cout, taps=taps, dil=d, dil_idx=dmap[d],
                          w_off=w_off, rows_per_tap=rpt, b_off=b_off))
        w_off += taps * rpt
        b_off += rpt
    return w_all, b_all, convs, mask_dils


def _bilinear_matrix(n_in, n_out):
    # PyTorch bilinear interpolation weights, align_corners=False.
    i = jnp.arange(n_out, dtype=jnp.float32)
    src = (i + 0.5) * (n_in / n_out) - 0.5
    src = jnp.clip(src, 0.0, float(n_in - 1))
    i0 = jnp.floor(src).astype(jnp.int32)
    i1 = jnp.minimum(i0 + 1, n_in - 1)
    w1 = src - i0.astype(jnp.float32)
    w0 = 1.0 - w1
    U = jnp.zeros((n_out, n_in), jnp.float32)
    U = U.at[jnp.arange(n_out), i0].add(w0)
    U = U.at[jnp.arange(n_out), i1].add(w1)
    return U


def build_upsample(H, W):
    UH = _bilinear_matrix(H, 2 * H)                      # (2H, H)
    UW = _bilinear_matrix(W, 2 * W)                      # (2W, W)
    return (UH.T[:, None, :, None] * UW.T[None, :, None, :]).reshape(
        H * W, 4 * H * W)


def build_masks(mask_dils, H, W, B):
    """(len(mask_dils)*9, B*H*W) f32 border masks for the roll-based taps."""
    HW = H * W
    idx = jnp.arange(HW, dtype=jnp.int32)
    yy = idx // W
    xx = idx % W
    rows = []
    for d in mask_dils:
        for t in range(9):
            dy = (t // 3 - 1) * d
            dx = (t % 3 - 1) * d
            ok = ((yy + dy >= 0) & (yy + dy < H) & (xx + dx >= 0) & (xx + dx < W))
            rows.append(ok)
    m = jnp.stack(rows, axis=0).astype(jnp.float32)      # (n*9, HW)
    return jnp.tile(m, (1, B))                           # (n*9, B*HW)


# ----------------------------------------------------------------------------
# Public forward (single pallas_call; NCHW in / NCHW out)
# ----------------------------------------------------------------------------

def basic_decoder_block_forward(params, decoder_x, rgb_x, depth_x, dilation, *,
                                compute_dtype=jnp.bfloat16, images_per_step=None):
    imgs = [decoder_x, rgb_x, depth_x]
    N, _, H, W = decoder_x.shape
    HW = H * W
    in_channels = tuple(int(t.shape[1]) for t in imgs)
    Cin = sum(in_channels)

    if images_per_step is None:
        # Fold as much of the batch as possible into the lane axis (amortizes
        # per-step overhead, fills MXU columns).  Capped at 8 images / step.
        images_per_step = 1
        for b in range(min(N, 8), 0, -1):
            if N % b == 0:
                images_per_step = b
                break
    B = images_per_step
    assert N % B == 0, (N, B)
    BHW = B * HW

    w_all, b_all, convs, mask_dils = pack_params(params, dilation)
    w_all = w_all.astype(compute_dtype)
    up = build_upsample(H, W).astype(compute_dtype)
    masks = build_masks(mask_dils, H, W, B)
    Cout = convs[-1]['cout']

    cfg = dict(H=H, W=W, B=B, L=len(dilation), num_blocks=len(params['blocks']),
               block_has_ds=tuple('wd' in b for b in params['blocks']),
               convs=convs, compute_dtype=compute_dtype)
    kernel = make_fused_kernel(cfg)

    # Channel concat + NCHW -> channel-major lane-dense (Cin, N*H*W): pure
    # layout plumbing on a few KB; all compute happens inside the kernel.
    x = jnp.concatenate([t.astype(jnp.float32) for t in imgs], axis=1)
    x = jnp.transpose(x, (1, 0, 2, 3)).reshape(Cin, N * HW)

    out = pl.pallas_call(
        kernel,
        out_shape=jax.ShapeDtypeStruct((Cout, N * 4 * HW), jnp.float32),
        grid=(N // B,),
        in_specs=[
            pl.BlockSpec((Cin, BHW), lambda n: (0, n)),        # activations
            pl.BlockSpec(w_all.shape, lambda n: (0, 0)),       # packed weights
            pl.BlockSpec(b_all.shape, lambda n: (0, 0)),       # packed biases
            pl.BlockSpec(up.shape, lambda n: (0, 0)),          # upsample matrix
            pl.BlockSpec(masks.shape, lambda n: (0, 0)),       # tap border masks
        ],
        out_specs=pl.BlockSpec((Cout, 4 * BHW), lambda n: (0, n)),
        compiler_params=pltpu.CompilerParams(
            dimension_semantics=("parallel",),
            vmem_limit_bytes=32 * 1024 * 1024),
    )(x, w_all, b_all, up, masks)

    out = out.reshape(Cout, N, 2 * H, 2 * W)
    return jnp.transpose(out, (1, 0, 2, 3))                    # NCHW


# ----------------------------------------------------------------------------
# Parameter initialization (mirrors module __init__ shapes / init)
# ----------------------------------------------------------------------------

def _bn_fused(c, eps=1e-5):
    gamma = jnp.ones((c,), jnp.float32)
    beta = jnp.zeros((c,), jnp.float32)
    mean = jnp.zeros((c,), jnp.float32)
    var = jnp.ones((c,), jnp.float32)
    scale = gamma * lax.rsqrt(var + eps)
    bias = beta - mean * scale
    return scale, bias


def _kaiming_oihw(key, cout, cin, k):
    gain = math.sqrt(2.0 / (1.0 + 0.01 ** 2))          # kaiming, leaky_relu
    std = gain / math.sqrt(cout * k * k)               # mode='fan_out'
    return std * jax.random.normal(key, (cout, cin, k, k), jnp.float32)


def init_params(key, input_channels, dilation, internal_channels, output_channels,
                num_blocks=2):
    cin = sum(input_channels)
    keys = iter(jax.random.split(key, 64))
    p = {}
    p['dil_w'] = jnp.stack([_kaiming_oihw(next(keys), internal_channels, cin, 3)
                            for _ in dilation])                  # (L,Cint,Cin,3,3)
    s, b = _bn_fused(internal_channels)
    p['dil_s'] = jnp.stack([s] * len(dilation))
    p['dil_b'] = jnp.stack([b] * len(dilation))
    blocks = []
    inp = internal_channels
    for bi in range(num_blocks):
        blk = {}
        blk['w1'] = _kaiming_oihw(next(keys), output_channels, inp, 3)
        blk['s1'], blk['b1'] = _bn_fused(output_channels)
        blk['w2'] = _kaiming_oihw(next(keys), output_channels, output_channels, 3)
        blk['s2'], blk['b2'] = _bn_fused(output_channels)
        if bi == 0 and inp != output_channels:
            blk['wd'] = _kaiming_oihw(next(keys), output_channels, inp, 1)
            blk['sd'], blk['bd'] = _bn_fused(output_channels)
        blocks.append(blk)
        inp = output_channels
    p['blocks'] = blocks
    return p


# ----------------------------------------------------------------------------
# Pure-JAX reference (f32, HIGHEST precision)
# ----------------------------------------------------------------------------

def _ref_conv(x, w, dil=1):
    pad = dil * (w.shape[2] // 2)
    return lax.conv_general_dilated(
        x, w, (1, 1), ((pad, pad), (pad, pad)), rhs_dilation=(dil, dil),
        dimension_numbers=('NCHW', 'OIHW', 'NCHW'),
        precision=lax.Precision.HIGHEST)


def reference_forward(params, decoder_x, rgb_x, depth_x, dilation):
    x = jnp.concatenate([decoder_x, rgb_x, depth_x], axis=1)
    acc = 0.0
    for l, d in enumerate(dilation):
        y = _ref_conv(x, params['dil_w'][l], dil=d)
        y = y * params['dil_s'][l][None, :, None, None] \
            + params['dil_b'][l][None, :, None, None]
        acc = acc + jnp.where(y > 0, y, 0.2 * y)
    x = acc
    for blk in params['blocks']:
        identity = x
        if 'wd' in blk:
            identity = _ref_conv(x, blk['wd'])
            identity = identity * blk['sd'][None, :, None, None] \
                + blk['bd'][None, :, None, None]
        out = _ref_conv(x, blk['w1'])
        out = out * blk['s1'][None, :, None, None] + blk['b1'][None, :, None, None]
        out = jnp.maximum(out, 0.0)
        out = _ref_conv(out, blk['w2'])
        out = out * blk['s2'][None, :, None, None] + blk['b2'][None, :, None, None]
        x = jnp.maximum(out + identity, 0.0)
    N, C, H, W = x.shape
    UH = _bilinear_matrix(H, 2 * H)
    UW = _bilinear_matrix(W, 2 * W)
    x = jnp.einsum('oh,nchw->ncow', UH, x, precision=lax.Precision.HIGHEST)
    x = jnp.einsum('pw,ncow->ncop', UW, x, precision=lax.Precision.HIGHEST)
    return x


# ----------------------------------------------------------------------------

if __name__ == "__main__":
    key = jax.random.PRNGKey(0)
    k1, k2, k3, kp = jax.random.split(key, 4)

    input_channels = (2, 1, 1)        # decoder / rgb / depth channel counts
    dilation = (1, 2)
    internal_channels = 8
    output_channels = 16              # != internal -> exercises 1x1 downsample
    N, H, W = 2, 16, 16

    decoder_x = jax.random.normal(k1, (N, input_channels[0], H, W), jnp.float32)
    rgb_x = jax.random.normal(k2, (N, input_channels[1], H, W), jnp.float32)
    depth_x = jax.random.normal(k3, (N, input_channels[2], H, W), jnp.float32)

    params = init_params(kp, input_channels, dilation, internal_channels,
                         output_channels, num_blocks=2)

    ref = jax.block_until_ready(
        reference_forward(params, decoder_x, rgb_x, depth_x, dilation))

    # Strict correctness check with f32 matmul operands (same kernel code path).
    out_f32 = basic_decoder_block_forward(params, decoder_x, rgb_x, depth_x,
                                          dilation, compute_dtype=jnp.float32)
    out_f32 = jax.block_until_ready(out_f32)
    assert out_f32.shape == (N, output_channels, 2 * H, 2 * W), out_f32.shape
    err32 = float(jnp.max(jnp.abs(out_f32 - ref)))
    assert jnp.allclose(out_f32, ref, atol=5e-3, rtol=5e-3), err32

    # Default (performance) path: bf16 matmul operands, f32 accumulation.
    out_bf16 = basic_decoder_block_forward(params, decoder_x, rgb_x, depth_x,
                                           dilation)
    out_bf16 = jax.block_until_ready(out_bf16)
    assert out_bf16.shape == (N, output_channels, 2 * H, 2 * W), out_bf16.shape
    err = jnp.abs(out_bf16 - ref)
    max_err, mean_err = float(jnp.max(err)), float(jnp.mean(err))
    assert max_err < 5e-1 and mean_err < 5e-2, (max_err, mean_err)

    print("KERNEL_OK")
</pallas_src>

<mosaic_0001>
module attributes {stable_mosaic.version = 11 : i64} {
  func.func @kernel(%arg0: i32, %arg1: memref<4x512xf32, #tpu.memory_space<vmem>>, %arg2: memref<736x16xf32, #tpu.memory_space<vmem>>, %arg3: memref<96x1xf32, #tpu.memory_space<vmem>>, %arg4: memref<256x1024xf32, #tpu.memory_space<vmem>>, %arg5: memref<18x512xf32, #tpu.memory_space<vmem>>, %arg6: memref<16x2048xf32, #tpu.memory_space<vmem>>) attributes {dimension_semantics = [#tpu.dimension_semantics<parallel>], iteration_bounds = array<i64: 1>, scalar_prefetch = 0 : i64, scratch_operands = 0 : i64, tpu.core_type = #tpu.core_type<tc>, window_params = [{transform_indices = @transform_0, window_bounds = array<i64: 4, 512>}, {pipeline_mode = #tpu.pipeline_mode<synchronous>, transform_indices = @transform_1, window_bounds = array<i64: 736, 16>}, {pipeline_mode = #tpu.pipeline_mode<synchronous>, transform_indices = @transform_2, window_bounds = array<i64: 96, 1>}, {pipeline_mode = #tpu.pipeline_mode<synchronous>, transform_indices = @transform_3, window_bounds = array<i64: 256, 1024>}, {pipeline_mode = #tpu.pipeline_mode<synchronous>, transform_indices = @transform_4, window_bounds = array<i64: 18, 512>}, {transform_indices = @transform_5, window_bounds = array<i64: 16, 2048>}]} {
    %c0 = arith.constant 0 : index
    %c0_0 = arith.constant 0 : index
    %0 = vector.load %arg1[%c0, %c0_0] : memref<4x512xf32, #tpu.memory_space<vmem>>, vector<4x512xf32>
    %c17_i32 = arith.constant 17 : i32
    %1 = tpu.dynamic_rotate %0 by %c17_i32 dim 1 : vector<4x512xf32>, i32 -> vector<4x512xf32>
    %c0_1 = arith.constant 0 : index
    %c0_2 = arith.constant 0 : index
    %2 = vector.load %arg5[%c0_1, %c0_2] : memref<18x512xf32, #tpu.memory_space<vmem>>, vector<1x512xf32>
    %3 = vector.broadcast %2 : vector<1x512xf32> to vector<4x512xf32>
    %4 = arith.mulf %1, %3 : vector<4x512xf32>
    %c0_3 = arith.constant 0 : index
    %c0_4 = arith.constant 0 : index
    %5 = vector.load %arg2[%c0_3, %c0_4] : memref<736x16xf32, #tpu.memory_space<vmem>>, vector<8x4xf32>
    %cst = arith.constant dense<0.000000e+00> : vector<8x512xf32>
    %6 = tpu.matmul %5, %4, %cst {dimension_numbers = #tpu.dot_dimension_numbers<[1], [0], [0], [1], [0, 0, 1, 1], [], []>} : vector<8x4xf32>, vector<4x512xf32>, vector<8x512xf32> -> vector<8x512xf32>
    %c16_i32 = arith.constant 16 : i32
    %7 = tpu.dynamic_rotate %0 by %c16_i32 dim 1 : vector<4x512xf32>, i32 -> vector<4x512xf32>
    %c1 = arith.constant 1 : index
    %c0_5 = arith.constant 0 : index
    %8 = vector.load %arg5[%c1, %c0_5] : memref<18x512xf32, #tpu.memory_space<vmem>>, vector<1x512xf32>
    %9 = vector.broadcast %8 : vector<1x512xf32> to vector<4x512xf32>
    %10 = arith.mulf %7, %9 : vector<4x512xf32>
    %c8 = arith.constant 8 : index
    %c0_6 = arith.constant 0 : index
    %11 = vector.load %arg2[%c8, %c0_6] : memref<736x16xf32, #tpu.memory_space<vmem>>, vector<8x4xf32>
    %cst_7 = arith.constant dense<0.000000e+00> : vector<8x512xf32>
    %12 = tpu.matmul %11, %10, %cst_7 {dimension_numbers = #tpu.dot_dimension_numbers<[1], [0], [0], [1], [0, 0, 1, 1], [], []>} : vector<8x4xf32>, vector<4x512xf32>, vector<8x512xf32> -> vector<8x512xf32>
    %13 = arith.addf %6, %12 : vector<8x512xf32>
    %c15_i32 = arith.constant 15 : i32
    %14 = tpu.dynamic_rotate %0 by %c15_i32 dim 1 : vector<4x512xf32>, i32 -> vector<4x512xf32>
    %c2 = arith.constant 2 : index
    %c0_8 = arith.constant 0 : index
    %15 = vector.load %arg5[%c2, %c0_8] : memref<18x512xf32, #tpu.memory_space<vmem>>, vector<1x512xf32>
    %16 = vector.broadcast %15 : vector<1x512xf32> to vector<4x512xf32>
    %17 = arith.mulf %14, %16 : vector<4x512xf32>
    %c16 = arith.constant 16 : index
    %c0_9 = arith.constant 0 : index
    %18 = vector.load %arg2[%c16, %c0_9] : memref<736x16xf32, #tpu.memory_space<vmem>>, vector<8x4xf32>
    %cst_10 = arith.constant dense<0.000000e+00> : vector<8x512xf32>
    %19 = tpu.matmul %18, %17, %cst_10 {dimension_numbers = #tpu.dot_dimension_numbers<[1], [0], [0], [1], [0, 0, 1, 1], [], []>} : vector<8x4xf32>, vector<4x512xf32>, vector<8x512xf32> -> vector<8x512xf32>
    %20 = arith.addf %13, %19 : vector<8x512xf32>
    %c1_i32 = arith.constant 1 : i32
    %21 = tpu.dynamic_rotate %0 by %c1_i32 dim 1 : vector<4x512xf32>, i32 -> vector<4x512xf32>
    %c3 = arith.constant 3 : index
    %c0_11 = arith.constant 0 : index
    %22 = vector.load %arg5[%c3, %c0_11] : memref<18x512xf32, #tpu.memory_space<vmem>>, vector<1x512xf32>
    %23 = vector.broadcast %22 : vector<1x512xf32> to vector<4x512xf32>
    %24 = arith.mulf %21, %23 : vector<4x512xf32>
    %c24 = arith.constant 24 : index
    %c0_12 = arith.constant 0 : index
    %25 = vector.load %arg2[%c24, %c0_12] : memref<736x16xf32, #tpu.memory_space<vmem>>, vector<8x4xf32>
    %cst_13 = arith.constant dense<0.000000e+00> : vector<8x512xf32>
    %26 = tpu.matmul %25, %24, %cst_13 {dimension_numbers = #tpu.dot_dimension_numbers<[1], [0], [0], [1], [0, 0, 1, 1], [], []>} : vector<8x4xf32>, vector<4x512xf32>, vector<8x512xf32> -> vector<8x512xf32>
    %27 = arith.addf %20, %26 : vector<8x512xf32>
    %c32 = arith.constant 32 : index
    %c0_14 = arith.constant 0 : index
    %28 = vector.load %arg2[%c32, %c0_14] : memref<736x16xf32, #tpu.memory_space<vmem>>, vector<8x4xf32>
    %cst_15 = arith.constant dense<0.000000e+00> : vector<8x512xf32>
    %29 = tpu.matmul %28, %0, %cst_15 {dimension_numbers = #tpu.dot_dimension_numbers<[1], [0], [0], [1], [0, 0, 1, 1], [], []>} : vector<8x4xf32>, vector<4x512xf32>, vector<8x512xf32> -> vector<8x512xf32>
    %30 = arith.addf %27, %29 : vector<8x512xf32>
    %c511_i32 = arith.constant 511 : i32
    %31 = tpu.dynamic_rotate %0 by %c511_i32 dim 1 : vector<4x512xf32>, i32 -> vector<4x512xf32>
    %c5 = arith.constant 5 : index
    %c0_16 = arith.constant 0 : index
    %32 = vector.load %arg5[%c5, %c0_16] : memref<18x512xf32, #tpu.memory_space<vmem>>, vector<1x512xf32>
    %33 = vector.broadcast %32 : vector<1x512xf32> to vector<4x512xf32>
    %34 = arith.mulf %31, %33 : vector<4x512xf32>
    %c40 = arith.constant 40 : index
    %c0_17 = arith.constant 0 : index
    %35 = vector.load %arg2[%c40, %c0_17] : memref<736x16xf32, #tpu.memory_space<vmem>>, vector<8x4xf32>
    %cst_18 = arith.constant dense<0.000000e+00> : vector<8x512xf32>
    %36 = tpu.matmul %35, %34, %cst_18 {dimension_numbers = #tpu.dot_dimension_numbers<[1], [0], [0], [1], [0, 0, 1, 1], [], []>} : vector<8x4xf32>, vector<4x512xf32>, vector<8x512xf32> -> vector<8x512xf32>
    %37 = arith.addf %30, %36 : vector<8x512xf32>
    %c497_i32 = arith.constant 497 : i32
    %38 = tpu.dynamic_rotate %0 by %c497_i32 dim 1 : vector<4x512xf32>, i32 -> vector<4x512xf32>
    %c6 = arith.constant 6 : index
    %c0_19 = arith.constant 0 : index
    %39 = vector.load %arg5[%c6, %c0_19] : memref<18x512xf32, #tpu.memory_space<vmem>>, vector<1x512xf32>
    %40 = vector.broadcast %39 : vector<1x512xf32> to vector<4x512xf32>
    %41 = arith.mulf %38, %40 : vector<4x512xf32>
    %c48 = arith.constant 48 : index
    %c0_20 = arith.constant 0 : index
    %42 = vector.load %arg2[%c48, %c0_20] : memref<736x16xf32, #tpu.memory_space<vmem>>, vector<8x4xf32>
    %cst_21 = arith.constant dense<0.000000e+00> : vector<8x512xf32>
    %43 = tpu.matmul %42, %41, %cst_21 {dimension_numbers = #tpu.dot_dimension_numbers<[1], [0], [0], [1], [0, 0, 1, 1], [], []>} : vector<8x4xf32>, vector<4x512xf32>, vector<8x512xf32> -> vector<8x512xf32>
    %44 = arith.addf %37, %43 : vector<8x512xf32>
    %c496_i32 = arith.constant 496 : i32
    %45 = tpu.dynamic_rotate %0 by %c496_i32 dim 1 : vector<4x512xf32>, i32 -> vector<4x512xf32>
    %c7 = arith.constant 7 : index
    %c0_22 = arith.constant 0 : index
    %46 = vector.load %arg5[%c7, %c0_22] : memref<18x512xf32, #tpu.memory_space<vmem>>, vector<1x512xf32>
    %47 = vector.broadcast %46 : vector<1x512xf32> to vector<4x512xf32>
    %48 = arith.mulf %45, %47 : vector<4x512xf32>
    %c56 = arith.constant 56 : index
    %c0_23 = arith.constant 0 : index
    %49 = vector.load %arg2[%c56, %c0_23] : memref<736x16xf32, #tpu.memory_space<vmem>>, vector<8x4xf32>
    %cst_24 = arith.constant dense<0.000000e+00> : vector<8x512xf32>
    %50 = tpu.matmul %49, %48, %cst_24 {dimension_numbers = #tpu.dot_dimension_numbers<[1], [0], [0], [1], [0, 0, 1, 1], [], []>} : vector<8x4xf32>, vector<4x512xf32>, vector<8x512xf32> -> vector<8x512xf32>
    %51 = arith.addf %44, %50 : vector<8x512xf32>
    %c495_i32 = arith.constant 495 : i32
    %52 = tpu.dynamic_rotate %0 by %c495_i32 dim 1 : vector<4x512xf32>, i32 -> vector<4x512xf32>
    %c8_25 = arith.constant 8 : index
    %c0_26 = arith.constant 0 : index
    %53 = vector.load %arg5[%c8_25, %c0_26] : memref<18x512xf32, #tpu.memory_space<vmem>>, vector<1x512xf32>
    %54 = vector.broadcast %53 : vector<1x512xf32> to vector<4x512xf32>
    %55 = arith.mulf %52, %54 : vector<4x512xf32>
    %c64 = arith.constant 64 : index
    %c0_27 = arith.constant 0 : index
    %56 = vector.load %arg2[%c64, %c0_27] : memref<736x16xf32, #tpu.memory_space<vmem>>, vector<8x4xf32>
    %cst_28 = arith.constant dense<0.000000e+00> : vector<8x512xf32>
    %57 = tpu.matmul %56, %55, %cst_28 {dimension_numbers = #tpu.dot_dimension_numbers<[1], [0], [0], [1], [0, 0, 1, 1], [], []>} : vector<8x4xf32>, vector<4x512xf32>, vector<8x512xf32> -> vector<8x512xf32>
    %58 = arith.addf %51, %57 : vector<8x512xf32>
    %c0_29 = arith.constant 0 : index
    %c0_30 = arith.constant 0 : index
    %59 = vector.load %arg3[%c0_29, %c0_30] : memref<96x1xf32, #tpu.memory_space<vmem>>, vector<8x1xf32>
    %60 = vector.broadcast %59 : vector<8x1xf32> to vector<8x512xf32>
    %61 = arith.addf %58, %60 : vector<8x512xf32>
    %cst_31 = arith.constant 0.000000e+00 : f32
    %62 = vector.broadcast %cst_31 : f32 to vector<8x512xf32>
    %63 = arith.cmpf ogt, %61, %62 : vector<8x512xf32>
    %cst_32 = arith.constant 2.000000e-01 : f32
    %64 = vector.broadcast %cst_32 : f32 to vector<8x512xf32>
    %65 = arith.mulf %64, %61 : vector<8x512xf32>
    %66 = arith.select %63, %61, %65 : vector<8x512xi1>, vector<8x512xf32>
    %c34_i32 = arith.constant 34 : i32
    %67 = tpu.dynamic_rotate %0 by %c34_i32 dim 1 : vector<4x512xf32>, i32 -> vector<4x512xf32>
    %c9 = arith.constant 9 : index
    %c0_33 = arith.constant 0 : index
    %68 = vector.load %arg5[%c9, %c0_33] : memref<18x512xf32, #tpu.memory_space<vmem>>, vector<1x512xf32>
    %69 = vector.broadcast %68 : vector<1x512xf32> to vector<4x512xf32>
    %70 = arith.mulf %67, %69 : vector<4x512xf32>
    %c72 = arith.constant 72 : index
    %c0_34 = arith.constant 0 : index
    %71 = vector.load %arg2[%c72, %c0_34] : memref<736x16xf32, #tpu.memory_space<vmem>>, vector<8x4xf32>
    %cst_35 = arith.constant dense<0.000000e+00> : vector<8x512xf32>
    %72 = tpu.matmul %71, %70, %cst_35 {dimension_numbers = #tpu.dot_dimension_numbers<[1], [0], [0], [1], [0, 0, 1, 1], [], []>} : vector<8x4xf32>, vector<4x512xf32>, vector<8x512xf32> -> vector<8x512xf32>
    %c32_i32 = arith.constant 32 : i32
    %73 = tpu.dynamic_rotate %0 by %c32_i32 dim 1 : vector<4x512xf32>, i32 -> vector<4x512xf32>
    %c10 = arith.constant 10 : index
    %c0_36 = arith.constant 0 : index
    %74 = vector.load %arg5[%c10, %c0_36] : memref<18x512xf32, #tpu.memory_space<vmem>>, vector<1x512xf32>
    %75 = vector.broadcast %74 : vector<1x512xf32> to vector<4x512xf32>
    %76 = arith.mulf %73, %75 : vector<4x512xf32>
    %c80 = arith.constant 80 : index
    %c0_37 = arith.constant 0 : index
    %77 = vector.load %arg2[%c80, %c0_37] : memref<736x16xf32, #tpu.memory_space<vmem>>, vector<8x4xf32>
    %cst_38 = arith.constant dense<0.000000e+00> : vector<8x512xf32>
    %78 = tpu.matmul %77, %76, %cst_38 {dimension_numbers = #tpu.dot_dimension_numbers<[1], [0], [0], [1], [0, 0, 1, 1], [], []>} : vector<8x4xf32>, vector<4x512xf32>, vector<8x512xf32> -> vector<8x512xf32>
    %79 = arith.addf %72, %78 : vector<8x512xf32>
    %c30_i32 = arith.constant 30 : i32
    %80 = tpu.dynamic_rotate %0 by %c30_i32 dim 1 : vector<4x512xf32>, i32 -> vector<4x512xf32>
    %c11 = arith.constant 11 : index
    %c0_39 = arith.constant 0 : index
    %81 = vector.load %arg5[%c11, %c0_39] : memref<18x512xf32, #tpu.memory_space<vmem>>, vector<1x512xf32>
    %82 = vector.broadcast %81 : vector<1x512xf32> to vector<4x512xf32>
    %83 = arith.mulf %80, %82 : vector<4x512xf32>
    %c88 = arith.constant 88 : index
    %c0_40 = arith.constant 0 : index
    %84 = vector.load %arg2[%c88, %c0_40] : memref<736x16xf32, #tpu.memory_space<vmem>>, vector<8x4xf32>
    %cst_41 = arith.constant dense<0.000000e+00> : vector<8x512xf32>
    %85 = tpu.matmul %84, %83, %cst_41 {dimension_numbers = #tpu.dot_dimension_numbers<[1], [0], [0], [1], [0, 0, 1, 1], [], []>} : vector<8x4xf32>, vector<4x512xf32>, vector<8x512xf32> -> vector<8x512xf32>
    %86 = arith.addf %79, %85 : vector<8x512xf32>
    %c2_i32 = arith.constant 2 : i32
    %87 = tpu.dynamic_rotate %0 by %c2_i32 dim 1 : vector<4x512xf32>, i32 -> vector<4x512xf32>
    %c12 = arith.constant 12 : index
    %c0_42 = arith.constant 0 : index
    %88 = vector.load %arg5[%c12, %c0_42] : memref<18x512xf32, #tpu.memory_space<vmem>>, vector<1x512xf32>
    %89 = vector.broadcast %88 : vector<1x512xf32> to vector<4x512xf32>
    %90 = arith.mulf %87, %89 : vector<4x512xf32>
    %c96 = arith.constant 96 : index
    %c0_43 = arith.constant 0 : index
    %91 = vector.load %arg2[%c96, %c0_43] : memref<736x16xf32, #tpu.memory_space<vmem>>, vector<8x4xf32>
    %cst_44 = arith.constant dense<0.000000e+00> : vector<8x512xf32>
    %92 = tpu.matmul %91, %90, %cst_44 {dimension_numbers = #tpu.dot_dimension_numbers<[1], [0], [0], [1], [0, 0, 1, 1], [], []>} : vector<8x4xf32>, vector<4x512xf32>, vector<8x512xf32> -> vector<8x512xf32>
    %93 = arith.addf %86, %92 : vector<8x512xf32>
    %c104 = arith.constant 104 : index
    %c0_45 = arith.constant 0 : index
    %94 = vector.load %arg2[%c104, %c0_45] : memref<736x16xf32, #tpu.memory_space<vmem>>, vector<8x4xf32>
    %cst_46 = arith.constant dense<0.000000e+00> : vector<8x512xf32>
    %95 = tpu.matmul %94, %0, %cst_46 {dimension_numbers = #tpu.dot_dimension_numbers<[1], [0], [0], [1], [0, 0, 1, 1], [], []>} : vector<8x4xf32>, vector<4x512xf32>, vector<8x512xf32> -> vector<8x512xf32>
    %96 = arith.addf %93, %95 : vector<8x512xf32>
    %c510_i32 = arith.constant 510 : i32
    %97 = tpu.dynamic_rotate %0 by %c510_i32 dim 1 : vector<4x512xf32>, i32 -> vector<4x512xf32>
    %c14 = arith.constant 14 : index
    %c0_47 = arith.constant 0 : index
    %98 = vector.load %arg5[%c14, %c0_47] : memref<18x512xf32, #tpu.memory_space<vmem>>, vector<1x512xf32>
    %99 = vector.broadcast %98 : vector<1x512xf32> to vector<4x512xf32>
    %100 = arith.mulf %97, %99 : vector<4x512xf32>
    %c112 = arith.constant 112 : index
    %c0_48 = arith.constant 0 : index
    %101 = vector.load %arg2[%c112, %c0_48] : memref<736x16xf32, #tpu.memory_space<vmem>>, vector<8x4xf32>
    %cst_49 = arith.constant dense<0.000000e+00> : vector<8x512xf32>
    %102 = tpu.matmul %101, %100, %cst_49 {dimension_numbers = #tpu.dot_dimension_numbers<[1], [0], [0], [1], [0, 0, 1, 1], [], []>} : vector<8x4xf32>, vector<4x512xf32>, vector<8x512xf32> -> vector<8x512xf32>
    %103 = arith.addf %96, %102 : vector<8x512xf32>
    %c482_i32 = arith.constant 482 : i32
    %104 = tpu.dynamic_rotate %0 by %c482_i32 dim 1 : vector<4x512xf32>, i32 -> vector<4x512xf32>
    %c15 = arith.constant 15 : index
    %c0_50 = arith.constant 0 : index
    %105 = vector.load %arg5[%c15, %c0_50] : memref<18x512xf32, #tpu.memory_space<vmem>>, vector<1x512xf32>
    %106 = vector.broadcast %105 : vector<1x512xf32> to vector<4x512xf32>
    %107 = arith.mulf %104, %106 : vector<4x512xf32>
    %c120 = arith.constant 120 : index
    %c0_51 = arith.constant 0 : index
    %108 = vector.load %arg2[%c120, %c0_51] : memref<736x16xf32, #tpu.memory_space<vmem>>, vector<8x4xf32>
    %cst_52 = arith.constant dense<0.000000e+00> : vector<8x512xf32>
    %109 = tpu.matmul %108, %107, %cst_52 {dimension_numbers = #tpu.dot_dimension_numbers<[1], [0], [0], [1], [0, 0, 1, 1], [], []>} : vector<8x4xf32>, vector<4x512xf32>, vector<8x512xf32> -> vector<8x512xf32>
    %110 = arith.addf %103, %109 : vector<8x512xf32>
    %c480_i32 = arith.constant 480 : i32
    %111 = tpu.dynamic_rotate %0 by %c480_i32 dim 1 : vector<4x512xf32>, i32 -> vector<4x512xf32>
    %c16_53 = arith.constant 16 : index
    %c0_54 = arith.constant 0 : index
    %112 = vector.load %arg5[%c16_53, %c0_54] : memref<18x512xf32, #tpu.memory_space<vmem>>, vector<1x512xf32>
    %113 = vector.broadcast %112 : vector<1x512xf32> to vector<4x512xf32>
    %114 = arith.mulf %111, %113 : vector<4x512xf32>
    %c128 = arith.constant 128 : index
    %c0_55 = arith.constant 0 : index
    %115 = vector.load %arg2[%c128, %c0_55] : memref<736x16xf32, #tpu.memory_space<vmem>>, vector<8x4xf32>
    %cst_56 = arith.constant dense<0.000000e+00> : vector<8x512xf32>
    %116 = tpu.matmul %115, %114, %cst_56 {dimension_numbers = #tpu.dot_dimension_numbers<[1], [0], [0], [1], [0, 0, 1, 1], [], []>} : vector<8x4xf32>, vector<4x512xf32>, vector<8x512xf32> -> vector<8x512xf32>
    %117 = arith.addf %110, %116 : vector<8x512xf32>
    %c478_i32 = arith.constant 478 : i32
    %118 = tpu.dynamic_rotate %0 by %c478_i32 dim 1 : vector<4x512xf32>, i32 -> vector<4x512xf32>
    %c17 = arith.constant 17 : index
    %c0_57 = arith.constant 0 : index
    %119 = vector.load %arg5[%c17, %c0_57] : memref<18x512xf32, #tpu.memory_space<vmem>>, vector<1x512xf32>
    %120 = vector.broadcast %119 : vector<1x512xf32> to vector<4x512xf32>
    %121 = arith.mulf %118, %120 : vector<4x512xf32>
    %c136 = arith.constant 136 : index
    %c0_58 = arith.constant 0 : index
    %122 = vector.load %arg2[%c136, %c0_58] : memref<736x16xf32, #tpu.memory_space<vmem>>, vector<8x4xf32>
    %cst_59 = arith.constant dense<0.000000e+00> : vector<8x512xf32>
    %123 = tpu.matmul %122, %121, %cst_59 {dimension_numbers = #tpu.dot_dimension_numbers<[1], [0], [0], [1], [0, 0, 1, 1], [], []>} : vector<8x4xf32>, vector<4x512xf32>, vector<8x512xf32> -> vector<8x512xf32>
    %124 = arith.addf %117, %123 : vector<8x512xf32>
    %c8_60 = arith.constant 8 : index
    %c0_61 = arith.constant 0 : index
    %125 = vector.load %arg3[%c8_60, %c0_61] : memref<96x1xf32, #tpu.memory_space<vmem>>, vector<8x1xf32>
    %126 = vector.broadcast %125 : vector<8x1xf32> to vector<8x512xf32>
    %127 = arith.addf %124, %126 : vector<8x512xf32>
    %cst_62 = arith.constant 0.000000e+00 : f32
    %128 = vector.broadcast %cst_62 : f32 to vector<8x512xf32>
    %129 = arith.cmpf ogt, %127, %128 : vector<8x512xf32>
    %cst_63 = arith.constant 2.000000e-01 : f32
    %130 = vector.broadcast %cst_63 : f32 to vector<8x512xf32>
    %131 = arith.mulf %130, %127 : vector<8x512xf32>
    %132 = arith.select %129, %127, %131 : vector<8x512xi1>, vector<8x512xf32>
    %133 = arith.addf %66, %132 : vector<8x512xf32>
    %c144 = arith.constant 144 : index
    %c0_64 = arith.constant 0 : index
    %134 = vector.load %arg2[%c144, %c0_64] : memref<736x16xf32, #tpu.memory_space<vmem>>, vector<16x8xf32>
    %cst_65 = arith.constant dense<0.000000e+00> : vector<16x512xf32>
    %135 = tpu.matmul %134, %133, %cst_65 {dimension_numbers = #tpu.dot_dimension_numbers<[1], [0], [0], [1], [0, 0, 1, 1], [], []>} : vector<16x8xf32>, vector<8x512xf32>, vector<16x512xf32> -> vector<16x512xf32>
    %c16_66 = arith.constant 16 : index
    %c0_67 = arith.constant 0 : index
    %136 = vector.load %arg3[%c16_66, %c0_67] : memref<96x1xf32, #tpu.memory_space<vmem>>, vector<16x1xf32>
    %137 = vector.broadcast %136 : vector<16x1xf32> to vector<16x512xf32>
    %138 = arith.addf %135, %137 : vector<16x512xf32>
    %c17_i32_68 = arith.constant 17 : i32
    %139 = tpu.dynamic_rotate %133 by %c17_i32_68 dim 1 : vector<8x512xf32>, i32 -> vector<8x512xf32>
    %c0_69 = arith.constant 0 : index
    %c0_70 = arith.constant 0 : index
    %140 = vector.load %arg5[%c0_69, %c0_70] : memref<18x512xf32, #tpu.memory_space<vmem>>, vector<1x512xf32>
    %141 = vector.broadcast %140 : vector<1x512xf32> to vector<8x512xf32>
    %142 = arith.mulf %139, %141 : vector<8x512xf32>
    %c160 = arith.constant 160 : index
    %c0_71 = arith.constant 0 : index
    %143 = vector.load %arg2[%c160, %c0_71] : memref<736x16xf32, #tpu.memory_space<vmem>>, vector<16x8xf32>
    %cst_72 = arith.constant dense<0.000000e+00> : vector<16x512xf32>
    %144 = tpu.matmul %143, %142, %cst_72 {dimension_numbers = #tpu.dot_dimension_numbers<[1], [0], [0], [1], [0, 0, 1, 1], [], []>} : vector<16x8xf32>, vector<8x512xf32>, vector<16x512xf32> -> vector<16x512xf32>
    %c16_i32_73 = arith.constant 16 : i32
    %145 = tpu.dynamic_rotate %133 by %c16_i32_73 dim 1 : vector<8x512xf32>, i32 -> vector<8x512xf32>
    %c1_74 = arith.constant 1 : index
    %c0_75 = arith.constant 0 : index
    %146 = vector.load %arg5[%c1_74, %c0_75] : memref<18x512xf32, #tpu.memory_space<vmem>>, vector<1x512xf32>
    %147 = vector.broadcast %146 : vector<1x512xf32> to vector<8x512xf32>
    %148 = arith.mulf %145, %147 : vector<8x512xf32>
    %c176 = arith.constant 176 : index
    %c0_76 = arith.constant 0 : index
    %149 = vector.load %arg2[%c176, %c0_76] : memref<736x16xf32, #tpu.memory_space<vmem>>, vector<16x8xf32>
    %cst_77 = arith.constant dense<0.000000e+00> : vector<16x512xf32>
    %150 = tpu.matmul %149, %148, %cst_77 {dimension_numbers = #tpu.dot_dimension_numbers<[1], [0], [0], [1], [0, 0, 1, 1], [], []>} : vector<16x8xf32>, vector<8x512xf32>, vector<16x512xf32> -> vector<16x512xf32>
    %151 = arith.addf %144, %150 : vector<16x512xf32>
    %c15_i32_78 = arith.constant 15 : i32
    %152 = tpu.dynamic_rotate %133 by %c15_i32_78 dim 1 : vector<8x512xf32>, i32 -> vector<8x512xf32>
    %c2_79 = arith.constant 2 : index
    %c0_80 = arith.constant 0 : index
    %153 = vector.load %arg5[%c2_79, %c0_80] : memref<18x512xf32, #tpu.memory_space<vmem>>, vector<1x512xf32>
    %154 = vector.broadcast %153 : vector<1x512xf32> to vector<8x512xf32>
    %155 = arith.mulf %152, %154 : vector<8x512xf32>
    %c192 = arith.constant 192 : index
    %c0_81 = arith.constant 0 : index
    %156 = vector.load %arg2[%c192, %c0_81] : memref<736x16xf32, #tpu.memory_space<vmem>>, vector<16x8xf32>
    %cst_82 = arith.constant dense<0.000000e+00> : vector<16x512xf32>
    %157 = tpu.matmul %156, %155, %cst_82 {dimension_numbers = #tpu.dot_dimension_numbers<[1], [0], [0], [1], [0, 0, 1, 1], [], []>} : vector<16x8xf32>, vector<8x512xf32>, vector<16x512xf32> -> vector<16x512xf32>
    %158 = arith.addf %151, %157 : vector<16x512xf32>
    %c1_i32_83 = arith.constant 1 : i32
    %159 = tpu.dynamic_rotate %133 by %c1_i32_83 dim 1 : vector<8x512xf32>, i32 -> vector<8x512xf32>
    %c3_84 = arith.constant 3 : index
    %c0_85 = arith.constant 0 : index
    %160 = vector.load %arg5[%c3_84, %c0_85] : memref<18x512xf32, #tpu.memory_space<vmem>>, vector<1x512xf32>
    %161 = vector.broadcast %160 : vector<1x512xf32> to vector<8x512xf32>
    %162 = arith.mulf %159, %161 : vector<8x512xf32>
    %c208 = arith.constant 208 : index
    %c0_86 = arith.constant 0 : index
    %163 = vector.load %arg2[%c208, %c0_86] : memref<736x16xf32, #tpu.memory_space<vmem>>, vector<16x8xf32>
    %cst_87 = arith.constant dense<0.000000e+00> : vector<16x512xf32>
    %164 = tpu.matmul %163, %162, %cst_87 {dimension_numbers = #tpu.dot_dimension_numbers<[1], [0], [0], [1], [0, 0, 1, 1], [], []>} : vector<16x8xf32>, vector<8x512xf32>, vector<16x512xf32> -> vector<16x512xf32>
    %165 = arith.addf %158, %164 : vector<16x512xf32>
    %c224 = arith.constant 224 : index
    %c0_88 = arith.constant 0 : index
    %166 = vector.load %arg2[%c224, %c0_88] : memref<736x16xf32, #tpu.memory_space<vmem>>, vector<16x8xf32>
    %cst_89 = arith.constant dense<0.000000e+00> : vector<16x512xf32>
    %167 = tpu.matmul %166, %133, %cst_89 {dimension_numbers = #tpu.dot_dimension_numbers<[1], [0], [0], [1], [0, 0, 1, 1], [], []>} : vector<16x8xf32>, vector<8x512xf32>, vector<16x512xf32> -> vector<16x512xf32>
    %168 = arith.addf %165, %167 : vector<16x512xf32>
    %c511_i32_90 = arith.constant 511 : i32
    %169 = tpu.dynamic_rotate %133 by %c511_i32_90 dim 1 : vector<8x512xf32>, i32 -> vector<8x512xf32>
    %c5_91 = arith.constant 5 : index
    %c0_92 = arith.constant 0 : index
    %170 = vector.load %arg5[%c5_91, %c0_92] : memref<18x512xf32, #tpu.memory_space<vmem>>, vector<1x512xf32>
    %171 = vector.broadcast %170 : vector<1x512xf32> to vector<8x512xf32>
    %172 = arith.mulf %169, %171 : vector<8x512xf32>
    %c240 = arith.constant 240 : index
    %c0_93 = arith.constant 0 : index
    %173 = vector.load %arg2[%c240, %c0_93] : memref<736x16xf32, #tpu.memory_space<vmem>>, vector<16x8xf32>
    %cst_94 = arith.constant dense<0.000000e+00> : vector<16x512xf32>
    %174 = tpu.matmul %173, %172, %cst_94 {dimension_numbers = #tpu.dot_dimension_numbers<[1], [0], [0], [1], [0, 0, 1, 1], [], []>} : vector<16x8xf32>, vector<8x512xf32>, vector<16x512xf32> -> vector<16x512xf32>
    %175 = arith.addf %168, %174 : vector<16x512xf32>
    %c497_i32_95 = arith.constant 497 : i32
    %176 = tpu.dynamic_rotate %133 by %c497_i32_95 dim 1 : vector<8x512xf32>, i32 -> vector<8x512xf32>
    %c6_96 = arith.constant 6 : index
    %c0_97 = arith.constant 0 : index
    %177 = vector.load %arg5[%c6_96, %c0_97] : memref<18x512xf32, #tpu.memory_space<vmem>>, vector<1x512xf32>
    %178 = vector.broadcast %177 : vector<1x512xf32> to vector<8x512xf32>
    %179 = arith.mulf %176, %178 : vector<8x512xf32>
    %c256 = arith.constant 256 : index
    %c0_98 = arith.constant 0 : index
    %180 = vector.load %arg2[%c256, %c0_98] : memref<736x16xf32, #tpu.memory_space<vmem>>, vector<16x8xf32>
    %cst_99 = arith.constant dense<0.000000e+00> : vector<16x512xf32>
    %181 = tpu.matmul %180, %179, %cst_99 {dimension_numbers = #tpu.dot_dimension_numbers<[1], [0], [0], [1], [0, 0, 1, 1], [], []>} : vector<16x8xf32>, vector<8x512xf32>, vector<16x512xf32> -> vector<16x512xf32>
    %182 = arith.addf %175, %181 : vector<16x512xf32>
    %c496_i32_100 = arith.constant 496 : i32
    %183 = tpu.dynamic_rotate %133 by %c496_i32_100 dim 1 : vector<8x512xf32>, i32 -> vector<8x512xf32>
    %c7_101 = arith.constant 7 : index
    %c0_102 = arith.constant 0 : index
    %184 = vector.load %arg5[%c7_101, %c0_102] : memref<18x512xf32, #tpu.memory_space<vmem>>, vector<1x512xf32>
    %185 = vector.broadcast %184 : vector<1x512xf32> to vector<8x512xf32>
    %186 = arith.mulf %183, %185 : vector<8x512xf32>
    %c272 = arith.constant 272 : index
    %c0_103 = arith.constant 0 : index
    %187 = vector.load %arg2[%c272, %c0_103] : memref<736x16xf32, #tpu.memory_space<vmem>>, vector<16x8xf32>
    %cst_104 = arith.constant dense<0.000000e+00> : vector<16x512xf32>
    %188 = tpu.matmul %187, %186, %cst_104 {dimension_numbers = #tpu.dot_dimension_numbers<[1], [0], [0], [1], [0, 0, 1, 1], [], []>} : vector<16x8xf32>, vector<8x512xf32>, vector<16x512xf32> -> vector<16x512xf32>
    %189 = arith.addf %182, %188 : vector<16x512xf32>
    %c495_i32_105 = arith.constant 495 : i32
    %190 = tpu.dynamic_rotate %133 by %c495_i32_105 dim 1 : vector<8x512xf32>, i32 -> vector<8x512xf32>
    %c8_106 = arith.constant 8 : index
    %c0_107 = arith.constant 0 : index
    %191 = vector.load %arg5[%c8_106, %c0_107] : memref<18x512xf32, #tpu.memory_space<vmem>>, vector<1x512xf32>
    %192 = vector.broadcast %191 : vector<1x512xf32> to vector<8x512xf32>
    %193 = arith.mulf %190, %192 : vector<8x512xf32>
    %c288 = arith.constant 288 : index
    %c0_108 = arith.constant 0 : index
    %194 = vector.load %arg2[%c288, %c0_108] : memref<736x16xf32, #tpu.memory_space<vmem>>, vector<16x8xf32>
    %cst_109 = arith.constant dense<0.000000e+00> : vector<16x512xf32>
    %195 = tpu.matmul %194, %193, %cst_109 {dimension_numbers = #tpu.dot_dimension_numbers<[1], [0], [0], [1], [0, 0, 1, 1], [], []>} : vector<16x8xf32>, vector<8x512xf32>, vector<16x512xf32> -> vector<16x512xf32>
    %196 = arith.addf %189, %195 : vector<16x512xf32>
    %c32_110 = arith.constant 32 : index
    %c0_111 = arith.constant 0 : index
    %197 = vector.load %arg3[%c32_110, %c0_111] : memref<96x1xf32, #tpu.memory_space<vmem>>, vector<16x1xf32>
    %198 = vector.broadcast %197 : vector<16x1xf32> to vector<16x512xf32>
    %199 = arith.addf %196, %198 : vector<16x512xf32>
    %cst_112 = arith.constant 0.000000e+00 : f32
    %200 = vector.broadcast %cst_112 : f32 to vector<16x512xf32>
    %201 = arith.maximumf %199, %200 : vector<16x512xf32>
    %c17_i32_113 = arith.constant 17 : i32
    %202 = tpu.dynamic_rotate %201 by %c17_i32_113 dim 1 : vector<16x512xf32>, i32 -> vector<16x512xf32>
    %c0_114 = arith.constant 0 : index
    %c0_115 = arith.constant 0 : index
    %203 = vector.load %arg5[%c0_114, %c0_115] : memref<18x512xf32, #tpu.memory_space<vmem>>, vector<1x512xf32>
    %204 = vector.broadcast %203 : vector<1x512xf32> to vector<16x512xf32>
    %205 = arith.mulf %202, %204 : vector<16x512xf32>
    %c304 = arith.constant 304 : index
    %c0_116 = arith.constant 0 : index
    %206 = vector.load %arg2[%c304, %c0_116] : memref<736x16xf32, #tpu.memory_space<vmem>>, vector<16x16xf32>
    %cst_117 = arith.constant dense<0.000000e+00> : vector<16x512xf32>
    %207 = tpu.matmul %206, %205, %cst_117 {dimension_numbers = #tpu.dot_dimension_numbers<[1], [0], [0], [1], [0, 0, 1, 1], [], []>} : vector<16x16xf32>, vector<16x512xf32>, vector<16x512xf32> -> vector<16x512xf32>
    %c16_i32_118 = arith.constant 16 : i32
    %208 = tpu.dynamic_rotate %201 by %c16_i32_118 dim 1 : vector<16x512xf32>, i32 -> vector<16x512xf32>
    %c1_119 = arith.constant 1 : index
    %c0_120 = arith.constant 0 : index
    %209 = vector.load %arg5[%c1_119, %c0_120] : memref<18x512xf32, #tpu.memory_space<vmem>>, vector<1x512xf32>
    %210 = vector.broadcast %209 : vector<1x512xf32> to vector<16x512xf32>
    %211 = arith.mulf %208, %210 : vector<16x512xf32>
    %c320 = arith.constant 320 : index
    %c0_121 = arith.constant 0 : index
    %212 = vector.load %arg2[%c320, %c0_121] : memref<736x16xf32, #tpu.memory_space<vmem>>, vector<16x16xf32>
    %cst_122 = arith.constant dense<0.000000e+00> : vector<16x512xf32>
    %213 = tpu.matmul %212, %211, %cst_122 {dimension_numbers = #tpu.dot_dimension_numbers<[1], [0], [0], [1], [0, 0, 1, 1], [], []>} : vector<16x16xf32>, vector<16x512xf32>, vector<16x512xf32> -> vector<16x512xf32>
    %214 = arith.addf %207, %213 : vector<16x512xf32>
    %c15_i32_123 = arith.constant 15 : i32
    %215 = tpu.dynamic_rotate %201 by %c15_i32_123 dim 1 : vector<16x512xf32>, i32 -> vector<16x512xf32>
    %c2_124 = arith.constant 2 : index
    %c0_125 = arith.constant 0 : index
    %216 = vector.load %arg5[%c2_124, %c0_125] : memref<18x512xf32, #tpu.memory_space<vmem>>, vector<1x512xf32>
    %217 = vector.broadcast %216 : vector<1x512xf32> to vector<16x512xf32>
    %218 = arith.mulf %215, %217 : vector<16x512xf32>
    %c336 = arith.constant 336 : index
    %c0_126 = arith.constant 0 : index
    %219 = vector.load %arg2[%c336, %c0_126] : memref<736x16xf32, #tpu.memory_space<vmem>>, vector<16x16xf32>
    %cst_127 = arith.constant dense<0.000000e+00> : vector<16x512xf32>
    %220 = tpu.matmul %219, %218, %cst_127 {dimension_numbers = #tpu.dot_dimension_numbers<[1], [0], [0], [1], [0, 0, 1, 1], [], []>} : vector<16x16xf32>, vector<16x512xf32>, vector<16x512xf32> -> vector<16x512xf32>
    %221 = arith.addf %214, %220 : vector<16x512xf32>
    %c1_i32_128 = arith.constant 1 : i32
    %222 = tpu.dynamic_rotate %201 by %c1_i32_128 dim 1 : vector<16x512xf32>, i32 -> vector<16x512xf32>
    %c3_129 = arith.constant 3 : index
    %c0_130 = arith.constant 0 : index
    %223 = vector.load %arg5[%c3_129, %c0_130] : memref<18x512xf32, #tpu.memory_space<vmem>>, vector<1x512xf32>
    %224 = vector.broadcast %223 : vector<1x512xf32> to vector<16x512xf32>
    %225 = arith.mulf %222, %224 : vector<16x512xf32>
    %c352 = arith.constant 352 : index
    %c0_131 = arith.constant 0 : index
    %226 = vector.load %arg2[%c352, %c0_131] : memref<736x16xf32, #tpu.memory_space<vmem>>, vector<16x16xf32>
    %cst_132 = arith.constant dense<0.000000e+00> : vector<16x512xf32>
    %227 = tpu.matmul %226, %225, %cst_132 {dimension_numbers = #tpu.dot_dimension_numbers<[1], [0], [0], [1], [0, 0, 1, 1], [], []>} : vector<16x16xf32>, vector<16x512xf32>, vector<16x512xf32> -> vector<16x512xf32>
    %228 = arith.addf %221, %227 : vector<16x512xf32>
    %c368 = arith.constant 368 : index
    %c0_133 = arith.constant 0 : index
    %229 = vector.load %arg2[%c368, %c0_133] : memref<736x16xf32, #tpu.memory_space<vmem>>, vector<16x16xf32>
    %cst_134 = arith.constant dense<0.000000e+00> : vector<16x512xf32>
    %230 = tpu.matmul %229, %201, %cst_134 {dimension_numbers = #tpu.dot_dimension_numbers<[1], [0], [0], [1], [0, 0, 1, 1], [], []>} : vector<16x16xf32>, vector<16x512xf32>, vector<16x512xf32> -> vector<16x512xf32>
    %231 = arith.addf %228, %230 : vector<16x512xf32>
    %c511_i32_135 = arith.constant 511 : i32
    %232 = tpu.dynamic_rotate %201 by %c511_i32_135 dim 1 : vector<16x512xf32>, i32 -> vector<16x512xf32>
    %c5_136 = arith.constant 5 : index
    %c0_137 = arith.constant 0 : index
    %233 = vector.load %arg5[%c5_136, %c0_137] : memref<18x512xf32, #tpu.memory_space<vmem>>, vector<1x512xf32>
    %234 = vector.broadcast %233 : vector<1x512xf32> to vector<16x512xf32>
    %235 = arith.mulf %232, %234 : vector<16x512xf32>
    %c384 = arith.constant 384 : index
    %c0_138 = arith.constant 0 : index
    %236 = vector.load %arg2[%c384, %c0_138] : memref<736x16xf32, #tpu.memory_space<vmem>>, vector<16x16xf32>
    %cst_139 = arith.constant dense<0.000000e+00> : vector<16x512xf32>
    %237 = tpu.matmul %236, %235, %cst_139 {dimension_numbers = #tpu.dot_dimension_numbers<[1], [0], [0], [1], [0, 0, 1, 1], [], []>} : vector<16x16xf32>, vector<16x512xf32>, vector<16x512xf32> -> vector<16x512xf32>
    %238 = arith.addf %231, %237 : vector<16x512xf32>
    %c497_i32_140 = arith.constant 497 : i32
    %239 = tpu.dynamic_rotate %201 by %c497_i32_140 dim 1 : vector<16x512xf32>, i32 -> vector<16x512xf32>
    %c6_141 = arith.constant 6 : index
    %c0_142 = arith.constant 0 : index
    %240 = vector.load %arg5[%c6_141, %c0_142] : memref<18x512xf32, #tpu.memory_space<vmem>>, vector<1x512xf32>
    %241 = vector.broadcast %240 : vector<1x512xf32> to vector<16x512xf32>
    %242 = arith.mulf %239, %241 : vector<16x512xf32>
    %c400 = arith.constant 400 : index
    %c0_143 = arith.constant 0 : index
    %243 = vector.load %arg2[%c400, %c0_143] : memref<736x16xf32, #tpu.memory_space<vmem>>, vector<16x16xf32>
    %cst_144 = arith.constant dense<0.000000e+00> : vector<16x512xf32>
    %244 = tpu.matmul %243, %242, %cst_144 {dimension_numbers = #tpu.dot_dimension_numbers<[1], [0], [0], [1], [0, 0, 1, 1], [], []>} : vector<16x16xf32>, vector<16x512xf32>, vector<16x512xf32> -> vector<16x512xf32>
    %245 = arith.addf %238, %244 : vector<16x512xf32>
    %c496_i32_145 = arith.constant 496 : i32
    %246 = tpu.dynamic_rotate %201 by %c496_i32_145 dim 1 : vector<16x512xf32>, i32 -> vector<16x512xf32>
    %c7_146 = arith.constant 7 : index
    %c0_147 = arith.constant 0 : index
    %247 = vector.load %arg5[%c7_146, %c0_147] : memref<18x512xf32, #tpu.memory_space<vmem>>, vector<1x512xf32>
    %248 = vector.broadcast %247 : vector<1x512xf32> to vector<16x512xf32>
    %249 = arith.mulf %246, %248 : vector<16x512xf32>
    %c416 = arith.constant 416 : index
    %c0_148 = arith.constant 0 : index
    %250 = vector.load %arg2[%c416, %c0_148] : memref<736x16xf32, #tpu.memory_space<vmem>>, vector<16x16xf32>
    %cst_149 = arith.constant dense<0.000000e+00> : vector<16x512xf32>
    %251 = tpu.matmul %250, %249, %cst_149 {dimension_numbers = #tpu.dot_dimension_numbers<[1], [0], [0], [1], [0, 0, 1, 1], [], []>} : vector<16x16xf32>, vector<16x512xf32>, vector<16x512xf32> -> vector<16x512xf32>
    %252 = arith.addf %245, %251 : vector<16x512xf32>
    %c495_i32_150 = arith.constant 495 : i32
    %253 = tpu.dynamic_rotate %201 by %c495_i32_150 dim 1 : vector<16x512xf32>, i32 -> vector<16x512xf32>
    %c8_151 = arith.constant 8 : index
    %c0_152 = arith.constant 0 : index
    %254 = vector.load %arg5[%c8_151, %c0_152] : memref<18x512xf32, #tpu.memory_space<vmem>>, vector<1x512xf32>
    %255 = vector.broadcast %254 : vector<1x512xf32> to vector<16x512xf32>
    %256 = arith.mulf %253, %255 : vector<16x512xf32>
    %c432 = arith.constant 432 : index
    %c0_153 = arith.constant 0 : index
    %257 = vector.load %arg2[%c432, %c0_153] : memref<736x16xf32, #tpu.memory_space<vmem>>, vector<16x16xf32>
    %cst_154 = arith.constant dense<0.000000e+00> : vector<16x512xf32>
    %258 = tpu.matmul %257, %256, %cst_154 {dimension_numbers = #tpu.dot_dimension_numbers<[1], [0], [0], [1], [0, 0, 1, 1], [], []>} : vector<16x16xf32>, vector<16x512xf32>, vector<16x512xf32> -> vector<16x512xf32>
    %259 = arith.addf %252, %258 : vector<16x512xf32>
    %c48_155 = arith.constant 48 : index
    %c0_156 = arith.constant 0 : index
    %260 = vector.load %arg3[%c48_155, %c0_156] : memref<96x1xf32, #tpu.memory_space<vmem>>, vector<16x1xf32>
    %261 = vector.broadcast %260 : vector<16x1xf32> to vector<16x512xf32>
    %262 = arith.addf %259, %261 : vector<16x512xf32>
    %263 = arith.addf %262, %138 : vector<16x512xf32>
    %cst_157 = arith.constant 0.000000e+00 : f32
    %264 = vector.broadcast %cst_157 : f32 to vector<16x512xf32>
    %265 = arith.maximumf %263, %264 : vector<16x512xf32>
    %c17_i32_158 = arith.constant 17 : i32
    %266 = tpu.dynamic_rotate %265 by %c17_i32_158 dim 1 : vector<16x512xf32>, i32 -> vector<16x512xf32>
    %c0_159 = arith.constant 0 : index
    %c0_160 = arith.constant 0 : index
    %267 = vector.load %arg5[%c0_159, %c0_160] : memref<18x512xf32, #tpu.memory_space<vmem>>, vector<1x512xf32>
    %268 = vector.broadcast %267 : vector<1x512xf32> to vector<16x512xf32>
    %269 = arith.mulf %266, %268 : vector<16x512xf32>
    %c448 = arith.constant 448 : index
    %c0_161 = arith.constant 0 : index
    %270 = vector.load %arg2[%c448, %c0_161] : memref<736x16xf32, #tpu.memory_space<vmem>>, vector<16x16xf32>
    %cst_162 = arith.constant dense<0.000000e+00> : vector<16x512xf32>
    %271 = tpu.matmul %270, %269, %cst_162 {dimension_numbers = #tpu.dot_dimension_numbers<[1], [0], [0], [1], [0, 0, 1, 1], [], []>} : vector<16x16xf32>, vector<16x512xf32>, vector<16x512xf32> -> vector<16x512xf32>
    %c16_i32_163 = arith.constant 16 : i32
    %272 = tpu.dynamic_rotate %265 by %c16_i32_163 dim 1 : vector<16x512xf32>, i32 -> vector<16x512xf32>
    %c1_164 = arith.constant 1 : index
    %c0_165 = arith.constant 0 : index
    %273 = vector.load %arg5[%c1_164, %c0_165] : memref<18x512xf32, #tpu.memory_space<vmem>>, vector<1x512xf32>
    %274 = vector.broadcast %273 : vector<1x512xf32> to vector<16x512xf32>
    %275 = arith.mulf %272, %274 : vector<16x512xf32>
    %c464 = arith.constant 464 : index
    %c0_166 = arith.constant 0 : index
    %276 = vector.load %arg2[%c464, %c0_166] : memref<736x16xf32, #tpu.memory_space<vmem>>, vector<16x16xf32>
    %cst_167 = arith.constant dense<0.000000e+00> : vector<16x512xf32>
    %277 = tpu.matmul %276, %275, %cst_167 {dimension_numbers = #tpu.dot_dimension_numbers<[1], [0], [0], [1], [0, 0, 1, 1], [], []>} : vector<16x16xf32>, vector<16x512xf32>, vector<16x512xf32> -> vector<16x512xf32>
    %278 = arith.addf %271, %277 : vector<16x512xf32>
    %c15_i32_168 = arith.constant 15 : i32
    %279 = tpu.dynamic_rotate %265 by %c15_i32_168 dim 1 : vector<16x512xf32>, i32 -> vector<16x512xf32>
    %c2_169 = arith.constant 2 : index
    %c0_170 = arith.constant 0 : index
    %280 = vector.load %arg5[%c2_169, %c0_170] : memref<18x512xf32, #tpu.memory_space<vmem>>, vector<1x512xf32>
    %281 = vector.broadcast %280 : vector<1x512xf32> to vector<16x512xf32>
    %282 = arith.mulf %279, %281 : vector<16x512xf32>
    %c480 = arith.constant 480 : index
    %c0_171 = arith.constant 0 : index
    %283 = vector.load %arg2[%c480, %c0_171] : memref<736x16xf32, #tpu.memory_space<vmem>>, vector<16x16xf32>
    %cst_172 = arith.constant dense<0.000000e+00> : vector<16x512xf32>
    %284 = tpu.matmul %283, %282, %cst_172 {dimension_numbers = #tpu.dot_dimension_numbers<[1], [0], [0], [1], [0, 0, 1, 1], [], []>} : vector<16x16xf32>, vector<16x512xf32>, vector<16x512xf32> -> vector<16x512xf32>
    %285 = arith.addf %278, %284 : vector<16x512xf32>
    %c1_i32_173 = arith.constant 1 : i32
    %286 = tpu.dynamic_rotate %265 by %c1_i32_173 dim 1 : vector<16x512xf32>, i32 -> vector<16x512xf32>
    %c3_174 = arith.constant 3 : index
    %c0_175 = arith.constant 0 : index
    %287 = vector.load %arg5[%c3_174, %c0_175] : memref<18x512xf32, #tpu.memory_space<vmem>>, vector<1x512xf32>
    %288 = vector.broadcast %287 : vector<1x512xf32> to vector<16x512xf32>
    %289 = arith.mulf %286, %288 : vector<16x512xf32>
    %c496 = arith.constant 496 : index
    %c0_176 = arith.constant 0 : index
    %290 = vector.load %arg2[%c496, %c0_176] : memref<736x16xf32, #tpu.memory_space<vmem>>, vector<16x16xf32>
    %cst_177 = arith.constant dense<0.000000e+00> : vector<16x512xf32>
    %291 = tpu.matmul %290, %289, %cst_177 {dimension_numbers = #tpu.dot_dimension_numbers<[1], [0], [0], [1], [0, 0, 1, 1], [], []>} : vector<16x16xf32>, vector<16x512xf32>, vector<16x512xf32> -> vector<16x512xf32>
    %292 = arith.addf %285, %291 : vector<16x512xf32>
    %c512 = arith.constant 512 : index
    %c0_178 = arith.constant 0 : index
    %293 = vector.load %arg2[%c512, %c0_178] : memref<736x16xf32, #tpu.memory_space<vmem>>, vector<16x16xf32>
    %cst_179 = arith.constant dense<0.000000e+00> : vector<16x512xf32>
    %294 = tpu.matmul %293, %265, %cst_179 {dimension_numbers = #tpu.dot_dimension_numbers<[1], [0], [0], [1], [0, 0, 1, 1], [], []>} : vector<16x16xf32>, vector<16x512xf32>, vector<16x512xf32> -> vector<16x512xf32>
    %295 = arith.addf %292, %294 : vector<16x512xf32>
    %c511_i32_180 = arith.constant 511 : i32
    %296 = tpu.dynamic_rotate %265 by %c511_i32_180 dim 1 : vector<16x512xf32>, i32 -> vector<16x512xf32>
    %c5_181 = arith.constant 5 : index
    %c0_182 = arith.constant 0 : index
    %297 = vector.load %arg5[%c5_181, %c0_182] : memref<18x512xf32, #tpu.memory_space<vmem>>, vector<1x512xf32>
    %298 = vector.broadcast %297 : vector<1x512xf32> to vector<16x512xf32>
    %299 = arith.mulf %296, %298 : vector<16x512xf32>
    %c528 = arith.constant 528 : index
    %c0_183 = arith.constant 0 : index
    %300 = vector.load %arg2[%c528, %c0_183] : memref<736x16xf32, #tpu.memory_space<vmem>>, vector<16x16xf32>
    %cst_184 = arith.constant dense<0.000000e+00> : vector<16x512xf32>
    %301 = tpu.matmul %300, %299, %cst_184 {dimension_numbers = #tpu.dot_dimension_numbers<[1], [0], [0], [1], [0, 0, 1, 1], [], []>} : vector<16x16xf32>, vector<16x512xf32>, vector<16x512xf32> -> vector<16x512xf32>
    %302 = arith.addf %295, %301 : vector<16x512xf32>
    %c497_i32_185 = arith.constant 497 : i32
    %303 = tpu.dynamic_rotate %265 by %c497_i32_185 dim 1 : vector<16x512xf32>, i32 -> vector<16x512xf32>
    %c6_186 = arith.constant 6 : index
    %c0_187 = arith.constant 0 : index
    %304 = vector.load %arg5[%c6_186, %c0_187] : memref<18x512xf32, #tpu.memory_space<vmem>>, vector<1x512xf32>
    %305 = vector.broadcast %304 : vector<1x512xf32> to vector<16x512xf32>
    %306 = arith.mulf %303, %305 : vector<16x512xf32>
    %c544 = arith.constant 544 : index
    %c0_188 = arith.constant 0 : index
    %307 = vector.load %arg2[%c544, %c0_188] : memref<736x16xf32, #tpu.memory_space<vmem>>, vector<16x16xf32>
    %cst_189 = arith.constant dense<0.000000e+00> : vector<16x512xf32>
    %308 = tpu.matmul %307, %306, %cst_189 {dimension_numbers = #tpu.dot_dimension_numbers<[1], [0], [0], [1], [0, 0, 1, 1], [], []>} : vector<16x16xf32>, vector<16x512xf32>, vector<16x512xf32> -> vector<16x512xf32>
    %309 = arith.addf %302, %308 : vector<16x512xf32>
    %c496_i32_190 = arith.constant 496 : i32
    %310 = tpu.dynamic_rotate %265 by %c496_i32_190 dim 1 : vector<16x512xf32>, i32 -> vector<16x512xf32>
    %c7_191 = arith.constant 7 : index
    %c0_192 = arith.constant 0 : index
    %311 = vector.load %arg5[%c7_191, %c0_192] : memref<18x512xf32, #tpu.memory_space<vmem>>, vector<1x512xf32>
    %312 = vector.broadcast %311 : vector<1x512xf32> to vector<16x512xf32>
    %313 = arith.mulf %310, %312 : vector<16x512xf32>
    %c560 = arith.constant 560 : index
    %c0_193 = arith.constant 0 : index
    %314 = vector.load %arg2[%c560, %c0_193] : memref<736x16xf32, #tpu.memory_space<vmem>>, vector<16x16xf32>
    %cst_194 = arith.constant dense<0.000000e+00> : vector<16x512xf32>
    %315 = tpu.matmul %314, %313, %cst_194 {dimension_numbers = #tpu.dot_dimension_numbers<[1], [0], [0], [1], [0, 0, 1, 1], [], []>} : vector<16x16xf32>, vector<16x512xf32>, vector<16x512xf32> -> vector<16x512xf32>
    %316 = arith.addf %309, %315 : vector<16x512xf32>
    %c495_i32_195 = arith.constant 495 : i32
    %317 = tpu.dynamic_rotate %265 by %c495_i32_195 dim 1 : vector<16x512xf32>, i32 -> vector<16x512xf32>
    %c8_196 = arith.constant 8 : index
    %c0_197 = arith.constant 0 : index
    %318 = vector.load %arg5[%c8_196, %c0_197] : memref<18x512xf32, #tpu.memory_space<vmem>>, vector<1x512xf32>
    %319 = vector.broadcast %318 : vector<1x512xf32> to vector<16x512xf32>
    %320 = arith.mulf %317, %319 : vector<16x512xf32>
    %c576 = arith.constant 576 : index
    %c0_198 = arith.constant 0 : index
    %321 = vector.load %arg2[%c576, %c0_198] : memref<736x16xf32, #tpu.memory_space<vmem>>, vector<16x16xf32>
    %cst_199 = arith.constant dense<0.000000e+00> : vector<16x512xf32>
    %322 = tpu.matmul %321, %320, %cst_199 {dimension_numbers = #tpu.dot_dimension_numbers<[1], [0], [0], [1], [0, 0, 1, 1], [], []>} : vector<16x16xf32>, vector<16x512xf32>, vector<16x512xf32> -> vector<16x512xf32>
    %323 = arith.addf %316, %322 : vector<16x512xf32>
    %c64_200 = arith.constant 64 : index
    %c0_201 = arith.constant 0 : index
    %324 = vector.load %arg3[%c64_200, %c0_201] : memref<96x1xf32, #tpu.memory_space<vmem>>, vector<16x1xf32>
    %325 = vector.broadcast %324 : vector<16x1xf32> to vector<16x512xf32>
    %326 = arith.addf %323, %325 : vector<16x512xf32>
    %cst_202 = arith.constant 0.000000e+00 : f32
    %327 = vector.broadcast %cst_202 : f32 to vector<16x512xf32>
    %328 = arith.maximumf %326, %327 : vector<16x512xf32>
    %c17_i32_203 = arith.constant 17 : i32
    %329 = tpu.dynamic_rotate %328 by %c17_i32_203 dim 1 : vector<16x512xf32>, i32 -> vector<16x512xf32>
    %c0_204 = arith.constant 0 : index
    %c0_205 = arith.constant 0 : index
    %330 = vector.load %arg5[%c0_204, %c0_205] : memref<18x512xf32, #tpu.memory_space<vmem>>, vector<1x512xf32>
    %331 = vector.broadcast %330 : vector<1x512xf32> to vector<16x512xf32>
    %332 = arith.mulf %329, %331 : vector<16x512xf32>
    %c592 = arith.constant 592 : index
    %c0_206 = arith.constant 0 : index
    %333 = vector.load %arg2[%c592, %c0_206] : memref<736x16xf32, #tpu.memory_space<vmem>>, vector<16x16xf32>
    %cst_207 = arith.constant dense<0.000000e+00> : vector<16x512xf32>
    %334 = tpu.matmul %333, %332, %cst_207 {dimension_numbers = #tpu.dot_dimension_numbers<[1], [0], [0], [1], [0, 0, 1, 1], [], []>} : vector<16x16xf32>, vector<16x512xf32>, vector<16x512xf32> -> vector<16x512xf32>
    %c16_i32_208 = arith.constant 16 : i32
    %335 = tpu.dynamic_rotate %328 by %c16_i32_208 dim 1 : vector<16x512xf32>, i32 -> vector<16x512xf32>
    %c1_209 = arith.constant 1 : index
    %c0_210 = arith.constant 0 : index
    %336 = vector.load %arg5[%c1_209, %c0_210] : memref<18x512xf32, #tpu.memory_space<vmem>>, vector<1x512xf32>
    %337 = vector.broadcast %336 : vector<1x512xf32> to vector<16x512xf32>
    %338 = arith.mulf %335, %337 : vector<16x512xf32>
    %c608 = arith.constant 608 : index
    %c0_211 = arith.constant 0 : index
    %339 = vector.load %arg2[%c608, %c0_211] : memref<736x16xf32, #tpu.memory_space<vmem>>, vector<16x16xf32>
    %cst_212 = arith.constant dense<0.000000e+00> : vector<16x512xf32>
    %340 = tpu.matmul %339, %338, %cst_212 {dimension_numbers = #tpu.dot_dimension_numbers<[1], [0], [0], [1], [0, 0, 1, 1], [], []>} : vector<16x16xf32>, vector<16x512xf32>, vector<16x512xf32> -> vector<16x512xf32>
    %341 = arith.addf %334, %340 : vector<16x512xf32>
    %c15_i32_213 = arith.constant 15 : i32
    %342 = tpu.dynamic_rotate %328 by %c15_i32_213 dim 1 : vector<16x512xf32>, i32 -> vector<16x512xf32>
    %c2_214 = arith.constant 2 : index
    %c0_215 = arith.constant 0 : index
    %343 = vector.load %arg5[%c2_214, %c0_215] : memref<18x512xf32, #tpu.memory_space<vmem>>, vector<1x512xf32>
    %344 = vector.broadcast %343 : vector<1x512xf32> to vector<16x512xf32>
    %345 = arith.mulf %342, %344 : vector<16x512xf32>
    %c624 = arith.constant 624 : index
    %c0_216 = arith.constant 0 : index
    %346 = vector.load %arg2[%c624, %c0_216] : memref<736x16xf32, #tpu.memory_space<vmem>>, vector<16x16xf32>
    %cst_217 = arith.constant dense<0.000000e+00> : vector<16x512xf32>
    %347 = tpu.matmul %346, %345, %cst_217 {dimension_numbers = #tpu.dot_dimension_numbers<[1], [0], [0], [1], [0, 0, 1, 1], [], []>} : vector<16x16xf32>, vector<16x512xf32>, vector<16x512xf32> -> vector<16x512xf32>
    %348 = arith.addf %341, %347 : vector<16x512xf32>
    %c1_i32_218 = arith.constant 1 : i32
    %349 = tpu.dynamic_rotate %328 by %c1_i32_218 dim 1 : vector<16x512xf32>, i32 -> vector<16x512xf32>
    %c3_219 = arith.constant 3 : index
    %c0_220 = arith.constant 0 : index
    %350 = vector.load %arg5[%c3_219, %c0_220] : memref<18x512xf32, #tpu.memory_space<vmem>>, vector<1x512xf32>
    %351 = vector.broadcast %350 : vector<1x512xf32> to vector<16x512xf32>
    %352 = arith.mulf %349, %351 : vector<16x512xf32>
    %c640 = arith.constant 640 : index
    %c0_221 = arith.constant 0 : index
    %353 = vector.load %arg2[%c640, %c0_221] : memref<736x16xf32, #tpu.memory_space<vmem>>, vector<16x16xf32>
    %cst_222 = arith.constant dense<0.000000e+00> : vector<16x512xf32>
    %354 = tpu.matmul %353, %352, %cst_222 {dimension_numbers = #tpu.dot_dimension_numbers<[1], [0], [0], [1], [0, 0, 1, 1], [], []>} : vector<16x16xf32>, vector<16x512xf32>, vector<16x512xf32> -> vector<16x512xf32>
    %355 = arith.addf %348, %354 : vector<16x512xf32>
    %c656 = arith.constant 656 : index
    %c0_223 = arith.constant 0 : index
    %356 = vector.load %arg2[%c656, %c0_223] : memref<736x16xf32, #tpu.memory_space<vmem>>, vector<16x16xf32>
    %cst_224 = arith.constant dense<0.000000e+00> : vector<16x512xf32>
    %357 = tpu.matmul %356, %328, %cst_224 {dimension_numbers = #tpu.dot_dimension_numbers<[1], [0], [0], [1], [0, 0, 1, 1], [], []>} : vector<16x16xf32>, vector<16x512xf32>, vector<16x512xf32> -> vector<16x512xf32>
    %358 = arith.addf %355, %357 : vector<16x512xf32>
    %c511_i32_225 = arith.constant 511 : i32
    %359 = tpu.dynamic_rotate %328 by %c511_i32_225 dim 1 : vector<16x512xf32>, i32 -> vector<16x512xf32>
    %c5_226 = arith.constant 5 : index
    %c0_227 = arith.constant 0 : index
    %360 = vector.load %arg5[%c5_226, %c0_227] : memref<18x512xf32, #tpu.memory_space<vmem>>, vector<1x512xf32>
    %361 = vector.broadcast %360 : vector<1x512xf32> to vector<16x512xf32>
    %362 = arith.mulf %359, %361 : vector<16x512xf32>
    %c672 = arith.constant 672 : index
    %c0_228 = arith.constant 0 : index
    %363 = vector.load %arg2[%c672, %c0_228] : memref<736x16xf32, #tpu.memory_space<vmem>>, vector<16x16xf32>
    %cst_229 = arith.constant dense<0.000000e+00> : vector<16x512xf32>
    %364 = tpu.matmul %363, %362, %cst_229 {dimension_numbers = #tpu.dot_dimension_numbers<[1], [0], [0], [1], [0, 0, 1, 1], [], []>} : vector<16x16xf32>, vector<16x512xf32>, vector<16x512xf32> -> vector<16x512xf32>
    %365 = arith.addf %358, %364 : vector<16x512xf32>
    %c497_i32_230 = arith.constant 497 : i32
    %366 = tpu.dynamic_rotate %328 by %c497_i32_230 dim 1 : vector<16x512xf32>, i32 -> vector<16x512xf32>
    %c6_231 = arith.constant 6 : index
    %c0_232 = arith.constant 0 : index
    %367 = vector.load %arg5[%c6_231, %c0_232] : memref<18x512xf32, #tpu.memory_space<vmem>>, vector<1x512xf32>
    %368 = vector.broadcast %367 : vector<1x512xf32> to vector<16x512xf32>
    %369 = arith.mulf %366, %368 : vector<16x512xf32>
    %c688 = arith.constant 688 : index
    %c0_233 = arith.constant 0 : index
    %370 = vector.load %arg2[%c688, %c0_233] : memref<736x16xf32, #tpu.memory_space<vmem>>, vector<16x16xf32>
    %cst_234 = arith.constant dense<0.000000e+00> : vector<16x512xf32>
    %371 = tpu.matmul %370, %369, %cst_234 {dimension_numbers = #tpu.dot_dimension_numbers<[1], [0], [0], [1], [0, 0, 1, 1], [], []>} : vector<16x16xf32>, vector<16x512xf32>, vector<16x512xf32> -> vector<16x512xf32>
    %372 = arith.addf %365, %371 : vector<16x512xf32>
    %c496_i32_235 = arith.constant 496 : i32
    %373 = tpu.dynamic_rotate %328 by %c496_i32_235 dim 1 : vector<16x512xf32>, i32 -> vector<16x512xf32>
    %c7_236 = arith.constant 7 : index
    %c0_237 = arith.constant 0 : index
    %374 = vector.load %arg5[%c7_236, %c0_237] : memref<18x512xf32, #tpu.memory_space<vmem>>, vector<1x512xf32>
    %375 = vector.broadcast %374 : vector<1x512xf32> to vector<16x512xf32>
    %376 = arith.mulf %373, %375 : vector<16x512xf32>
    %c704 = arith.constant 704 : index
    %c0_238 = arith.constant 0 : index
    %377 = vector.load %arg2[%c704, %c0_238] : memref<736x16xf32, #tpu.memory_space<vmem>>, vector<16x16xf32>
    %cst_239 = arith.constant dense<0.000000e+00> : vector<16x512xf32>
    %378 = tpu.matmul %377, %376, %cst_239 {dimension_numbers = #tpu.dot_dimension_numbers<[1], [0], [0], [1], [0, 0, 1, 1], [], []>} : vector<16x16xf32>, vector<16x512xf32>, vector<16x512xf32> -> vector<16x512xf32>
    %379 = arith.addf %372, %378 : vector<16x512xf32>
    %c495_i32_240 = arith.constant 495 : i32
    %380 = tpu.dynamic_rotate %328 by %c495_i32_240 dim 1 : vector<16x512xf32>, i32 -> vector<16x512xf32>
    %c8_241 = arith.constant 8 : index
    %c0_242 = arith.constant 0 : index
    %381 = vector.load %arg5[%c8_241, %c0_242] : memref<18x512xf32, #tpu.memory_space<vmem>>, vector<1x512xf32>
    %382 = vector.broadcast %381 : vector<1x512xf32> to vector<16x512xf32>
    %383 = arith.mulf %380, %382 : vector<16x512xf32>
    %c720 = arith.constant 720 : index
    %c0_243 = arith.constant 0 : index
    %384 = vector.load %arg2[%c720, %c0_243] : memref<736x16xf32, #tpu.memory_space<vmem>>, vector<16x16xf32>
    %cst_244 = arith.constant dense<0.000000e+00> : vector<16x512xf32>
    %385 = tpu.matmul %384, %383, %cst_244 {dimension_numbers = #tpu.dot_dimension_numbers<[1], [0], [0], [1], [0, 0, 1, 1], [], []>} : vector<16x16xf32>, vector<16x512xf32>, vector<16x512xf32> -> vector<16x512xf32>
    %386 = arith.addf %379, %385 : vector<16x512xf32>
    %c80_245 = arith.constant 80 : index
    %c0_246 = arith.constant 0 : index
    %387 = vector.load %arg3[%c80_245, %c0_246] : memref<96x1xf32, #tpu.memory_space<vmem>>, vector<16x1xf32>
    %388 = vector.broadcast %387 : vector<16x1xf32> to vector<16x512xf32>
    %389 = arith.addf %386, %388 : vector<16x512xf32>
    %390 = arith.addf %389, %265 : vector<16x512xf32>
    %cst_247 = arith.constant 0.000000e+00 : f32
    %391 = vector.broadcast %cst_247 : f32 to vector<16x512xf32>
    %392 = arith.maximumf %390, %391 : vector<16x512xf32>
    %c0_248 = arith.constant 0 : index
    %c0_249 = arith.constant 0 : index
    %393 = vector.load %arg4[%c0_248, %c0_249] : memref<256x1024xf32, #tpu.memory_space<vmem>>, vector<256x1024xf32>
    %394 = vector.extract_strided_slice %392 {offsets = [0, 0], sizes = [16, 256], strides = [1, 1]} : vector<16x512xf32> to vector<16x256xf32>
    %cst_250 = arith.constant dense<0.000000e+00> : vector<16x1024xf32>
    %395 = tpu.matmul %394, %393, %cst_250 {dimension_numbers = #tpu.dot_dimension_numbers<[1], [0], [0], [1], [0, 0, 1, 1], [], []>} : vector<16x256xf32>, vector<256x1024xf32>, vector<16x1024xf32> -> vector<16x1024xf32>
    %c0_251 = arith.constant 0 : index
    %c0_252 = arith.constant 0 : index
    %396 = vector.load %arg6[%c0_251, %c0_252] : memref<16x2048xf32, #tpu.memory_space<vmem>>, vector<16x1024xf32>
    tpu.vector_store %arg6[%c0_251, %c0_252], %395 {strides = array<i32>} : memref<16x2048xf32, #tpu.memory_space<vmem>>, vector<16x1024xf32>,
    %397 = vector.extract_strided_slice %392 {offsets = [0, 256], sizes = [16, 256], strides = [1, 1]} : vector<16x512xf32> to vector<16x256xf32>
    %cst_253 = arith.constant dense<0.000000e+00> : vector<16x1024xf32>
    %398 = tpu.matmul %397, %393, %cst_253 {dimension_numbers = #tpu.dot_dimension_numbers<[1], [0], [0], [1], [0, 0, 1, 1], [], []>} : vector<16x256xf32>, vector<256x1024xf32>, vector<16x1024xf32> -> vector<16x1024xf32>
    %c0_254 = arith.constant 0 : index
    %c1024 = arith.constant 1024 : index
    %399 = vector.load %arg6[%c0_254, %c1024] : memref<16x2048xf32, #tpu.memory_space<vmem>>, vector<16x1024xf32>
    tpu.vector_store %arg6[%c0_254, %c1024], %398 {strides = array<i32>} : memref<16x2048xf32, #tpu.memory_space<vmem>>, vector<16x1024xf32>,
    return
  }
  func.func @transform_0(%arg0: i32) -> (i32, i32) {
    %c0_i32 = arith.constant 0 : i32
    %c0_i32_0 = arith.constant 0 : i32
    return %c0_i32, %arg0 : i32, i32
  }
  func.func @transform_1(%arg0: i32) -> (i32, i32) {
    %c0_i32 = arith.constant 0 : i32
    %c0_i32_0 = arith.constant 0 : i32
    %c0_i32_1 = arith.constant 0 : i32
    return %c0_i32, %c0_i32_0 : i32, i32
  }
  func.func @transform_2(%arg0: i32) -> (i32, i32) {
    %c0_i32 = arith.constant 0 : i32
    %c0_i32_0 = arith.constant 0 : i32
    %c0_i32_1 = arith.constant 0 : i32
    return %c0_i32, %c0_i32_0 : i32, i32
  }
  func.func @transform_3(%arg0: i32) -> (i32, i32) {
    %c0_i32 = arith.constant 0 : i32
    %c0_i32_0 = arith.constant 0 : i32
    %c0_i32_1 = arith.constant 0 : i32
    return %c0_i32, %c0_i32_0 : i32, i32
  }
  func.func @transform_4(%arg0: i32) -> (i32, i32) {
    %c0_i32 = arith.constant 0 : i32
    %c0_i32_0 = arith.constant 0 : i32
    %c0_i32_1 = arith.constant 0 : i32
    return %c0_i32, %c0_i32_0 : i32, i32
  }
  func.func @transform_5(%arg0: i32) -> (i32, i32) {
    %c0_i32 = arith.constant 0 : i32
    %c0_i32_0 = arith.constant 0 : i32
    return %c0_i32, %arg0 : i32, i32
  }
}

</mosaic_0001>

<bundles_post_ra>
// kernel: tpu_custom_call.1
= control target key start
LH: loop header
LB: loop body
LE: loop exit
PB: predicated region body
PF: predicated region fallthrough
CT: control target
= control target key end

     0   :  { %10 = vsyncpa [#allocation3], 0  ;;  %s16815_s0 = inlined_call_operand.vmem [shape: f32[4,512], index: 0, kind: input, shape index: {}]   ;;  %s16816_s1 = inlined_call_operand.vmem [shape: f32[736,16], index: 1, kind: input, shape index: {}]   ;;  %s16817_s2 = inlined_call_operand.vmem [shape: f32[96,1], index: 2, kind: input, shape index: {}]   ;;  %s16818_s3 = inlined_call_operand.hbm [shape: f32[256,1024], index: 3, kind: input, shape index: {}]   ;;  %s16819_s4 = inlined_call_operand.vmem [shape: f32[18,512], index: 4, kind: input, shape index: {}]   ;;  %s16820_s5 = inlined_call_operand.hbm [shape: f32[16,2048], index: 5, kind: output, shape index: {}]  }
   0x1   :  { %11 = vsyncpa [#allocation4], 0  ;;  %s13214_s18 = smov [#allocation2]   ;;  %s13166_s22 = scalar_lea.hbm %s16818_s3, 32768 }
   0x2   :  { %s23_s19 = sshll.u32 %s13214_s18, 4  ;;  %p13167_p0 = scmp.ne.s32.totalorder %s16818_s3, %s13166_s22  ;;  %s24_s19 = int_to_ptr.vmem [resolvable:$true] %s23_s19 }
   0x3   :  { %p13170_p1 = scmp.lt.u32.totalorder %s13166_s22, %s16818_s3 }
   0x5   :  { %p13172_p2 = pnand %p13170_p1, %p13167_p0 }
   0x7   :  { %13175 = shalt.err (!%p13172_p2)
}
   0x8   :  { %s13176_s27 = scalar_lea.vmem %s24_s19, 32768  ;;  %p13181_p4 = scmp.lt.s32.totalorder %s24_s19, %s24_s19 }
   0x9   :  { %p13177_p3 = scmp.ne.s32.totalorder %s24_s19, %s13176_s27  ;;  %p13182_p5 = scmp.lt.s32.totalorder %s13176_s27, %s13176_s27 }
   0xb   :  { %p13183_p6 = por %p13182_p5, %p13181_p4 }
   0xd   :  { %p13184_p7 = pnand %p13183_p6, %p13177_p3 }
   0xf   :  { %13187 = shalt.err (!%p13184_p7)
}
  0x10   :  { %s13215_s28 = smov 1024   ;;  %s13216_s29 = smov 64  }
  0x11   :  { %29 = dma.hbm_to_vmem [thread:$0]  %s16818_s3, 32768, %s24_s19, [#allocation3], %s13215_s28, %s13215_s28, %s13216_s29  }
  0x12   :  { %13210 = dma.done.wait [#allocation3], 32768  }
  0x13   :  { %13211 = vsyncadd [#allocation3], 4294934528  ;;  %v16821_v0 = vmov 0.0   ;;  %v13285_v1 = vld [vmem:[%s16815_s0 + $0x8] sm:$0xff]  ;;  %v13290_v2 = vld [vmem:[%s16815_s0] sm:$0xff]  ;;  %s13218_s11 = smov 16   ;;  %v51_v5 = vlaneseq }
  0x14   :  { %207 = vmatprep.mubr.f32.mxu0 %v16821_v0  ;;  %278 = vmatprep.mubr.f32.mxu1 %v16821_v0  ;;  %v13298_v3 = vcombine.high %v13285_v1, %v13285_v1  ;;  %v13302_v4 = vcombine.high %v13290_v2, %v13290_v2  ;;  %s13219_s0 = smov 17   ;;  %s13220_s3 = smov 15   ;;  %v11795_v9 = vld [vmem:[%s16819_s4 + $0x1] ss:$8 sm:$0xf]  ;;  %vm130_vm1 = vcmask 1043456  }
  0x15   :  { %89 = vrot.lane.b32.xlu1 %v13285_v1, %s13218_s11  ;;  %85 = vrot.lane.b32.xlu0 %v13290_v2, %s13218_s11  ;;  %s13221_s12 = smov 1   ;;  %s13222_s13 = smov 127   ;;  %v61_v6 = vshrl.u32 %v51_v5, 7  ;;  %v13388_v7 = vand.u32 127, %v51_v5  ;;  %v125_v31 = vld [vmem:[%s16816_s1 + $0x8] sm:$0xff]  ;;  %vm126_vm3 = vcmask 31744  }
  0x16   :  { %s13223_s14 = smov 113   ;;  %s13224_s15 = smov 112   ;;  %v58_v16 = vld [vmem:[%s16819_s4] ss:$8 sm:$0xf]  ;;  %v13234_v51 = vmov 0  }
  0x17   :  { %s13225_s16 = smov 111   ;;  %s13226_s17 = smov 32   ;;  %v13390_v8 = vsub.s32 3, %v61_v6  ;;  %v13396_v10 = vsub.s32 1, %v61_v6  ;;  %v13399_v11 = vsub.s32 0, %v61_v6  ;;  %v13401_v12 = vsub.s32 2, %v61_v6  ;;  %13162 = vset.pattern.permute.xlu0 %v13234_v51  ;;  %13163 = vset.pattern.permute.xlu1 %v13234_v51 }
  0x18   :  { %s13227_s18 = smov 34   ;;  %s13228_s19 = smov 30   ;;  %vm93_vm0 = vcmp.lt.s32.totalorder %v13388_v7, 16  ;;  %vm53_vm2 = vcmp.lt.s32.totalorder %v13388_v7, 17  ;;  %vm450_vm4 = vcmp.lt.s32.totalorder %v13388_v7, 15  ;;  %v1812_v49 = vld [vmem:[%s16817_s2] sm:$0xff] }
  0x19   :  { %91 = vrot.lane.b32.xlu1 %v13298_v3, %s13218_s11  ;;  %87 = vrot.lane.b32.xlu0 %v13302_v4, %s13218_s11  ;;  %s13229_s20 = smov 2   ;;  %s13230_s21 = smov 126   ;;  %v13404_v15 = vrot.slane %v11795_v9, %v13390_v8  ;;  %v13411_v17 = vrot.slane %v11795_v9, %v13396_v10  ;;  %v13414_v18 = vrot.slane %v11795_v9, %v13399_v11  ;;  %v11808_v39 = vld [vmem:[%s16819_s4 + $0x2] ss:$8 sm:$0xf]  ;;  %vm652_vm5 = vcmp.lt.s32.totalorder %v13388_v7, 1 }
  0x1a   :  { %s13231_s22 = smov 98   ;;  %s13232_s23 = smov 96   ;;  %v13417_v19 = vrot.slane %v11795_v9, %v13401_v12  ;;  %v13423_v22 = vrot.slane %v58_v16, %v13396_v10  ;;  %v13449_v35 = vrot.slane %v58_v16, %v13399_v11  ;;  %v13455_v37 = vrot.slane %v58_v16, %v13401_v12  ;;  %v84_v50 = vld [vmem:[%s16816_s1] sm:$0xff]  ;;  %v3592_v56 = vld [vmem:[%s16817_s2 + $0x8] sm:$0xff] }
  0x1b   :  { %16988 = vst [vmem:[#allocation8_spill] sm:$0xff] %v13411_v17  ;;  %s13233_s28 = smov 94   ;;  %v13458_v38 = vrot.slane %v58_v16, %v13390_v8  ;;  %v13475_v45 = vrot.slane %v11808_v39, %v13396_v10  ;;  %v13493_v55 = vrot.slane %v11808_v39, %v13399_v11  ;;  %v13502_v58 = vrot.slane %v11808_v39, %v13401_v12  ;;  %v11815_v60 = vld [vmem:[%s16819_s4 + $0x3] ss:$8 sm:$0xf] }
  0x1c   :  { %v13505_v59 = vrot.slane %v11808_v39, %v13390_v8  ;;  %v13524_v16 = vrot.slane %v11815_v60, %v13396_v10  ;;  %vm1012_vm6 = vcmp.lt.s32.totalorder %v13388_v7, 127  ;;  %v11835_v51 = vld [vmem:[%s16819_s4 + $0x6] ss:$8 sm:$0xf]  ;;  %vm1214_vm7 = vcmp.lt.s32.totalorder %v13388_v7, 113 }
  0x1d   :  { %45 = vrot.lane.b32.xlu1 %v13302_v4, %s13219_s0  ;;  %43 = vrot.lane.b32.xlu0 %v13290_v2, %s13219_s0  ;;  %vm1416_vm8 = vcmp.lt.s32.totalorder %v13388_v7, 112  ;;  %vm1618_vm9 = vcmp.lt.s32.totalorder %v13388_v7, 111  ;;  %vm1883_vm10 = vcmp.lt.s32.totalorder %v13388_v7, 32  ;;  %vm1842_vm11 = vcmp.lt.s32.totalorder %v13388_v7, 34 }
  0x1e   :  { %vm2238_vm12 = vcmp.lt.s32.totalorder %v13388_v7, 30  ;;  %vm2440_vm13 = vcmp.lt.s32.totalorder %v13388_v7, 2  ;;  %vm2792_vm14 = vcmp.lt.s32.totalorder %v13388_v7, 126  ;;  %vm2994_vm15 = vcmp.lt.s32.totalorder %v13388_v7, 98 }
  0x21   :  { %49 = vrot.lane.b32.xlu1 %v13298_v3, %s13219_s0  ;;  %47 = vrot.lane.b32.xlu0 %v13285_v1, %s13219_s0 }
  0x25   :  { %444 = vrot.lane.b32.xlu1 %v13302_v4, %s13220_s3  ;;  %442 = vrot.lane.b32.xlu0 %v13290_v2, %s13220_s3 }
  0x29   :  { %448 = vrot.lane.b32.xlu1 %v13298_v3, %s13220_s3  ;;  %446 = vrot.lane.b32.xlu0 %v13285_v1, %s13220_s3 }
  0x2d   :  { %646 = vrot.lane.b32.xlu1 %v13302_v4, %s13221_s12  ;;  %644 = vrot.lane.b32.xlu0 %v13290_v2, %s13221_s12 }
  0x31   :  { %650 = vrot.lane.b32.xlu1 %v13298_v3, %s13221_s12  ;;  %648 = vrot.lane.b32.xlu0 %v13285_v1, %s13221_s12 }
  0x35   :  { %1008 = vrot.lane.b32.xlu1 %v13285_v1, %s13222_s13  ;;  %1006 = vrot.lane.b32.xlu0 %v13302_v4, %s13222_s13 }
  0x39   :  { %1010 = vrot.lane.b32.xlu1 %v13298_v3, %s13222_s13  ;;  %1004 = vrot.lane.b32.xlu0 %v13290_v2, %s13222_s13 }
  0x3d   :  { %1210 = vrot.lane.b32.xlu1 %v13285_v1, %s13223_s14  ;;  %1208 = vrot.lane.b32.xlu0 %v13302_v4, %s13223_s14 }
  0x41   :  { %1212 = vrot.lane.b32.xlu1 %v13298_v3, %s13223_s14  ;;  %1206 = vrot.lane.b32.xlu0 %v13290_v2, %s13223_s14 }
  0x45   :  { %1412 = vrot.lane.b32.xlu1 %v13285_v1, %s13224_s15  ;;  %1410 = vrot.lane.b32.xlu0 %v13302_v4, %s13224_s15 }
  0x49   :  { %1414 = vrot.lane.b32.xlu1 %v13298_v3, %s13224_s15  ;;  %1408 = vrot.lane.b32.xlu0 %v13290_v2, %s13224_s15 }
  0x4d   :  { %1614 = vrot.lane.b32.xlu1 %v13285_v1, %s13225_s16  ;;  %1612 = vrot.lane.b32.xlu0 %v13302_v4, %s13225_s16 }
  0x51   :  { %1616 = vrot.lane.b32.xlu1 %v13298_v3, %s13225_s16  ;;  %1610 = vrot.lane.b32.xlu0 %v13290_v2, %s13225_s16 }
  0x55   :  { %1877 = vrot.lane.b32.xlu1 %v13302_v4, %s13226_s17  ;;  %1875 = vrot.lane.b32.xlu0 %v13290_v2, %s13226_s17 }
  0x59   :  { %1881 = vrot.lane.b32.xlu1 %v13298_v3, %s13226_s17  ;;  %1879 = vrot.lane.b32.xlu0 %v13285_v1, %s13226_s17 }
  0x5d   :  { %1836 = vrot.lane.b32.xlu1 %v13302_v4, %s13227_s18  ;;  %1834 = vrot.lane.b32.xlu0 %v13290_v2, %s13227_s18 }
  0x61   :  { %1840 = vrot.lane.b32.xlu1 %v13298_v3, %s13227_s18  ;;  %1838 = vrot.lane.b32.xlu0 %v13285_v1, %s13227_s18 }
  0x65   :  { %2232 = vrot.lane.b32.xlu1 %v13302_v4, %s13228_s19  ;;  %2230 = vrot.lane.b32.xlu0 %v13290_v2, %s13228_s19 }
  0x69   :  { %2236 = vrot.lane.b32.xlu1 %v13298_v3, %s13228_s19  ;;  %2234 = vrot.lane.b32.xlu0 %v13285_v1, %s13228_s19 }
  0x6d   :  { %2434 = vrot.lane.b32.xlu1 %v13302_v4, %s13229_s20  ;;  %2432 = vrot.lane.b32.xlu0 %v13290_v2, %s13229_s20 }
  0x71   :  { %2438 = vrot.lane.b32.xlu1 %v13298_v3, %s13229_s20  ;;  %2436 = vrot.lane.b32.xlu0 %v13285_v1, %s13229_s20 }
  0x75   :  { %2786 = vrot.lane.b32.xlu0 %v13302_v4, %s13230_s21  ;;  %2788 = vrot.lane.b32.xlu1 %v13285_v1, %s13230_s21 }
  0x79   :  { %2784 = vrot.lane.b32.xlu0 %v13290_v2, %s13230_s21  ;;  %2790 = vrot.lane.b32.xlu1 %v13298_v3, %s13230_s21 }
  0x7d   :  { %2988 = vrot.lane.b32.xlu0 %v13302_v4, %s13231_s22  ;;  %2990 = vrot.lane.b32.xlu1 %v13285_v1, %s13231_s22 }
  0x81   :  { %2986 = vrot.lane.b32.xlu0 %v13290_v2, %s13231_s22  ;;  %2992 = vrot.lane.b32.xlu1 %v13298_v3, %s13231_s22 }
  0x85   :  { %3190 = vrot.lane.b32.xlu0 %v13302_v4, %s13232_s23  ;;  %3192 = vrot.lane.b32.xlu1 %v13285_v1, %s13232_s23 }
  0x87   :  { %v90_v13 = vpop.permute.xlu1 %89  ;;  %v86_v14 = vpop.permute.xlu0 %85 }
  0x89   :  { %3188 = vrot.lane.b32.xlu0 %v13290_v2, %s13232_s23  ;;  %3194 = vrot.lane.b32.xlu1 %v13298_v3, %s13232_s23 }
  0x8b   :  { %v92_v20 = vpop.permute.xlu1 %91  ;;  %v88_v21 = vpop.permute.xlu0 %87 }
  0x8c   :  { %v97_v23 = vsel %vm93_vm0, %v92_v20, %v86_v14  ;;  %v95_v24 = vsel %vm93_vm0, %v88_v21, %v90_v13  ;;  %v94_v25 = vsel %vm93_vm0, %v90_v13, %v92_v20  ;;  %v96_v26 = vsel %vm93_vm0, %v86_v14, %v88_v21  ;;  %v482_v20 = vld [vmem:[%s16816_s1 + $0x10] sm:$0xff] }
  0x8d   :  { %v124_v27 = vmul.f32 %v13404_v15, %v94_v25  ;;  %v122_v28 = vmul.f32 %v13411_v17, %v96_v26  ;;  %v121_v29 = vmul.f32 %v13414_v18, %v97_v23  ;;  %v123_v30 = vmul.f32 %v13417_v19, %v95_v24  ;;  %3392 = vrot.lane.b32.xlu0 %v13302_v4, %s13233_s28 }
  0x8e   :  { %3394 = vrot.lane.b32.xlu1 %v13285_v1, %s13233_s28  ;;  %v13535_v25 = vrot.slane %v11815_v60, %v13399_v11 }
  0x8f   :  { %11799 = vmatprep.subr.msk.mxu1 %vm130_vm1, %v124_v27  ;;  %v46_v32 = vpop.permute.xlu1 %45  ;;  %11796 = vmatprep.subr.msk.mxu0 %vm130_vm1, %v122_v28  ;;  %v44_v33 = vpop.permute.xlu0 %43  ;;  %v13541_v27 = vrot.slane %v11815_v60, %v13401_v12  ;;  %v13544_v28 = vrot.slane %v11815_v60, %v13390_v8 }
  0x90   :  { %v56_v34 = vsel %vm53_vm2, %v44_v33, %v46_v32  ;;  %11797 = vmatpush1.msk.msra.mxu0 %vm130_vm1, %v121_v29  ;;  %11800 = vmatpush1.msk.msra.mxu1 %vm130_vm1, %v123_v30  ;;  %v11828_v29 = vld [vmem:[%s16819_s4 + $0x5] ss:$8 sm:$0xf] }
  0x91   :  { %v81_v36 = vmul.f32 %v13423_v22, %v56_v34  ;;  %11798 = vmatmul.mubr.msk.f32.vlgmr.msra.gmra.mrb[0].mxu0 %vm126_vm3, %v125_v31  ;;  %11801 = vmatmul.mubr.msk.f32.vlgmr.msra.gmra.mrb[0].mxu1 %vm126_vm3, %v125_v31 }
  0x92   :  { %364 = vmatprep.mubr.f32.mxu0 %v16821_v0  ;;  %435 = vmatprep.mubr.f32.mxu1 %v16821_v0 }
  0x93   :  { %v50_v40 = vpop.permute.xlu1 %49  ;;  %v48_v41 = vpop.permute.xlu0 %47  ;;  %11802 = vmatprep.subr.msk.mxu0 %vm130_vm1, %v81_v36  ;;  %3390 = vrot.lane.b32.xlu0 %v13290_v2, %s13233_s28 }
  0x94   :  { %v57_v42 = vsel %vm53_vm2, %v50_v40, %v44_v33  ;;  %v54_v43 = vsel %vm53_vm2, %v48_v41, %v50_v40  ;;  %v55_v44 = vsel %vm53_vm2, %v46_v32, %v48_v41  ;;  %3396 = vrot.lane.b32.xlu1 %v13298_v3, %s13233_s28  ;;  %v13563_v41 = vrot.slane %v11828_v29, %v13396_v10 }
  0x95   :  { %v80_v46 = vmul.f32 %v13449_v35, %v57_v42  ;;  %v82_v47 = vmul.f32 %v13455_v37, %v55_v44  ;;  %v83_v48 = vmul.f32 %v13458_v38, %v54_v43  ;;  %v684_v42 = vld [vmem:[%s16816_s1 + $0x18] sm:$0xff] }
  0x97   :  { %v445_v52 = vpop.permute.xlu1 %444  ;;  %11803 = vmatpush1.msk.msra.mxu0 %vm130_vm1, %v80_v46  ;;  %11805 = vmatprep.subr.msk.mxu1 %vm130_vm1, %v83_v48  ;;  %v443_v53 = vpop.permute.xlu0 %442  ;;  %v13579_v48 = vrot.slane %v11828_v29, %v13390_v8 }
  0x98   :  { %v453_v54 = vsel %vm450_vm4, %v443_v53, %v445_v52  ;;  %11806 = vmatpush1.msk.msra.mxu1 %vm130_vm1, %v82_v47  ;;  %1815 = vperm.xlu0 %13162, %v1812_v49   ;;  %v13582_v49 = vrot.slane %v11828_v29, %v13401_v12 }
  0x99   :  { %v479_v57 = vmul.f32 %v13475_v45, %v453_v54  ;;  %11804 = vmatmul.mubr.msk.f32.vlgmr.msra.gmra.mrb[0].mxu0 %vm126_vm3, %v84_v50  ;;  %11807 = vmatmul.mubr.msk.f32.vlgmr.msra.gmra.mrb[0].mxu1 %vm126_vm3, %v84_v50  ;;  %16989 = vst [vmem:[#allocation9_spill] sm:$0xff] %v13579_v48  ;;  %v13585_v50 = vrot.slane %v11828_v29, %v13399_v11 }
  0x9a   :  { %562 = vmatprep.mubr.f32.mxu0 %v16821_v0  ;;  %633 = vmatprep.mubr.f32.mxu1 %v16821_v0  ;;  %16990 = vst [vmem:[#allocation10_spill] sm:$0xff] %v13582_v49 }
  0x9b   :  { %v449_v61 = vpop.permute.xlu1 %448  ;;  %v447_v62 = vpop.permute.xlu0 %446  ;;  %11809 = vmatprep.subr.msk.mxu0 %vm130_vm1, %v479_v57  ;;  %3595 = vperm.xlu1 %13163, %v3592_v56  }
  0x9c   :  { %v454_v63 = vsel %vm450_vm4, %v449_v61, %v443_v53  ;;  %v451_v5 = vsel %vm450_vm4, %v447_v62, %v449_v61  ;;  %v452_v6 = vsel %vm450_vm4, %v445_v52, %v447_v62  ;;  %v13608_v61 = vrot.slane %v11835_v51, %v13396_v10 }
  0x9d   :  { %v478_v9 = vmul.f32 %v13493_v55, %v454_v63  ;;  %v480_v13 = vmul.f32 %v13502_v58, %v452_v6  ;;  %v481_v14 = vmul.f32 %v13505_v59, %v451_v5  ;;  %v846_v5 = vld [vmem:[%s16816_s1 + $0x20] sm:$0xff] }
  0x9e   :  { %16991 = vst [vmem:[#allocation11_spill] sm:$0xff] %v13608_v61 }
  0x9f   :  { %v647_v21 = vpop.permute.xlu1 %646  ;;  %11810 = vmatpush1.msk.msra.mxu0 %vm130_vm1, %v478_v9  ;;  %11812 = vmatprep.subr.msk.mxu1 %vm130_vm1, %v481_v14  ;;  %v645_v23 = vpop.permute.xlu0 %644 }
  0xa0   :  { %v655_v24 = vsel %vm652_vm5, %v645_v23, %v647_v21  ;;  %11813 = vmatpush1.msk.msra.mxu1 %vm130_vm1, %v480_v13 }
  0xa1   :  { %v681_v26 = vmul.f32 %v13524_v16, %v655_v24  ;;  %11811 = vmatmul.mubr.msk.f32.vlgmr.msra.gmra.mrb[0].mxu0 %vm126_vm3, %v482_v20  ;;  %11814 = vmatmul.mubr.msk.f32.vlgmr.msra.gmra.mrb[0].mxu1 %vm126_vm3, %v482_v20  ;;  %v13622_v20 = vrot.slane %v11835_v51, %v13390_v8  ;;  %v11842_v24 = vld [vmem:[%s16819_s4 + $0x7] ss:$8 sm:$0xf] }
  0xa2   :  { %764 = vmatprep.mubr.f32.mxu0 %v16821_v0  ;;  %835 = vmatprep.mubr.f32.mxu1 %v16821_v0 }
  0xa3   :  { %v651_v30 = vpop.permute.xlu1 %650  ;;  %v649_v31 = vpop.permute.xlu0 %648  ;;  %11816 = vmatprep.subr.msk.mxu0 %vm130_vm1, %v681_v26  ;;  %16992 = vst [vmem:[#allocation12_spill] sm:$0xff] %v13622_v20 }
  0xa4   :  { %v656_v32 = vsel %vm652_vm5, %v651_v30, %v645_v23  ;;  %v653_v33 = vsel %vm652_vm5, %v649_v31, %v651_v30  ;;  %v654_v34 = vsel %vm652_vm5, %v647_v21, %v649_v31  ;;  %v13626_v21 = vrot.slane %v11835_v51, %v13401_v12 }
  0xa5   :  { %v680_v36 = vmul.f32 %v13535_v25, %v656_v32  ;;  %v682_v39 = vmul.f32 %v13541_v27, %v654_v34  ;;  %v683_v40 = vmul.f32 %v13544_v28, %v653_v33  ;;  %v13630_v23 = vrot.slane %v11835_v51, %v13399_v11 }
  0xa6   :  { %16993 = vst [vmem:[#allocation13_spill] sm:$0xff] %v13626_v21  ;;  %v13647_v34 = vrot.slane %v11842_v24, %v13396_v10  ;;  %v13665_v51 = vrot.slane %v11842_v24, %v13401_v12 }
  0xa7   :  { %v1009_v43 = vpop.permute.xlu1 %1008  ;;  %11817 = vmatpush1.msk.msra.mxu0 %vm130_vm1, %v680_v36  ;;  %11819 = vmatprep.subr.msk.mxu1 %vm130_vm1, %v683_v40  ;;  %v1007_v44 = vpop.permute.xlu0 %1006  ;;  %16994 = vst [vmem:[#allocation14_spill] sm:$0xff] %v13630_v23  ;;  %v1044_v40 = vld [vmem:[%s16816_s1 + $0x28] sm:$0xff] }
  0xa8   :  { %v1014_v46 = vsel %vm1012_vm6, %v1007_v44, %v1009_v43  ;;  %11820 = vmatpush1.msk.msra.mxu1 %vm130_vm1, %v682_v39  ;;  %11822 = vmatprep.subr.msk.mxu0 %vm130_vm1, %v13302_v4  ;;  %16995 = vst [vmem:[#allocation15_spill] sm:$0xff] %v13647_v34  ;;  %16997 = vst [vmem:[#allocation17_spill] sm:$0xff] %v13665_v51 }
  0xa9   :  { %v1041_v47 = vmul.f32 %v13563_v41, %v1014_v46  ;;  %11818 = vmatmul.mubr.msk.f32.vlgmr.msra.gmra.mrb[0].mxu0 %vm126_vm3, %v684_v42  ;;  %11821 = vmatmul.mubr.msk.f32.vlgmr.msra.gmra.mrb[0].mxu1 %vm126_vm3, %v684_v42 }
  0xaa   :  { %11825 = vmatprep.subr.msk.mxu1 %vm130_vm1, %v13298_v3  ;;  %11823 = vmatpush1.msk.msra.mxu0 %vm130_vm1, %v13290_v2 }
  0xab   :  { %v1011_v52 = vpop.permute.xlu1 %1010  ;;  %v1005_v53 = vpop.permute.xlu0 %1004  ;;  %11826 = vmatpush1.msk.msra.mxu1 %vm130_vm1, %v13285_v1  ;;  %922 = vmatprep.mubr.f32.mxu0 %v16821_v0 }
  0xac   :  { %v1013_v54 = vsel %vm1012_vm6, %v1009_v43, %v1011_v52  ;;  %v1015_v56 = vsel %vm1012_vm6, %v1005_v53, %v1007_v44  ;;  %v1016_v57 = vsel %vm1012_vm6, %v1011_v52, %v1005_v53  ;;  %993 = vmatprep.mubr.f32.mxu1 %v16821_v0  ;;  %11829 = vmatprep.subr.msk.mxu0 %vm130_vm1, %v1041_v47  ;;  %v11849_v53 = vld [vmem:[%s16819_s4 + $0x20] ss:$8 sm:$0xf] }
  0xad   :  { %v1043_v60 = vmul.f32 %v13579_v48, %v1016_v57  ;;  %v1042_v62 = vmul.f32 %v13582_v49, %v1013_v54  ;;  %v1040_v63 = vmul.f32 %v13585_v50, %v1015_v56  ;;  %v13661_v47 = vrot.slane %v11842_v24, %v13390_v8 }
  0xae   :  { %v13669_v52 = vrot.slane %v11842_v24, %v13399_v11 }
  0xaf   :  { %v1211_v6 = vpop.permute.xlu1 %1210  ;;  %v1209_v9 = vpop.permute.xlu0 %1208  ;;  %11832 = vmatprep.subr.msk.mxu1 %vm130_vm1, %v1043_v60  ;;  %16996 = vst [vmem:[#allocation16_spill] sm:$0xff] %v13661_v47 }
  0xb0   :  { %v1216_v13 = vsel %vm1214_vm7, %v1209_v9, %v1211_v6  ;;  %16998 = vst [vmem:[#allocation18_spill] sm:$0xff] %v13669_v52 }
  0xb1   :  { %v1243_v14 = vmul.f32 %v13608_v61, %v1216_v13  ;;  %11824 = vmatmul.mubr.msk.f32.vlgmr.msra.gmra.mrb[0].mxu0 %vm126_vm3, %v846_v5  ;;  %11827 = vmatmul.mubr.msk.f32.vlgmr.msra.gmra.mrb[0].mxu1 %vm126_vm3, %v846_v5  ;;  %v13686_v5 = vrot.slane %v11849_v53, %v13396_v10  ;;  %v1246_v13 = vld [vmem:[%s16816_s1 + $0x30] sm:$0xff] }
  0xb2   :  { %11833 = vmatpush1.msk.msra.mxu1 %vm130_vm1, %v1042_v62  ;;  %11830 = vmatpush1.msk.msra.mxu0 %vm130_vm1, %v1040_v63 }
  0xb3   :  { %v1213_v26 = vpop.permute.xlu1 %1212  ;;  %v1207_v29 = vpop.permute.xlu0 %1206  ;;  %1124 = vmatprep.mubr.f32.mxu0 %v16821_v0  ;;  %1195 = vmatprep.mubr.f32.mxu1 %v16821_v0  ;;  %16999 = vst [vmem:[#allocation19_spill] sm:$0xff] %v13686_v5 }
  0xb4   :  { %v1215_v30 = vsel %vm1214_vm7, %v1211_v6, %v1213_v26  ;;  %v1217_v31 = vsel %vm1214_vm7, %v1207_v29, %v1209_v9  ;;  %v1218_v32 = vsel %vm1214_vm7, %v1213_v26, %v1207_v29  ;;  %11836 = vmatprep.subr.msk.mxu0 %vm130_vm1, %v1243_v14 }
  0xb5   :  { %v1245_v33 = vmul.f32 %v13622_v20, %v1218_v32  ;;  %v1244_v36 = vmul.f32 %v13626_v21, %v1215_v30  ;;  %v1242_v39 = vmul.f32 %v13630_v23, %v1217_v31  ;;  %v13700_v30 = vrot.slane %v11849_v53, %v13390_v8 }
  0xb6   :  { %v13704_v31 = vrot.slane %v11849_v53, %v13401_v12  ;;  %v13708_v32 = vrot.slane %v11849_v53, %v13399_v11 }
  0xb7   :  { %v1413_v42 = vpop.permute.xlu1 %1412  ;;  %v1411_v43 = vpop.permute.xlu0 %1410  ;;  %11839 = vmatprep.subr.msk.mxu1 %vm130_vm1, %v1245_v33  ;;  %17000 = vst [vmem:[#allocation20_spill] sm:$0xff] %v13700_v30  ;;  %v11857_v33 = vld [vmem:[%s16819_s4 + $0x22] ss:$8 sm:$0xf] }
  0xb8   :  { %v1418_v44 = vsel %vm1416_vm8, %v1411_v43, %v1413_v42  ;;  %17001 = vst [vmem:[#allocation21_spill] sm:$0xff] %v13704_v31  ;;  %17002 = vst [vmem:[#allocation22_spill] sm:$0xff] %v13708_v32 }
  0xb9   :  { %v1445_v46 = vmul.f32 %v13647_v34, %v1418_v44  ;;  %11831 = vmatmul.mubr.msk.f32.vlgmr.msra.gmra.mrb[0].mxu0 %vm126_vm3, %v1044_v40  ;;  %11834 = vmatmul.mubr.msk.f32.vlgmr.msra.gmra.mrb[0].mxu1 %vm126_vm3, %v1044_v40 }
  0xba   :  { %11840 = vmatpush1.msk.msra.mxu1 %vm130_vm1, %v1244_v36  ;;  %11837 = vmatpush1.msk.msra.mxu0 %vm130_vm1, %v1242_v39 }
  0xbb   :  { %v1415_v54 = vpop.permute.xlu1 %1414  ;;  %v1409_v56 = vpop.permute.xlu0 %1408  ;;  %1326 = vmatprep.mubr.f32.mxu0 %v16821_v0  ;;  %1397 = vmatprep.mubr.f32.mxu1 %v16821_v0 }
  0xbc   :  { %v1417_v57 = vsel %vm1416_vm8, %v1413_v42, %v1415_v54  ;;  %v1419_v60 = vsel %vm1416_vm8, %v1409_v56, %v1411_v43  ;;  %v1420_v62 = vsel %vm1416_vm8, %v1415_v54, %v1409_v56  ;;  %11843 = vmatprep.subr.msk.mxu0 %vm130_vm1, %v1445_v46  ;;  %v1898_v46 = vrot.slane %v11857_v33, %v13396_v10  ;;  %v1448_v56 = vld [vmem:[%s16816_s1 + $0x38] sm:$0xff] }
  0xbd   :  { %v1447_v63 = vmul.f32 %v13661_v47, %v1420_v62  ;;  %v1446_v6 = vmul.f32 %v13665_v51, %v1417_v57  ;;  %v1444_v9 = vmul.f32 %v13669_v52, %v1419_v60 }
  0xbf   :  { %v1615_v14 = vpop.permute.xlu1 %1614  ;;  %v1613_v24 = vpop.permute.xlu0 %1612  ;;  %11846 = vmatprep.subr.msk.mxu1 %vm130_vm1, %v1447_v63 }
  0xc0   :  { %v1620_v26 = vsel %vm1618_vm9, %v1613_v24, %v1615_v14 }
  0xc1   :  { %v1647_v29 = vmul.f32 %v13686_v5, %v1620_v26  ;;  %11838 = vmatmul.mubr.msk.f32.vlgmr.msra.gmra.mrb[0].mxu0 %vm126_vm3, %v1246_v13  ;;  %11841 = vmatmul.mubr.msk.f32.vlgmr.msra.gmra.mrb[0].mxu1 %vm126_vm3, %v1246_v13  ;;  %v1902_v13 = vrot.slane %v11857_v33, %v13401_v12 }
  0xc2   :  { %11847 = vmatpush1.msk.msra.mxu1 %vm130_vm1, %v1446_v6  ;;  %11844 = vmatpush1.msk.msra.mxu0 %vm130_vm1, %v1444_v9  ;;  %v1906_v6 = vrot.slane %v11857_v33, %v13390_v8  ;;  %v1894_v9 = vrot.slane %v11857_v33, %v13399_v11 }
  0xc3   :  { %v1617_v36 = vpop.permute.xlu1 %1616  ;;  %v1611_v39 = vpop.permute.xlu0 %1610  ;;  %1528 = vmatprep.mubr.f32.mxu0 %v16821_v0  ;;  %1599 = vmatprep.mubr.f32.mxu1 %v16821_v0 }
  0xc4   :  { %v1619_v40 = vsel %vm1618_vm9, %v1615_v14, %v1617_v36  ;;  %v1621_v42 = vsel %vm1618_vm9, %v1611_v39, %v1613_v24  ;;  %v1622_v43 = vsel %vm1618_vm9, %v1617_v36, %v1611_v39  ;;  %11850 = vmatprep.subr.msk.mxu0 %vm130_vm1, %v1647_v29  ;;  %v11856_v14 = vld [vmem:[%s16819_s4 + $0x21] ss:$8 sm:$0xf] }
  0xc5   :  { %v1649_v44 = vmul.f32 %v13700_v30, %v1622_v43  ;;  %v1648_v53 = vmul.f32 %v13704_v31, %v1619_v40  ;;  %v1646_v54 = vmul.f32 %v13708_v32, %v1621_v42  ;;  %v1857_v40 = vrot.slane %v11856_v14, %v13396_v10 }
  0xc7   :  { %v1878_v57 = vpop.permute.xlu1 %1877  ;;  %v1876_v60 = vpop.permute.xlu0 %1875  ;;  %11853 = vmatprep.subr.msk.mxu1 %vm130_vm1, %v1649_v44  ;;  %v1650_v44 = vld [vmem:[%s16816_s1 + $0x40] sm:$0xff] }
  0xc8   :  { %v1886_v62 = vsel %vm1883_vm10, %v1876_v60, %v1878_v57 }
  0xc9   :  { %v1912_v63 = vmul.f32 %v1898_v46, %v1886_v62  ;;  %11845 = vmatmul.mubr.msk.f32.vlgmr.msra.gmra.mrb[0].mxu0 %vm126_vm3, %v1448_v56  ;;  %11848 = vmatmul.mubr.msk.f32.vlgmr.msra.gmra.mrb[0].mxu1 %vm126_vm3, %v1448_v56  ;;  %v1853_v56 = vrot.slane %v11856_v14, %v13399_v11  ;;  %v1865_v62 = vrot.slane %v11856_v14, %v13390_v8 }
  0xca   :  { %11854 = vmatpush1.msk.msra.mxu1 %vm130_vm1, %v1648_v53  ;;  %11851 = vmatpush1.msk.msra.mxu0 %vm130_vm1, %v1646_v54 }
  0xcb   :  { %v1882_v24 = vpop.permute.xlu1 %1881  ;;  %v1880_v26 = vpop.permute.xlu0 %1879  ;;  %1730 = vmatprep.mubr.f32.mxu0 %v16821_v0  ;;  %1801 = vmatprep.mubr.f32.mxu1 %v16821_v0 }
  0xcc   :  { %v1887_v29 = vsel %vm1883_vm10, %v1882_v24, %v1876_v60  ;;  %v1884_v36 = vsel %vm1883_vm10, %v1880_v26, %v1882_v24  ;;  %v1885_v39 = vsel %vm1883_vm10, %v1878_v57, %v1880_v26  ;;  %11858 = vmatprep.subr.msk.mxu0 %vm130_vm1, %v1912_v63  ;;  %v1861_v60 = vrot.slane %v11856_v14, %v13401_v12  ;;  %v11870_v63 = vld [vmem:[%s16819_s4 + $0x23] ss:$8 sm:$0xf] }
  0xcd   :  { %v1914_v33 = vmul.f32 %v1906_v6, %v1884_v36  ;;  %v1911_v42 = vmul.f32 %v1894_v9, %v1887_v29  ;;  %v1913_v43 = vmul.f32 %v1902_v13, %v1885_v39  ;;  %v1915_v6 = vld [vmem:[%s16816_s1 + $0x50] sm:$0xff]  ;;  %v2253_v29 = vrot.slane %v11870_v63, %v13396_v10 }
  0xce   :  { %vm3196_vm10 = vcmp.lt.s32.totalorder %v13388_v7, 96 }
  0xcf   :  { %v1837_v46 = vpop.permute.xlu1 %1836  ;;  %v1835_v53 = vpop.permute.xlu0 %1834  ;;  %11861 = vmatprep.subr.msk.mxu1 %vm130_vm1, %v1914_v33 }
  0xd0   :  { %v1845_v54 = vsel %vm1842_vm11, %v1835_v53, %v1837_v46 }
  0xd1   :  { %v1871_v57 = vmul.f32 %v1857_v40, %v1845_v54  ;;  %11852 = vmatmul.mubr.msk.f32.vlgmr.msra.gmra.mrb[0].mxu0 %vm126_vm3, %v1650_v44  ;;  %11855 = vmatmul.mubr.msk.f32.vlgmr.msra.gmra.mrb[0].mxu1 %vm126_vm3, %v1650_v44  ;;  %v2261_v54 = vrot.slane %v11870_v63, %v13390_v8 }
  0xd2   :  { %11862 = vmatpush1.msk.msra.mxu1 %vm130_vm1, %v1913_v43  ;;  %11859 = vmatpush1.msk.msra.mxu0 %vm130_vm1, %v1911_v42 }
  0xd3   :  { %v1841_v9 = vpop.permute.xlu1 %1840  ;;  %v1839_v13 = vpop.permute.xlu0 %1838  ;;  %1995 = vmatprep.mubr.f32.mxu0 %v16821_v0  ;;  %2066 = vmatprep.mubr.f32.mxu1 %v16821_v0 }
  0xd4   :  { %v1846_v14 = vsel %vm1842_vm11, %v1841_v9, %v1835_v53  ;;  %v1843_v24 = vsel %vm1842_vm11, %v1839_v13, %v1841_v9  ;;  %v1844_v26 = vsel %vm1842_vm11, %v1837_v46, %v1839_v13  ;;  %11864 = vmatprep.subr.msk.mxu0 %vm130_vm1, %v1871_v57  ;;  %v2249_v46 = vrot.slane %v11870_v63, %v13399_v11  ;;  %v1874_v57 = vld [vmem:[%s16816_s1 + $0x48] sm:$0xff] }
  0xd5   :  { %v1870_v36 = vmul.f32 %v1853_v56, %v1846_v14  ;;  %v1872_v39 = vmul.f32 %v1861_v60, %v1844_v26  ;;  %v1873_v33 = vmul.f32 %v1865_v62, %v1843_v24  ;;  %11860 = vmatmul.mubr.msk.f32.vlgmr.msra.gmra.mrb[2].mxu0 %vm126_vm3, %v1915_v6  ;;  %11863 = vmatmul.mubr.msk.f32.vlgmr.msra.gmra.mrb[2].mxu1 %vm126_vm3, %v1915_v6  ;;  %v11877_v56 = vld [vmem:[%s16819_s4 + $0x24] ss:$8 sm:$0xf]  ;;  %vm3398_vm11 = vcmp.lt.s32.totalorder %v13388_v7, 94 }
  0xd6   :  { %2152 = vmatprep.mubr.f32.mxu0 %v16821_v0  ;;  %2223 = vmatprep.mubr.f32.mxu1 %v16821_v0  ;;  %v2257_v53 = vrot.slane %v11870_v63, %v13401_v12  ;;  %v2455_v13 = vrot.slane %v11877_v56, %v13396_v10 }
  0xd7   :  { %v2233_v40 = vpop.permute.xlu1 %2232  ;;  %11867 = vmatprep.subr.msk.mxu1 %vm130_vm1, %v1873_v33  ;;  %v2231_v42 = vpop.permute.xlu0 %2230  ;;  %11865 = vmatpush1.msk.msra.mxu0 %vm130_vm1, %v1870_v36 }
  0xd8   :  { %v2241_v43 = vsel %vm2238_vm12, %v2231_v42, %v2233_v40  ;;  %11868 = vmatpush1.msk.msra.mxu1 %vm130_vm1, %v1872_v39 }
  0xd9   :  { %v2267_v44 = vmul.f32 %v2253_v29, %v2241_v43  ;;  %v2463_v43 = vrot.slane %v11877_v56, %v13390_v8 }
  0xdb   :  { %v2237_v60 = vpop.permute.xlu1 %2236  ;;  %v2235_v62 = vpop.permute.xlu0 %2234  ;;  %11871 = vmatprep.subr.msk.mxu0 %vm130_vm1, %v2267_v44  ;;  %v2270_v44 = vld [vmem:[%s16816_s1 + $0x58] sm:$0xff] }
  0xdc   :  { %v2242_v6 = vsel %vm2238_vm12, %v2237_v60, %v2231_v42  ;;  %v2239_v9 = vsel %vm2238_vm12, %v2235_v62, %v2237_v60  ;;  %v2240_v63 = vsel %vm2238_vm12, %v2233_v40, %v2235_v62  ;;  %v2451_v40 = vrot.slane %v11877_v56, %v13399_v11 }
  0xdd   :  { %v2266_v14 = vmul.f32 %v2249_v46, %v2242_v6  ;;  %v2268_v24 = vmul.f32 %v2257_v53, %v2240_v63  ;;  %v2269_v26 = vmul.f32 %v2261_v54, %v2239_v9  ;;  %11866 = vmatmul.mubr.msk.f32.vlgmr.msra.gmra.mrb[2].mxu0 %vm126_vm3, %v1874_v57  ;;  %11869 = vmatmul.mubr.msk.f32.vlgmr.msra.gmra.mrb[2].mxu1 %vm126_vm3, %v1874_v57  ;;  %v11890_v9 = vld [vmem:[%s16819_s4 + $0x26] ss:$8 sm:$0xf] }
  0xde   :  { %2350 = vmatprep.mubr.f32.mxu0 %v16821_v0  ;;  %2421 = vmatprep.mubr.f32.mxu1 %v16821_v0  ;;  %v2459_v42 = vrot.slane %v11877_v56, %v13401_v12 }
  0xdf   :  { %v2435_v29 = vpop.permute.xlu1 %2434  ;;  %11874 = vmatprep.subr.msk.mxu1 %vm130_vm1, %v2269_v26  ;;  %v2433_v36 = vpop.permute.xlu0 %2432  ;;  %11872 = vmatpush1.msk.msra.mxu0 %vm130_vm1, %v2266_v14  ;;  %v2807_v14 = vrot.slane %v11890_v9, %v13396_v10  ;;  %v2815_v26 = vrot.slane %v11890_v9, %v13390_v8 }
  0xe0   :  { %v2443_v39 = vsel %vm2440_vm13, %v2433_v36, %v2435_v29  ;;  %11875 = vmatpush1.msk.msra.mxu1 %vm130_vm1, %v2268_v24 }
  0xe1   :  { %v2469_v33 = vmul.f32 %v2455_v13, %v2443_v39 }
  0xe3   :  { %v2439_v46 = vpop.permute.xlu1 %2438  ;;  %v2437_v53 = vpop.permute.xlu0 %2436  ;;  %11878 = vmatprep.subr.msk.mxu0 %vm130_vm1, %v2469_v33 }
  0xe4   :  { %v2444_v54 = vsel %vm2440_vm13, %v2439_v46, %v2433_v36  ;;  %v2441_v57 = vsel %vm2440_vm13, %v2437_v53, %v2439_v46  ;;  %v2442_v60 = vsel %vm2440_vm13, %v2435_v29, %v2437_v53  ;;  %v2472_v29 = vld [vmem:[%s16816_s1 + $0x60] sm:$0xff] }
  0xe5   :  { %v2468_v62 = vmul.f32 %v2451_v40, %v2444_v54  ;;  %v2470_v6 = vmul.f32 %v2459_v42, %v2442_v60  ;;  %v2471_v56 = vmul.f32 %v2463_v43, %v2441_v57  ;;  %11873 = vmatmul.mubr.msk.f32.vlgmr.msra.gmra.mrb[2].mxu0 %vm126_vm3, %v2270_v44  ;;  %11876 = vmatmul.mubr.msk.f32.vlgmr.msra.gmra.mrb[2].mxu1 %vm126_vm3, %v2270_v44 }
  0xe6   :  { %2552 = vmatprep.mubr.f32.mxu0 %v16821_v0  ;;  %2623 = vmatprep.mubr.f32.mxu1 %v16821_v0  ;;  %v2803_v42 = vrot.slane %v11890_v9, %v13399_v11  ;;  %v2811_v43 = vrot.slane %v11890_v9, %v13401_v12 }
  0xe7   :  { %11881 = vmatprep.subr.msk.mxu1 %vm130_vm1, %v2471_v56  ;;  %11879 = vmatpush1.msk.msra.mxu0 %vm130_vm1, %v2468_v62  ;;  %v2787_v63 = vpop.permute.xlu0 %2786  ;;  %v2789_v13 = vpop.permute.xlu1 %2788  ;;  %v2634_v62 = vld [vmem:[%s16816_s1 + $0x68] sm:$0xff] }
  0xe8   :  { %11882 = vmatpush1.msk.msra.mxu1 %vm130_vm1, %v2470_v6  ;;  %11884 = vmatprep.subr.msk.mxu0 %vm130_vm1, %v13302_v4  ;;  %v2794_v24 = vsel %vm2792_vm14, %v2787_v63, %v2789_v13 }
  0xe9   :  { %11887 = vmatprep.subr.msk.mxu1 %vm130_vm1, %v13298_v3  ;;  %v2821_v33 = vmul.f32 %v2807_v14, %v2794_v24  ;;  %v11897_v3 = vld [vmem:[%s16819_s4 + $0x27] ss:$8 sm:$0xf]  ;;  %v11904_v24 = vld [vmem:[%s16819_s4 + $0x40] ss:$8 sm:$0xf] }
  0xea   :  { %v3009_v54 = vrot.slane %v11897_v3, %v13396_v10 }
  0xeb   :  { %v2785_v36 = vpop.permute.xlu0 %2784  ;;  %v2791_v39 = vpop.permute.xlu1 %2790 }
  0xec   :  { %v2796_v40 = vsel %vm2792_vm14, %v2791_v39, %v2785_v36  ;;  %v2795_v44 = vsel %vm2792_vm14, %v2785_v36, %v2787_v63  ;;  %v2793_v46 = vsel %vm2792_vm14, %v2789_v13, %v2791_v39 }
  0xed   :  { %11880 = vmatmul.mubr.msk.f32.vlgmr.msra.gmra.mrb[2].mxu0 %vm126_vm3, %v2472_v29  ;;  %11883 = vmatmul.mubr.msk.f32.vlgmr.msra.gmra.mrb[2].mxu1 %vm126_vm3, %v2472_v29  ;;  %v2823_v4 = vmul.f32 %v2815_v26, %v2796_v40  ;;  %v2820_v60 = vmul.f32 %v2803_v42, %v2795_v44  ;;  %v2822_v6 = vmul.f32 %v2811_v43, %v2793_v46  ;;  %v2824_v44 = vld [vmem:[%s16816_s1 + $0x70] sm:$0xff] }
  0xee   :  { %11885 = vmatpush1.msk.msra.mxu0 %vm130_vm1, %v13290_v2  ;;  %2702 = vmatprep.mubr.f32.mxu0 %v16821_v0  ;;  %v3005_v26 = vrot.slane %v11897_v3, %v13399_v11  ;;  %v3013_v29 = vrot.slane %v11897_v3, %v13401_v12  ;;  %v3219_v42 = vrot.slane %v11904_v24, %v13390_v8 }
  0xef   :  { %11888 = vmatpush1.msk.msra.mxu1 %vm130_vm1, %v13285_v1  ;;  %2773 = vmatprep.mubr.f32.mxu1 %v16821_v0  ;;  %v2989_v2 = vpop.permute.xlu0 %2988  ;;  %v2991_v53 = vpop.permute.xlu1 %2990  ;;  %v3017_v1 = vrot.slane %v11897_v3, %v13390_v8 }
  0xf0   :  { %11891 = vmatprep.subr.msk.mxu0 %vm130_vm1, %v2821_v33  ;;  %11894 = vmatprep.subr.msk.mxu1 %vm130_vm1, %v2823_v4  ;;  %v2996_v57 = vsel %vm2994_vm15, %v2989_v2, %v2991_v53  ;;  %v3211_v4 = vrot.slane %v11904_v24, %v13396_v10 }
  0xf1   :  { %v3023_v63 = vmul.f32 %v3009_v54, %v2996_v57 }
  0xf3   :  { %v2987_v56 = vpop.permute.xlu0 %2986  ;;  %v2993_v9 = vpop.permute.xlu1 %2992 }
  0xf4   :  { %v2998_v13 = vsel %vm2994_vm15, %v2993_v9, %v2987_v56  ;;  %v2997_v36 = vsel %vm2994_vm15, %v2987_v56, %v2989_v2  ;;  %v2995_v39 = vsel %vm2994_vm15, %v2991_v53, %v2993_v9 }
  0xf5   :  { %11886 = vmatmul.mubr.msk.f32.vlgmr.msra.gmra.mrb[2].mxu0 %vm126_vm3, %v2634_v62  ;;  %11889 = vmatmul.mubr.msk.f32.vlgmr.msra.gmra.mrb[2].mxu1 %vm126_vm3, %v2634_v62  ;;  %v3025_v14 = vmul.f32 %v3017_v1, %v2998_v13  ;;  %v3022_v43 = vmul.f32 %v3005_v26, %v2997_v36  ;;  %v3024_v46 = vmul.f32 %v3013_v29, %v2995_v39  ;;  %v3026_v29 = vld [vmem:[%s16816_s1 + $0x78] sm:$0xff] }
  0xf6   :  { %11892 = vmatpush1.msk.msra.mxu0 %vm130_vm1, %v2820_v60  ;;  %11895 = vmatpush1.msk.msra.mxu1 %vm130_vm1, %v2822_v6  ;;  %v11911_v60 = vld [vmem:[%s16819_s4 + $0x41] ss:$8 sm:$0xf]  ;;  %v3207_v62 = vrot.slane %v11904_v24, %v13399_v11  ;;  %v3215_v6 = vrot.slane %v11904_v24, %v13401_v12 }
  0xf7   :  { %2904 = vmatprep.mubr.f32.mxu0 %v16821_v0  ;;  %2975 = vmatprep.mubr.f32.mxu1 %v16821_v0  ;;  %v3191_v33 = vpop.permute.xlu0 %3190  ;;  %v3193_v40 = vpop.permute.xlu1 %3192  ;;  %v3413_v13 = vrot.slane %v11911_v60, %v13396_v10 }
  0xf8   :  { %11898 = vmatprep.subr.msk.mxu0 %vm130_vm1, %v3023_v63  ;;  %11901 = vmatprep.subr.msk.mxu1 %vm130_vm1, %v3025_v14  ;;  %v3198_v3 = vsel %vm3196_vm10, %v3191_v33, %v3193_v40 }
  0xf9   :  { %v3225_v54 = vmul.f32 %v3211_v4, %v3198_v3  ;;  %v3417_v4 = vrot.slane %v11911_v60, %v13401_v12  ;;  %v3228_v12 = vld [vmem:[%s16816_s1 + $0x80] sm:$0xff] }
  0xfb   :  { %v3189_v2 = vpop.permute.xlu0 %3188  ;;  %v3195_v53 = vpop.permute.xlu1 %3194 }
  0xfc   :  { %v3200_v57 = vsel %vm3196_vm10, %v3195_v53, %v3189_v2  ;;  %v3199_v56 = vsel %vm3196_vm10, %v3189_v2, %v3191_v33  ;;  %v3197_v9 = vsel %vm3196_vm10, %v3193_v40, %v3195_v53  ;;  %v3421_v33 = vrot.slane %v11911_v60, %v13390_v8  ;;  %v3430_v2 = vld [vmem:[%s16816_s1 + $0x88] sm:$0xff] }
  0xfd   :  { %11893 = vmatmul.mubr.msk.f32.vlgmr.msra.gmra.mrb[2].mxu0 %vm126_vm3, %v2824_v44  ;;  %11896 = vmatmul.mubr.msk.f32.vlgmr.msra.gmra.mrb[2].mxu1 %vm126_vm3, %v2824_v44  ;;  %v3227_v1 = vmul.f32 %v3219_v42, %v3200_v57  ;;  %v3224_v26 = vmul.f32 %v3207_v62, %v3199_v56  ;;  %v3226_v36 = vmul.f32 %v3215_v6, %v3197_v9 }
  0xfe   :  { %11899 = vmatpush1.msk.msra.mxu0 %vm130_vm1, %v3022_v43  ;;  %11902 = vmatpush1.msk.msra.mxu1 %vm130_vm1, %v3024_v46  ;;  %v3409_v40 = vrot.slane %v11911_v60, %v13399_v11 }
  0xff   :  { %3106 = vmatprep.mubr.f32.mxu0 %v16821_v0  ;;  %3177 = vmatprep.mubr.f32.mxu1 %v16821_v0  ;;  %v3393_v63 = vpop.permute.xlu0 %3392 }
 0x100   :  { %11905 = vmatprep.subr.msk.mxu0 %vm130_vm1, %v3225_v54  ;;  %v3395_v14 = vpop.permute.xlu1 %3394  ;;  %11908 = vmatprep.subr.msk.mxu1 %vm130_vm1, %v3227_v1 }
 0x101   :  { %v3400_v24 = vsel %vm3398_vm11, %v3393_v63, %v3395_v14 }
 0x102   :  { %v3427_v39 = vmul.f32 %v3413_v13, %v3400_v24 }
 0x105   :  { %11900 = vmatmul.mubr.msk.f32.vlgmr.msra.gmra.mrb[2].mxu0 %vm126_vm3, %v3026_v29  ;;  %11903 = vmatmul.mubr.msk.f32.vlgmr.msra.gmra.mrb[2].mxu1 %vm126_vm3, %v3026_v29  ;;  %v3391_v10 = vpop.permute.xlu0 %3390 }
 0x106   :  { %11906 = vmatpush1.msk.msra.mxu0 %vm130_vm1, %v3224_v26  ;;  %11909 = vmatpush1.msk.msra.mxu1 %vm130_vm1, %v3226_v36  ;;  %v3397_v3 = vpop.permute.xlu1 %3396  ;;  %v3401_v8 = vsel %vm3398_vm11, %v3391_v10, %v3393_v63 }
 0x107   :  { %3308 = vmatprep.mubr.f32.mxu0 %v16821_v0  ;;  %3379 = vmatprep.mubr.f32.mxu1 %v16821_v0  ;;  %v3399_v42 = vsel %vm3398_vm11, %v3395_v14, %v3397_v3  ;;  %v3402_v43 = vsel %vm3398_vm11, %v3397_v3, %v3391_v10  ;;  %v3426_v11 = vmul.f32 %v3409_v40, %v3401_v8 }
 0x108   :  { %v3429_v44 = vmul.f32 %v3421_v33, %v3402_v43  ;;  %11912 = vmatprep.subr.msk.mxu0 %vm130_vm1, %v3427_v39  ;;  %v3428_v46 = vmul.f32 %v3417_v4, %v3399_v42 }
 0x10a   :  { %11915 = vmatprep.subr.msk.mxu1 %vm130_vm1, %v3429_v44 }
 0x10d   :  { %11907 = vmatmul.mubr.msk.f32.vlgmr.msra.gmra.mrb[2].mxu0 %vm126_vm3, %v3228_v12  ;;  %11910 = vmatmul.mubr.msk.f32.vlgmr.msra.gmra.mrb[2].mxu1 %vm126_vm3, %v3228_v12 }
 0x10e   :  { %11913 = vmatpush1.msk.msra.mxu0 %vm130_vm1, %v3426_v11  ;;  %11916 = vmatpush1.msk.msra.mxu1 %vm130_vm1, %v3428_v46 }
 0x10f   :  { %3510 = vmatprep.mubr.f32.mxu0 %v16821_v0  ;;  %3581 = vmatprep.mubr.f32.mxu1 %v16821_v0 }
 0x115   :  { %11914 = vmatmul.mubr.msk.f32.vlgmr.msra.gmra.mrb[2].mxu0 %vm126_vm3, %v3430_v2  ;;  %11917 = vmatmul.mubr.msk.f32.vlgmr.msra.gmra.mrb[2].mxu1 %vm126_vm3, %v3430_v2 }
 0x116   :  { %3703 = vmatprep.mubr.f32.mxu0 %v16821_v0  ;;  %3780 = vmatprep.mubr.f32.mxu1 %v16821_v0 }
 0x117   :  { %v1816_v60 = vpop.permute.xlu0 %1815 }
 0x11a   :  { %v3596_v63 = vpop.permute.xlu1 %3595 }
 0x1a4   :  { %v1732_v53 = vpop.f32.mrb[0].mxu0  ;;  %v1803_v54 = vpop.f32.mrb[0].mxu1 }
 0x1a5   :  { %v1734_v57 = vpop.f32.mrb[1].mxu0  ;;  %v1805_v1 = vpop.f32.mrb[1].mxu1  ;;  %v1818_v62 = vadd.f32 %v1816_v60, %v1732_v53  ;;  %v1820_v6 = vadd.f32 %v1816_v60, %v1803_v54 }
 0x1a6   :  { %v1819_v56 = vadd.f32 %v1816_v60, %v1734_v57  ;;  %v1821_v9 = vadd.f32 %v1816_v60, %v1805_v1 }
 0x1a7   :  { %v1826_v13 = vmul.f32 0.2, %v1818_v62  ;;  %v1828_v14 = vmul.f32 0.2, %v1820_v6  ;;  %vm1822_vm1 = vcmp.gt.f32.partialorder %v1818_v62, 0.0  ;;  %vm1824_vm12 = vcmp.gt.f32.partialorder %v1820_v6, 0.0 }
 0x1a8   :  { %vm1823_vm13 = vcmp.gt.f32.partialorder %v1819_v56, 0.0  ;;  %v1827_v24 = vmul.f32 0.2, %v1819_v56  ;;  %vm1825_vm3 = vcmp.gt.f32.partialorder %v1821_v9, 0.0  ;;  %v1829_v36 = vmul.f32 0.2, %v1821_v9 }
 0x1a9   :  { %v1830_v4 = vsel %vm1822_vm1, %v1818_v62, %v1826_v13  ;;  %v1832_v3 = vsel %vm1824_vm12, %v1820_v6, %v1828_v14  ;;  %vm3632_vm1 = vcmask 64512   ;;  %v5435_v13 = vld [vmem:[%s16817_s2 + $0x20] sm:$0xff]  ;;  %v5436_v14 = vld [vmem:[%s16817_s2 + $0x28] sm:$0xff]  ;;  %vm5531_vm12 = vcmask 130048  }
 0x1aa   :  { %v1831_v46 = vsel %vm1823_vm13, %v1819_v56, %v1827_v24  ;;  %v1833_v2 = vsel %vm1825_vm3, %v1821_v9, %v1829_v36  ;;  %v3618_v56 = vld [vmem:[%s16816_s1 + $0x90] sm:$0xff]  ;;  %v3619_v9 = vld [vmem:[%s16816_s1 + $0x98] sm:$0xff] }
 0x1e8   :  { %v3512_v26 = vpop.f32.mrb[2].mxu0  ;;  %v3583_v29 = vpop.f32.mrb[2].mxu1 }
 0x1e9   :  { %v3598_v39 = vadd.f32 %v3596_v63, %v3512_v26  ;;  %v3600_v33 = vadd.f32 %v3596_v63, %v3583_v29  ;;  %v3514_v10 = vpop.f32.mrb[3].mxu0  ;;  %v3585_v40 = vpop.f32.mrb[3].mxu1 }
 0x1ea   :  { %v3599_v8 = vadd.f32 %v3596_v63, %v3514_v10  ;;  %v3601_v42 = vadd.f32 %v3596_v63, %v3585_v40 }
 0x1eb   :  { %vm3602_vm14 = vcmp.gt.f32.partialorder %v3598_v39, 0.0  ;;  %v3606_v43 = vmul.f32 0.2, %v3598_v39  ;;  %vm3604_vm15 = vcmp.gt.f32.partialorder %v3600_v33, 0.0  ;;  %v3608_v44 = vmul.f32 0.2, %v3600_v33 }
 0x1ec   :  { %vm3603_vm10 = vcmp.gt.f32.partialorder %v3599_v8, 0.0  ;;  %v3607_v11 = vmul.f32 0.2, %v3599_v8  ;;  %vm3605_vm11 = vcmp.gt.f32.partialorder %v3601_v42, 0.0  ;;  %v3609_v12 = vmul.f32 0.2, %v3601_v42 }
 0x1ed   :  { %v3610_v53 = vsel %vm3602_vm14, %v3598_v39, %v3606_v43  ;;  %v3612_v54 = vsel %vm3604_vm15, %v3600_v33, %v3608_v44 }
 0x1ee   :  { %v13972_v57 = vadd.f32 %v3610_v53, %v1830_v4  ;;  %v13974_v1 = vadd.f32 %v3612_v54, %v1832_v3  ;;  %v3611_v60 = vsel %vm3603_vm10, %v3599_v8, %v3607_v11  ;;  %v3613_v62 = vsel %vm3605_vm11, %v3601_v42, %v3609_v12  ;;  %v3827_v42 = vld [vmem:[%s16816_s1 + $0xb0] sm:$0xff] }
 0x1ef   :  { %v13976_v6 = vadd.f32 %v3611_v60, %v1831_v46  ;;  %v13978_v63 = vadd.f32 %v3613_v62, %v1833_v2  ;;  %v3828_v2 = vld [vmem:[%s16816_s1 + $0xb8] sm:$0xff] }
 0x1f0   :  { %3811 = vrot.lane.b32.xlu1 %v13972_v57, %s13218_s11 }
 0x1f1   :  { %3716 = vmatprep.subr.mxu1 %v13978_v63  ;;  %3813 = vrot.lane.b32.xlu0 %v13976_v6, %s13218_s11 }
 0x1f2   :  { %3639 = vmatprep.subr.mxu0 %v13976_v6  ;;  %3717 = vmatpush1.msra.mxu1 %v13974_v1 }
 0x1f3   :  { %3640 = vmatpush1.msra.mxu0 %v13972_v57  ;;  %11920 = vmatmul.mubr.msk.f32.vlgmr.msra.gmra.mrb[4].mxu1 %vm3632_vm1, %v3618_v56 }
 0x1f4   :  { %3815 = vrot.lane.b32.xlu1 %v13974_v1, %s13218_s11  ;;  %11918 = vmatmul.mubr.msk.f32.vlgmr.msra.gmra.mrb[4].mxu0 %vm3632_vm1, %v3618_v56 }
 0x1f5   :  { %3817 = vrot.lane.b32.xlu0 %v13978_v63, %s13218_s11  ;;  %3709 = vmatprep.mubr.f32.mxu0 %v16821_v0 }
 0x1f6   :  { %3786 = vmatprep.mubr.f32.mxu1 %v16821_v0 }
 0x1f7   :  { %11921 = vmatmul.mubr.msk.f32.gmra.mrb[6].mxu1 %vm3632_vm1, %v3619_v9 }
 0x1f8   :  { %3793 = vrot.lane.b32.xlu1 %v13972_v57, %s13219_s0  ;;  %11919 = vmatmul.mubr.msk.f32.gmra.mrb[6].mxu0 %vm3632_vm1, %v3619_v9 }
 0x1f9   :  { %3795 = vrot.lane.b32.xlu0 %v13976_v6, %s13219_s0  ;;  %3899 = vmatprep.mubr.f32.mxu0 %v16821_v0 }
 0x1fa   :  { %3976 = vmatprep.mubr.f32.mxu1 %v16821_v0 }
 0x1fc   :  { %3797 = vrot.lane.b32.xlu1 %v13974_v1, %s13219_s0 }
 0x1fd   :  { %3799 = vrot.lane.b32.xlu0 %v13978_v63, %s13219_s0 }
 0x200   :  { %4149 = vrot.lane.b32.xlu1 %v13972_v57, %s13220_s3 }
 0x201   :  { %4151 = vrot.lane.b32.xlu0 %v13976_v6, %s13220_s3 }
 0x204   :  { %4153 = vrot.lane.b32.xlu1 %v13974_v1, %s13220_s3 }
 0x205   :  { %4155 = vrot.lane.b32.xlu0 %v13978_v63, %s13220_s3 }
 0x208   :  { %4335 = vrot.lane.b32.xlu1 %v13972_v57, %s13221_s12 }
 0x209   :  { %4337 = vrot.lane.b32.xlu0 %v13976_v6, %s13221_s12 }
 0x20c   :  { %4339 = vrot.lane.b32.xlu1 %v13974_v1, %s13221_s12 }
 0x20d   :  { %4341 = vrot.lane.b32.xlu0 %v13978_v63, %s13221_s12 }
 0x210   :  { %4693 = vrot.lane.b32.xlu1 %v13976_v6, %s13222_s13 }
 0x211   :  { %4695 = vrot.lane.b32.xlu0 %v13974_v1, %s13222_s13 }
 0x214   :  { %4691 = vrot.lane.b32.xlu1 %v13972_v57, %s13222_s13 }
 0x215   :  { %4697 = vrot.lane.b32.xlu0 %v13978_v63, %s13222_s13 }
 0x218   :  { %4879 = vrot.lane.b32.xlu1 %v13976_v6, %s13223_s14 }
 0x219   :  { %4881 = vrot.lane.b32.xlu0 %v13974_v1, %s13223_s14 }
 0x21c   :  { %4877 = vrot.lane.b32.xlu1 %v13972_v57, %s13223_s14 }
 0x21d   :  { %4883 = vrot.lane.b32.xlu0 %v13978_v63, %s13223_s14 }
 0x220   :  { %5065 = vrot.lane.b32.xlu1 %v13976_v6, %s13224_s15 }
 0x221   :  { %5067 = vrot.lane.b32.xlu0 %v13974_v1, %s13224_s15 }
 0x224   :  { %5063 = vrot.lane.b32.xlu1 %v13972_v57, %s13224_s15 }
 0x225   :  { %5069 = vrot.lane.b32.xlu0 %v13978_v63, %s13224_s15 }
 0x228   :  { %5251 = vrot.lane.b32.xlu1 %v13976_v6, %s13225_s16 }
 0x229   :  { %5253 = vrot.lane.b32.xlu0 %v13974_v1, %s13225_s16 }
 0x22c   :  { %5249 = vrot.lane.b32.xlu1 %v13972_v57, %s13225_s16 }
 0x22d   :  { %5255 = vrot.lane.b32.xlu0 %v13978_v63, %s13225_s16 }
 0x230   :  { %5439 = vperm.xlu1 %13163, %v5435_v13  }
 0x231   :  { %5444 = vperm.xlu0 %13162, %v5436_v14   ;;  %v3809_v14 = vld [vmem:[%s16816_s1 + $0xa0] sm:$0xff] }
 0x262   :  { %v3812_v24 = vpop.permute.xlu1 %3811 }
 0x263   :  { %v3814_v26 = vpop.permute.xlu0 %3813 }
 0x264   :  { %v3821_v29 = vsel %vm93_vm0, %v3812_v24, %v3814_v26 }
 0x265   :  { %v3824_v36 = vmul.f32 %v3821_v29, %v13411_v17 }
 0x266   :  { %v3816_v39 = vpop.permute.xlu1 %3815 }
 0x267   :  { %v3820_v33 = vsel %vm93_vm0, %v3814_v26, %v3816_v39  ;;  %v3818_v10 = vpop.permute.xlu0 %3817  ;;  %3835 = vmatprep.subr.mxu0 %v3824_v36 }
 0x268   :  { %v3819_v40 = vsel %vm93_vm0, %v3816_v39, %v3818_v10  ;;  %v3822_v4 = vsel %vm93_vm0, %v3818_v10, %v3812_v24  ;;  %v3825_v43 = vmul.f32 %v3820_v33, %v13417_v19  ;;  %v3810_v33 = vld [vmem:[%s16816_s1 + $0xa8] sm:$0xff] }
 0x269   :  { %v3823_v3 = vmul.f32 %v3822_v4, %v13414_v18  ;;  %v3826_v8 = vmul.f32 %v3819_v40, %v13404_v15 }
 0x26a   :  { %v3794_v44 = vpop.permute.xlu1 %3793 }
 0x26b   :  { %v3796_v11 = vpop.permute.xlu0 %3795  ;;  %3836 = vmatpush1.msra.mxu0 %v3823_v3  ;;  %3912 = vmatprep.subr.mxu1 %v3826_v8 }
 0x26c   :  { %v3803_v12 = vsel %vm53_vm2, %v3794_v44, %v3796_v11  ;;  %11922 = vmatmul.mubr.msk.f32.vlgmr.msra.gmra.mrb[8].mxu0 %vm3632_vm1, %v3827_v42  ;;  %3913 = vmatpush1.msra.mxu1 %v3825_v43 }
 0x26d   :  { %11924 = vmatmul.mubr.msk.f32.vlgmr.msra.gmra.mrb[8].mxu1 %vm3632_vm1, %v3827_v42  ;;  %3905 = vmatprep.mubr.f32.mxu0 %v16821_v0  ;;  %v3806_v46 = vmul.f32 %v3803_v12, %v13423_v22 }
 0x26e   :  { %v3798_v53 = vpop.permute.xlu1 %3797  ;;  %3982 = vmatprep.mubr.f32.mxu1 %v16821_v0 }
 0x26f   :  { %v3802_v54 = vsel %vm53_vm2, %v3796_v11, %v3798_v53  ;;  %v3800_v60 = vpop.permute.xlu0 %3799  ;;  %3995 = vmatprep.subr.mxu0 %v3806_v46 }
 0x270   :  { %v3801_v62 = vsel %vm53_vm2, %v3798_v53, %v3800_v60  ;;  %v3804_v56 = vsel %vm53_vm2, %v3800_v60, %v3794_v44  ;;  %11923 = vmatmul.mubr.msk.f32.gmra.mrb[10].mxu0 %vm3632_vm1, %v3828_v2  ;;  %v3807_v24 = vmul.f32 %v3802_v54, %v13455_v37  ;;  %v4165_v44 = vld [vmem:[%s16816_s1 + $0xc0] sm:$0xff]  ;;  %v4166_v54 = vld [vmem:[%s16816_s1 + $0xc8] sm:$0xff] }
 0x271   :  { %v3805_v9 = vmul.f32 %v3804_v56, %v13449_v35  ;;  %11925 = vmatmul.mubr.msk.f32.gmra.mrb[10].mxu1 %vm3632_vm1, %v3828_v2  ;;  %4059 = vmatprep.mubr.f32.mxu0 %v16821_v0  ;;  %v3808_v13 = vmul.f32 %v3801_v62, %v13458_v38 }
 0x272   :  { %v4150_v26 = vpop.permute.xlu1 %4149  ;;  %4136 = vmatprep.mubr.f32.mxu1 %v16821_v0 }
 0x273   :  { %v4152_v29 = vpop.permute.xlu0 %4151  ;;  %3996 = vmatpush1.msra.mxu0 %v3805_v9  ;;  %4072 = vmatprep.subr.mxu1 %v3808_v13 }
 0x274   :  { %v4159_v36 = vsel %vm450_vm4, %v4150_v26, %v4152_v29  ;;  %11926 = vmatmul.mubr.msk.f32.vlgmr.msra.gmra.mrb[8].mxu0 %vm3632_vm1, %v3809_v14  ;;  %4073 = vmatpush1.msra.mxu1 %v3807_v24 }
 0x275   :  { %11928 = vmatmul.mubr.msk.f32.vlgmr.msra.gmra.mrb[8].mxu1 %vm3632_vm1, %v3809_v14  ;;  %4065 = vmatprep.mubr.f32.mxu0 %v16821_v0  ;;  %v4162_v39 = vmul.f32 %v4159_v36, %v13475_v45 }
 0x276   :  { %v4154_v10 = vpop.permute.xlu1 %4153  ;;  %4142 = vmatprep.mubr.f32.mxu1 %v16821_v0 }
 0x277   :  { %v4158_v40 = vsel %vm450_vm4, %v4152_v29, %v4154_v10  ;;  %v4156_v4 = vpop.permute.xlu0 %4155  ;;  %4173 = vmatprep.subr.mxu0 %v4162_v39 }
 0x278   :  { %v4157_v3 = vsel %vm450_vm4, %v4154_v10, %v4156_v4  ;;  %v4160_v8 = vsel %vm450_vm4, %v4156_v4, %v4150_v26  ;;  %11927 = vmatmul.mubr.msk.f32.gmra.mrb[10].mxu0 %vm3632_vm1, %v3810_v33  ;;  %v4163_v11 = vmul.f32 %v4158_v40, %v13502_v58  ;;  %v4351_v26 = vld [vmem:[%s16816_s1 + $0xd0] sm:$0xff]  ;;  %v4352_v40 = vld [vmem:[%s16816_s1 + $0xd8] sm:$0xff] }
 0x279   :  { %v4161_v42 = vmul.f32 %v4160_v8, %v13493_v55  ;;  %11929 = vmatmul.mubr.msk.f32.gmra.mrb[10].mxu1 %vm3632_vm1, %v3810_v33  ;;  %4237 = vmatprep.mubr.f32.mxu0 %v16821_v0  ;;  %v4164_v43 = vmul.f32 %v4157_v3, %v13505_v59 }
 0x27a   :  { %v4336_v12 = vpop.permute.xlu1 %4335  ;;  %4314 = vmatprep.mubr.f32.mxu1 %v16821_v0 }
 0x27b   :  { %v4338_v46 = vpop.permute.xlu0 %4337  ;;  %4174 = vmatpush1.msra.mxu0 %v4161_v42  ;;  %4250 = vmatprep.subr.mxu1 %v4164_v43 }
 0x27c   :  { %v4345_v2 = vsel %vm652_vm5, %v4336_v12, %v4338_v46  ;;  %11930 = vmatmul.mubr.msk.f32.vlgmr.msra.gmra.mrb[8].mxu0 %vm3632_vm1, %v4165_v44  ;;  %4251 = vmatpush1.msra.mxu1 %v4163_v11 }
 0x27d   :  { %11932 = vmatmul.mubr.msk.f32.vlgmr.msra.gmra.mrb[8].mxu1 %vm3632_vm1, %v4165_v44  ;;  %4243 = vmatprep.mubr.f32.mxu0 %v16821_v0  ;;  %v4348_v53 = vmul.f32 %v4345_v2, %v13524_v16  ;;  %v4522_v2 = vld [vmem:[%s16816_s1 + $0xe8] sm:$0xff] }
 0x27e   :  { %v4340_v60 = vpop.permute.xlu1 %4339  ;;  %4320 = vmatprep.mubr.f32.mxu1 %v16821_v0 }
 0x27f   :  { %v4344_v62 = vsel %vm652_vm5, %v4338_v46, %v4340_v60  ;;  %v4342_v56 = vpop.permute.xlu0 %4341  ;;  %4359 = vmatprep.subr.mxu0 %v4348_v53 }
 0x280   :  { %v4343_v9 = vsel %vm652_vm5, %v4340_v60, %v4342_v56  ;;  %v4346_v13 = vsel %vm652_vm5, %v4342_v56, %v4336_v12  ;;  %11931 = vmatmul.mubr.msk.f32.gmra.mrb[10].mxu0 %vm3632_vm1, %v4166_v54  ;;  %v4349_v29 = vmul.f32 %v4344_v62, %v13541_v27 }
 0x281   :  { %v4347_v14 = vmul.f32 %v4346_v13, %v13535_v25  ;;  %11933 = vmatmul.mubr.msk.f32.gmra.mrb[10].mxu1 %vm3632_vm1, %v4166_v54  ;;  %4423 = vmatprep.mubr.f32.mxu0 %v16821_v0  ;;  %v4350_v24 = vmul.f32 %v4343_v9, %v13544_v28  ;;  %v4707_v9 = vld [vmem:[%s16816_s1 + $0xf0] sm:$0xff] }
 0x282   :  { %v4694_v36 = vpop.permute.xlu1 %4693  ;;  %4500 = vmatprep.mubr.f32.mxu1 %v16821_v0 }
 0x283   :  { %v4696_v39 = vpop.permute.xlu0 %4695  ;;  %4360 = vmatpush1.msra.mxu0 %v4347_v14  ;;  %4436 = vmatprep.subr.mxu1 %v4350_v24 }
 0x284   :  { %v4700_v33 = vsel %vm1012_vm6, %v4694_v36, %v4696_v39  ;;  %11934 = vmatmul.mubr.msk.f32.vlgmr.msra.gmra.mrb[8].mxu0 %vm3632_vm1, %v4351_v26  ;;  %4437 = vmatpush1.msra.mxu1 %v4349_v29 }
 0x285   :  { %4529 = vmatprep.subr.mxu0 %v13976_v6  ;;  %11936 = vmatmul.mubr.msk.f32.vlgmr.msra.gmra.mrb[8].mxu1 %vm3632_vm1, %v4351_v26  ;;  %v4704_v10 = vmul.f32 %v4700_v33, %v13563_v41  ;;  %v4708_v33 = vld [vmem:[%s16816_s1 + $0xf8] sm:$0xff] }
 0x286   :  { %4530 = vmatpush1.msra.mxu0 %v13972_v57  ;;  %4606 = vmatprep.subr.mxu1 %v13978_v63  ;;  %v4692_v4 = vpop.permute.xlu1 %4691 }
 0x287   :  { %4607 = vmatpush1.msra.mxu1 %v13974_v1  ;;  %v4698_v3 = vpop.permute.xlu0 %4697  ;;  %4429 = vmatprep.mubr.f32.mxu0 %v16821_v0  ;;  %v4701_v6 = vsel %vm1012_vm6, %v4692_v4, %v4694_v36  ;;  %v4521_v1 = vld [vmem:[%s16816_s1 + $0xe0] sm:$0xff] }
 0x288   :  { %v4702_v8 = vsel %vm1012_vm6, %v4698_v3, %v4692_v4  ;;  %4715 = vmatprep.subr.mxu0 %v4704_v10  ;;  %11935 = vmatmul.mubr.msk.f32.gmra.mrb[10].mxu0 %vm3632_vm1, %v4352_v40  ;;  %v4699_v63 = vsel %vm1012_vm6, %v4696_v39, %v4698_v3  ;;  %v4703_v43 = vmul.f32 %v4701_v6, %v13585_v50 }
 0x289   :  { %4506 = vmatprep.mubr.f32.mxu1 %v16821_v0  ;;  %4593 = vmatprep.mubr.f32.mxu0 %v16821_v0  ;;  %v4706_v57 = vmul.f32 %v4702_v8, %v13579_v48  ;;  %v4705_v12 = vmul.f32 %v4699_v63, %v13582_v49  ;;  %v4893_v8 = vld [vmem:[%s16816_s1 + $0x100] sm:$0xff] }
 0x28a   :  { %11937 = vmatmul.mubr.msk.f32.gmra.mrb[10].mxu1 %vm3632_vm1, %v4352_v40  ;;  %v4880_v42 = vpop.permute.xlu1 %4879 }
 0x28b   :  { %v4882_v44 = vpop.permute.xlu0 %4881  ;;  %4792 = vmatprep.subr.mxu1 %v4706_v57  ;;  %4670 = vmatprep.mubr.f32.mxu1 %v16821_v0 }
 0x28c   :  { %v4886_v11 = vsel %vm1214_vm7, %v4880_v42, %v4882_v44  ;;  %11938 = vmatmul.mubr.msk.f32.vlgmr.msra.gmra.mrb[8].mxu0 %vm3632_vm1, %v4521_v1 }
 0x28d   :  { %4716 = vmatpush1.msra.mxu0 %v4703_v43  ;;  %4599 = vmatprep.mubr.f32.mxu0 %v16821_v0  ;;  %v4890_v46 = vmul.f32 %v4886_v11, %v13608_v61 }
 0x28e   :  { %11940 = vmatmul.mubr.msk.f32.vlgmr.msra.gmra.mrb[8].mxu1 %vm3632_vm1, %v4521_v1  ;;  %v4878_v53 = vpop.permute.xlu1 %4877 }
 0x28f   :  { %4793 = vmatpush1.msra.mxu1 %v4705_v12  ;;  %v4884_v54 = vpop.permute.xlu0 %4883  ;;  %4901 = vmatprep.subr.mxu0 %v4890_v46  ;;  %v4887_v60 = vsel %vm1214_vm7, %v4878_v53, %v4880_v42  ;;  %v4894_v12 = vld [vmem:[%s16816_s1 + $0x108] sm:$0xff] }
 0x290   :  { %v4888_v62 = vsel %vm1214_vm7, %v4884_v54, %v4878_v53  ;;  %11939 = vmatmul.mubr.msk.f32.gmra.mrb[10].mxu0 %vm3632_vm1, %v4522_v2  ;;  %4676 = vmatprep.mubr.f32.mxu1 %v16821_v0  ;;  %v4885_v13 = vsel %vm1214_vm7, %v4882_v44, %v4884_v54  ;;  %v4889_v24 = vmul.f32 %v4887_v60, %v13630_v23 }
 0x291   :  { %4779 = vmatprep.mubr.f32.mxu0 %v16821_v0  ;;  %v4892_v56 = vmul.f32 %v4888_v62, %v13622_v20  ;;  %v4891_v36 = vmul.f32 %v4885_v13, %v13626_v21  ;;  %v5079_v62 = vld [vmem:[%s16816_s1 + $0x110] sm:$0xff] }
 0x292   :  { %11941 = vmatmul.mubr.msk.f32.gmra.mrb[10].mxu1 %vm3632_vm1, %v4522_v2  ;;  %v5066_v14 = vpop.permute.xlu1 %5065 }
 0x293   :  { %v5068_v26 = vpop.permute.xlu0 %5067  ;;  %4978 = vmatprep.subr.mxu1 %v4892_v56  ;;  %4856 = vmatprep.mubr.f32.mxu1 %v16821_v0 }
 0x294   :  { %v5072_v29 = vsel %vm1416_vm8, %v5066_v14, %v5068_v26  ;;  %11942 = vmatmul.mubr.msk.f32.vlgmr.msra.gmra.mrb[8].mxu0 %vm3632_vm1, %v4707_v9 }
 0x295   :  { %4902 = vmatpush1.msra.mxu0 %v4889_v24  ;;  %4785 = vmatprep.mubr.f32.mxu0 %v16821_v0  ;;  %v5076_v39 = vmul.f32 %v5072_v29, %v13647_v34  ;;  %v5265_v24 = vld [vmem:[%s16816_s1 + $0x120] sm:$0xff] }
 0x296   :  { %11944 = vmatmul.mubr.msk.f32.vlgmr.msra.gmra.mrb[8].mxu1 %vm3632_vm1, %v4707_v9  ;;  %v5064_v10 = vpop.permute.xlu1 %5063 }
 0x297   :  { %4979 = vmatpush1.msra.mxu1 %v4891_v36  ;;  %v5070_v40 = vpop.permute.xlu0 %5069  ;;  %5087 = vmatprep.subr.mxu0 %v5076_v39  ;;  %v5073_v4 = vsel %vm1416_vm8, %v5064_v10, %v5066_v14  ;;  %v5080_v14 = vld [vmem:[%s16816_s1 + $0x118] sm:$0xff] }
 0x298   :  { %v5074_v3 = vsel %vm1416_vm8, %v5070_v40, %v5064_v10  ;;  %11943 = vmatmul.mubr.msk.f32.gmra.mrb[10].mxu0 %vm3632_vm1, %v4708_v33  ;;  %4862 = vmatprep.mubr.f32.mxu1 %v16821_v0  ;;  %v5071_v57 = vsel %vm1416_vm8, %v5068_v26, %v5070_v40  ;;  %v5075_v63 = vmul.f32 %v5073_v4, %v13669_v52  ;;  %v5266_v26 = vld [vmem:[%s16816_s1 + $0x128] sm:$0xff] }
 0x299   :  { %4965 = vmatprep.mubr.f32.mxu0 %v16821_v0  ;;  %v5078_v6 = vmul.f32 %v5074_v3, %v13661_v47  ;;  %v5077_v44 = vmul.f32 %v5071_v57, %v13665_v51 }
 0x29a   :  { %11945 = vmatmul.mubr.msk.f32.gmra.mrb[10].mxu1 %vm3632_vm1, %v4708_v33  ;;  %v5252_v1 = vpop.permute.xlu1 %5251 }
 0x29b   :  { %v5254_v42 = vpop.permute.xlu0 %5253  ;;  %5164 = vmatprep.subr.mxu1 %v5078_v6  ;;  %5042 = vmatprep.mubr.f32.mxu1 %v16821_v0 }
 0x29c   :  { %v5258_v43 = vsel %vm1618_vm9, %v5252_v1, %v5254_v42  ;;  %11946 = vmatmul.mubr.msk.f32.vlgmr.msra.gmra.mrb[8].mxu0 %vm3632_vm1, %v4893_v8 }
 0x29d   :  { %5088 = vmatpush1.msra.mxu0 %v5075_v63  ;;  %4971 = vmatprep.mubr.f32.mxu0 %v16821_v0  ;;  %v5262_v11 = vmul.f32 %v5258_v43, %v13686_v5 }
 0x29e   :  { %11948 = vmatmul.mubr.msk.f32.vlgmr.msra.gmra.mrb[8].mxu1 %vm3632_vm1, %v4893_v8  ;;  %v5250_v46 = vpop.permute.xlu1 %5249 }
 0x29f   :  { %5165 = vmatpush1.msra.mxu1 %v5077_v44  ;;  %v5256_v2 = vpop.permute.xlu0 %5255  ;;  %5273 = vmatprep.subr.mxu0 %v5262_v11  ;;  %v5259_v53 = vsel %vm1618_vm9, %v5250_v46, %v5252_v1 }
 0x2a0   :  { %v5260_v54 = vsel %vm1618_vm9, %v5256_v2, %v5250_v46  ;;  %11947 = vmatmul.mubr.msk.f32.gmra.mrb[10].mxu0 %vm3632_vm1, %v4894_v12  ;;  %5048 = vmatprep.mubr.f32.mxu1 %v16821_v0  ;;  %v5257_v56 = vsel %vm1618_vm9, %v5254_v42, %v5256_v2  ;;  %v5261_v9 = vmul.f32 %v5259_v53, %v13708_v32 }
 0x2a1   :  { %5151 = vmatprep.mubr.f32.mxu0 %v16821_v0  ;;  %v5264_v60 = vmul.f32 %v5260_v54, %v13700_v30  ;;  %v5263_v13 = vmul.f32 %v5257_v56, %v13704_v31 }
 0x2a2   :  { %11949 = vmatmul.mubr.msk.f32.gmra.mrb[10].mxu1 %vm3632_vm1, %v4894_v12 }
 0x2a3   :  { %5350 = vmatprep.subr.mxu1 %v5264_v60  ;;  %5228 = vmatprep.mubr.f32.mxu1 %v16821_v0 }
 0x2a4   :  { %11950 = vmatmul.mubr.msk.f32.vlgmr.msra.gmra.mrb[8].mxu0 %vm3632_vm1, %v5079_v62 }
 0x2a5   :  { %5274 = vmatpush1.msra.mxu0 %v5261_v9  ;;  %5157 = vmatprep.mubr.f32.mxu0 %v16821_v0 }
 0x2a6   :  { %11952 = vmatmul.mubr.msk.f32.vlgmr.msra.gmra.mrb[8].mxu1 %vm3632_vm1, %v5079_v62 }
 0x2a7   :  { %5351 = vmatpush1.msra.mxu1 %v5263_v13  ;;  %5234 = vmatprep.mubr.f32.mxu1 %v16821_v0 }
 0x2a8   :  { %11951 = vmatmul.mubr.msk.f32.gmra.mrb[10].mxu0 %vm3632_vm1, %v5080_v14 }
 0x2a9   :  { %5337 = vmatprep.mubr.f32.mxu0 %v16821_v0 }
 0x2aa   :  { %11953 = vmatmul.mubr.msk.f32.gmra.mrb[10].mxu1 %vm3632_vm1, %v5080_v14 }
 0x2ab   :  { %5414 = vmatprep.mubr.f32.mxu1 %v16821_v0 }
 0x2ac   :  { %11954 = vmatmul.mubr.msk.f32.vlgmr.msra.gmra.mrb[8].mxu0 %vm3632_vm1, %v5265_v24 }
 0x2ad   :  { %5343 = vmatprep.mubr.f32.mxu0 %v16821_v0 }
 0x2ae   :  { %11956 = vmatmul.mubr.msk.f32.vlgmr.msra.gmra.mrb[8].mxu1 %vm3632_vm1, %v5265_v24 }
 0x2af   :  { %5420 = vmatprep.mubr.f32.mxu1 %v16821_v0  ;;  %v5440_v29 = vpop.permute.xlu1 %5439 }
 0x2b0   :  { %11955 = vmatmul.mubr.msk.f32.gmra.mrb[10].mxu0 %vm3632_vm1, %v5266_v26  ;;  %v5445_v6 = vpop.permute.xlu0 %5444 }
 0x2b1   :  { %5602 = vmatprep.mubr.f32.mxu0 %v16821_v0 }
 0x2b2   :  { %11957 = vmatmul.mubr.msk.f32.gmra.mrb[10].mxu1 %vm3632_vm1, %v5266_v26 }
 0x2b3   :  { %5679 = vmatprep.mubr.f32.mxu1 %v16821_v0 }
 0x37f   :  { %v5339_v36 = vpop.f32.mrb[8].mxu0 }
 0x380   :  { %v5447_v39 = vadd.f32 %v5440_v29, %v5339_v36  ;;  %v5341_v33 = vpop.f32.mrb[9].mxu0  ;;  %v3620_v36 = vld [vmem:[%s16817_s2 + $0x10] sm:$0xff] }
 0x381   :  { %v5416_v10 = vpop.f32.mrb[8].mxu1  ;;  %v5448_v46 = vadd.f32 %v5440_v29, %v5341_v33 }
 0x382   :  { %v14294_v40 = vmax.f32 %v5447_v39, 0.0  ;;  %v5449_v4 = vadd.f32 %v5440_v29, %v5416_v10  ;;  %v5418_v3 = vpop.f32.mrb[9].mxu1  ;;  %v7234_v10 = vld [vmem:[%s16817_s2 + $0x30] sm:$0xff] }
 0x383   :  { %v5345_v8 = vpop.f32.mrb[10].mxu0  ;;  %v14356_v2 = vmax.f32 %v5448_v46, 0.0  ;;  %v5450_v53 = vadd.f32 %v5440_v29, %v5418_v3 }
 0x384   :  { %v5451_v57 = vadd.f32 %v5445_v6, %v5345_v8  ;;  %5497 = vrot.lane.b32.xlu1 %v14294_v40, %s13218_s11  ;;  %v5347_v1 = vpop.f32.mrb[11].mxu0  ;;  %v14298_v42 = vmax.f32 %v5449_v4, 0.0  ;;  %v3621_v4 = vld [vmem:[%s16817_s2 + $0x18] sm:$0xff] }
 0x385   :  { %v5422_v63 = vpop.f32.mrb[10].mxu1  ;;  %v5452_v54 = vadd.f32 %v5445_v6, %v5347_v1  ;;  %v14362_v60 = vmax.f32 %v5450_v53, 0.0  ;;  %v7235_v8 = vld [vmem:[%s16817_s2 + $0x38] sm:$0xff] }
 0x386   :  { %v14300_v43 = vmax.f32 %v5451_v57, 0.0  ;;  %v5453_v44 = vadd.f32 %v5445_v6, %v5422_v63  ;;  %v5424_v11 = vpop.f32.mrb[11].mxu1 }
 0x387   :  { %v14364_v62 = vmax.f32 %v5452_v54, 0.0  ;;  %v5454_v56 = vadd.f32 %v5445_v6, %v5424_v11 }
 0x388   :  { %5505 = vrot.lane.b32.xlu1 %v14298_v42, %s13218_s11  ;;  %5499 = vrot.lane.b32.xlu0 %v14300_v43, %s13218_s11  ;;  %v14306_v12 = vmax.f32 %v5453_v44, 0.0 }
 0x389   :  { %v14370_v9 = vmax.f32 %v5454_v56, 0.0 }
 0x38c   :  { %5463 = vrot.lane.b32.xlu1 %v14294_v40, %s13219_s0  ;;  %5507 = vrot.lane.b32.xlu0 %v14306_v12, %s13218_s11 }
 0x390   :  { %5471 = vrot.lane.b32.xlu1 %v14298_v42, %s13219_s0  ;;  %5465 = vrot.lane.b32.xlu0 %v14300_v43, %s13219_s0 }
 0x394   :  { %5852 = vrot.lane.b32.xlu1 %v14294_v40, %s13220_s3  ;;  %5473 = vrot.lane.b32.xlu0 %v14306_v12, %s13219_s0 }
 0x398   :  { %5860 = vrot.lane.b32.xlu1 %v14298_v42, %s13220_s3  ;;  %5854 = vrot.lane.b32.xlu0 %v14300_v43, %s13220_s3 }
 0x39c   :  { %6054 = vrot.lane.b32.xlu1 %v14294_v40, %s13221_s12  ;;  %5862 = vrot.lane.b32.xlu0 %v14306_v12, %s13220_s3 }
 0x3a0   :  { %6062 = vrot.lane.b32.xlu1 %v14298_v42, %s13221_s12  ;;  %6056 = vrot.lane.b32.xlu0 %v14300_v43, %s13221_s12 }
 0x3a4   :  { %6434 = vrot.lane.b32.xlu1 %v14298_v42, %s13222_s13  ;;  %6064 = vrot.lane.b32.xlu0 %v14306_v12, %s13221_s12 }
 0x3a8   :  { %6426 = vrot.lane.b32.xlu1 %v14294_v40, %s13222_s13  ;;  %6436 = vrot.lane.b32.xlu0 %v14306_v12, %s13222_s13 }
 0x3ac   :  { %6636 = vrot.lane.b32.xlu1 %v14298_v42, %s13223_s14  ;;  %6428 = vrot.lane.b32.xlu0 %v14300_v43, %s13222_s13 }
 0x3b0   :  { %6628 = vrot.lane.b32.xlu1 %v14294_v40, %s13223_s14  ;;  %6638 = vrot.lane.b32.xlu0 %v14306_v12, %s13223_s14 }
 0x3b4   :  { %6838 = vrot.lane.b32.xlu1 %v14298_v42, %s13224_s15  ;;  %6630 = vrot.lane.b32.xlu0 %v14300_v43, %s13223_s14 }
 0x3b8   :  { %6830 = vrot.lane.b32.xlu1 %v14294_v40, %s13224_s15  ;;  %6840 = vrot.lane.b32.xlu0 %v14306_v12, %s13224_s15 }
 0x3bc   :  { %5501 = vrot.lane.b32.xlu1 %v14356_v2, %s13218_s11  ;;  %6832 = vrot.lane.b32.xlu0 %v14300_v43, %s13224_s15 }
 0x3c0   :  { %5509 = vrot.lane.b32.xlu1 %v14362_v60, %s13218_s11  ;;  %5503 = vrot.lane.b32.xlu0 %v14364_v62, %s13218_s11 }
 0x3c4   :  { %5467 = vrot.lane.b32.xlu1 %v14356_v2, %s13219_s0  ;;  %5511 = vrot.lane.b32.xlu0 %v14370_v9, %s13218_s11 }
 0x3c8   :  { %5475 = vrot.lane.b32.xlu1 %v14362_v60, %s13219_s0  ;;  %5469 = vrot.lane.b32.xlu0 %v14364_v62, %s13219_s0 }
 0x3cc   :  { %5856 = vrot.lane.b32.xlu1 %v14356_v2, %s13220_s3  ;;  %5477 = vrot.lane.b32.xlu0 %v14370_v9, %s13219_s0 }
 0x3d0   :  { %5864 = vrot.lane.b32.xlu1 %v14362_v60, %s13220_s3  ;;  %5858 = vrot.lane.b32.xlu0 %v14364_v62, %s13220_s3 }
 0x3d4   :  { %6058 = vrot.lane.b32.xlu1 %v14356_v2, %s13221_s12  ;;  %5866 = vrot.lane.b32.xlu0 %v14370_v9, %s13220_s3 }
 0x3d8   :  { %6066 = vrot.lane.b32.xlu1 %v14362_v60, %s13221_s12  ;;  %6060 = vrot.lane.b32.xlu0 %v14364_v62, %s13221_s12 }
 0x3dc   :  { %7040 = vrot.lane.b32.xlu1 %v14298_v42, %s13225_s16  ;;  %6068 = vrot.lane.b32.xlu0 %v14370_v9, %s13221_s12 }
 0x3e0   :  { %6430 = vrot.lane.b32.xlu1 %v14356_v2, %s13222_s13  ;;  %7042 = vrot.lane.b32.xlu0 %v14306_v12, %s13225_s16 }
 0x3e4   :  { %6438 = vrot.lane.b32.xlu1 %v14362_v60, %s13222_s13  ;;  %7034 = vrot.lane.b32.xlu0 %v14300_v43, %s13225_s16 }
 0x3e8   :  { %6632 = vrot.lane.b32.xlu1 %v14356_v2, %s13223_s14  ;;  %6432 = vrot.lane.b32.xlu0 %v14364_v62, %s13222_s13 }
 0x3ec   :  { %6640 = vrot.lane.b32.xlu1 %v14362_v60, %s13223_s14  ;;  %6440 = vrot.lane.b32.xlu0 %v14370_v9, %s13222_s13 }
 0x3f0   :  { %6834 = vrot.lane.b32.xlu1 %v14356_v2, %s13224_s15  ;;  %6634 = vrot.lane.b32.xlu0 %v14364_v62, %s13223_s14 }
 0x3f4   :  { %6842 = vrot.lane.b32.xlu1 %v14362_v60, %s13224_s15  ;;  %6642 = vrot.lane.b32.xlu0 %v14370_v9, %s13223_s14 }
 0x3f6   :  { %v5498_v13 = vpop.permute.xlu1 %5497 }
 0x3f8   :  { %7036 = vrot.lane.b32.xlu1 %v14356_v2, %s13225_s16  ;;  %6836 = vrot.lane.b32.xlu0 %v14364_v62, %s13224_s15 }
 0x3fa   :  { %v5506_v14 = vpop.permute.xlu1 %5505  ;;  %v5500_v24 = vpop.permute.xlu0 %5499 }
 0x3fc   :  { %7032 = vrot.lane.b32.xlu1 %v14294_v40, %s13225_s16  ;;  %6844 = vrot.lane.b32.xlu0 %v14370_v9, %s13224_s15 }
 0x3fe   :  { %v14432_v26 = vpop.permute.xlu1 %5463  ;;  %v5508_v29 = vpop.permute.xlu0 %5507 }
 0x400   :  { %7044 = vrot.lane.b32.xlu1 %v14362_v60, %s13225_s16  ;;  %7038 = vrot.lane.b32.xlu0 %v14364_v62, %s13225_s16 }
 0x402   :  { %v14441_v39 = vpop.permute.xlu1 %5471  ;;  %v14443_v33 = vpop.permute.xlu0 %5465 }
 0x404   :  { %3624 = vperm.xlu1 %13163, %v3620_v36   ;;  %7046 = vrot.lane.b32.xlu0 %v14370_v9, %s13225_s16 }
 0x406   :  { %v14453_v3 = vpop.permute.xlu1 %5852  ;;  %v14455_v6 = vpop.permute.xlu0 %5473 }
 0x408   :  { %7238 = vperm.xlu1 %13163, %v7234_v10   ;;  %3629 = vperm.xlu0 %13162, %v3621_v4  }
 0x40a   :  { %v14460_v57 = vpop.permute.xlu1 %5860  ;;  %v14462_v1 = vpop.permute.xlu0 %5854 }
 0x40c   :  { %7243 = vperm.xlu0 %13162, %v7235_v8  }
 0x40e   :  { %v14464_v63 = vpop.permute.xlu1 %6054  ;;  %v14466_v44 = vpop.permute.xlu0 %5862 }
 0x412   :  { %v14468_v11 = vpop.permute.xlu1 %6062  ;;  %v14470_v46 = vpop.permute.xlu0 %6056 }
 0x416   :  { %v14472_v53 = vpop.permute.xlu1 %6434  ;;  %v14474_v54 = vpop.permute.xlu0 %6064 }
 0x41a   :  { %v14476_v56 = vpop.permute.xlu1 %6426  ;;  %v14478_v36 = vpop.permute.xlu0 %6436 }
 0x41e   :  { %v14480_v10 = vpop.permute.xlu1 %6636  ;;  %v14482_v4 = vpop.permute.xlu0 %6428 }
 0x41f   :  { %17003 = vst [vmem:[#allocation23_spill] sm:$0xff] %v14480_v10 }
 0x422   :  { %v14484_v8 = vpop.permute.xlu1 %6628  ;;  %v14486_v0 = vpop.permute.xlu0 %6638 }
 0x423   :  { %17004 = vst [vmem:[#allocation24_spill] sm:$0xff] %v14484_v8  ;;  %17005 = vst [vmem:[#allocation25_spill] sm:$0xff] %v14486_v0 }
 0x426   :  { %v14488_v30 = vpop.permute.xlu1 %6838  ;;  %v14490_v31 = vpop.permute.xlu0 %6630 }
 0x427   :  { %17006 = vst [vmem:[#allocation26_spill] sm:$0xff] %v14488_v30  ;;  %17007 = vst [vmem:[#allocation27_spill] sm:$0xff] %v14490_v31 }
 0x42a   :  { %v14492_v32 = vpop.permute.xlu1 %6830  ;;  %v14494_v5 = vpop.permute.xlu0 %6840 }
 0x42b   :  { %17008 = vst [vmem:[#allocation28_spill] sm:$0xff] %v14492_v32  ;;  %17009 = vst [vmem:[#allocation29_spill] sm:$0xff] %v14494_v5 }
 0x42e   :  { %v5502_v47 = vpop.permute.xlu1 %5501  ;;  %v14496_v51 = vpop.permute.xlu0 %6832 }
 0x42f   :  { %17010 = vst [vmem:[#allocation30_spill] sm:$0xff] %v14496_v51  ;;  %v5517_v34 = vsel %vm93_vm0, %v5498_v13, %v5502_v47  ;;  %v5515_v10 = vsel %vm93_vm0, %v5502_v47, %v5506_v14 }
 0x430   :  { %v5522_v61 = vmul.f32 %v5517_v34, %v13411_v17  ;;  %v5523_v47 = vmul.f32 %v5515_v10, %v13417_v19  ;;  %v5529_v10 = vld [vmem:[%s16816_s1 + $0x140] sm:$0xff] }
 0x432   :  { %v5510_v52 = vpop.permute.xlu1 %5509  ;;  %v5504_v20 = vpop.permute.xlu0 %5503 }
 0x433   :  { %v5518_v21 = vsel %vm93_vm0, %v5500_v24, %v5504_v20  ;;  %v5519_v30 = vsel %vm93_vm0, %v5510_v52, %v5498_v13  ;;  %v5513_v5 = vsel %vm93_vm0, %v5506_v14, %v5510_v52  ;;  %v5516_v51 = vsel %vm93_vm0, %v5504_v20, %v5508_v29 }
 0x434   :  { %v5526_v32 = vmul.f32 %v5518_v21, %v13411_v17  ;;  %v5521_v8 = vmul.f32 %v5519_v30, %v13414_v18  ;;  %v5524_v13 = vmul.f32 %v5513_v5, %v13404_v15  ;;  %v5527_v52 = vmul.f32 %v5516_v51, %v13417_v19 }
 0x436   :  { %v5468_v31 = vpop.permute.xlu1 %5467  ;;  %v5512_v0 = vpop.permute.xlu0 %5511  ;;  %v12066_v23 = vpack.c.bf16 %v5526_v32, %v5522_v61  ;;  %v12072_v51 = vpack.c.bf16 %v5527_v52, %v5523_v47 }
 0x437   :  { %v5514_v34 = vsel %vm93_vm0, %v5508_v29, %v5512_v0  ;;  %v5520_v21 = vsel %vm93_vm0, %v5512_v0, %v5500_v24  ;;  %v5483_v61 = vsel %vm53_vm2, %v14432_v26, %v5468_v31 }
 0x438   :  { %v5525_v20 = vmul.f32 %v5520_v21, %v13414_v18  ;;  %v5528_v17 = vmul.f32 %v5514_v34, %v13404_v15  ;;  %12067 = vmatprep.subr.bf16.mxu0 %v12066_v23  ;;  %v5488_v5 = vmul.f32 %v5483_v61, %v13423_v22 }
 0x43a   :  { %v12068_v30 = vpack.c.bf16 %v5525_v20, %v5521_v8  ;;  %v5476_v32 = vpop.permute.xlu1 %5475  ;;  %v5470_v14 = vpop.permute.xlu0 %5469  ;;  %v12070_v29 = vpack.c.bf16 %v5528_v17, %v5524_v13  ;;  %v5481_v13 = vsel %vm53_vm2, %v5468_v31, %v14441_v39 }
 0x43b   :  { %v5484_v0 = vsel %vm53_vm2, %v14443_v33, %v5470_v14  ;;  %v5485_v23 = vsel %vm53_vm2, %v5476_v32, %v14432_v26  ;;  %v5479_v17 = vsel %vm53_vm2, %v14441_v39, %v5476_v32  ;;  %v5482_v8 = vsel %vm53_vm2, %v5470_v14, %v14455_v6  ;;  %v5530_v39 = vld [vmem:[%s16816_s1 + $0x148] sm:$0xff] }
 0x43c   :  { %v5492_v24 = vmul.f32 %v5484_v0, %v13423_v22  ;;  %12069 = vmatpush1.bf16.msra.mxu0 %v12068_v30  ;;  %12071 = vmatprep.subr.bf16.mxu1 %v12070_v29  ;;  %v5487_v52 = vmul.f32 %v5485_v23, %v13449_v35  ;;  %v5490_v47 = vmul.f32 %v5479_v17, %v13458_v38 }
 0x43d   :  { %12073 = vmatpush1.bf16.msra.mxu1 %v12072_v51  ;;  %v5493_v30 = vmul.f32 %v5482_v8, %v13455_v37  ;;  %v5489_v14 = vmul.f32 %v5481_v13, %v13455_v37 }
 0x43e   :  { %v5857_v34 = vpop.permute.xlu1 %5856  ;;  %v5478_v21 = vpop.permute.xlu0 %5477  ;;  %v12074_v26 = vpack.c.bf16 %v5492_v24, %v5488_v5 }
 0x43f   :  { %v5480_v20 = vsel %vm53_vm2, %v14455_v6, %v5478_v21  ;;  %v5486_v61 = vsel %vm53_vm2, %v5478_v21, %v14443_v33  ;;  %11958 = vmatmul.mubr.msk.f32.vlgmr.msra.gmra.mrb[4].mxu0 %vm5531_vm12, %v5529_v10  ;;  %v5872_v6 = vsel %vm450_vm4, %v14453_v3, %v5857_v34  ;;  %v17011_v33 = vmov 0.0   ;;  %v5495_v21 = vld [vmem:[%s16816_s1 + $0x130] sm:$0xff] }
 0x440   :  { %v5491_v32 = vmul.f32 %v5486_v61, %v13449_v35  ;;  %v5494_v31 = vmul.f32 %v5480_v20, %v13458_v38  ;;  %12075 = vmatprep.subr.bf16.mxu0 %v12074_v26  ;;  %11960 = vmatmul.mubr.msk.f32.vlgmr.msra.gmra.mrb[4].mxu1 %vm5531_vm12, %v5529_v10  ;;  %v12080_v24 = vpack.c.bf16 %v5493_v30, %v5489_v14 }
 0x441   :  { %5608 = vmatprep.mubr.f32.mxu0 %v17011_v33  ;;  %5685 = vmatprep.mubr.f32.mxu1 %v17011_v33  ;;  %v5877_v17 = vmul.f32 %v5872_v6, %v13475_v45  ;;  %v5870_v61 = vsel %vm450_vm4, %v5857_v34, %v14460_v57 }
 0x442   :  { %v12076_v29 = vpack.c.bf16 %v5491_v32, %v5487_v52  ;;  %v5865_v0 = vpop.permute.xlu1 %5864  ;;  %v5859_v51 = vpop.permute.xlu0 %5858  ;;  %v12078_v5 = vpack.c.bf16 %v5494_v31, %v5490_v47  ;;  %v5878_v34 = vmul.f32 %v5870_v61, %v13502_v58 }
 0x443   :  { %v5873_v23 = vsel %vm450_vm4, %v14462_v1, %v5859_v51  ;;  %11959 = vmatmul.mubr.msk.f32.gmra.mrb[6].mxu0 %vm5531_vm12, %v5530_v39  ;;  %v5874_v10 = vsel %vm450_vm4, %v5865_v0, %v14453_v3  ;;  %v5868_v26 = vsel %vm450_vm4, %v14460_v57, %v5865_v0  ;;  %v5871_v13 = vsel %vm450_vm4, %v5859_v51, %v14466_v44 }
 0x444   :  { %v5881_v8 = vmul.f32 %v5873_v23, %v13475_v45  ;;  %12077 = vmatpush1.bf16.msra.mxu0 %v12076_v29  ;;  %11961 = vmatmul.mubr.msk.f32.gmra.mrb[6].mxu1 %vm5531_vm12, %v5530_v39  ;;  %v5876_v47 = vmul.f32 %v5874_v10, %v13493_v55  ;;  %v5879_v31 = vmul.f32 %v5868_v26, %v13505_v59 }
 0x445   :  { %12079 = vmatprep.subr.bf16.mxu1 %v12078_v5  ;;  %5762 = vmatprep.mubr.f32.mxu0 %v17011_v33  ;;  %v5882_v39 = vmul.f32 %v5871_v13, %v13502_v58 }
 0x446   :  { %12081 = vmatpush1.bf16.msra.mxu1 %v12080_v24  ;;  %v6059_v3 = vpop.permute.xlu1 %6058  ;;  %v5867_v52 = vpop.permute.xlu0 %5866  ;;  %v12082_v20 = vpack.c.bf16 %v5881_v8, %v5877_v17  ;;  %5839 = vmatprep.mubr.f32.mxu1 %v17011_v33 }
 0x447   :  { %v5869_v30 = vsel %vm450_vm4, %v14466_v44, %v5867_v52  ;;  %v5875_v32 = vsel %vm450_vm4, %v5867_v52, %v14462_v1  ;;  %11962 = vmatmul.mubr.msk.f32.vlgmr.msra.gmra.mrb[4].mxu0 %vm5531_vm12, %v5495_v21  ;;  %v5496_v44 = vld [vmem:[%s16816_s1 + $0x138] sm:$0xff]  ;;  %v6074_v1 = vsel %vm652_vm5, %v14464_v63, %v6059_v3  ;;  %v12088_v24 = vpack.c.bf16 %v5882_v39, %v5878_v34 }
 0x448   :  { %v5880_v6 = vmul.f32 %v5875_v32, %v13493_v55  ;;  %v5883_v57 = vmul.f32 %v5869_v30, %v13505_v59  ;;  %12083 = vmatprep.subr.bf16.mxu0 %v12082_v20  ;;  %5768 = vmatprep.mubr.f32.mxu0 %v17011_v33  ;;  %v6079_v17 = vmul.f32 %v6074_v1, %v13524_v16 }
 0x449   :  { %11964 = vmatmul.mubr.msk.f32.vlgmr.msra.gmra.mrb[4].mxu1 %vm5531_vm12, %v5495_v21  ;;  %v6072_v26 = vsel %vm652_vm5, %v6059_v3, %v14468_v11  ;;  %v12098_v1 = vpack.c.bf16 %v14364_v62, %v14356_v2  ;;  %v12100_v2 = vpack.c.bf16 %v14300_v43, %v14294_v40 }
 0x44a   :  { %v12084_v14 = vpack.c.bf16 %v5880_v6, %v5876_v47  ;;  %v6067_v29 = vpop.permute.xlu1 %6066  ;;  %v6061_v0 = vpop.permute.xlu0 %6060  ;;  %5845 = vmatprep.mubr.f32.mxu1 %v17011_v33  ;;  %v12086_v51 = vpack.c.bf16 %v5883_v57, %v5879_v31 }
 0x44b   :  { %v6076_v5 = vsel %vm652_vm5, %v6067_v29, %v14464_v63  ;;  %v6075_v23 = vsel %vm652_vm5, %v14470_v46, %v6061_v0  ;;  %11963 = vmatmul.mubr.msk.f32.gmra.mrb[6].mxu0 %vm5531_vm12, %v5496_v44  ;;  %v6070_v10 = vsel %vm652_vm5, %v14468_v11, %v6067_v29  ;;  %v5884_v63 = vld [vmem:[%s16816_s1 + $0x150] sm:$0xff]  ;;  %v6073_v21 = vsel %vm652_vm5, %v6061_v0, %v14474_v54 }
 0x44c   :  { %v6083_v8 = vmul.f32 %v6075_v23, %v13524_v16  ;;  %12085 = vmatpush1.bf16.msra.mxu0 %v12084_v14  ;;  %12087 = vmatprep.subr.bf16.mxu1 %v12086_v51  ;;  %v6078_v13 = vmul.f32 %v6076_v5, %v13535_v25  ;;  %v6081_v47 = vmul.f32 %v6070_v10, %v13544_v28  ;;  %v6086_v14 = vld [vmem:[%s16816_s1 + $0x160] sm:$0xff] }
 0x44d   :  { %11965 = vmatmul.mubr.msk.f32.gmra.mrb[6].mxu1 %vm5531_vm12, %v5496_v44  ;;  %5956 = vmatprep.mubr.f32.mxu0 %v17011_v33  ;;  %v6084_v11 = vmul.f32 %v6073_v21, %v13541_v27  ;;  %v12102_v29 = vpack.c.bf16 %v14370_v9, %v14362_v60  ;;  %v12104_v60 = vpack.c.bf16 %v14306_v12, %v14298_v42  ;;  %v6087_v9 = vld [vmem:[%s16816_s1 + $0x168] sm:$0xff] }
 0x44e   :  { %12089 = vmatpush1.bf16.msra.mxu1 %v12088_v24  ;;  %v14636_v52 = vpop.permute.xlu1 %7040  ;;  %v6069_v20 = vpop.permute.xlu0 %6068  ;;  %v12090_v61 = vpack.c.bf16 %v6083_v8, %v6079_v17  ;;  %6033 = vmatprep.mubr.f32.mxu1 %v17011_v33 }
 0x44f   :  { %v6071_v30 = vsel %vm652_vm5, %v14474_v54, %v6069_v20  ;;  %v6077_v32 = vsel %vm652_vm5, %v6069_v20, %v14470_v46  ;;  %11966 = vmatmul.mubr.msk.f32.vlgmr.msra.gmra.mrb[4].mxu0 %vm5531_vm12, %v5884_v63  ;;  %v5885_v54 = vld [vmem:[%s16816_s1 + $0x158] sm:$0xff]  ;;  %v6080_v46 = vmul.f32 %v6072_v26, %v13541_v27 }
 0x450   :  { %v6082_v3 = vmul.f32 %v6077_v32, %v13535_v25  ;;  %v6085_v31 = vmul.f32 %v6071_v30, %v13544_v28  ;;  %12091 = vmatprep.subr.bf16.mxu0 %v12090_v61  ;;  %5962 = vmatprep.mubr.f32.mxu0 %v17011_v33  ;;  %v17012_v32 = vld [vmem:[#allocation24_spill] sm:$0xff] }
 0x451   :  { %11968 = vmatmul.mubr.msk.f32.vlgmr.msra.gmra.mrb[4].mxu1 %vm5531_vm12, %v5884_v63  ;;  %v12096_v34 = vpack.c.bf16 %v6084_v11, %v6080_v46  ;;  %v6256_v63 = vld [vmem:[%s16816_s1 + $0x170] sm:$0xff] }
 0x452   :  { %v12092_v39 = vpack.c.bf16 %v6082_v3, %v6078_v13  ;;  %v6431_v6 = vpop.permute.xlu1 %6430  ;;  %v14657_v57 = vpop.permute.xlu0 %7042  ;;  %6039 = vmatprep.mubr.f32.mxu1 %v17011_v33  ;;  %v12094_v44 = vpack.c.bf16 %v6085_v31, %v6081_v47 }
 0x453   :  { %11967 = vmatmul.mubr.msk.f32.gmra.mrb[6].mxu0 %vm5531_vm12, %v5885_v54  ;;  %v6446_v62 = vsel %vm1012_vm6, %v14476_v56, %v6431_v6  ;;  %v6444_v40 = vsel %vm1012_vm6, %v6431_v6, %v14472_v53 }
 0x454   :  { %12093 = vmatpush1.bf16.msra.mxu0 %v12092_v39  ;;  %12095 = vmatprep.subr.bf16.mxu1 %v12094_v44  ;;  %v6450_v23 = vmul.f32 %v6446_v62, %v13585_v50  ;;  %v6451_v24 = vmul.f32 %v6444_v40, %v13563_v41  ;;  %v17017_v62 = vld [vmem:[#allocation11_spill] sm:$0xff] }
 0x455   :  { %11969 = vmatmul.mubr.msk.f32.gmra.mrb[6].mxu1 %vm5531_vm12, %v5885_v54  ;;  %12099 = vmatprep.subr.bf16.mxu0 %v12098_v1  ;;  %v17013_v54 = vld [vmem:[#allocation23_spill] sm:$0xff]  ;;  %v17014_v1 = vld [vmem:[#allocation14_spill] sm:$0xff] }
 0x456   :  { %12097 = vmatpush1.bf16.msra.mxu1 %v12096_v34  ;;  %v6439_v0 = vpop.permute.xlu1 %6438  ;;  %6158 = vmatprep.mubr.f32.mxu0 %v17011_v33  ;;  %v14670_v51 = vpop.permute.xlu0 %7034 }
 0x457   :  { %12103 = vmatprep.subr.bf16.mxu1 %v12102_v29  ;;  %11970 = vmatmul.mubr.msk.f32.vlgmr.msra.gmra.mrb[4].mxu0 %vm5531_vm12, %v6086_v14  ;;  %v6442_v17 = vsel %vm1012_vm6, %v14472_v53, %v6439_v0  ;;  %v6448_v21 = vsel %vm1012_vm6, %v6439_v0, %v14476_v56  ;;  %v17016_v0 = vld [vmem:[#allocation27_spill] sm:$0xff] }
 0x458   :  { %6235 = vmatprep.mubr.f32.mxu1 %v17011_v33  ;;  %12101 = vmatpush1.bf16.msra.mxu0 %v12100_v2  ;;  %v6452_v61 = vmul.f32 %v6442_v17, %v13582_v49  ;;  %v6453_v56 = vmul.f32 %v6448_v21, %v13579_v48 }
 0x459   :  { %11972 = vmatmul.mubr.msk.f32.vlgmr.msra.gmra.mrb[4].mxu1 %vm5531_vm12, %v6086_v14  ;;  %6164 = vmatprep.mubr.f32.mxu0 %v17011_v33  ;;  %v17015_v14 = vld [vmem:[#allocation25_spill] sm:$0xff] }
 0x45a   :  { %12105 = vmatpush1.bf16.msra.mxu1 %v12104_v60  ;;  %v6633_v43 = vpop.permute.xlu1 %6632  ;;  %v6433_v5 = vpop.permute.xlu0 %6432  ;;  %6241 = vmatprep.mubr.f32.mxu1 %v17011_v33 }
 0x45b   :  { %v6445_v42 = vsel %vm1012_vm6, %v6433_v5, %v14478_v36  ;;  %v6447_v12 = vsel %vm1012_vm6, %v14482_v4, %v6433_v5  ;;  %11971 = vmatmul.mubr.msk.f32.gmra.mrb[6].mxu0 %vm5531_vm12, %v6087_v9  ;;  %v6648_v11 = vsel %vm1214_vm7, %v17012_v32, %v6633_v43  ;;  %v6458_v5 = vld [vmem:[%s16816_s1 + $0x180] sm:$0xff] }
 0x45c   :  { %v6454_v10 = vmul.f32 %v6447_v12, %v13585_v50  ;;  %v6455_v8 = vmul.f32 %v6445_v42, %v13563_v41  ;;  %6328 = vmatprep.mubr.f32.mxu0 %v17011_v33  ;;  %v6652_v34 = vmul.f32 %v6648_v11, %v17014_v1  ;;  %v17022_v11 = vld [vmem:[#allocation18_spill] sm:$0xff] }
 0x45d   :  { %11973 = vmatmul.mubr.msk.f32.gmra.mrb[6].mxu1 %vm5531_vm12, %v6087_v9 }
 0x45e   :  { %v12108_v26 = vpack.c.bf16 %v6454_v10, %v6450_v23  ;;  %v6641_v13 = vpop.permute.xlu1 %6640  ;;  %v6441_v20 = vpop.permute.xlu0 %6440  ;;  %6405 = vmatprep.mubr.f32.mxu1 %v17011_v33  ;;  %v12106_v53 = vpack.c.bf16 %v6455_v8, %v6451_v24  ;;  %v17018_v10 = vld [vmem:[#allocation13_spill] sm:$0xff] }
 0x45f   :  { %v6443_v47 = vsel %vm1012_vm6, %v14478_v36, %v6441_v20  ;;  %v6449_v30 = vsel %vm1012_vm6, %v6441_v20, %v14482_v4  ;;  %11974 = vmatmul.mubr.msk.f32.vlgmr.msra.gmra.mrb[4].mxu0 %vm5531_vm12, %v6256_v63  ;;  %v6257_v36 = vld [vmem:[%s16816_s1 + $0x178] sm:$0xff]  ;;  %v6646_v4 = vsel %vm1214_vm7, %v6633_v43, %v17013_v54  ;;  %v6644_v9 = vsel %vm1214_vm7, %v17013_v54, %v6641_v13  ;;  %v17020_v20 = vld [vmem:[#allocation12_spill] sm:$0xff] }
 0x460   :  { %v6456_v3 = vmul.f32 %v6443_v47, %v13582_v49  ;;  %v6457_v31 = vmul.f32 %v6449_v30, %v13579_v48  ;;  %12107 = vmatprep.subr.bf16.mxu0 %v12106_v53  ;;  %6334 = vmatprep.mubr.f32.mxu0 %v17011_v33  ;;  %v6653_v60 = vmul.f32 %v6646_v4, %v17017_v62 }
 0x461   :  { %11976 = vmatmul.mubr.msk.f32.vlgmr.msra.gmra.mrb[4].mxu1 %vm5531_vm12, %v6256_v63  ;;  %12109 = vmatpush1.bf16.msra.mxu0 %v12108_v26  ;;  %v6650_v23 = vsel %vm1214_vm7, %v6641_v13, %v17012_v32  ;;  %v6654_v8 = vmul.f32 %v6644_v9, %v17018_v10  ;;  %v17019_v63 = vld [vmem:[#allocation28_spill] sm:$0xff]  ;;  %v6459_v32 = vld [vmem:[%s16816_s1 + $0x188] sm:$0xff]  ;;  %v6660_v9 = vld [vmem:[%s16816_s1 + $0x190] sm:$0xff] }
 0x462   :  { %v12112_v46 = vpack.c.bf16 %v6456_v3, %v6452_v61  ;;  %v6835_v39 = vpop.permute.xlu1 %6834  ;;  %v6635_v6 = vpop.permute.xlu0 %6634  ;;  %6411 = vmatprep.mubr.f32.mxu1 %v17011_v33  ;;  %v12110_v44 = vpack.c.bf16 %v6457_v31, %v6453_v56  ;;  %v6655_v53 = vmul.f32 %v6650_v23, %v17020_v20  ;;  %v17021_v61 = vld [vmem:[#allocation26_spill] sm:$0xff] }
 0x463   :  { %v6647_v29 = vsel %vm1214_vm7, %v6635_v6, %v17015_v14  ;;  %v6649_v2 = vsel %vm1214_vm7, %v17016_v0, %v6635_v6  ;;  %11975 = vmatmul.mubr.msk.f32.gmra.mrb[6].mxu0 %vm5531_vm12, %v6257_v36  ;;  %v6850_v21 = vsel %vm1416_vm8, %v17019_v63, %v6835_v39  ;;  %v6848_v47 = vsel %vm1416_vm8, %v6835_v39, %v17021_v61 }
 0x464   :  { %v6656_v40 = vmul.f32 %v6649_v2, %v17014_v1  ;;  %v6657_v43 = vmul.f32 %v6647_v29, %v17017_v62  ;;  %12111 = vmatprep.subr.bf16.mxu1 %v12110_v44  ;;  %6530 = vmatprep.mubr.f32.mxu0 %v17011_v33  ;;  %v6854_v3 = vmul.f32 %v6850_v21, %v17022_v11  ;;  %v17024_v44 = vld [vmem:[#allocation29_spill] sm:$0xff]  ;;  %v17048_v62 = vld [vmem:[#allocation8_spill] sm:$0xff] }
 0x465   :  { %11977 = vmatmul.mubr.msk.f32.gmra.mrb[6].mxu1 %vm5531_vm12, %v6257_v36 }
 0x466   :  { %v12116_v42 = vpack.c.bf16 %v6656_v40, %v6652_v34  ;;  %12113 = vmatpush1.bf16.msra.mxu1 %v12112_v46  ;;  %v6843_v12 = vpop.permute.xlu1 %6842  ;;  %v6643_v24 = vpop.permute.xlu0 %6642  ;;  %6607 = vmatprep.mubr.f32.mxu1 %v17011_v33  ;;  %v12114_v17 = vpack.c.bf16 %v6657_v43, %v6653_v60  ;;  %v17023_v46 = vld [vmem:[#allocation15_spill] sm:$0xff] }
 0x467   :  { %v6645_v26 = vsel %vm1214_vm7, %v17015_v14, %v6643_v24  ;;  %v6651_v13 = vsel %vm1214_vm7, %v6643_v24, %v17016_v0  ;;  %11978 = vmatmul.mubr.msk.f32.vlgmr.msra.gmra.mrb[4].mxu0 %vm5531_vm12, %v6458_v5  ;;  %v6855_v39 = vmul.f32 %v6848_v47, %v17023_v46  ;;  %v6846_v6 = vsel %vm1416_vm8, %v17021_v61, %v6843_v12  ;;  %v17025_v14 = vld [vmem:[#allocation30_spill] sm:$0xff]  ;;  %v17027_v24 = vld [vmem:[#allocation16_spill] sm:$0xff] }
 0x468   :  { %v6658_v30 = vmul.f32 %v6645_v26, %v17018_v10  ;;  %v6659_v56 = vmul.f32 %v6651_v13, %v17020_v20  ;;  %12115 = vmatprep.subr.bf16.mxu0 %v12114_v17  ;;  %6536 = vmatprep.mubr.f32.mxu0 %v17011_v33  ;;  %v6852_v0 = vsel %vm1416_vm8, %v6843_v12, %v17019_v63 }
 0x469   :  { %11980 = vmatmul.mubr.msk.f32.vlgmr.msra.gmra.mrb[4].mxu1 %vm5531_vm12, %v6458_v5  ;;  %12117 = vmatpush1.bf16.msra.mxu0 %v12116_v42  ;;  %v17026_v42 = vld [vmem:[#allocation17_spill] sm:$0xff]  ;;  %v6857_v17 = vmul.f32 %v6852_v0, %v17027_v24 }
 0x46a   :  { %v12120_v31 = vpack.c.bf16 %v6658_v30, %v6654_v8  ;;  %v7037_v36 = vpop.permute.xlu1 %7036  ;;  %v6837_v54 = vpop.permute.xlu0 %6836  ;;  %6613 = vmatprep.mubr.f32.mxu1 %v17011_v33  ;;  %v12118_v4 = vpack.c.bf16 %v6659_v56, %v6655_v53  ;;  %v6856_v12 = vmul.f32 %v6846_v6, %v17026_v42  ;;  %v6661_v53 = vld [vmem:[%s16816_s1 + $0x198] sm:$0xff] }
 0x46b   :  { %v6849_v34 = vsel %vm1416_vm8, %v6837_v54, %v17024_v44  ;;  %v6851_v29 = vsel %vm1416_vm8, %v17025_v14, %v6837_v54  ;;  %11979 = vmatmul.mubr.msk.f32.gmra.mrb[6].mxu0 %vm5531_vm12, %v6459_v32  ;;  %v7050_v21 = vsel %vm1618_vm9, %v7037_v36, %v14636_v52 }
 0x46c   :  { %v6858_v2 = vmul.f32 %v6851_v29, %v17022_v11  ;;  %v6859_v60 = vmul.f32 %v6849_v34, %v17023_v46  ;;  %12119 = vmatprep.subr.bf16.mxu1 %v12118_v4  ;;  %6732 = vmatprep.mubr.f32.mxu0 %v17011_v33 }
 0x46d   :  { %11981 = vmatmul.mubr.msk.f32.gmra.mrb[6].mxu1 %vm5531_vm12, %v6459_v32 }
 0x46e   :  { %v12124_v40 = vpack.c.bf16 %v6858_v2, %v6854_v3  ;;  %12121 = vmatpush1.bf16.msra.mxu1 %v12120_v31  ;;  %v7033_v43 = vpop.permute.xlu1 %7032  ;;  %v6845_v5 = vpop.permute.xlu0 %6844  ;;  %6809 = vmatprep.mubr.f32.mxu1 %v17011_v33  ;;  %v12122_v23 = vpack.c.bf16 %v6859_v60, %v6855_v39  ;;  %v17028_v3 = vld [vmem:[#allocation19_spill] sm:$0xff]  ;;  %v17030_v60 = vld [vmem:[#allocation21_spill] sm:$0xff] }
 0x46f   :  { %v6847_v8 = vsel %vm1416_vm8, %v17024_v44, %v6845_v5  ;;  %v6853_v63 = vsel %vm1416_vm8, %v6845_v5, %v17025_v14  ;;  %11982 = vmatmul.mubr.msk.f32.vlgmr.msra.gmra.mrb[4].mxu0 %vm5531_vm12, %v6660_v9  ;;  %v7052_v61 = vsel %vm1618_vm9, %v7033_v43, %v7037_v36  ;;  %v7057_v31 = vmul.f32 %v7050_v21, %v17028_v3  ;;  %v17029_v36 = vld [vmem:[#allocation22_spill] sm:$0xff]  ;;  %v6862_v14 = vld [vmem:[%s16816_s1 + $0x1a0] sm:$0xff]  ;;  %v7065_v21 = vld [vmem:[%s16816_s1 + $0x1b8] sm:$0xff] }
 0x470   :  { %v6860_v26 = vmul.f32 %v6847_v8, %v17026_v42  ;;  %v6861_v13 = vmul.f32 %v6853_v63, %v17027_v24  ;;  %12123 = vmatprep.subr.bf16.mxu0 %v12122_v23  ;;  %6738 = vmatprep.mubr.f32.mxu0 %v17011_v33  ;;  %v7056_v39 = vmul.f32 %v7052_v61, %v17029_v36  ;;  %v17031_v5 = vld [vmem:[#allocation20_spill] sm:$0xff]  ;;  %v6863_v8 = vld [vmem:[%s16816_s1 + $0x1a8] sm:$0xff]  ;;  %v7064_v63 = vld [vmem:[%s16816_s1 + $0x1b0] sm:$0xff] }
 0x471   :  { %11984 = vmatmul.mubr.msk.f32.vlgmr.msra.gmra.mrb[4].mxu1 %vm5531_vm12, %v6660_v9  ;;  %12125 = vmatpush1.bf16.msra.mxu0 %v12124_v40 }
 0x472   :  { %v12128_v47 = vpack.c.bf16 %v6860_v26, %v6856_v12  ;;  %v7045_v30 = vpop.permute.xlu1 %7044  ;;  %v7039_v56 = vpop.permute.xlu0 %7038  ;;  %6815 = vmatprep.mubr.f32.mxu1 %v17011_v33  ;;  %v12126_v32 = vpack.c.bf16 %v6861_v13, %v6857_v17 }
 0x473   :  { %v7051_v54 = vsel %vm1618_vm9, %v7039_v56, %v14657_v57  ;;  %v7053_v4 = vsel %vm1618_vm9, %v14670_v51, %v7039_v56  ;;  %11983 = vmatmul.mubr.msk.f32.gmra.mrb[6].mxu0 %vm5531_vm12, %v6661_v53  ;;  %v7048_v6 = vsel %vm1618_vm9, %v14636_v52, %v7045_v30  ;;  %v7054_v29 = vsel %vm1618_vm9, %v7045_v30, %v7033_v43 }
 0x474   :  { %v7060_v44 = vmul.f32 %v7053_v4, %v17029_v36  ;;  %v7061_v34 = vmul.f32 %v7051_v54, %v17028_v3  ;;  %12127 = vmatprep.subr.bf16.mxu1 %v12126_v32  ;;  %6934 = vmatprep.mubr.f32.mxu0 %v17011_v33  ;;  %v7058_v9 = vmul.f32 %v7048_v6, %v17030_v60 }
 0x475   :  { %11985 = vmatmul.mubr.msk.f32.gmra.mrb[6].mxu1 %vm5531_vm12, %v6661_v53  ;;  %v7059_v23 = vmul.f32 %v7054_v29, %v17031_v5 }
 0x476   :  { %v12132_v0 = vpack.c.bf16 %v7060_v44, %v7056_v39  ;;  %12129 = vmatpush1.bf16.msra.mxu1 %v12128_v47  ;;  %v7047_v2 = vpop.permute.xlu0 %7046  ;;  %7011 = vmatprep.mubr.f32.mxu1 %v17011_v33  ;;  %v12130_v52 = vpack.c.bf16 %v7061_v34, %v7057_v31 }
 0x477   :  { %v7049_v40 = vsel %vm1618_vm9, %v14657_v57, %v7047_v2  ;;  %v7055_v43 = vsel %vm1618_vm9, %v7047_v2, %v14670_v51  ;;  %11986 = vmatmul.mubr.msk.f32.vlgmr.msra.gmra.mrb[4].mxu0 %vm5531_vm12, %v6862_v14 }
 0x478   :  { %v7062_v12 = vmul.f32 %v7049_v40, %v17030_v60  ;;  %v7063_v17 = vmul.f32 %v7055_v43, %v17031_v5  ;;  %12131 = vmatprep.subr.bf16.mxu0 %v12130_v52  ;;  %6940 = vmatprep.mubr.f32.mxu0 %v17011_v33 }
 0x479   :  { %11988 = vmatmul.mubr.msk.f32.vlgmr.msra.gmra.mrb[4].mxu1 %vm5531_vm12, %v6862_v14  ;;  %12133 = vmatpush1.bf16.msra.mxu0 %v12132_v0 }
 0x47a   :  { %v12136_v57 = vpack.c.bf16 %v7062_v12, %v7058_v9  ;;  %7017 = vmatprep.mubr.f32.mxu1 %v17011_v33  ;;  %v12134_v51 = vpack.c.bf16 %v7063_v17, %v7059_v23 }
 0x47b   :  { %11987 = vmatmul.mubr.msk.f32.gmra.mrb[6].mxu0 %vm5531_vm12, %v6863_v8 }
 0x47c   :  { %12135 = vmatprep.subr.bf16.mxu1 %v12134_v51  ;;  %7136 = vmatprep.mubr.f32.mxu0 %v17011_v33 }
 0x47d   :  { %11989 = vmatmul.mubr.msk.f32.gmra.mrb[6].mxu1 %vm5531_vm12, %v6863_v8 }
 0x47e   :  { %12137 = vmatpush1.bf16.msra.mxu1 %v12136_v57  ;;  %7213 = vmatprep.mubr.f32.mxu1 %v17011_v33 }
 0x47f   :  { %11990 = vmatmul.mubr.msk.f32.vlgmr.msra.gmra.mrb[4].mxu0 %vm5531_vm12, %v7064_v63 }
 0x480   :  { %7142 = vmatprep.mubr.f32.mxu0 %v17011_v33 }
 0x481   :  { %11992 = vmatmul.mubr.msk.f32.vlgmr.msra.gmra.mrb[4].mxu1 %vm5531_vm12, %v7064_v63 }
 0x482   :  { %7219 = vmatprep.mubr.f32.mxu1 %v17011_v33 }
 0x483   :  { %11991 = vmatmul.mubr.msk.f32.gmra.mrb[6].mxu0 %vm5531_vm12, %v7065_v21  ;;  %v3625_v26 = vpop.permute.xlu1 %3624 }
 0x484   :  { %7408 = vmatprep.mubr.f32.mxu0 %v17011_v33 }
 0x485   :  { %11993 = vmatmul.mubr.msk.f32.gmra.mrb[6].mxu1 %vm5531_vm12, %v7065_v21 }
 0x486   :  { %7485 = vmatprep.mubr.f32.mxu1 %v17011_v33 }
 0x487   :  { %v3630_v13 = vpop.permute.xlu0 %3629  ;;  %v7239_v30 = vpop.permute.xlu1 %7238 }
 0x48b   :  { %v7244_v14 = vpop.permute.xlu0 %7243 }
 0x552   :  { %v7138_v53 = vpop.f32.mrb[4].mxu0 }
 0x553   :  { %v12794_v61 = vadd.f32 %v7138_v53, %v3625_v26  ;;  %v7140_v47 = vpop.f32.mrb[5].mxu0 }
 0x554   :  { %v7215_v56 = vpop.f32.mrb[4].mxu1  ;;  %v12796_v12 = vadd.f32 %v7140_v47, %v3625_v26 }
 0x555   :  { %v12795_v32 = vadd.f32 %v12794_v61, %v7239_v30  ;;  %v12802_v31 = vadd.f32 %v7215_v56, %v3625_v26  ;;  %v7217_v54 = vpop.f32.mrb[5].mxu1 }
 0x556   :  { %v7144_v4 = vpop.f32.mrb[6].mxu0  ;;  %v12797_v17 = vadd.f32 %v12796_v12, %v7239_v30  ;;  %v12804_v8 = vadd.f32 %v7217_v54, %v3625_v26 }
 0x557   :  { %v14884_v39 = vmax.f32 %v12795_v32, 0.0  ;;  %v12803_v6 = vadd.f32 %v12802_v31, %v7239_v30  ;;  %v12798_v44 = vadd.f32 %v7144_v4, %v3630_v13  ;;  %v7146_v34 = vpop.f32.mrb[7].mxu0  ;;  %v9040_v4 = vld [vmem:[%s16817_s2 + $0x40] sm:$0xff] }
 0x558   :  { %v7221_v29 = vpop.f32.mrb[6].mxu1  ;;  %v12800_v57 = vadd.f32 %v7146_v34, %v3630_v13  ;;  %v14946_v51 = vmax.f32 %v12797_v17, 0.0  ;;  %v12805_v63 = vadd.f32 %v12804_v8, %v7239_v30  ;;  %v9041_v34 = vld [vmem:[%s16817_s2 + $0x48] sm:$0xff] }
 0x559   :  { %17032 = vst [vmem:[#allocation24_spill] sm:$0xff] %v14884_v39  ;;  %v12799_v0 = vadd.f32 %v12798_v44, %v7244_v14  ;;  %v12806_v2 = vadd.f32 %v7221_v29, %v3630_v13  ;;  %v7223_v52 = vpop.f32.mrb[7].mxu1  ;;  %7304 = vrot.lane.b32.xlu1 %v14884_v39, %s13218_s11  ;;  %v14888_v9 = vmax.f32 %v12803_v6, 0.0 }
 0x55a   :  { %17036 = vst [vmem:[#allocation28_spill] sm:$0xff] %v14946_v51  ;;  %v12801_v21 = vadd.f32 %v12800_v57, %v7244_v14  ;;  %v12808_v53 = vadd.f32 %v7223_v52, %v3630_v13  ;;  %v14952_v61 = vmax.f32 %v12805_v63, 0.0 }
 0x55b   :  { %17033 = vst [vmem:[#allocation23_spill] sm:$0xff] %v14888_v9  ;;  %v14890_v40 = vmax.f32 %v12799_v0, 0.0  ;;  %v12807_v43 = vadd.f32 %v12806_v2, %v7244_v14 }
 0x55c   :  { %17037 = vst [vmem:[#allocation26_spill] sm:$0xff] %v14952_v61  ;;  %v14954_v26 = vmax.f32 %v12801_v21, 0.0  ;;  %v12809_v47 = vadd.f32 %v12808_v53, %v7244_v14 }
 0x55d   :  { %17034 = vst [vmem:[#allocation25_spill] sm:$0xff] %v14890_v40  ;;  %7312 = vrot.lane.b32.xlu1 %v14888_v9, %s13218_s11  ;;  %7306 = vrot.lane.b32.xlu0 %v14890_v40, %s13218_s11  ;;  %v14896_v23 = vmax.f32 %v12807_v43, 0.0 }
 0x55e   :  { %17038 = vst [vmem:[#allocation29_spill] sm:$0xff] %v14954_v26  ;;  %v14960_v30 = vmax.f32 %v12809_v47, 0.0 }
 0x55f   :  { %17035 = vst [vmem:[#allocation27_spill] sm:$0xff] %v14896_v23 }
 0x560   :  { %17039 = vst [vmem:[#allocation30_spill] sm:$0xff] %v14960_v30 }
 0x561   :  { %7270 = vrot.lane.b32.xlu1 %v14884_v39, %s13219_s0  ;;  %7314 = vrot.lane.b32.xlu0 %v14896_v23, %s13218_s11 }
 0x565   :  { %7278 = vrot.lane.b32.xlu1 %v14888_v9, %s13219_s0  ;;  %7272 = vrot.lane.b32.xlu0 %v14890_v40, %s13219_s0 }
 0x569   :  { %7658 = vrot.lane.b32.xlu1 %v14884_v39, %s13220_s3  ;;  %7280 = vrot.lane.b32.xlu0 %v14896_v23, %s13219_s0 }
 0x56d   :  { %7666 = vrot.lane.b32.xlu1 %v14888_v9, %s13220_s3  ;;  %7660 = vrot.lane.b32.xlu0 %v14890_v40, %s13220_s3 }
 0x571   :  { %7860 = vrot.lane.b32.xlu1 %v14884_v39, %s13221_s12  ;;  %7668 = vrot.lane.b32.xlu0 %v14896_v23, %s13220_s3 }
 0x575   :  { %7868 = vrot.lane.b32.xlu1 %v14888_v9, %s13221_s12  ;;  %7862 = vrot.lane.b32.xlu0 %v14890_v40, %s13221_s12 }
 0x579   :  { %8240 = vrot.lane.b32.xlu1 %v14888_v9, %s13222_s13  ;;  %7870 = vrot.lane.b32.xlu0 %v14896_v23, %s13221_s12 }
 0x57d   :  { %8232 = vrot.lane.b32.xlu1 %v14884_v39, %s13222_s13  ;;  %8242 = vrot.lane.b32.xlu0 %v14896_v23, %s13222_s13 }
 0x581   :  { %8442 = vrot.lane.b32.xlu1 %v14888_v9, %s13223_s14  ;;  %8234 = vrot.lane.b32.xlu0 %v14890_v40, %s13222_s13 }
 0x585   :  { %8434 = vrot.lane.b32.xlu1 %v14884_v39, %s13223_s14  ;;  %8444 = vrot.lane.b32.xlu0 %v14896_v23, %s13223_s14 }
 0x589   :  { %8644 = vrot.lane.b32.xlu1 %v14888_v9, %s13224_s15  ;;  %8436 = vrot.lane.b32.xlu0 %v14890_v40, %s13223_s14 }
 0x58d   :  { %8636 = vrot.lane.b32.xlu1 %v14884_v39, %s13224_s15  ;;  %8646 = vrot.lane.b32.xlu0 %v14896_v23, %s13224_s15 }
 0x591   :  { %7308 = vrot.lane.b32.xlu1 %v14946_v51, %s13218_s11  ;;  %8638 = vrot.lane.b32.xlu0 %v14890_v40, %s13224_s15 }
 0x595   :  { %7316 = vrot.lane.b32.xlu1 %v14952_v61, %s13218_s11  ;;  %7310 = vrot.lane.b32.xlu0 %v14954_v26, %s13218_s11 }
 0x599   :  { %7274 = vrot.lane.b32.xlu1 %v14946_v51, %s13219_s0  ;;  %7318 = vrot.lane.b32.xlu0 %v14960_v30, %s13218_s11 }
 0x59d   :  { %7282 = vrot.lane.b32.xlu1 %v14952_v61, %s13219_s0  ;;  %7276 = vrot.lane.b32.xlu0 %v14954_v26, %s13219_s0 }
 0x5a1   :  { %7662 = vrot.lane.b32.xlu1 %v14946_v51, %s13220_s3  ;;  %7284 = vrot.lane.b32.xlu0 %v14960_v30, %s13219_s0 }
 0x5a5   :  { %7670 = vrot.lane.b32.xlu1 %v14952_v61, %s13220_s3  ;;  %7664 = vrot.lane.b32.xlu0 %v14954_v26, %s13220_s3 }
 0x5a9   :  { %7864 = vrot.lane.b32.xlu1 %v14946_v51, %s13221_s12  ;;  %7672 = vrot.lane.b32.xlu0 %v14960_v30, %s13220_s3 }
 0x5ad   :  { %7872 = vrot.lane.b32.xlu1 %v14952_v61, %s13221_s12  ;;  %7866 = vrot.lane.b32.xlu0 %v14954_v26, %s13221_s12 }
 0x5b1   :  { %8846 = vrot.lane.b32.xlu1 %v14888_v9, %s13225_s16  ;;  %7874 = vrot.lane.b32.xlu0 %v14960_v30, %s13221_s12 }
 0x5b5   :  { %8236 = vrot.lane.b32.xlu1 %v14946_v51, %s13222_s13  ;;  %8848 = vrot.lane.b32.xlu0 %v14896_v23, %s13225_s16 }
 0x5b9   :  { %8244 = vrot.lane.b32.xlu1 %v14952_v61, %s13222_s13  ;;  %8840 = vrot.lane.b32.xlu0 %v14890_v40, %s13225_s16 }
 0x5bd   :  { %8438 = vrot.lane.b32.xlu1 %v14946_v51, %s13223_s14  ;;  %8238 = vrot.lane.b32.xlu0 %v14954_v26, %s13222_s13 }
 0x5c1   :  { %8446 = vrot.lane.b32.xlu1 %v14952_v61, %s13223_s14  ;;  %8246 = vrot.lane.b32.xlu0 %v14960_v30, %s13222_s13 }
 0x5c5   :  { %8640 = vrot.lane.b32.xlu1 %v14946_v51, %s13224_s15  ;;  %8440 = vrot.lane.b32.xlu0 %v14954_v26, %s13223_s14 }
 0x5c9   :  { %8648 = vrot.lane.b32.xlu1 %v14952_v61, %s13224_s15  ;;  %8448 = vrot.lane.b32.xlu0 %v14960_v30, %s13223_s14 }
 0x5cb   :  { %v7305_v13 = vpop.permute.xlu1 %7304 }
 0x5cd   :  { %8842 = vrot.lane.b32.xlu1 %v14946_v51, %s13225_s16  ;;  %8642 = vrot.lane.b32.xlu0 %v14954_v26, %s13224_s15 }
 0x5cf   :  { %v7313_v56 = vpop.permute.xlu1 %7312  ;;  %v7307_v32 = vpop.permute.xlu0 %7306 }
 0x5d1   :  { %8838 = vrot.lane.b32.xlu1 %v14884_v39, %s13225_s16  ;;  %8650 = vrot.lane.b32.xlu0 %v14960_v30, %s13224_s15 }
 0x5d3   :  { %v15022_v31 = vpop.permute.xlu1 %7270  ;;  %v7315_v54 = vpop.permute.xlu0 %7314 }
 0x5d5   :  { %8850 = vrot.lane.b32.xlu1 %v14952_v61, %s13225_s16  ;;  %8844 = vrot.lane.b32.xlu0 %v14954_v26, %s13225_s16 }
 0x5d7   :  { %v15031_v6 = vpop.permute.xlu1 %7278  ;;  %v15033_v44 = vpop.permute.xlu0 %7272 }
 0x5d9   :  { %9044 = vperm.xlu1 %13163, %v9040_v4   ;;  %8852 = vrot.lane.b32.xlu0 %v14960_v30, %s13225_s16 }
 0x5db   :  { %v15040_v14 = vpop.permute.xlu1 %7658  ;;  %v15042_v29 = vpop.permute.xlu0 %7280 }
 0x5dd   :  { %9049 = vperm.xlu0 %13162, %v9041_v34  }
 0x5df   :  { %v15044_v0 = vpop.permute.xlu1 %7666  ;;  %v15046_v2 = vpop.permute.xlu0 %7660 }
 0x5e3   :  { %v15048_v52 = vpop.permute.xlu1 %7860  ;;  %v15050_v43 = vpop.permute.xlu0 %7668 }
 0x5e7   :  { %v15052_v12 = vpop.permute.xlu1 %7868  ;;  %v15054_v17 = vpop.permute.xlu0 %7862 }
 0x5eb   :  { %v15056_v8 = vpop.permute.xlu1 %8240  ;;  %v15058_v57 = vpop.permute.xlu0 %7870 }
 0x5ef   :  { %v15060_v63 = vpop.permute.xlu1 %8232  ;;  %v15062_v21 = vpop.permute.xlu0 %8242 }
 0x5f3   :  { %v15064_v53 = vpop.permute.xlu1 %8442  ;;  %v15066_v47 = vpop.permute.xlu0 %8234 }
 0x5f4   :  { %17040 = vst [vmem:[#allocation31_spill] sm:$0xff] %v15064_v53 }
 0x5f7   :  { %v15068_v4 = vpop.permute.xlu1 %8434  ;;  %v15070_v34 = vpop.permute.xlu0 %8444 }
 0x5f8   :  { %17041 = vst [vmem:[#allocation32_spill] sm:$0xff] %v15068_v4  ;;  %17042 = vst [vmem:[#allocation33_spill] sm:$0xff] %v15070_v34 }
 0x5fb   :  { %v15072_v5 = vpop.permute.xlu1 %8644  ;;  %v15074_v60 = vpop.permute.xlu0 %8436 }
 0x5fc   :  { %17043 = vst [vmem:[#allocation34_spill] sm:$0xff] %v15072_v5  ;;  %17044 = vst [vmem:[#allocation35_spill] sm:$0xff] %v15074_v60 }
 0x5ff   :  { %v15076_v36 = vpop.permute.xlu1 %8636  ;;  %v15078_v3 = vpop.permute.xlu0 %8646 }
 0x600   :  { %17045 = vst [vmem:[#allocation36_spill] sm:$0xff] %v15076_v36  ;;  %17046 = vst [vmem:[#allocation37_spill] sm:$0xff] %v15078_v3 }
 0x603   :  { %v7309_v24 = vpop.permute.xlu1 %7308  ;;  %v15080_v42 = vpop.permute.xlu0 %8638 }
 0x604   :  { %17047 = vst [vmem:[#allocation38_spill] sm:$0xff] %v15080_v42  ;;  %v7324_v46 = vsel %vm93_vm0, %v7305_v13, %v7309_v24  ;;  %v7322_v4 = vsel %vm93_vm0, %v7309_v24, %v7313_v56 }
 0x605   :  { %v7329_v34 = vmul.f32 %v7324_v46, %v17048_v62 }
 0x607   :  { %v7317_v11 = vpop.permute.xlu1 %7316  ;;  %v7311_v20 = vpop.permute.xlu0 %7310 }
 0x608   :  { %v7325_v10 = vsel %vm93_vm0, %v7307_v32, %v7311_v20  ;;  %v7326_v5 = vsel %vm93_vm0, %v7317_v11, %v7305_v13  ;;  %v7320_v3 = vsel %vm93_vm0, %v7313_v56, %v7317_v11  ;;  %v7323_v42 = vsel %vm93_vm0, %v7311_v20, %v7315_v54 }
 0x609   :  { %v7333_v36 = vmul.f32 %v7325_v10, %v17048_v62  ;;  %v7328_v48 = vmul.f32 %v7326_v5, %v13414_v18  ;;  %v7331_v13 = vmul.f32 %v7320_v3, %v13404_v15  ;;  %v7334_v11 = vmul.f32 %v7323_v42, %v13417_v19 }
 0x60b   :  { %v7275_v60 = vpop.permute.xlu1 %7274  ;;  %v7319_v1 = vpop.permute.xlu0 %7318  ;;  %v12138_v53 = vpack.c.bf16 %v7333_v36, %v7329_v34  ;;  %v7330_v36 = vmul.f32 %v7322_v4, %v13417_v19 }
 0x60c   :  { %v7321_v46 = vsel %vm93_vm0, %v7315_v54, %v7319_v1  ;;  %v7327_v10 = vsel %vm93_vm0, %v7319_v1, %v7307_v32  ;;  %v7290_v24 = vsel %vm53_vm2, %v15022_v31, %v7275_v60 }
 0x60d   :  { %v7332_v20 = vmul.f32 %v7327_v10, %v13414_v18  ;;  %v7335_v62 = vmul.f32 %v7321_v46, %v13404_v15  ;;  %12139 = vmatprep.subr.bf16.mxu0 %v12138_v53  ;;  %v12144_v42 = vpack.c.bf16 %v7334_v11, %v7330_v36  ;;  %v7295_v3 = vmul.f32 %v7290_v24, %v13423_v22 }
 0x60f   :  { %v12140_v5 = vpack.c.bf16 %v7332_v20, %v7328_v48  ;;  %v7283_v56 = vpop.permute.xlu1 %7282  ;;  %v7277_v54 = vpop.permute.xlu0 %7276  ;;  %v12142_v34 = vpack.c.bf16 %v7335_v62, %v7331_v13  ;;  %v7336_v48 = vld [vmem:[%s16816_s1 + $0x1d0] sm:$0xff]  ;;  %v7288_v13 = vsel %vm53_vm2, %v7275_v60, %v15031_v6 }
 0x610   :  { %v7291_v1 = vsel %vm53_vm2, %v15033_v44, %v7277_v54  ;;  %v7292_v32 = vsel %vm53_vm2, %v7283_v56, %v15022_v31  ;;  %v7286_v62 = vsel %vm53_vm2, %v15031_v6, %v7283_v56  ;;  %v7289_v4 = vsel %vm53_vm2, %v7277_v54, %v15042_v29  ;;  %v7337_v6 = vld [vmem:[%s16816_s1 + $0x1d8] sm:$0xff] }
 0x611   :  { %v7299_v53 = vmul.f32 %v7291_v1, %v13423_v22  ;;  %12141 = vmatpush1.bf16.msra.mxu0 %v12140_v5  ;;  %12143 = vmatprep.subr.bf16.mxu1 %v12142_v34  ;;  %v7294_v11 = vmul.f32 %v7292_v32, %v13449_v35  ;;  %v7297_v36 = vmul.f32 %v7286_v62, %v13458_v38 }
 0x612   :  { %12145 = vmatpush1.bf16.msra.mxu1 %v12144_v42  ;;  %v7300_v5 = vmul.f32 %v7289_v4, %v13455_v37  ;;  %v7302_v4 = vld [vmem:[%s16816_s1 + $0x1c0] sm:$0xff] }
 0x613   :  { %v7663_v46 = vpop.permute.xlu1 %7662  ;;  %v7285_v10 = vpop.permute.xlu0 %7284  ;;  %v12146_v31 = vpack.c.bf16 %v7299_v53, %v7295_v3 }
 0x614   :  { %v7287_v20 = vsel %vm53_vm2, %v15042_v29, %v7285_v10  ;;  %v7293_v24 = vsel %vm53_vm2, %v7285_v10, %v15033_v44  ;;  %11994 = vmatmul.mubr.msk.f32.vlgmr.msra.gmra.mrb[12].mxu0 %vm5531_vm12, %v7336_v48  ;;  %v7678_v29 = vsel %vm450_vm4, %v15040_v14, %v7663_v46  ;;  %v7296_v44 = vmul.f32 %v7288_v13, %v13455_v37 }
 0x615   :  { %v7298_v56 = vmul.f32 %v7293_v24, %v13449_v35  ;;  %v7301_v60 = vmul.f32 %v7287_v20, %v13458_v38  ;;  %12147 = vmatprep.subr.bf16.mxu0 %v12146_v31  ;;  %11996 = vmatmul.mubr.msk.f32.vlgmr.msra.gmra.mrb[12].mxu1 %vm5531_vm12, %v7336_v48  ;;  %v7683_v53 = vmul.f32 %v7678_v29, %v13475_v45 }
 0x616   :  { %7414 = vmatprep.mubr.f32.mxu0 %v17011_v33  ;;  %7491 = vmatprep.mubr.f32.mxu1 %v17011_v33  ;;  %v12152_v32 = vpack.c.bf16 %v7300_v5, %v7296_v44  ;;  %v7676_v20 = vsel %vm450_vm4, %v7663_v46, %v15044_v0 }
 0x617   :  { %v12148_v54 = vpack.c.bf16 %v7298_v56, %v7294_v11  ;;  %v7671_v34 = vpop.permute.xlu1 %7670  ;;  %v7665_v1 = vpop.permute.xlu0 %7664  ;;  %v12150_v42 = vpack.c.bf16 %v7301_v60, %v7297_v36  ;;  %v7684_v46 = vmul.f32 %v7676_v20, %v13502_v58 }
 0x618   :  { %v7679_v3 = vsel %vm450_vm4, %v15046_v2, %v7665_v1  ;;  %11995 = vmatmul.mubr.msk.f32.gmra.mrb[14].mxu0 %vm5531_vm12, %v7337_v6  ;;  %v7680_v48 = vsel %vm450_vm4, %v7671_v34, %v15040_v14  ;;  %v7674_v10 = vsel %vm450_vm4, %v15044_v0, %v7671_v34  ;;  %v7677_v31 = vsel %vm450_vm4, %v7665_v1, %v15050_v43 }
 0x619   :  { %v7687_v62 = vmul.f32 %v7679_v3, %v13475_v45  ;;  %12149 = vmatpush1.bf16.msra.mxu0 %v12148_v54  ;;  %11997 = vmatmul.mubr.msk.f32.gmra.mrb[14].mxu1 %vm5531_vm12, %v7337_v6  ;;  %v7682_v24 = vmul.f32 %v7680_v48, %v13493_v55  ;;  %v7685_v56 = vmul.f32 %v7674_v10, %v13505_v59 }
 0x61a   :  { %12151 = vmatprep.subr.bf16.mxu1 %v12150_v42  ;;  %7568 = vmatprep.mubr.f32.mxu0 %v17011_v33  ;;  %v7688_v60 = vmul.f32 %v7677_v31, %v13502_v58 }
 0x61b   :  { %12153 = vmatpush1.bf16.msra.mxu1 %v12152_v32  ;;  %v7865_v14 = vpop.permute.xlu1 %7864  ;;  %v7673_v13 = vpop.permute.xlu0 %7672  ;;  %v12154_v11 = vpack.c.bf16 %v7687_v62, %v7683_v53  ;;  %7645 = vmatprep.mubr.f32.mxu1 %v17011_v33 }
 0x61c   :  { %v7675_v36 = vsel %vm450_vm4, %v15050_v43, %v7673_v13  ;;  %v7681_v5 = vsel %vm450_vm4, %v7673_v13, %v15046_v2  ;;  %11998 = vmatmul.mubr.msk.f32.vlgmr.msra.gmra.mrb[12].mxu0 %vm5531_vm12, %v7302_v4  ;;  %v7303_v43 = vld [vmem:[%s16816_s1 + $0x1c8] sm:$0xff]  ;;  %v7880_v2 = vsel %vm652_vm5, %v15048_v52, %v7865_v14  ;;  %v12160_v3 = vpack.c.bf16 %v7688_v60, %v7684_v46  ;;  %v7892_v46 = vld [vmem:[%s16816_s1 + $0x1f0] sm:$0xff] }
 0x61d   :  { %v7686_v6 = vmul.f32 %v7681_v5, %v13493_v55  ;;  %v7689_v0 = vmul.f32 %v7675_v36, %v13505_v59  ;;  %12155 = vmatprep.subr.bf16.mxu0 %v12154_v11  ;;  %7574 = vmatprep.mubr.f32.mxu0 %v17011_v33  ;;  %v7885_v32 = vmul.f32 %v7880_v2, %v13524_v16 }
 0x61e   :  { %12000 = vmatmul.mubr.msk.f32.vlgmr.msra.gmra.mrb[12].mxu1 %vm5531_vm12, %v7302_v4  ;;  %v7878_v4 = vsel %vm652_vm5, %v7865_v14, %v15052_v12 }
 0x61f   :  { %v12156_v29 = vpack.c.bf16 %v7686_v6, %v7682_v24  ;;  %v7873_v44 = vpop.permute.xlu1 %7872  ;;  %v7867_v54 = vpop.permute.xlu0 %7866  ;;  %7651 = vmatprep.mubr.f32.mxu1 %v17011_v33  ;;  %v12158_v34 = vpack.c.bf16 %v7689_v0, %v7685_v56 }
 0x620   :  { %v7882_v1 = vsel %vm652_vm5, %v7873_v44, %v15048_v52  ;;  %v7881_v42 = vsel %vm652_vm5, %v15054_v17, %v7867_v54  ;;  %11999 = vmatmul.mubr.msk.f32.gmra.mrb[14].mxu0 %vm5531_vm12, %v7303_v43  ;;  %v7876_v53 = vsel %vm652_vm5, %v15052_v12, %v7873_v44  ;;  %v7690_v52 = vld [vmem:[%s16816_s1 + $0x1e0] sm:$0xff]  ;;  %v7879_v62 = vsel %vm652_vm5, %v7867_v54, %v15058_v57 }
 0x621   :  { %v7889_v48 = vmul.f32 %v7881_v42, %v13524_v16  ;;  %12157 = vmatpush1.bf16.msra.mxu0 %v12156_v29  ;;  %12159 = vmatprep.subr.bf16.mxu1 %v12158_v34  ;;  %v7884_v10 = vmul.f32 %v7882_v1, %v13535_v25  ;;  %v7887_v20 = vmul.f32 %v7876_v53, %v13544_v28 }
 0x622   :  { %12001 = vmatmul.mubr.msk.f32.gmra.mrb[14].mxu1 %vm5531_vm12, %v7303_v43  ;;  %7762 = vmatprep.mubr.f32.mxu0 %v17011_v33  ;;  %v7890_v12 = vmul.f32 %v7879_v62, %v13541_v27  ;;  %v12170_v43 = vpack.c.bf16 %v14954_v26, %v14946_v51  ;;  %v12174_v29 = vpack.c.bf16 %v14960_v30, %v14952_v61 }
 0x623   :  { %12161 = vmatpush1.bf16.msra.mxu1 %v12160_v3  ;;  %v15220_v31 = vpop.permute.xlu1 %8846  ;;  %v7875_v13 = vpop.permute.xlu0 %7874  ;;  %v12162_v11 = vpack.c.bf16 %v7889_v48, %v7885_v32  ;;  %7839 = vmatprep.mubr.f32.mxu1 %v17011_v33  ;;  %v12172_v34 = vpack.c.bf16 %v14890_v40, %v14884_v39  ;;  %v12176_v42 = vpack.c.bf16 %v14896_v23, %v14888_v9  ;;  %v7893_v3 = vld [vmem:[%s16816_s1 + $0x1f8] sm:$0xff]  ;;  %v17074_v9 = vld [vmem:[#allocation8_spill] sm:$0xff] }
 0x624   :  { %v7877_v24 = vsel %vm652_vm5, %v15058_v57, %v7875_v13  ;;  %v7883_v36 = vsel %vm652_vm5, %v7875_v13, %v15054_v17  ;;  %12002 = vmatmul.mubr.msk.f32.vlgmr.msra.gmra.mrb[12].mxu0 %vm5531_vm12, %v7690_v52  ;;  %v7691_v57 = vld [vmem:[%s16816_s1 + $0x1e8] sm:$0xff]  ;;  %v7886_v17 = vmul.f32 %v7878_v4, %v13541_v27 }
 0x625   :  { %v7888_v14 = vmul.f32 %v7883_v36, %v13535_v25  ;;  %v7891_v5 = vmul.f32 %v7877_v24, %v13544_v28  ;;  %12163 = vmatprep.subr.bf16.mxu0 %v12162_v11  ;;  %7768 = vmatprep.mubr.f32.mxu0 %v17011_v33  ;;  %v8062_v24 = vld [vmem:[%s16816_s1 + $0x200] sm:$0xff] }
 0x626   :  { %12004 = vmatmul.mubr.msk.f32.vlgmr.msra.gmra.mrb[12].mxu1 %vm5531_vm12, %v7690_v52  ;;  %v12168_v2 = vpack.c.bf16 %v7890_v12, %v7886_v17 }
 0x627   :  { %v12164_v56 = vpack.c.bf16 %v7888_v14, %v7884_v10  ;;  %v8237_v60 = vpop.permute.xlu1 %8236  ;;  %v15241_v6 = vpop.permute.xlu0 %8848  ;;  %7845 = vmatprep.mubr.f32.mxu1 %v17011_v33  ;;  %v12166_v0 = vpack.c.bf16 %v7891_v5, %v7887_v20 }
 0x628   :  { %12003 = vmatmul.mubr.msk.f32.gmra.mrb[14].mxu0 %vm5531_vm12, %v7691_v57  ;;  %v8252_v1 = vsel %vm1012_vm6, %v15060_v63, %v8237_v60  ;;  %v8250_v32 = vsel %vm1012_vm6, %v8237_v60, %v15056_v8 }
 0x629   :  { %12165 = vmatpush1.bf16.msra.mxu0 %v12164_v56  ;;  %12167 = vmatprep.subr.bf16.mxu1 %v12166_v0  ;;  %v8256_v52 = vmul.f32 %v8252_v1, %v13585_v50  ;;  %v8257_v10 = vmul.f32 %v8250_v32, %v13563_v41  ;;  %v17050_v0 = vld [vmem:[#allocation32_spill] sm:$0xff] }
 0x62a   :  { %12005 = vmatmul.mubr.msk.f32.gmra.mrb[14].mxu1 %vm5531_vm12, %v7691_v57  ;;  %12171 = vmatprep.subr.bf16.mxu0 %v12170_v43 }
 0x62b   :  { %12169 = vmatpush1.bf16.msra.mxu1 %v12168_v2  ;;  %v8245_v44 = vpop.permute.xlu1 %8244  ;;  %7964 = vmatprep.mubr.f32.mxu0 %v17011_v33  ;;  %v15254_v54 = vpop.permute.xlu0 %8840 }
 0x62c   :  { %12175 = vmatprep.subr.bf16.mxu1 %v12174_v29  ;;  %12006 = vmatmul.mubr.msk.f32.vlgmr.msra.gmra.mrb[12].mxu0 %vm5531_vm12, %v7892_v46  ;;  %v8248_v13 = vsel %vm1012_vm6, %v15056_v8, %v8245_v44  ;;  %v8254_v36 = vsel %vm1012_vm6, %v8245_v44, %v15060_v63  ;;  %v17049_v63 = vld [vmem:[#allocation9_spill] sm:$0xff]  ;;  %v17051_v29 = vld [vmem:[#allocation31_spill] sm:$0xff] }
 0x62d   :  { %8041 = vmatprep.mubr.f32.mxu1 %v17011_v33  ;;  %12173 = vmatpush1.bf16.msra.mxu0 %v12172_v34  ;;  %v8258_v57 = vmul.f32 %v8248_v13, %v13582_v49  ;;  %v8259_v60 = vmul.f32 %v8254_v36, %v17049_v63 }
 0x62e   :  { %12008 = vmatmul.mubr.msk.f32.vlgmr.msra.gmra.mrb[12].mxu1 %vm5531_vm12, %v7892_v46  ;;  %7970 = vmatprep.mubr.f32.mxu0 %v17011_v33 }
 0x62f   :  { %12177 = vmatpush1.bf16.msra.mxu1 %v12176_v42  ;;  %v8439_v53 = vpop.permute.xlu1 %8438  ;;  %v8239_v48 = vpop.permute.xlu0 %8238  ;;  %8047 = vmatprep.mubr.f32.mxu1 %v17011_v33 }
 0x630   :  { %v8251_v62 = vsel %vm1012_vm6, %v8239_v48, %v15062_v21  ;;  %v8253_v4 = vsel %vm1012_vm6, %v15066_v47, %v8239_v48  ;;  %12007 = vmatmul.mubr.msk.f32.gmra.mrb[14].mxu0 %vm5531_vm12, %v7893_v3  ;;  %v8454_v43 = vsel %vm1214_vm7, %v17050_v0, %v8439_v53  ;;  %v17053_v48 = vld [vmem:[#allocation33_spill] sm:$0xff] }
 0x631   :  { %v8260_v11 = vmul.f32 %v8253_v4, %v13585_v50  ;;  %v8261_v20 = vmul.f32 %v8251_v62, %v13563_v41  ;;  %8134 = vmatprep.mubr.f32.mxu0 %v17011_v33  ;;  %v17054_v62 = vld [vmem:[#allocation35_spill] sm:$0xff] }
 0x632   :  { %12009 = vmatmul.mubr.msk.f32.gmra.mrb[14].mxu1 %vm5531_vm12, %v7893_v3  ;;  %v17052_v3 = vld [vmem:[#allocation14_spill] sm:$0xff]  ;;  %v17055_v4 = vld [vmem:[#allocation11_spill] sm:$0xff] }
 0x633   :  { %v12180_v12 = vpack.c.bf16 %v8260_v11, %v8256_v52  ;;  %v8447_v14 = vpop.permute.xlu1 %8446  ;;  %v8247_v5 = vpop.permute.xlu0 %8246  ;;  %8211 = vmatprep.mubr.f32.mxu1 %v17011_v33  ;;  %v12178_v8 = vpack.c.bf16 %v8261_v20, %v8257_v10  ;;  %v8458_v32 = vmul.f32 %v8454_v43, %v17052_v3 }
 0x634   :  { %v8249_v17 = vsel %vm1012_vm6, %v15062_v21, %v8247_v5  ;;  %v8255_v56 = vsel %vm1012_vm6, %v8247_v5, %v15066_v47  ;;  %12010 = vmatmul.mubr.msk.f32.vlgmr.msra.gmra.mrb[12].mxu0 %vm5531_vm12, %v8062_v24  ;;  %v8063_v21 = vld [vmem:[%s16816_s1 + $0x208] sm:$0xff]  ;;  %v8452_v47 = vsel %vm1214_vm7, %v8439_v53, %v17051_v29  ;;  %v8450_v13 = vsel %vm1214_vm7, %v17051_v29, %v8447_v14 }
 0x635   :  { %v8262_v2 = vmul.f32 %v8249_v17, %v13582_v49  ;;  %v8263_v46 = vmul.f32 %v8255_v56, %v17049_v63  ;;  %12179 = vmatprep.subr.bf16.mxu0 %v12178_v8  ;;  %8140 = vmatprep.mubr.f32.mxu0 %v17011_v33  ;;  %v8459_v10 = vmul.f32 %v8452_v47, %v17055_v4  ;;  %v17056_v17 = vld [vmem:[#allocation13_spill] sm:$0xff] }
 0x636   :  { %12012 = vmatmul.mubr.msk.f32.vlgmr.msra.gmra.mrb[12].mxu1 %vm5531_vm12, %v8062_v24  ;;  %12181 = vmatpush1.bf16.msra.mxu0 %v12180_v12  ;;  %v8264_v24 = vld [vmem:[%s16816_s1 + $0x210] sm:$0xff]  ;;  %v8456_v36 = vsel %vm1214_vm7, %v8447_v14, %v17050_v0  ;;  %v8460_v56 = vmul.f32 %v8450_v13, %v17056_v17 }
 0x637   :  { %v12184_v44 = vpack.c.bf16 %v8262_v2, %v8258_v57  ;;  %v8641_v34 = vpop.permute.xlu1 %8640  ;;  %v8441_v1 = vpop.permute.xlu0 %8440  ;;  %8217 = vmatprep.mubr.f32.mxu1 %v17011_v33  ;;  %v12182_v42 = vpack.c.bf16 %v8263_v46, %v8259_v60  ;;  %v17057_v60 = vld [vmem:[#allocation36_spill] sm:$0xff] }
 0x638   :  { %v8453_v52 = vsel %vm1214_vm7, %v8441_v1, %v17053_v48  ;;  %v8455_v53 = vsel %vm1214_vm7, %v17054_v62, %v8441_v1  ;;  %12011 = vmatmul.mubr.msk.f32.gmra.mrb[14].mxu0 %vm5531_vm12, %v8063_v21  ;;  %v8656_v43 = vsel %vm1416_vm8, %v17057_v60, %v8641_v34  ;;  %v17058_v2 = vld [vmem:[#allocation12_spill] sm:$0xff]  ;;  %v8265_v1 = vld [vmem:[%s16816_s1 + $0x218] sm:$0xff] }
 0x639   :  { %v8462_v11 = vmul.f32 %v8455_v53, %v17052_v3  ;;  %v8463_v20 = vmul.f32 %v8453_v52, %v17055_v4  ;;  %12183 = vmatprep.subr.bf16.mxu1 %v12182_v42  ;;  %8336 = vmatprep.mubr.f32.mxu0 %v17011_v33  ;;  %v8461_v46 = vmul.f32 %v8456_v36, %v17058_v2  ;;  %v17060_v42 = vld [vmem:[#allocation18_spill] sm:$0xff]  ;;  %v17061_v53 = vld [vmem:[#allocation15_spill] sm:$0xff] }
 0x63a   :  { %12013 = vmatmul.mubr.msk.f32.gmra.mrb[14].mxu1 %vm5531_vm12, %v8063_v21  ;;  %v17059_v21 = vld [vmem:[#allocation34_spill] sm:$0xff] }
 0x63b   :  { %v12188_v12 = vpack.c.bf16 %v8462_v11, %v8458_v32  ;;  %12185 = vmatpush1.bf16.msra.mxu1 %v12184_v44  ;;  %v8649_v5 = vpop.permute.xlu1 %8648  ;;  %v8449_v8 = vpop.permute.xlu0 %8448  ;;  %8413 = vmatprep.mubr.f32.mxu1 %v17011_v33  ;;  %v12186_v57 = vpack.c.bf16 %v8463_v20, %v8459_v10  ;;  %v8654_v29 = vsel %vm1416_vm8, %v8641_v34, %v17059_v21  ;;  %v17062_v11 = vld [vmem:[#allocation37_spill] sm:$0xff] }
 0x63c   :  { %v8451_v14 = vsel %vm1214_vm7, %v17053_v48, %v8449_v8  ;;  %v8457_v0 = vsel %vm1214_vm7, %v8449_v8, %v17054_v62  ;;  %12014 = vmatmul.mubr.msk.f32.vlgmr.msra.gmra.mrb[12].mxu0 %vm5531_vm12, %v8264_v24  ;;  %v8660_v32 = vmul.f32 %v8656_v43, %v17060_v42  ;;  %v8661_v10 = vmul.f32 %v8654_v29, %v17061_v53 }
 0x63d   :  { %v8464_v47 = vmul.f32 %v8451_v14, %v17056_v17  ;;  %v8465_v44 = vmul.f32 %v8457_v0, %v17058_v2  ;;  %12187 = vmatprep.subr.bf16.mxu0 %v12186_v57  ;;  %8342 = vmatprep.mubr.f32.mxu0 %v17011_v33  ;;  %v8652_v13 = vsel %vm1416_vm8, %v17059_v21, %v8649_v5  ;;  %v17065_v21 = vld [vmem:[#allocation16_spill] sm:$0xff] }
 0x63e   :  { %12016 = vmatmul.mubr.msk.f32.vlgmr.msra.gmra.mrb[12].mxu1 %vm5531_vm12, %v8264_v24  ;;  %12189 = vmatpush1.bf16.msra.mxu0 %v12188_v12  ;;  %v17063_v24 = vld [vmem:[#allocation38_spill] sm:$0xff]  ;;  %v8658_v12 = vsel %vm1416_vm8, %v8649_v5, %v17057_v60  ;;  %v17064_v60 = vld [vmem:[#allocation17_spill] sm:$0xff] }
 0x63f   :  { %v12192_v48 = vpack.c.bf16 %v8464_v47, %v8460_v56  ;;  %v8843_v52 = vpop.permute.xlu1 %8842  ;;  %v8643_v62 = vpop.permute.xlu0 %8642  ;;  %8419 = vmatprep.mubr.f32.mxu1 %v17011_v33  ;;  %v12190_v34 = vpack.c.bf16 %v8465_v44, %v8461_v46  ;;  %v8466_v56 = vld [vmem:[%s16816_s1 + $0x220] sm:$0xff]  ;;  %v8662_v46 = vmul.f32 %v8652_v13, %v17064_v60  ;;  %v8663_v29 = vmul.f32 %v8658_v12, %v17065_v21 }
 0x640   :  { %v8655_v20 = vsel %vm1416_vm8, %v8643_v62, %v17062_v11  ;;  %v8657_v36 = vsel %vm1416_vm8, %v17063_v24, %v8643_v62  ;;  %12015 = vmatmul.mubr.msk.f32.gmra.mrb[14].mxu0 %vm5531_vm12, %v8265_v1  ;;  %v8467_v62 = vld [vmem:[%s16816_s1 + $0x228] sm:$0xff] }
 0x641   :  { %v8664_v8 = vmul.f32 %v8657_v36, %v17060_v42  ;;  %v8665_v57 = vmul.f32 %v8655_v20, %v17061_v53  ;;  %12191 = vmatprep.subr.bf16.mxu1 %v12190_v34  ;;  %8538 = vmatprep.mubr.f32.mxu0 %v17011_v33 }
 0x642   :  { %12017 = vmatmul.mubr.msk.f32.gmra.mrb[14].mxu1 %vm5531_vm12, %v8265_v1  ;;  %v8856_v1 = vsel %vm1618_vm9, %v8843_v52, %v15220_v31 }
 0x643   :  { %v12196_v43 = vpack.c.bf16 %v8664_v8, %v8660_v32  ;;  %12193 = vmatpush1.bf16.msra.mxu1 %v12192_v48  ;;  %v8839_v14 = vpop.permute.xlu1 %8838  ;;  %v8651_v0 = vpop.permute.xlu0 %8650  ;;  %8615 = vmatprep.mubr.f32.mxu1 %v17011_v33  ;;  %v12194_v5 = vpack.c.bf16 %v8665_v57, %v8661_v10 }
 0x644   :  { %v8653_v47 = vsel %vm1416_vm8, %v17062_v11, %v8651_v0  ;;  %v8659_v44 = vsel %vm1416_vm8, %v8651_v0, %v17063_v24  ;;  %12018 = vmatmul.mubr.msk.f32.vlgmr.msra.gmra.mrb[12].mxu0 %vm5531_vm12, %v8466_v56  ;;  %v8858_v34 = vsel %vm1618_vm9, %v8839_v14, %v8843_v52  ;;  %v17066_v24 = vld [vmem:[#allocation19_spill] sm:$0xff]  ;;  %v17067_v52 = vld [vmem:[#allocation22_spill] sm:$0xff] }
 0x645   :  { %v8666_v32 = vmul.f32 %v8653_v47, %v17064_v60  ;;  %v8667_v48 = vmul.f32 %v8659_v44, %v17065_v21  ;;  %12195 = vmatprep.subr.bf16.mxu0 %v12194_v5  ;;  %8544 = vmatprep.mubr.f32.mxu0 %v17011_v33  ;;  %v8863_v36 = vmul.f32 %v8856_v1, %v17066_v24  ;;  %v8668_v5 = vld [vmem:[%s16816_s1 + $0x230] sm:$0xff]  ;;  %v17068_v44 = vld [vmem:[#allocation21_spill] sm:$0xff] }
 0x646   :  { %12020 = vmatmul.mubr.msk.f32.vlgmr.msra.gmra.mrb[12].mxu1 %vm5531_vm12, %v8466_v56  ;;  %12197 = vmatpush1.bf16.msra.mxu0 %v12196_v43  ;;  %v8862_v57 = vmul.f32 %v8858_v34, %v17067_v52 }
 0x647   :  { %v12200_v10 = vpack.c.bf16 %v8666_v32, %v8662_v46  ;;  %v8851_v13 = vpop.permute.xlu1 %8850  ;;  %v8845_v11 = vpop.permute.xlu0 %8844  ;;  %8621 = vmatprep.mubr.f32.mxu1 %v17011_v33  ;;  %v12198_v20 = vpack.c.bf16 %v8667_v48, %v8663_v29  ;;  %v17069_v48 = vld [vmem:[#allocation20_spill] sm:$0xff] }
 0x648   :  { %v8857_v12 = vsel %vm1618_vm9, %v8845_v11, %v15241_v6  ;;  %v8859_v8 = vsel %vm1618_vm9, %v15254_v54, %v8845_v11  ;;  %12019 = vmatmul.mubr.msk.f32.gmra.mrb[14].mxu0 %vm5531_vm12, %v8467_v62  ;;  %v8854_v56 = vsel %vm1618_vm9, %v15220_v31, %v8851_v13  ;;  %v8860_v46 = vsel %vm1618_vm9, %v8851_v13, %v8839_v14  ;;  %v8669_v13 = vld [vmem:[%s16816_s1 + $0x238] sm:$0xff]  ;;  %v8870_v11 = vld [vmem:[%s16816_s1 + $0x240] sm:$0xff] }
 0x649   :  { %v8866_v43 = vmul.f32 %v8859_v8, %v17067_v52  ;;  %v8867_v0 = vmul.f32 %v8857_v12, %v17066_v24  ;;  %12199 = vmatprep.subr.bf16.mxu1 %v12198_v20  ;;  %8740 = vmatprep.mubr.f32.mxu0 %v17011_v33  ;;  %v8864_v1 = vmul.f32 %v8854_v56, %v17068_v44  ;;  %v8871_v20 = vld [vmem:[%s16816_s1 + $0x248] sm:$0xff] }
 0x64a   :  { %12021 = vmatmul.mubr.msk.f32.gmra.mrb[14].mxu1 %vm5531_vm12, %v8467_v62  ;;  %v8865_v62 = vmul.f32 %v8860_v46, %v17069_v48 }
 0x64b   :  { %v12204_v29 = vpack.c.bf16 %v8866_v43, %v8862_v57  ;;  %12201 = vmatpush1.bf16.msra.mxu1 %v12200_v10  ;;  %v8853_v47 = vpop.permute.xlu0 %8852  ;;  %8817 = vmatprep.mubr.f32.mxu1 %v17011_v33  ;;  %v12202_v31 = vpack.c.bf16 %v8867_v0, %v8863_v36 }
 0x64c   :  { %v8855_v32 = vsel %vm1618_vm9, %v15241_v6, %v8853_v47  ;;  %v8861_v14 = vsel %vm1618_vm9, %v8853_v47, %v15254_v54  ;;  %12022 = vmatmul.mubr.msk.f32.vlgmr.msra.gmra.mrb[12].mxu0 %vm5531_vm12, %v8668_v5 }
 0x64d   :  { %v8868_v34 = vmul.f32 %v8855_v32, %v17068_v44  ;;  %v8869_v10 = vmul.f32 %v8861_v14, %v17069_v48  ;;  %12203 = vmatprep.subr.bf16.mxu0 %v12202_v31  ;;  %8746 = vmatprep.mubr.f32.mxu0 %v17011_v33 }
 0x64e   :  { %12024 = vmatmul.mubr.msk.f32.vlgmr.msra.gmra.mrb[12].mxu1 %vm5531_vm12, %v8668_v5  ;;  %12205 = vmatpush1.bf16.msra.mxu0 %v12204_v29 }
 0x64f   :  { %v12208_v6 = vpack.c.bf16 %v8868_v34, %v8864_v1  ;;  %8823 = vmatprep.mubr.f32.mxu1 %v17011_v33  ;;  %v12206_v54 = vpack.c.bf16 %v8869_v10, %v8865_v62 }
 0x650   :  { %12023 = vmatmul.mubr.msk.f32.gmra.mrb[14].mxu0 %vm5531_vm12, %v8669_v13 }
 0x651   :  { %12207 = vmatprep.subr.bf16.mxu1 %v12206_v54  ;;  %8942 = vmatprep.mubr.f32.mxu0 %v17011_v33 }
 0x652   :  { %12025 = vmatmul.mubr.msk.f32.gmra.mrb[14].mxu1 %vm5531_vm12, %v8669_v13 }
 0x653   :  { %12209 = vmatpush1.bf16.msra.mxu1 %v12208_v6  ;;  %9019 = vmatprep.mubr.f32.mxu1 %v17011_v33 }
 0x654   :  { %12026 = vmatmul.mubr.msk.f32.vlgmr.msra.gmra.mrb[12].mxu0 %vm5531_vm12, %v8870_v11 }
 0x655   :  { %8948 = vmatprep.mubr.f32.mxu0 %v17011_v33 }
 0x656   :  { %12028 = vmatmul.mubr.msk.f32.vlgmr.msra.gmra.mrb[12].mxu1 %vm5531_vm12, %v8870_v11 }
 0x657   :  { %9025 = vmatprep.mubr.f32.mxu1 %v17011_v33 }
 0x658   :  { %12027 = vmatmul.mubr.msk.f32.gmra.mrb[14].mxu0 %vm5531_vm12, %v8871_v20  ;;  %v9045_v36 = vpop.permute.xlu1 %9044 }
 0x659   :  { %9206 = vmatprep.mubr.f32.mxu0 %v17011_v33 }
 0x65a   :  { %12029 = vmatmul.mubr.msk.f32.gmra.mrb[14].mxu1 %vm5531_vm12, %v8871_v20 }
 0x65b   :  { %9283 = vmatprep.mubr.f32.mxu1 %v17011_v33 }
 0x65c   :  { %v9050_v5 = vpop.permute.xlu0 %9049 }
 0x727   :  { %v8944_v12 = vpop.f32.mrb[12].mxu0 }
 0x728   :  { %v9052_v8 = vadd.f32 %v9045_v36, %v8944_v12  ;;  %v8946_v57 = vpop.f32.mrb[13].mxu0 }
 0x729   :  { %v9021_v56 = vpop.f32.mrb[12].mxu1  ;;  %v9053_v10 = vadd.f32 %v9045_v36, %v8946_v57 }
 0x72a   :  { %v15468_v43 = vmax.f32 %v9052_v8, 0.0  ;;  %v9023_v0 = vpop.f32.mrb[13].mxu1  ;;  %v9054_v14 = vadd.f32 %v9045_v36, %v9021_v56 }
 0x72b   :  { %v8950_v46 = vpop.f32.mrb[14].mxu0  ;;  %v15498_v6 = vmax.f32 %v9053_v10, 0.0  ;;  %v9055_v54 = vadd.f32 %v9045_v36, %v9023_v0 }
 0x72c   :  { %v9056_v29 = vadd.f32 %v9050_v5, %v8950_v46  ;;  %9102 = vrot.lane.b32.xlu1 %v15468_v43, %s13218_s11  ;;  %v8952_v47 = vpop.f32.mrb[15].mxu0  ;;  %v15486_v62 = vmax.f32 %v9054_v14, 0.0 }
 0x72d   :  { %v9027_v31 = vpop.f32.mrb[14].mxu1  ;;  %v9057_v11 = vadd.f32 %v9050_v5, %v8952_v47  ;;  %v15504_v20 = vmax.f32 %v9055_v54, 0.0 }
 0x72e   :  { %v15472_v1 = vmax.f32 %v9056_v29, 0.0  ;;  %v9029_v32 = vpop.f32.mrb[15].mxu1  ;;  %17070 = vst [vmem:[#allocation32_spill] sm:$0xff] %v15486_v62  ;;  %v9058_v34 = vadd.f32 %v9050_v5, %v9027_v31  ;;  %v10838_v29 = vld [vmem:[%s16817_s2 + $0x50] sm:$0xff] }
 0x72f   :  { %v15506_v12 = vmax.f32 %v9057_v11, 0.0  ;;  %v9059_v8 = vadd.f32 %v9050_v5, %v9029_v32  ;;  %v10839_v32 = vld [vmem:[%s16817_s2 + $0x58] sm:$0xff] }
 0x730   :  { %9068 = vrot.lane.b32.xlu1 %v15468_v43, %s13219_s0  ;;  %9104 = vrot.lane.b32.xlu0 %v15472_v1, %s13218_s11  ;;  %v15492_v13 = vmax.f32 %v9058_v34, 0.0 }
 0x731   :  { %v15512_v57 = vmax.f32 %v9059_v8, 0.0 }
 0x732   :  { %17071 = vst [vmem:[#allocation31_spill] sm:$0xff] %v15492_v13 }
 0x734   :  { %9456 = vrot.lane.b32.xlu1 %v15468_v43, %s13220_s3  ;;  %9070 = vrot.lane.b32.xlu0 %v15472_v1, %s13219_s0 }
 0x738   :  { %9658 = vrot.lane.b32.xlu1 %v15468_v43, %s13221_s12  ;;  %9458 = vrot.lane.b32.xlu0 %v15472_v1, %s13220_s3 }
 0x73c   :  { %10038 = vrot.lane.b32.xlu1 %v15486_v62, %s13222_s13  ;;  %9660 = vrot.lane.b32.xlu0 %v15472_v1, %s13221_s12 }
 0x740   :  { %10030 = vrot.lane.b32.xlu1 %v15468_v43, %s13222_s13  ;;  %10040 = vrot.lane.b32.xlu0 %v15492_v13, %s13222_s13 }
 0x744   :  { %9106 = vrot.lane.b32.xlu1 %v15498_v6, %s13218_s11  ;;  %10032 = vrot.lane.b32.xlu0 %v15472_v1, %s13222_s13 }
 0x748   :  { %9114 = vrot.lane.b32.xlu1 %v15504_v20, %s13218_s11  ;;  %9108 = vrot.lane.b32.xlu0 %v15506_v12, %s13218_s11 }
 0x74c   :  { %9072 = vrot.lane.b32.xlu1 %v15498_v6, %s13219_s0  ;;  %9116 = vrot.lane.b32.xlu0 %v15512_v57, %s13218_s11 }
 0x750   :  { %9080 = vrot.lane.b32.xlu1 %v15504_v20, %s13219_s0  ;;  %9074 = vrot.lane.b32.xlu0 %v15506_v12, %s13219_s0 }
 0x754   :  { %9460 = vrot.lane.b32.xlu1 %v15498_v6, %s13220_s3  ;;  %9082 = vrot.lane.b32.xlu0 %v15512_v57, %s13219_s0 }
 0x758   :  { %9468 = vrot.lane.b32.xlu1 %v15504_v20, %s13220_s3  ;;  %9462 = vrot.lane.b32.xlu0 %v15506_v12, %s13220_s3 }
 0x75c   :  { %9662 = vrot.lane.b32.xlu1 %v15498_v6, %s13221_s12  ;;  %9470 = vrot.lane.b32.xlu0 %v15512_v57, %s13220_s3 }
 0x760   :  { %9670 = vrot.lane.b32.xlu1 %v15504_v20, %s13221_s12  ;;  %9664 = vrot.lane.b32.xlu0 %v15506_v12, %s13221_s12 }
 0x764   :  { %10240 = vrot.lane.b32.xlu1 %v15486_v62, %s13223_s14  ;;  %9672 = vrot.lane.b32.xlu0 %v15512_v57, %s13221_s12 }
 0x768   :  { %10034 = vrot.lane.b32.xlu1 %v15498_v6, %s13222_s13  ;;  %10242 = vrot.lane.b32.xlu0 %v15492_v13, %s13223_s14 }
 0x76c   :  { %10236 = vrot.lane.b32.xlu1 %v15498_v6, %s13223_s14  ;;  %10234 = vrot.lane.b32.xlu0 %v15472_v1, %s13223_s14 }
 0x770   :  { %10232 = vrot.lane.b32.xlu1 %v15468_v43, %s13223_s14  ;;  %10036 = vrot.lane.b32.xlu0 %v15506_v12, %s13222_s13 }
 0x774   :  { %10438 = vrot.lane.b32.xlu1 %v15498_v6, %s13224_s15  ;;  %10444 = vrot.lane.b32.xlu0 %v15492_v13, %s13224_s15 }
 0x778   :  { %10442 = vrot.lane.b32.xlu1 %v15486_v62, %s13224_s15  ;;  %10238 = vrot.lane.b32.xlu0 %v15506_v12, %s13223_s14 }
 0x77c   :  { %10434 = vrot.lane.b32.xlu1 %v15468_v43, %s13224_s15  ;;  %10436 = vrot.lane.b32.xlu0 %v15472_v1, %s13224_s15 }
 0x780   :  { %10640 = vrot.lane.b32.xlu1 %v15498_v6, %s13225_s16  ;;  %10440 = vrot.lane.b32.xlu0 %v15506_v12, %s13224_s15 }
 0x784   :  { %10644 = vrot.lane.b32.xlu1 %v15486_v62, %s13225_s16  ;;  %10646 = vrot.lane.b32.xlu0 %v15492_v13, %s13225_s16 }
 0x788   :  { %10636 = vrot.lane.b32.xlu1 %v15468_v43, %s13225_s16  ;;  %10642 = vrot.lane.b32.xlu0 %v15506_v12, %s13225_s16 }
 0x78c   :  { %9110 = vrot.lane.b32.xlu1 %v15486_v62, %s13218_s11  ;;  %10638 = vrot.lane.b32.xlu0 %v15472_v1, %s13225_s16 }
 0x790   :  { %9076 = vrot.lane.b32.xlu1 %v15486_v62, %s13219_s0  ;;  %9112 = vrot.lane.b32.xlu0 %v15492_v13, %s13218_s11 }
 0x794   :  { %9464 = vrot.lane.b32.xlu1 %v15486_v62, %s13220_s3  ;;  %9078 = vrot.lane.b32.xlu0 %v15492_v13, %s13219_s0 }
 0x798   :  { %9666 = vrot.lane.b32.xlu1 %v15486_v62, %s13221_s12  ;;  %9466 = vrot.lane.b32.xlu0 %v15492_v13, %s13220_s3 }
 0x79c   :  { %10042 = vrot.lane.b32.xlu1 %v15504_v20, %s13222_s13  ;;  %9668 = vrot.lane.b32.xlu0 %v15492_v13, %s13221_s12 }
 0x79e   :  { %v9103_v36 = vpop.permute.xlu1 %9102 }
 0x7a0   :  { %10244 = vrot.lane.b32.xlu1 %v15504_v20, %s13223_s14  ;;  %10044 = vrot.lane.b32.xlu0 %v15512_v57, %s13222_s13 }
 0x7a2   :  { %v9069_v56 = vpop.permute.xlu1 %9068  ;;  %v9105_v0 = vpop.permute.xlu0 %9104 }
 0x7a4   :  { %10446 = vrot.lane.b32.xlu1 %v15504_v20, %s13224_s15  ;;  %10246 = vrot.lane.b32.xlu0 %v15512_v57, %s13223_s14 }
 0x7a6   :  { %v15606_v5 = vpop.permute.xlu1 %9456  ;;  %v9071_v46 = vpop.permute.xlu0 %9070 }
 0x7a8   :  { %10648 = vrot.lane.b32.xlu1 %v15504_v20, %s13225_s16  ;;  %10448 = vrot.lane.b32.xlu0 %v15512_v57, %s13224_s15 }
 0x7aa   :  { %v15615_v47 = vpop.permute.xlu1 %9658  ;;  %v9459_v31 = vpop.permute.xlu0 %9458 }
 0x7ac   :  { %10842 = vperm.xlu1 %13163, %v10838_v29   ;;  %10650 = vrot.lane.b32.xlu0 %v15512_v57, %s13225_s16 }
 0x7ae   :  { %v15622_v14 = vpop.permute.xlu1 %10038  ;;  %v15624_v34 = vpop.permute.xlu0 %9660 }
 0x7af   :  { %17072 = vst [vmem:[#allocation14_spill] sm:$0xff] %v15622_v14 }
 0x7b0   :  { %10847 = vperm.xlu0 %13162, %v10839_v32  }
 0x7b2   :  { %v15626_v10 = vpop.permute.xlu1 %10030  ;;  %v15628_v54 = vpop.permute.xlu0 %10040 }
 0x7b3   :  { %17073 = vst [vmem:[#allocation33_spill] sm:$0xff] %v15628_v54 }
 0x7b6   :  { %v15630_v11 = vpop.permute.xlu1 %9106  ;;  %v15632_v8 = vpop.permute.xlu0 %10032 }
 0x7b7   :  { %v9122_v29 = vsel %vm93_vm0, %v9103_v36, %v15630_v11 }
 0x7b8   :  { %v9127_v61 = vmul.f32 %v9122_v29, %v17074_v9 }
 0x7ba   :  { %v15637_v23 = vpop.permute.xlu1 %9114  ;;  %v15639_v30 = vpop.permute.xlu0 %9108 }
 0x7bb   :  { %v9123_v32 = vsel %vm93_vm0, %v9105_v0, %v15639_v30  ;;  %v9124_v40 = vsel %vm93_vm0, %v15637_v23, %v9103_v36 }
 0x7bc   :  { %v9131_v26 = vmul.f32 %v9123_v32, %v17074_v9  ;;  %v9126_v49 = vmul.f32 %v9124_v40, %v13414_v18 }
 0x7be   :  { %v15649_v51 = vpop.permute.xlu1 %9072  ;;  %v15651_v39 = vpop.permute.xlu0 %9116  ;;  %v12210_v48 = vpack.c.bf16 %v9131_v26, %v9127_v61 }
 0x7bf   :  { %v9125_v21 = vsel %vm93_vm0, %v15651_v39, %v9105_v0  ;;  %v9088_v9 = vsel %vm53_vm2, %v9069_v56, %v15649_v51 }
 0x7c0   :  { %v9130_v13 = vmul.f32 %v9125_v21, %v13414_v18  ;;  %12211 = vmatprep.subr.bf16.mxu0 %v12210_v48  ;;  %v9093_v26 = vmul.f32 %v9088_v9, %v13423_v22  ;;  %v15673_v18 = vld [vmem:[%s16816_s1 + $0x260] sm:$0xff] }
 0x7c2   :  { %v12212_v29 = vpack.c.bf16 %v9130_v13, %v9126_v49  ;;  %v15661_v36 = vpop.permute.xlu1 %9080  ;;  %v15663_v32 = vpop.permute.xlu0 %9074 }
 0x7c3   :  { %v9089_v61 = vsel %vm53_vm2, %v9071_v46, %v15663_v32  ;;  %v9090_v49 = vsel %vm53_vm2, %v15661_v36, %v9069_v56  ;;  %v15693_v56 = vld [vmem:[%s16816_s1 + $0x268] sm:$0xff] }
 0x7c4   :  { %v9097_v40 = vmul.f32 %v9089_v61, %v13423_v22  ;;  %12213 = vmatpush1.bf16.msra.mxu0 %v12212_v29  ;;  %v9092_v22 = vmul.f32 %v9090_v49, %v13449_v35 }
 0x7c6   :  { %v15678_v21 = vpop.permute.xlu1 %9460  ;;  %v15680_v48 = vpop.permute.xlu0 %9082  ;;  %v12218_v13 = vpack.c.bf16 %v9097_v40, %v9093_v26 }
 0x7c7   :  { %v9091_v0 = vsel %vm53_vm2, %v15680_v48, %v9071_v46  ;;  %12030 = vmatmul.mubr.msk.f32.vlgmr.msra.gmra.mrb[16].mxu0 %vm5531_vm12, %v15673_v18  ;;  %v9476_v46 = vsel %vm450_vm4, %v15606_v5, %v15678_v21 }
 0x7c8   :  { %v9096_v9 = vmul.f32 %v9091_v0, %v13449_v35  ;;  %12219 = vmatprep.subr.bf16.mxu0 %v12218_v13  ;;  %9212 = vmatprep.mubr.f32.mxu0 %v17011_v33  ;;  %v9481_v40 = vmul.f32 %v9476_v46, %v13475_v45  ;;  %v15714_v13 = vld [vmem:[%s16816_s1 + $0x250] sm:$0xff] }
 0x7ca   :  { %v12220_v29 = vpack.c.bf16 %v9096_v9, %v9092_v22  ;;  %v15699_v61 = vpop.permute.xlu1 %9468  ;;  %v15701_v26 = vpop.permute.xlu0 %9462 }
 0x7cb   :  { %v9477_v35 = vsel %vm450_vm4, %v9459_v31, %v15701_v26  ;;  %12031 = vmatmul.mubr.msk.f32.gmra.mrb[18].mxu0 %vm5531_vm12, %v15693_v56  ;;  %v9478_v0 = vsel %vm450_vm4, %v15699_v61, %v15606_v5  ;;  %v15735_v5 = vld [vmem:[%s16816_s1 + $0x258] sm:$0xff] }
 0x7cc   :  { %v9485_v49 = vmul.f32 %v9477_v35, %v13475_v45  ;;  %12221 = vmatpush1.bf16.msra.mxu0 %v12220_v29  ;;  %9366 = vmatprep.mubr.f32.mxu0 %v17011_v33  ;;  %v9480_v29 = vmul.f32 %v9478_v0, %v13493_v55 }
 0x7ce   :  { %v15720_v22 = vpop.permute.xlu1 %9662  ;;  %v15722_v9 = vpop.permute.xlu0 %9470  ;;  %v12226_v46 = vpack.c.bf16 %v9485_v49, %v9481_v40 }
 0x7cf   :  { %v9479_v45 = vsel %vm450_vm4, %v15722_v9, %v9459_v31  ;;  %12034 = vmatmul.mubr.msk.f32.vlgmr.msra.gmra.mrb[16].mxu0 %vm5531_vm12, %v15714_v13  ;;  %v9678_v31 = vsel %vm652_vm5, %v15615_v47, %v15720_v22 }
 0x7d0   :  { %v9484_v35 = vmul.f32 %v9479_v45, %v13493_v55  ;;  %12227 = vmatprep.subr.bf16.mxu0 %v12226_v46  ;;  %9372 = vmatprep.mubr.f32.mxu0 %v17011_v33  ;;  %v9683_v0 = vmul.f32 %v9678_v31, %v13524_v16  ;;  %v15757_v45 = vld [vmem:[%s16816_s1 + $0x270] sm:$0xff] }
 0x7d2   :  { %v12228_v40 = vpack.c.bf16 %v9484_v35, %v9480_v29  ;;  %v15741_v49 = vpop.permute.xlu1 %9670  ;;  %v15743_v62 = vpop.permute.xlu0 %9664 }
 0x7d3   :  { %v9679_v55 = vsel %vm652_vm5, %v15624_v34, %v15743_v62  ;;  %12035 = vmatmul.mubr.msk.f32.gmra.mrb[18].mxu0 %vm5531_vm12, %v15735_v5  ;;  %v9680_v29 = vsel %vm652_vm5, %v15741_v49, %v15615_v47  ;;  %v15779_v47 = vld [vmem:[%s16816_s1 + $0x278] sm:$0xff] }
 0x7d4   :  { %v9687_v46 = vmul.f32 %v9679_v55, %v13524_v16  ;;  %12229 = vmatpush1.bf16.msra.mxu0 %v12228_v40  ;;  %9560 = vmatprep.mubr.f32.mxu0 %v17011_v33  ;;  %v9682_v40 = vmul.f32 %v9680_v29, %v13535_v25  ;;  %17075 = vst [vmem:[#allocation35_spill] sm:$0xff] %v15779_v47 }
 0x7d6   :  { %v15763_v35 = vpop.permute.xlu1 %10240  ;;  %v15765_v44 = vpop.permute.xlu0 %9672  ;;  %v12234_v31 = vpack.c.bf16 %v9687_v46, %v9683_v0 }
 0x7d7   :  { %v9681_v16 = vsel %vm652_vm5, %v15765_v44, %v15624_v34  ;;  %12038 = vmatmul.mubr.msk.f32.vlgmr.msra.gmra.mrb[16].mxu0 %vm5531_vm12, %v15757_v45  ;;  %v12242_v34 = vpack.c.bf16 %v15506_v12, %v15498_v6  ;;  %v15803_v6 = vld [vmem:[%s16816_s1 + $0x288] sm:$0xff] }
 0x7d8   :  { %v9686_v55 = vmul.f32 %v9681_v16, %v13535_v25  ;;  %12235 = vmatprep.subr.bf16.mxu0 %v12234_v31  ;;  %9566 = vmatprep.mubr.f32.mxu0 %v17011_v33  ;;  %v15791_v25 = vld [vmem:[%s16816_s1 + $0x280] sm:$0xff]  ;;  %v12244_v16 = vpack.c.bf16 %v15472_v1, %v15468_v43  ;;  %17077 = vst [vmem:[#allocation13_spill] sm:$0xff] %v15803_v6 }
 0x7d9   :  { %17076 = vst [vmem:[#allocation11_spill] sm:$0xff] %v15791_v25 }
 0x7da   :  { %v12236_v0 = vpack.c.bf16 %v9686_v55, %v9682_v40  ;;  %v10035_v46 = vpop.permute.xlu1 %10034  ;;  %v15781_v63 = vpop.permute.xlu0 %10242 }
 0x7db   :  { %12039 = vmatmul.mubr.msk.f32.gmra.mrb[18].mxu0 %vm5531_vm12, %v15779_v47  ;;  %v10048_v12 = vsel %vm1012_vm6, %v10035_v46, %v15622_v14  ;;  %v10050_v40 = vsel %vm1012_vm6, %v15626_v10, %v10035_v46 }
 0x7dc   :  { %12237 = vmatpush1.bf16.msra.mxu0 %v12236_v0  ;;  %9762 = vmatprep.mubr.f32.mxu0 %v17011_v33 }
 0x7dd   :  { %12243 = vmatprep.subr.bf16.mxu0 %v12242_v34  ;;  %v10054_v34 = vmul.f32 %v10050_v40, %v13585_v50 }
 0x7de   :  { %v10237_v29 = vpop.permute.xlu1 %10236  ;;  %v15793_v31 = vpop.permute.xlu0 %10234 }
 0x7df   :  { %12042 = vmatmul.mubr.msk.f32.vlgmr.msra.gmra.mrb[16].mxu0 %vm5531_vm12, %v15791_v25  ;;  %v15829_v25 = vld [vmem:[%s16816_s1 + $0x290] sm:$0xff] }
 0x7e0   :  { %12245 = vmatpush1.bf16.msra.mxu0 %v12244_v16  ;;  %9768 = vmatprep.mubr.f32.mxu0 %v17011_v33  ;;  %v10055_v16 = vmul.f32 %v10048_v12, %v13563_v41  ;;  %17078 = vst [vmem:[#allocation36_spill] sm:$0xff] %v15829_v25 }
 0x7e2   :  { %v15811_v43 = vpop.permute.xlu1 %10232  ;;  %v10037_v1 = vpop.permute.xlu0 %10036 }
 0x7e3   :  { %v10049_v55 = vsel %vm1012_vm6, %v10037_v1, %v15628_v54  ;;  %v10051_v0 = vsel %vm1012_vm6, %v15632_v8, %v10037_v1  ;;  %12043 = vmatmul.mubr.msk.f32.gmra.mrb[18].mxu0 %vm5531_vm12, %v15803_v6  ;;  %v10252_v12 = vsel %vm1214_vm7, %v15811_v43, %v10237_v29 }
 0x7e4   :  { %v10058_v46 = vmul.f32 %v10051_v0, %v13585_v50  ;;  %v10059_v14 = vmul.f32 %v10049_v55, %v13563_v41  ;;  %9932 = vmatprep.mubr.f32.mxu0 %v17011_v33  ;;  %v15839_v41 = vld [vmem:[%s16816_s1 + $0x298] sm:$0xff]  ;;  %v10250_v50 = vsel %vm1214_vm7, %v10237_v29, %v15763_v35 }
 0x7e5   :  { %17079 = vst [vmem:[#allocation12_spill] sm:$0xff] %v15839_v41  ;;  %v10257_v0 = vmul.f32 %v10250_v50, %v17055_v4 }
 0x7e6   :  { %v12252_v54 = vpack.c.bf16 %v10058_v46, %v10054_v34  ;;  %v10439_v1 = vpop.permute.xlu1 %10438  ;;  %v15831_v47 = vpop.permute.xlu0 %10444  ;;  %v12250_v6 = vpack.c.bf16 %v10059_v14, %v10055_v16  ;;  %v10256_v34 = vmul.f32 %v10252_v12, %v17052_v3  ;;  %v15865_v16 = vld [vmem:[%s16816_s1 + $0x2a0] sm:$0xff] }
 0x7e7   :  { %12046 = vmatmul.mubr.msk.f32.vlgmr.msra.gmra.mrb[16].mxu0 %vm5531_vm12, %v15829_v25  ;;  %17080 = vst [vmem:[#allocation34_spill] sm:$0xff] %v15865_v16 }
 0x7e8   :  { %12251 = vmatprep.subr.bf16.mxu0 %v12250_v6  ;;  %9938 = vmatprep.mubr.f32.mxu0 %v17011_v33 }
 0x7e9   :  { %12253 = vmatpush1.bf16.msra.mxu0 %v12252_v54 }
 0x7ea   :  { %v15847_v14 = vpop.permute.xlu1 %10442  ;;  %v10239_v40 = vpop.permute.xlu0 %10238 }
 0x7eb   :  { %v10251_v6 = vsel %vm1214_vm7, %v10239_v40, %v15781_v63  ;;  %v10253_v55 = vsel %vm1214_vm7, %v15793_v31, %v10239_v40  ;;  %12047 = vmatmul.mubr.msk.f32.gmra.mrb[18].mxu0 %vm5531_vm12, %v15839_v41 }
 0x7ec   :  { %v10260_v54 = vmul.f32 %v10253_v55, %v17052_v3  ;;  %v10261_v29 = vmul.f32 %v10251_v6, %v17055_v4  ;;  %10134 = vmatprep.mubr.f32.mxu0 %v17011_v33  ;;  %v15877_v3 = vld [vmem:[%s16816_s1 + $0x2a8] sm:$0xff]  ;;  %v10452_v4 = vsel %vm1416_vm8, %v10439_v1, %v15847_v14 }
 0x7ed   :  { %17081 = vst [vmem:[#allocation18_spill] sm:$0xff] %v15877_v3 }
 0x7ee   :  { %v12260_v46 = vpack.c.bf16 %v10260_v54, %v10256_v34  ;;  %v15867_v40 = vpop.permute.xlu1 %10434  ;;  %v15869_v25 = vpop.permute.xlu0 %10436  ;;  %v12258_v41 = vpack.c.bf16 %v10261_v29, %v10257_v0  ;;  %v10459_v0 = vmul.f32 %v10452_v4, %v17061_v53  ;;  %v15901_v29 = vld [vmem:[%s16816_s1 + $0x2b0] sm:$0xff] }
 0x7ef   :  { %12050 = vmatmul.mubr.msk.f32.vlgmr.msra.gmra.mrb[16].mxu0 %vm5531_vm12, %v15865_v16  ;;  %v10454_v50 = vsel %vm1416_vm8, %v15867_v40, %v10439_v1  ;;  %17082 = vst [vmem:[#allocation15_spill] sm:$0xff] %v15901_v29 }
 0x7f0   :  { %12259 = vmatprep.subr.bf16.mxu0 %v12258_v41  ;;  %10140 = vmatprep.mubr.f32.mxu0 %v17011_v33  ;;  %v10458_v34 = vmul.f32 %v10454_v50, %v17060_v42 }
 0x7f1   :  { %12261 = vmatpush1.bf16.msra.mxu0 %v12260_v46 }
 0x7f2   :  { %v10641_v12 = vpop.permute.xlu1 %10640  ;;  %v10441_v6 = vpop.permute.xlu0 %10440 }
 0x7f3   :  { %v10453_v41 = vsel %vm1416_vm8, %v10441_v6, %v15831_v47  ;;  %v10455_v55 = vsel %vm1416_vm8, %v15869_v25, %v10441_v6  ;;  %12051 = vmatmul.mubr.msk.f32.gmra.mrb[18].mxu0 %vm5531_vm12, %v15877_v3 }
 0x7f4   :  { %v10462_v1 = vmul.f32 %v10455_v55, %v17060_v42  ;;  %v10463_v54 = vmul.f32 %v10453_v41, %v17061_v53  ;;  %10336 = vmatprep.mubr.f32.mxu0 %v17011_v33  ;;  %v15913_v42 = vld [vmem:[%s16816_s1 + $0x2b8] sm:$0xff] }
 0x7f5   :  { %17083 = vst [vmem:[#allocation37_spill] sm:$0xff] %v15913_v42 }
 0x7f6   :  { %v12268_v46 = vpack.c.bf16 %v10462_v1, %v10458_v34  ;;  %v15903_v6 = vpop.permute.xlu1 %10644  ;;  %v15905_v16 = vpop.permute.xlu0 %10646  ;;  %v12266_v3 = vpack.c.bf16 %v10463_v54, %v10459_v0  ;;  %v15931_v0 = vld [vmem:[%s16816_s1 + $0x2c0] sm:$0xff] }
 0x7f7   :  { %12054 = vmatmul.mubr.msk.f32.vlgmr.msra.gmra.mrb[16].mxu0 %vm5531_vm12, %v15901_v29  ;;  %v10654_v53 = vsel %vm1618_vm9, %v10641_v12, %v15903_v6  ;;  %17085 = vst [vmem:[#allocation17_spill] sm:$0xff] %v15931_v0  ;;  %v10883_v29 = vld [vmem:[#allocation2 + $0x48] sm:$0xff] }
 0x7f8   :  { %12267 = vmatprep.subr.bf16.mxu0 %v12266_v3  ;;  %10342 = vmatprep.mubr.f32.mxu0 %v17011_v33  ;;  %v10661_v3 = vmul.f32 %v10654_v53, %v17066_v24 }
 0x7f9   :  { %12269 = vmatpush1.bf16.msra.mxu0 %v12268_v46 }
 0x7fa   :  { %v15918_v4 = vpop.permute.xlu1 %10636  ;;  %v10643_v50 = vpop.permute.xlu0 %10642 }
 0x7fb   :  { %17084 = vst [vmem:[#allocation38_spill] sm:$0xff] %v15918_v4  ;;  %v10655_v41 = vsel %vm1618_vm9, %v10643_v50, %v15905_v16  ;;  %12055 = vmatmul.mubr.msk.f32.gmra.mrb[18].mxu0 %vm5531_vm12, %v15913_v42  ;;  %v10656_v34 = vsel %vm1618_vm9, %v15918_v4, %v10641_v12  ;;  %v10875_v42 = vld [vmem:[#allocation2 + $0x8] sm:$0xff]  ;;  %v10882_v4 = vld [vmem:[#allocation2 + $0x40] sm:$0xff] }
 0x7fc   :  { %v10665_v55 = vmul.f32 %v10655_v41, %v17066_v24  ;;  %10538 = vmatprep.mubr.f32.mxu0 %v17011_v33  ;;  %v10660_v53 = vmul.f32 %v10656_v34, %v17067_v52  ;;  %v15949_v12 = vld [vmem:[%s16816_s1 + $0x2c8] sm:$0xff] }
 0x7fe   :  { %v9111_v1 = vpop.permute.xlu1 %9110  ;;  %v15936_v54 = vpop.permute.xlu0 %10638  ;;  %v12274_v46 = vpack.c.bf16 %v10665_v55, %v10661_v3  ;;  %v15957_v55 = vpack.c.bf16 %v10883_v29, %v10875_v42 }
 0x7ff   :  { %v10657_v24 = vsel %vm1618_vm9, %v15936_v54, %v10643_v50  ;;  %12058 = vmatmul.mubr.msk.f32.vlgmr.msra.gmra.mrb[16].mxu0 %vm5531_vm12, %v15931_v0  ;;  %v9118_v3 = vsel %vm93_vm0, %v9111_v1, %v15637_v23  ;;  %v9120_v50 = vsel %vm93_vm0, %v15630_v11, %v9111_v1  ;;  %v10874_v23 = vld [vmem:[#allocation2] sm:$0xff] }
 0x800   :  { %v10664_v41 = vmul.f32 %v10657_v24, %v17067_v52  ;;  %12275 = vmatprep.subr.bf16.mxu0 %v12274_v46  ;;  %10544 = vmatprep.mubr.f32.mxu0 %v17011_v33  ;;  %v9128_v11 = vmul.f32 %v9120_v50, %v13417_v19  ;;  %v9129_v29 = vmul.f32 %v9118_v3, %v13404_v15 }
 0x801   :  { %v15984_v3 = vpack.c.bf16 %v10882_v4, %v10874_v23  ;;  %v10898_v23 = vld [vmem:[#allocation2 + $0xc0] sm:$0xff] }
 0x802   :  { %v12276_v34 = vpack.c.bf16 %v10664_v41, %v10660_v53  ;;  %v9077_v52 = vpop.permute.xlu1 %9076  ;;  %v9113_v46 = vpop.permute.xlu0 %9112 }
 0x803   :  { %v9119_v24 = vsel %vm93_vm0, %v9113_v46, %v15651_v39  ;;  %v9121_v0 = vsel %vm93_vm0, %v15639_v30, %v9113_v46  ;;  %12059 = vmatmul.mubr.msk.f32.gmra.mrb[18].mxu0 %vm5531_vm12, %v15949_v12  ;;  %v15974_v39 = vld [vmem:[%s16816_s1 + $0x2d0] sm:$0xff]  ;;  %v9084_v30 = vsel %vm53_vm2, %v9077_v52, %v15661_v36  ;;  %v9086_v53 = vsel %vm53_vm2, %v15649_v51, %v9077_v52  ;;  %v10891_v51 = vld [vmem:[#allocation2 + $0x88] sm:$0xff] }
 0x804   :  { %v9132_v42 = vmul.f32 %v9121_v0, %v13417_v19  ;;  %v9133_v1 = vmul.f32 %v9119_v24, %v13404_v15  ;;  %12277 = vmatpush1.bf16.msra.mxu0 %v12276_v34  ;;  %10740 = vmatprep.mubr.f32.mxu0 %v17011_v33  ;;  %v10899_v34 = vld [vmem:[#allocation2 + $0xc8] sm:$0xff]  ;;  %v9094_v52 = vmul.f32 %v9086_v53, %v13455_v37 }
 0x805   :  { %12283 = vmatprep.subr.bf16.mxu0 %v15957_v55  ;;  %v9095_v46 = vmul.f32 %v9084_v30, %v13458_v38  ;;  %v16011_v30 = vpack.c.bf16 %v10899_v34, %v10891_v51 }
 0x806   :  { %v12216_v19 = vpack.c.bf16 %v9132_v42, %v9128_v11  ;;  %v9465_v15 = vpop.permute.xlu1 %9464  ;;  %v9079_v0 = vpop.permute.xlu0 %9078  ;;  %v12214_v41 = vpack.c.bf16 %v9133_v1, %v9129_v29 }
 0x807   :  { %v9085_v50 = vsel %vm53_vm2, %v9079_v0, %v15680_v48  ;;  %v9087_v36 = vsel %vm53_vm2, %v15663_v32, %v9079_v0  ;;  %12062 = vmatmul.mubr.msk.f32.vlgmr.msra.gmra.mrb[16].mxu0 %vm5531_vm12, %v15974_v39  ;;  %v16001_v48 = vld [vmem:[%s16816_s1 + $0x2d8] sm:$0xff]  ;;  %v10890_v32 = vld [vmem:[#allocation2 + $0x80] sm:$0xff]  ;;  %v9472_v11 = vsel %vm450_vm4, %v9465_v15, %v15699_v61  ;;  %v9474_v29 = vsel %vm450_vm4, %v15678_v21, %v9465_v15  ;;  %v10915_v15 = vld [vmem:[#allocation2 + $0x148] sm:$0xff]  ;;  %s13235_s1 = smov [#allocation5]  }
 0x808   :  { %v9098_v4 = vmul.f32 %v9087_v36, %v13455_v37  ;;  %v9099_v24 = vmul.f32 %v9085_v50, %v13458_v38  ;;  %12215 = vmatprep.subr.bf16.mxu1 %v12214_v41  ;;  %10746 = vmatprep.mubr.f32.mxu0 %v17011_v33  ;;  %v16021_v21 = vpack.c.bf16 %v10898_v23, %v10890_v32  ;;  %v10931_v32 = vld [vmem:[#allocation2 + $0x1c8] sm:$0xff]  ;;  %s11783_s30 = sshll.u32 %s13235_s1, 4  ;;  %s11784_s30 = int_to_ptr.vmem [resolvable:$true] %s11783_s30 }
 0x809   :  { %12217 = vmatpush1.bf16.msra.mxu1 %v12216_v19  ;;  %12285 = vmatpush1.bf16.msra.mxu0 %v15984_v3  ;;  %v10907_v19 = vld [vmem:[#allocation2 + $0x108] sm:$0xff]  ;;  %v9482_v0 = vmul.f32 %v9474_v29, %v13502_v58  ;;  %v9483_v41 = vmul.f32 %v9472_v11, %v13505_v59  ;;  %s13188_s6 = scalar_lea.vmem %s11784_s30, 4096  ;;  %p13193_p9 = scmp.lt.s32.totalorder %s11784_s30, %s11784_s30 }
 0x80a   :  { %v12224_v37 = vpack.c.bf16 %v9098_v4, %v9094_v52  ;;  %v9667_v38 = vpop.permute.xlu1 %9666  ;;  %v9467_v42 = vpop.permute.xlu0 %9466  ;;  %v12222_v1 = vpack.c.bf16 %v9099_v24, %v9095_v46  ;;  %12287 = vmatprep.subr.bf16.mxu0 %v16011_v30  ;;  %v10923_v24 = vld [vmem:[#allocation2 + $0x188] sm:$0xff]  ;;  %p13189_p8 = scmp.ne.s32.totalorder %s11784_s30, %s13188_s6  ;;  %p13194_p10 = scmp.lt.s32.totalorder %s13188_s6, %s13188_s6 }
 0x80b   :  { %v9473_v53 = vsel %vm450_vm4, %v9467_v42, %v15722_v9  ;;  %v9475_v61 = vsel %vm450_vm4, %v15701_v26, %v9467_v42  ;;  %12063 = vmatmul.mubr.msk.f32.gmra.mrb[18].mxu0 %vm5531_vm12, %v16001_v48  ;;  %v10906_v9 = vld [vmem:[#allocation2 + $0x100] sm:$0xff]  ;;  %v9674_v51 = vsel %vm652_vm5, %v9667_v38, %v15741_v49  ;;  %v9676_v34 = vsel %vm652_vm5, %v15720_v22, %v9667_v38 }
 0x80c   :  { %v9486_v50 = vmul.f32 %v9475_v61, %v13502_v58  ;;  %v9487_v36 = vmul.f32 %v9473_v53, %v13505_v59  ;;  %12032 = vmatmul.mubr.msk.f32.vlgmr.msra.gmra.mrb[16].mxu1 %vm5531_vm12, %v15673_v18  ;;  %v10914_v26 = vld [vmem:[#allocation2 + $0x140] sm:$0xff]  ;;  %12223 = vmatprep.subr.bf16.mxu1 %v12222_v1  ;;  %v16039_v18 = vpack.c.bf16 %v10915_v15, %v10907_v19  ;;  %v10947_v61 = vld [vmem:[#allocation2 + $0x248] sm:$0xff]  ;;  %p13195_p11 = por %p13194_p10, %p13193_p9 }
 0x80d   :  { %9289 = vmatprep.mubr.f32.mxu1 %v17011_v33  ;;  %12225 = vmatpush1.bf16.msra.mxu1 %v12224_v37  ;;  %v16048_v4 = vpack.c.bf16 %v10914_v26, %v10906_v9  ;;  %v16051_v23 = vmul.f32 %v9676_v34, %v13541_v27  ;;  %v9685_v11 = vmul.f32 %v9674_v51, %v13544_v28  ;;  %v10930_v37 = vld [vmem:[#allocation2 + $0x1c0] sm:$0xff]  ;;  %v10955_v26 = vld [vmem:[#allocation2 + $0x288] sm:$0xff] }
 0x80e   :  { %v12232_v52 = vpack.c.bf16 %v9486_v50, %v9482_v0  ;;  %v16036_v58 = vpop.permute.xlu1 %10042  ;;  %v9669_v59 = vpop.permute.xlu0 %9668  ;;  %v12230_v46 = vpack.c.bf16 %v9487_v36, %v9483_v41  ;;  %12289 = vmatpush1.bf16.msra.mxu0 %v16021_v21  ;;  %v10938_v19 = vld [vmem:[#allocation2 + $0x200] sm:$0xff]  ;;  %v10963_v51 = vld [vmem:[#allocation2 + $0x2c8] sm:$0xff]  ;;  %p13196_p12 = pnand %p13195_p11, %p13189_p8 }
 0x80f   :  { %v9675_v49 = vsel %vm652_vm5, %v9669_v59, %v15765_v44  ;;  %v9677_v22 = vsel %vm652_vm5, %v15743_v62, %v9669_v59  ;;  %v10922_v62 = vld [vmem:[#allocation2 + $0x180] sm:$0xff]  ;;  %12291 = vmatprep.subr.bf16.mxu0 %v16039_v18 }
 0x810   :  { %v16055_v29 = vmul.f32 %v9677_v22, %v13541_v27  ;;  %v9689_v44 = vmul.f32 %v9675_v49, %v13544_v28  ;;  %12033 = vmatmul.mubr.msk.f32.gmra.mrb[18].mxu1 %vm5531_vm12, %v15693_v56  ;;  %12231 = vmatprep.subr.bf16.mxu1 %v12230_v46  ;;  %v16066_v27 = vpack.c.bf16 %v10931_v32, %v10923_v24  ;;  %v10939_v28 = vld [vmem:[#allocation2 + $0x208] sm:$0xff]  ;;  %v10946_v15 = vld [vmem:[#allocation2 + $0x240] sm:$0xff] }
 0x811   :  { %9443 = vmatprep.mubr.f32.mxu1 %v17011_v33  ;;  %v16069_v56 = vpack.c.bf16 %v10930_v37, %v10922_v62  ;;  %v16080_v50 = vpack.c.bf16 %v10947_v61, %v10939_v28  ;;  %v10962_v46 = vld [vmem:[#allocation2 + $0x2c0] sm:$0xff]  ;;  %v10971_v22 = vld [vmem:[#allocation2 + $0x308] sm:$0xff]  ;;  %v12246_v37 = vpack.c.bf16 %v15512_v57, %v15504_v20 }
 0x812   :  { %v12240_v38 = vpack.c.bf16 %v16055_v29, %v16051_v23  ;;  %v10245_v42 = vpop.permute.xlu1 %10244  ;;  %v16063_v1 = vpop.permute.xlu0 %10044  ;;  %v12238_v53 = vpack.c.bf16 %v9689_v44, %v9685_v11  ;;  %12293 = vmatpush1.bf16.msra.mxu0 %v16048_v4  ;;  %v16122_v23 = vpack.c.bf16 %v10963_v51, %v10955_v26  ;;  %v10970_v29 = vld [vmem:[#allocation2 + $0x300] sm:$0xff]  ;;  %v10995_v28 = vld [vmem:[#allocation2 + $0x3c8] sm:$0xff] }
 0x813   :  { %v10248_v0 = vsel %vm1214_vm7, %v15763_v35, %v10245_v42  ;;  %v10254_v41 = vsel %vm1214_vm7, %v10245_v42, %v15811_v43  ;;  %12295 = vmatprep.subr.bf16.mxu0 %v16066_v27  ;;  %v16092_v43 = vpack.c.bf16 %v10946_v15, %v10938_v19  ;;  %v10053_v61 = vsel %vm1012_vm6, %v16063_v1, %v15632_v8  ;;  %v17086_v19 = vld [vmem:[#allocation9_spill] sm:$0xff] }
 0x814   :  { %12036 = vmatmul.mubr.msk.f32.vlgmr.msra.gmra.mrb[16].mxu1 %vm5531_vm12, %v15714_v13  ;;  %v16095_v34 = vmul.f32 %v10248_v0, %v17056_v17  ;;  %v10052_v8 = vsel %vm1012_vm6, %v16036_v58, %v15626_v10  ;;  %v10061_v15 = vmul.f32 %v10053_v61, %v17086_v19  ;;  %v17087_v0 = vld [vmem:[#allocation21_spill] sm:$0xff]  ;;  %v17088_v10 = vld [vmem:[#allocation35_spill] sm:$0xff]  ;;  %v11010_v61 = vld [vmem:[#allocation2 + $0x440] sm:$0xff] }
 0x815   :  { %12233 = vmatpush1.bf16.msra.mxu1 %v12232_v52  ;;  %9449 = vmatprep.mubr.f32.mxu1 %v17011_v33  ;;  %v16098_v52 = vmul.f32 %v10254_v41, %v17058_v2  ;;  %v11011_v26 = vld [vmem:[#allocation2 + $0x448] sm:$0xff]  ;;  %v10057_v51 = vmul.f32 %v10052_v8, %v17086_v19  ;;  %v17094_v19 = vld [vmem:[#allocation10_spill] sm:$0xff] }
 0x816   :  { %12239 = vmatprep.subr.bf16.mxu1 %v12238_v53  ;;  %v16082_v36 = vpop.permute.xlu1 %10446  ;;  %v10247_v9 = vpop.permute.xlu0 %10246  ;;  %12297 = vmatpush1.bf16.msra.mxu0 %v16069_v56  ;;  %v10987_v53 = vld [vmem:[#allocation2 + $0x388] sm:$0xff] }
 0x817   :  { %v10249_v13 = vsel %vm1214_vm7, %v15781_v63, %v10247_v9  ;;  %v10255_v35 = vsel %vm1214_vm7, %v10247_v9, %v15793_v31  ;;  %v10954_v31 = vld [vmem:[#allocation2 + $0x280] sm:$0xff]  ;;  %v10450_v49 = vsel %vm1416_vm8, %v15847_v14, %v16082_v36  ;;  %12299 = vmatprep.subr.bf16.mxu0 %v16080_v50  ;;  %v11027_v8 = vld [vmem:[#allocation2 + $0x4c8] sm:$0xff] }
 0x818   :  { %v16101_v59 = vmul.f32 %v10249_v13, %v17056_v17  ;;  %v16104_v63 = vmul.f32 %v10255_v35, %v17058_v2  ;;  %12037 = vmatmul.mubr.msk.f32.gmra.mrb[18].mxu1 %vm5531_vm12, %v15735_v5  ;;  %v10979_v17 = vld [vmem:[#allocation2 + $0x348] sm:$0xff]  ;;  %v16129_v11 = vpack.c.bf16 %v10962_v46, %v10954_v31  ;;  %v16132_v44 = vmul.f32 %v10450_v49, %v17064_v60  ;;  %v10994_v13 = vld [vmem:[#allocation2 + $0x3c0] sm:$0xff]  ;;  %v17090_v49 = vld [vmem:[#allocation31_spill] sm:$0xff] }
 0x819   :  { %9637 = vmatprep.mubr.f32.mxu1 %v17011_v33  ;;  %v16141_v42 = vpack.c.bf16 %v10979_v17, %v10971_v22  ;;  %v11003_v35 = vld [vmem:[#allocation2 + $0x408] sm:$0xff]  ;;  %v17089_v46 = vld [vmem:[#allocation32_spill] sm:$0xff] }
 0x81a   :  { %v12264_v2 = vpack.c.bf16 %v16101_v59, %v16095_v34  ;;  %v16116_v24 = vpop.permute.xlu1 %10648  ;;  %v16118_v32 = vpop.permute.xlu0 %10448  ;;  %v12262_v5 = vpack.c.bf16 %v16104_v63, %v16098_v52  ;;  %12301 = vmatpush1.bf16.msra.mxu0 %v16092_v43  ;;  %v12248_v22 = vpack.c.bf16 %v17090_v49, %v17089_v46  ;;  %v11050_v52 = vld [vmem:[#allocation2 + $0x580] sm:$0xff] }
 0x81b   :  { %v10451_v14 = vsel %vm1416_vm8, %v15831_v47, %v16118_v32  ;;  %v10978_v47 = vld [vmem:[#allocation2 + $0x340] sm:$0xff]  ;;  %12303 = vmatprep.subr.bf16.mxu0 %v16122_v23 }
 0x81c   :  { %v16135_v62 = vmul.f32 %v10451_v14, %v17064_v60  ;;  %12040 = vmatmul.mubr.msk.f32.vlgmr.msra.gmra.mrb[16].mxu1 %vm5531_vm12, %v15757_v45  ;;  %v10652_v60 = vsel %vm1618_vm9, %v15903_v6, %v16116_v24  ;;  %v16166_v6 = vpack.c.bf16 %v10978_v47, %v10970_v29  ;;  %v17091_v14 = vld [vmem:[#allocation33_spill] sm:$0xff]  ;;  %v12254_v47 = vpack.c.bf16 %v10061_v15, %v10057_v51  ;;  %v11058_v63 = vld [vmem:[#allocation2 + $0x5c0] sm:$0xff] }
 0x81d   :  { %12241 = vmatpush1.bf16.msra.mxu1 %v12240_v38  ;;  %9643 = vmatprep.mubr.f32.mxu1 %v17011_v33  ;;  %v16168_v38 = vpack.c.bf16 %v10995_v28, %v10987_v53  ;;  %v16172_v41 = vmul.f32 %v10652_v60, %v17087_v0  ;;  %v10047_v29 = vsel %vm1012_vm6, %v17091_v14, %v16063_v1  ;;  %v11002_v28 = vld [vmem:[#allocation2 + $0x400] sm:$0xff]  ;;  %v11019_v60 = vld [vmem:[#allocation2 + $0x488] sm:$0xff] }
 0x81e   :  { %v12272_v20 = vpack.c.bf16 %v16135_v62, %v16132_v44  ;;  %12247 = vmatprep.subr.bf16.mxu1 %v12246_v37  ;;  %v16154_v57 = vpop.permute.xlu0 %10650  ;;  %12305 = vmatpush1.bf16.msra.mxu0 %v16129_v11  ;;  %v17092_v37 = vld [vmem:[#allocation11_spill] sm:$0xff]  ;;  %v16196_v53 = vpack.c.bf16 %v11011_v26, %v11003_v35  ;;  %v16205_v15 = vpack.c.bf16 %v11010_v61, %v11002_v28  ;;  %v11026_v35 = vld [vmem:[#allocation2 + $0x4c0] sm:$0xff]  ;;  %v11043_v51 = vld [vmem:[#allocation2 + $0x548] sm:$0xff] }
 0x81f   :  { %v10653_v45 = vsel %vm1618_vm9, %v15905_v16, %v16154_v57  ;;  %12307 = vmatprep.subr.bf16.mxu0 %v16141_v42  ;;  %v10986_v16 = vld [vmem:[#allocation2 + $0x380] sm:$0xff]  ;;  %v11051_v28 = vld [vmem:[#allocation2 + $0x588] sm:$0xff]  ;;  %v10876_v44 = vld [vmem:[#allocation2 + $0x10] sm:$0xff] }
 0x820   :  { %v16175_v9 = vmul.f32 %v10653_v45, %v17087_v0  ;;  %12041 = vmatmul.mubr.msk.f32.gmra.mrb[18].mxu1 %vm5531_vm12, %v17088_v10  ;;  %v16187_v17 = vpack.c.bf16 %v10994_v13, %v10986_v16  ;;  %v17093_v45 = vld [vmem:[#allocation14_spill] sm:$0xff]  ;;  %v10060_v0 = vmul.f32 %v10047_v29, %v17094_v19  ;;  %v17095_v10 = vld [vmem:[#allocation13_spill] sm:$0xff]  ;;  %v16210_v16 = vpack.c.bf16 %v11027_v8, %v11019_v60  ;;  %v11018_v13 = vld [vmem:[#allocation2 + $0x480] sm:$0xff] }
 0x821   :  { %9839 = vmatprep.mubr.f32.mxu1 %v17011_v33  ;;  %v10046_v1 = vsel %vm1012_vm6, %v17093_v45, %v16036_v58  ;;  %v11035_v58 = vld [vmem:[#allocation2 + $0x508] sm:$0xff]  ;;  %v16215_v49 = vpack.c.bf16 %v11026_v35, %v11018_v13  ;;  %v11034_v29 = vld [vmem:[#allocation2 + $0x500] sm:$0xff]  ;;  %v10456_v60 = vsel %vm1416_vm8, %v16082_v36, %v15867_v40  ;;  %v16246_v36 = vpack.c.bf16 %v11058_v63, %v11050_v52  ;;  %v10884_v62 = vld [vmem:[#allocation2 + $0x50] sm:$0xff] }
 0x822   :  { %v12280_v31 = vpack.c.bf16 %v16175_v9, %v16172_v41  ;;  %12309 = vmatpush1.bf16.msra.mxu0 %v16166_v6  ;;  %17096 = vst [vmem:[#allocation19_spill] sm:$0xff] %v16210_v16  ;;  %v10056_v26 = vmul.f32 %v10046_v1, %v17094_v19  ;;  %v16220_v14 = vpack.c.bf16 %v11043_v51, %v11035_v58  ;;  %v11059_v61 = vld [vmem:[#allocation2 + $0x5c8] sm:$0xff]  ;;  %v17101_v45 = vld [vmem:[#allocation16_spill] sm:$0xff]  ;;  %v10901_v63 = vld [vmem:[#allocation2 + $0xd8] sm:$0xff] }
 0x823   :  { %12311 = vmatprep.subr.bf16.mxu0 %v16168_v38  ;;  %17097 = vst [vmem:[#allocation22_spill] sm:$0xff] %v16215_v49  ;;  %v16241_v1 = vpack.c.bf16 %v11059_v61, %v11051_v28  ;;  %v11075_v19 = vld [vmem:[#allocation2 + $0x648] sm:$0xff]  ;;  %v10461_v40 = vmul.f32 %v10456_v60, %v17101_v45  ;;  %17104 = vst [vmem:[#allocation35_spill] sm:$0xff] %v16246_v36  ;;  %v11066_v35 = vld [vmem:[#allocation2 + $0x600] sm:$0xff]  ;;  %v10659_v58 = vsel %vm1618_vm9, %v16154_v57, %v15936_v54 }
 0x824   :  { %12044 = vmatmul.mubr.msk.f32.vlgmr.msra.gmra.mrb[16].mxu1 %vm5531_vm12, %v17092_v37  ;;  %v12256_v46 = vpack.c.bf16 %v10060_v0, %v10056_v26  ;;  %17099 = vst [vmem:[#allocation8_spill] sm:$0xff] %v16220_v14  ;;  %v11042_v37 = vld [vmem:[#allocation2 + $0x540] sm:$0xff]  ;;  %v17105_v0 = vld [vmem:[#allocation34_spill] sm:$0xff]  ;;  %v11083_v51 = vld [vmem:[#allocation2 + $0x688] sm:$0xff] }
 0x825   :  { %12249 = vmatpush1.bf16.msra.mxu1 %v12248_v22  ;;  %9845 = vmatprep.mubr.f32.mxu1 %v17011_v33  ;;  %v17098_v22 = vld [vmem:[#allocation36_spill] sm:$0xff]  ;;  %v16235_v8 = vpack.c.bf16 %v11042_v37, %v11034_v29  ;;  %17103 = vst [vmem:[#allocation21_spill] sm:$0xff] %v16241_v1  ;;  %v17110_v57 = vld [vmem:[#allocation18_spill] sm:$0xff]  ;;  %v17113_v28 = vld [vmem:[#allocation15_spill] sm:$0xff] }
 0x826   :  { %12255 = vmatprep.subr.bf16.mxu1 %v12254_v47  ;;  %12313 = vmatpush1.bf16.msra.mxu0 %v16187_v17  ;;  %v10457_v47 = vsel %vm1416_vm8, %v16118_v32, %v15869_v25  ;;  %v17102_v32 = vld [vmem:[#allocation12_spill] sm:$0xff]  ;;  %v10877_v60 = vld [vmem:[#allocation2 + $0x18] sm:$0xff]  ;;  %v17115_v52 = vld [vmem:[#allocation17_spill] sm:$0xff] }
 0x827   :  { %12315 = vmatprep.subr.bf16.mxu0 %v16196_v53  ;;  %17100 = vst [vmem:[#allocation9_spill] sm:$0xff] %v16235_v8  ;;  %v10465_v25 = vmul.f32 %v10457_v47, %v17101_v45  ;;  %v11074_v26 = vld [vmem:[#allocation2 + $0x640] sm:$0xff]  ;;  %v10885_v45 = vld [vmem:[#allocation2 + $0x58] sm:$0xff]  ;;  %v10900_v41 = vld [vmem:[#allocation2 + $0xd0] sm:$0xff] }
 0x828   :  { %12045 = vmatmul.mubr.msk.f32.gmra.mrb[18].mxu1 %vm5531_vm12, %v17095_v10  ;;  %v16266_v37 = vpack.c.bf16 %v11074_v26, %v11066_v35  ;;  %v17109_v47 = vld [vmem:[#allocation20_spill] sm:$0xff]  ;;  %v10909_v9 = vld [vmem:[#allocation2 + $0x118] sm:$0xff]  ;;  %v10916_v35 = vld [vmem:[#allocation2 + $0x150] sm:$0xff] }
 0x829   :  { %10009 = vmatprep.mubr.f32.mxu1 %v17011_v33  ;;  %v12270_v10 = vpack.c.bf16 %v10465_v25, %v10461_v40  ;;  %v10667_v54 = vmul.f32 %v10659_v58, %v17109_v47  ;;  %v11082_v59 = vld [vmem:[#allocation2 + $0x680] sm:$0xff]  ;;  %v17114_v25 = vld [vmem:[#allocation37_spill] sm:$0xff]  ;;  %v10892_v40 = vld [vmem:[#allocation2 + $0x90] sm:$0xff] }
 0x82a   :  { %12317 = vmatpush1.bf16.msra.mxu0 %v16205_v15  ;;  %17108 = vst [vmem:[#allocation31_spill] sm:$0xff] %v16266_v37  ;;  %v10925_v26 = vld [vmem:[#allocation2 + $0x198] sm:$0xff] }
 0x82b   :  { %12319 = vmatprep.subr.bf16.mxu0 %v16210_v16  ;;  %v10933_v58 = vld [vmem:[#allocation2 + $0x1d8] sm:$0xff]  ;;  %v17142_v16 = vld [vmem:[#allocation29_spill] sm:$0xff] }
 0x82c   :  { %12048 = vmatmul.mubr.msk.f32.vlgmr.msra.gmra.mrb[16].mxu1 %vm5531_vm12, %v17098_v22  ;;  %v17107_v22 = vld [vmem:[#allocation38_spill] sm:$0xff] }
 0x82d   :  { %12257 = vmatpush1.bf16.msra.mxu1 %v12256_v46  ;;  %10015 = vmatprep.mubr.f32.mxu1 %v17011_v33  ;;  %v11091_v46 = vld [vmem:[#allocation2 + $0x6c8] sm:$0xff]  ;;  %v10658_v29 = vsel %vm1618_vm9, %v16116_v24, %v17107_v22  ;;  %v10941_v22 = vld [vmem:[#allocation2 + $0x218] sm:$0xff] }
 0x82e   :  { %12263 = vmatprep.subr.bf16.mxu1 %v12262_v5  ;;  %12321 = vmatpush1.bf16.msra.mxu0 %v16215_v49  ;;  %v11067_v5 = vld [vmem:[#allocation2 + $0x608] sm:$0xff]  ;;  %v16272_v34 = vpack.c.bf16 %v11091_v46, %v11083_v51  ;;  %v10663_v7 = vmul.f32 %v10658_v29, %v17109_v47  ;;  %v10924_v51 = vld [vmem:[#allocation2 + $0x190] sm:$0xff]  ;;  %v10949_v29 = vld [vmem:[#allocation2 + $0x258] sm:$0xff] }
 0x82f   :  { %12323 = vmatprep.subr.bf16.mxu0 %v16220_v14  ;;  %v16251_v13 = vpack.c.bf16 %v11075_v19, %v11067_v5  ;;  %v16302_v5 = vpack.c.bf16 %v10884_v62, %v10876_v44  ;;  %v10932_v46 = vld [vmem:[#allocation2 + $0x1d0] sm:$0xff]  ;;  %v11098_v44 = vld [vmem:[#allocation2 + $0x700] sm:$0xff]  ;;  %v17139_v14 = vld [vmem:[#allocation25_spill] sm:$0xff] }
 0x830   :  { %12049 = vmatmul.mubr.msk.f32.gmra.mrb[18].mxu1 %vm5531_vm12, %v17102_v32  ;;  %17111 = vst [vmem:[#allocation33_spill] sm:$0xff] %v16272_v34  ;;  %v12278_v61 = vpack.c.bf16 %v10667_v54, %v10663_v7  ;;  %v16290_v32 = vpack.c.bf16 %v10885_v45, %v10877_v60  ;;  %v16324_v47 = vpack.c.bf16 %v10932_v46, %v10924_v51  ;;  %v11107_v60 = vld [vmem:[#allocation2 + $0x748] sm:$0xff]  ;;  %v11106_v62 = vld [vmem:[#allocation2 + $0x740] sm:$0xff] }
 0x831   :  { %10211 = vmatprep.mubr.f32.mxu1 %v17011_v33  ;;  %17106 = vst [vmem:[#allocation32_spill] sm:$0xff] %v16251_v13  ;;  %v16327_v54 = vpack.c.bf16 %v10949_v29, %v10941_v22  ;;  %v11114_v51 = vld [vmem:[#allocation2 + $0x780] sm:$0xff]  ;;  %v10989_v22 = vld [vmem:[#allocation2 + $0x398] sm:$0xff] }
 0x832   :  { %12325 = vmatpush1.bf16.msra.mxu0 %v16235_v8  ;;  %v11122_v46 = vld [vmem:[#allocation2 + $0x7c0] sm:$0xff]  ;;  %v10997_v29 = vld [vmem:[#allocation2 + $0x3d8] sm:$0xff] }
 0x833   :  { %12327 = vmatprep.subr.bf16.mxu0 %v16241_v1  ;;  %v10902_v49 = vld [vmem:[#allocation2 + $0xe0] sm:$0xff] }
 0x834   :  { %12052 = vmatmul.mubr.msk.f32.vlgmr.msra.gmra.mrb[16].mxu1 %vm5531_vm12, %v17105_v0  ;;  %v16310_v0 = vpack.c.bf16 %v10900_v41, %v10892_v40  ;;  %v16337_v40 = vpack.c.bf16 %v11106_v62, %v11098_v44  ;;  %v11005_v44 = vld [vmem:[#allocation2 + $0x418] sm:$0xff] }
 0x835   :  { %12265 = vmatpush1.bf16.msra.mxu1 %v12264_v2  ;;  %10217 = vmatprep.mubr.f32.mxu1 %v17011_v33  ;;  %v11090_v2 = vld [vmem:[#allocation2 + $0x6c0] sm:$0xff]  ;;  %v11013_v62 = vld [vmem:[#allocation2 + $0x458] sm:$0xff] }
 0x836   :  { %12271 = vmatprep.subr.bf16.mxu1 %v12270_v10  ;;  %12329 = vmatpush1.bf16.msra.mxu0 %v16246_v36  ;;  %v16277_v24 = vpack.c.bf16 %v11090_v2, %v11082_v59  ;;  %v10908_v10 = vld [vmem:[#allocation2 + $0x110] sm:$0xff]  ;;  %v10957_v59 = vld [vmem:[#allocation2 + $0x298] sm:$0xff]  ;;  %17117 = vst [vmem:[#allocation10_spill] sm:$0xff] %v16337_v40 }
 0x837   :  { %12331 = vmatprep.subr.bf16.mxu0 %v16251_v13  ;;  %v10965_v2 = vld [vmem:[#allocation2 + $0x2d8] sm:$0xff] }
 0x838   :  { %12053 = vmatmul.mubr.msk.f32.gmra.mrb[18].mxu1 %vm5531_vm12, %v17110_v57  ;;  %17112 = vst [vmem:[#allocation11_spill] sm:$0xff] %v16277_v24  ;;  %v10948_v57 = vld [vmem:[#allocation2 + $0x250] sm:$0xff]  ;;  %v16333_v45 = vpack.c.bf16 %v10965_v2, %v10957_v59  ;;  %v10879_v59 = vld [vmem:[#allocation2 + $0x28] sm:$0xff]  ;;  %v10897_v36 = vld [vmem:[#allocation2 + $0xb8] sm:$0xff] }
 0x839   :  { %10413 = vmatprep.mubr.f32.mxu1 %v17011_v33  ;;  %v10887_v2 = vld [vmem:[#allocation2 + $0x68] sm:$0xff] }
 0x83a   :  { %12333 = vmatpush1.bf16.msra.mxu0 %v16266_v37  ;;  %v11108_v37 = vld [vmem:[#allocation2 + $0x750] sm:$0xff] }
 0x83b   :  { %12335 = vmatprep.subr.bf16.mxu0 %v16272_v34  ;;  %v11100_v34 = vld [vmem:[#allocation2 + $0x710] sm:$0xff] }
 0x83c   :  { %12056 = vmatmul.mubr.msk.f32.vlgmr.msra.gmra.mrb[16].mxu1 %vm5531_vm12, %v17113_v28  ;;  %v10956_v28 = vld [vmem:[#allocation2 + $0x290] sm:$0xff] }
 0x83d   :  { %12273 = vmatpush1.bf16.msra.mxu1 %v12272_v20  ;;  %10419 = vmatprep.mubr.f32.mxu1 %v17011_v33  ;;  %v10893_v20 = vld [vmem:[#allocation2 + $0x98] sm:$0xff] }
 0x83e   :  { %12279 = vmatprep.subr.bf16.mxu1 %v12278_v61  ;;  %12337 = vmatpush1.bf16.msra.mxu0 %v16277_v24  ;;  %v16304_v19 = vpack.c.bf16 %v10901_v63, %v10893_v20  ;;  %v11099_v61 = vld [vmem:[#allocation2 + $0x708] sm:$0xff]  ;;  %v10973_v20 = vld [vmem:[#allocation2 + $0x318] sm:$0xff]  ;;  %v11092_v24 = vld [vmem:[#allocation2 + $0x6d0] sm:$0xff] }
 0x83f   :  { %v10981_v63 = vld [vmem:[#allocation2 + $0x358] sm:$0xff] }
 0x840   :  { %12057 = vmatmul.mubr.msk.f32.gmra.mrb[18].mxu1 %vm5531_vm12, %v17114_v25  ;;  %v10964_v25 = vld [vmem:[#allocation2 + $0x2d0] sm:$0xff] }
 0x841   :  { %10615 = vmatprep.mubr.f32.mxu1 %v17011_v33  ;;  %v16341_v41 = vpack.c.bf16 %v10964_v25, %v10956_v28  ;;  %v16357_v28 = vpack.c.bf16 %v10997_v29, %v10989_v22  ;;  %v16359_v25 = vpack.c.bf16 %v10887_v2, %v10879_v59  ;;  %v11020_v22 = vld [vmem:[#allocation2 + $0x490] sm:$0xff]  ;;  %v11037_v59 = vld [vmem:[#allocation2 + $0x518] sm:$0xff] }
 0x842   :  { %v11028_v29 = vld [vmem:[#allocation2 + $0x4d0] sm:$0xff]  ;;  %v11045_v2 = vld [vmem:[#allocation2 + $0x558] sm:$0xff] }
 0x843   :  { %17120 = vst [vmem:[#allocation16_spill] sm:$0xff] %v16359_v25 }
 0x844   :  { %12060 = vmatmul.mubr.msk.f32.vlgmr.msra.gmra.mrb[16].mxu1 %vm5531_vm12, %v17115_v52  ;;  %v16335_v52 = vpack.c.bf16 %v11107_v60, %v11099_v61  ;;  %v10988_v61 = vld [vmem:[#allocation2 + $0x390] sm:$0xff] }
 0x845   :  { %12281 = vmatpush1.bf16.msra.mxu1 %v12280_v31  ;;  %10621 = vmatprep.mubr.f32.mxu1 %v17011_v33  ;;  %v10917_v31 = vld [vmem:[#allocation2 + $0x158] sm:$0xff]  ;;  %v10996_v60 = vld [vmem:[#allocation2 + $0x3d0] sm:$0xff] }
 0x846   :  { %12347 = vmatprep.subr.bf16.mxu1 %v16290_v32  ;;  %17116 = vst [vmem:[#allocation14_spill] sm:$0xff] %v16335_v52  ;;  %12339 = vmatprep.subr.bf16.mxu0 %v16335_v52  ;;  %v11084_v52 = vld [vmem:[#allocation2 + $0x690] sm:$0xff] }
 0x847   :  { %12341 = vmatpush1.bf16.msra.mxu0 %v16337_v40  ;;  %v11076_v40 = vld [vmem:[#allocation2 + $0x650] sm:$0xff] }
 0x848   :  { %12061 = vmatmul.mubr.msk.f32.gmra.mrb[18].mxu1 %vm5531_vm12, %v15949_v12  ;;  %v16313_v12 = vpack.c.bf16 %v10917_v31, %v10909_v9  ;;  %v10972_v9 = vld [vmem:[#allocation2 + $0x310] sm:$0xff]  ;;  %v11115_v31 = vld [vmem:[#allocation2 + $0x788] sm:$0xff] }
 0x849   :  { %10817 = vmatprep.mubr.f32.mxu1 %v17011_v33 }
 0x84c   :  { %12064 = vmatmul.mubr.msk.f32.vlgmr.msra.gmra.mrb[16].mxu1 %vm5531_vm12, %v15974_v39  ;;  %v16318_v39 = vpack.c.bf16 %v10916_v35, %v10908_v10  ;;  %v11123_v10 = vld [vmem:[#allocation2 + $0x7c8] sm:$0xff]  ;;  %v16345_v35 = vpack.c.bf16 %v10981_v63, %v10973_v20  ;;  %v16363_v20 = vpack.c.bf16 %v10996_v60, %v10988_v61  ;;  %v16366_v63 = vpack.c.bf16 %v11013_v62, %v11005_v44  ;;  %v11036_v44 = vld [vmem:[#allocation2 + $0x510] sm:$0xff] }
 0x84d   :  { %10823 = vmatprep.mubr.f32.mxu1 %v17011_v33  ;;  %12349 = vmatpush1.bf16.msra.mxu1 %v16302_v5  ;;  %v16321_v33 = vpack.c.bf16 %v10933_v58, %v10925_v26  ;;  %v10980_v26 = vld [vmem:[#allocation2 + $0x350] sm:$0xff]  ;;  %v16347_v58 = vpack.c.bf16 %v11123_v10, %v11115_v31  ;;  %v11021_v10 = vld [vmem:[#allocation2 + $0x498] sm:$0xff]  ;;  %v16375_v61 = vpack.c.bf16 %v11028_v29, %v11020_v22 }
 0x84e   :  { %12351 = vmatprep.subr.bf16.mxu1 %v16304_v19  ;;  %v11012_v31 = vld [vmem:[#allocation2 + $0x450] sm:$0xff]  ;;  %v16378_v60 = vpack.c.bf16 %v11045_v2, %v11037_v59  ;;  %v11069_v22 = vld [vmem:[#allocation2 + $0x618] sm:$0xff] }
 0x84f   :  { %17118 = vst [vmem:[#allocation13_spill] sm:$0xff] %v16347_v58  ;;  %12343 = vmatprep.subr.bf16.mxu0 %v16347_v58  ;;  %17122 = vst [vmem:[#allocation34_spill] sm:$0xff] %v16375_v61  ;;  %v11044_v62 = vld [vmem:[#allocation2 + $0x550] sm:$0xff]  ;;  %v11077_v29 = vld [vmem:[#allocation2 + $0x658] sm:$0xff] }
 0x850   :  { %12065 = vmatmul.mubr.msk.f32.gmra.mrb[18].mxu1 %vm5531_vm12, %v16001_v48  ;;  %v10940_v48 = vld [vmem:[#allocation2 + $0x210] sm:$0xff]  ;;  %17123 = vst [vmem:[#allocation38_spill] sm:$0xff] %v16378_v60  ;;  %v16390_v2 = vpack.c.bf16 %v11077_v29, %v11069_v22  ;;  %v16399_v22 = vpack.c.bf16 %v11092_v24, %v11084_v52  ;;  %v10881_v24 = vld [vmem:[#allocation2 + $0x38] sm:$0xff] }
 0x851   :  { %12353 = vmatpush1.bf16.msra.mxu1 %v16310_v0  ;;  %v16330_v7 = vpack.c.bf16 %v10948_v57, %v10940_v48  ;;  %v16349_v48 = vpack.c.bf16 %v11122_v46, %v11114_v51  ;;  %v16353_v57 = vpack.c.bf16 %v10980_v26, %v10972_v9  ;;  %v11004_v9 = vld [vmem:[#allocation2 + $0x410] sm:$0xff]  ;;  %v11029_v26 = vld [vmem:[#allocation2 + $0x4d8] sm:$0xff] }
 0x852   :  { %12355 = vmatprep.subr.bf16.mxu1 %v16313_v12  ;;  %v16369_v51 = vpack.c.bf16 %v11012_v31, %v11004_v9  ;;  %v16372_v46 = vpack.c.bf16 %v11029_v26, %v11021_v10  ;;  %v11053_v9 = vld [vmem:[#allocation2 + $0x598] sm:$0xff]  ;;  %v16381_v10 = vpack.c.bf16 %v11044_v62, %v11036_v44  ;;  %17127 = vst [vmem:[#allocation37_spill] sm:$0xff] %v16390_v2  ;;  %v11068_v58 = vld [vmem:[#allocation2 + $0x610] sm:$0xff]  ;;  %17130 = vst [vmem:[#allocation40_spill] sm:$0xff] %v16399_v22 }
 0x853   :  { %17119 = vst [vmem:[#allocation36_spill] sm:$0xff] %v16349_v48  ;;  %12345 = vmatpush1.bf16.msra.mxu0 %v16349_v48  ;;  %v11061_v31 = vld [vmem:[#allocation2 + $0x5d8] sm:$0xff]  ;;  %v11060_v48 = vld [vmem:[#allocation2 + $0x5d0] sm:$0xff] }
 0x854   :  { %12411 = vmatprep.subr.bf16.mxu0 %v16359_v25  ;;  %17121 = vst [vmem:[#allocation12_spill] sm:$0xff] %v16372_v46  ;;  %17124 = vst [vmem:[#allocation20_spill] sm:$0xff] %v16381_v10  ;;  %v16384_v26 = vpack.c.bf16 %v11061_v31, %v11053_v9  ;;  %v11052_v25 = vld [vmem:[#allocation2 + $0x590] sm:$0xff]  ;;  %v11085_v44 = vld [vmem:[#allocation2 + $0x698] sm:$0xff]  ;;  %v16393_v9 = vpack.c.bf16 %v11076_v40, %v11068_v58 }
 0x855   :  { %12357 = vmatpush1.bf16.msra.mxu1 %v16318_v39  ;;  %v16387_v59 = vpack.c.bf16 %v11060_v48, %v11052_v25  ;;  %v11093_v62 = vld [vmem:[#allocation2 + $0x6d8] sm:$0xff] }
 0x856   :  { %12359 = vmatprep.subr.bf16.mxu1 %v16321_v33  ;;  %17125 = vst [vmem:[#allocation18_spill] sm:$0xff] %v16384_v26  ;;  %17128 = vst [vmem:[#allocation17_spill] sm:$0xff] %v16393_v9  ;;  %v16396_v31 = vpack.c.bf16 %v11093_v62, %v11085_v44  ;;  %v11101_v48 = vld [vmem:[#allocation2 + $0x718] sm:$0xff]  ;;  %v16405_v44 = vpack.c.bf16 %v11108_v37, %v11100_v34  ;;  %v16418_v37 = vpop.permute.xlu1 %10842 }
 0x857   :  { %17126 = vst [vmem:[#allocation15_spill] sm:$0xff] %v16387_v59  ;;  %v11109_v25 = vld [vmem:[#allocation2 + $0x758] sm:$0xff] }
 0x858   :  { %17129 = vst [vmem:[#allocation39_spill] sm:$0xff] %v16396_v31  ;;  %v16402_v29 = vpack.c.bf16 %v11109_v25, %v11101_v48  ;;  %v11117_v40 = vld [vmem:[#allocation2 + $0x798] sm:$0xff]  ;;  %17132 = vst [vmem:[#allocation42_spill] sm:$0xff] %v16405_v44 }
 0x859   :  { %12361 = vmatpush1.bf16.msra.mxu1 %v16324_v47  ;;  %v11125_v58 = vld [vmem:[#allocation2 + $0x7d8] sm:$0xff] }
 0x85a   :  { %12363 = vmatprep.subr.bf16.mxu1 %v16327_v54  ;;  %17131 = vst [vmem:[#allocation41_spill] sm:$0xff] %v16402_v29  ;;  %v16408_v62 = vpack.c.bf16 %v11125_v58, %v11117_v40  ;;  %v10889_v52 = vld [vmem:[#allocation2 + $0x78] sm:$0xff] }
 0x85b   :  { %v16414_v25 = vpack.c.bf16 %v10889_v52, %v10881_v24  ;;  %v10895_v24 = vld [vmem:[#allocation2 + $0xa8] sm:$0xff]  ;;  %v16423_v52 = vpop.permute.xlu0 %10847 }
 0x85c   :  { %17133 = vst [vmem:[#allocation43_spill] sm:$0xff] %v16408_v62 }
 0x85d   :  { %12365 = vmatpush1.bf16.msra.mxu1 %v16330_v7  ;;  %17135 = vst [vmem:[#allocation45_spill] sm:$0xff] %v16414_v25 }
 0x85e   :  { %12367 = vmatprep.subr.bf16.mxu1 %v16333_v45 }
 0x861   :  { %12369 = vmatpush1.bf16.msra.mxu1 %v16341_v41 }
 0x862   :  { %12371 = vmatprep.subr.bf16.mxu1 %v16345_v35 }
 0x865   :  { %12373 = vmatpush1.bf16.msra.mxu1 %v16353_v57 }
 0x866   :  { %12375 = vmatprep.subr.bf16.mxu1 %v16357_v28 }
 0x869   :  { %12377 = vmatpush1.bf16.msra.mxu1 %v16363_v20 }
 0x86a   :  { %12379 = vmatprep.subr.bf16.mxu1 %v16366_v63 }
 0x86d   :  { %12381 = vmatpush1.bf16.msra.mxu1 %v16369_v51 }
 0x86e   :  { %12383 = vmatprep.subr.bf16.mxu1 %v16372_v46  ;;  %v10896_v46 = vld [vmem:[#allocation2 + $0xb0] sm:$0xff] }
 0x871   :  { %12385 = vmatpush1.bf16.msra.mxu1 %v16375_v61 }
 0x872   :  { %12387 = vmatprep.subr.bf16.mxu1 %v16378_v60 }
 0x875   :  { %12389 = vmatpush1.bf16.msra.mxu1 %v16381_v10 }
 0x876   :  { %12391 = vmatprep.subr.bf16.mxu1 %v16384_v26  ;;  %v10905_v26 = vld [vmem:[#allocation2 + $0xf8] sm:$0xff] }
 0x879   :  { %12393 = vmatpush1.bf16.msra.mxu1 %v16387_v59  ;;  %v10903_v59 = vld [vmem:[#allocation2 + $0xe8] sm:$0xff] }
 0x87a   :  { %12395 = vmatprep.subr.bf16.mxu1 %v16390_v2  ;;  %v11116_v2 = vld [vmem:[#allocation2 + $0x790] sm:$0xff] }
 0x87d   :  { %12397 = vmatpush1.bf16.msra.mxu1 %v16393_v9  ;;  %v11124_v9 = vld [vmem:[#allocation2 + $0x7d0] sm:$0xff] }
 0x87e   :  { %12399 = vmatprep.subr.bf16.mxu1 %v16396_v31  ;;  %v16411_v48 = vpack.c.bf16 %v11124_v9, %v11116_v2  ;;  %v17136_v2 = vld [vmem:[#allocation24_spill] sm:$0xff]  ;;  %v10880_v31 = vld [vmem:[#allocation2 + $0x30] sm:$0xff] }
 0x880   :  { %17134 = vst [vmem:[#allocation44_spill] sm:$0xff] %v16411_v48 }
 0x881   :  { %12401 = vmatpush1.bf16.msra.mxu1 %v16399_v22  ;;  %v10878_v22 = vld [vmem:[#allocation2 + $0x20] sm:$0xff] }
 0x882   :  { %12403 = vmatprep.subr.bf16.mxu1 %v16402_v29 }
 0x885   :  { %12405 = vmatpush1.bf16.msra.mxu1 %v16405_v44  ;;  %v10886_v44 = vld [vmem:[#allocation2 + $0x60] sm:$0xff] }
 0x886   :  { %12407 = vmatprep.subr.bf16.mxu1 %v16408_v62  ;;  %v10888_v62 = vld [vmem:[#allocation2 + $0x70] sm:$0xff]  ;;  %v16428_v8 = vpack.c.bf16 %v10886_v44, %v10878_v22  ;;  %v10913_v22 = vld [vmem:[#allocation2 + $0x138] sm:$0xff] }
 0x887   :  { %v10921_v44 = vld [vmem:[#allocation2 + $0x178] sm:$0xff] }
 0x889   :  { %12409 = vmatpush1.bf16.msra.mxu1 %v16411_v48  ;;  %v17137_v48 = vld [vmem:[#allocation28_spill] sm:$0xff] }
 0x88a   :  { %12475 = vmatprep.subr.bf16.mxu1 %v16414_v25 }
 0x8da   :  { %v10742_v34 = vpop.f32.mrb[16].mxu0 }
 0x8db   :  { %v10850_v40 = vadd.f32 %v16418_v37, %v10742_v34  ;;  %v10744_v58 = vpop.f32.mrb[17].mxu0 }
 0x8dc   :  { %v10851_v29 = vadd.f32 %v16418_v37, %v10744_v58 }
 0x8dd   :  { %v10858_v9 = vadd.f32 %v10850_v40, %v17136_v2  ;;  %v16430_v40 = vpack.c.bf16 %v10888_v62, %v10880_v31  ;;  %v10894_v2 = vld [vmem:[#allocation2 + $0xa0] sm:$0xff]  ;;  %v10919_v31 = vld [vmem:[#allocation2 + $0x168] sm:$0xff] }
 0x8de   :  { %v10859_v13 = vadd.f32 %v10851_v29, %v17137_v48  ;;  %v10748_v25 = vpop.f32.mrb[18].mxu0  ;;  %v16435_v29 = vpack.c.bf16 %v10903_v59, %v10895_v24  ;;  %v16437_v48 = vpack.c.bf16 %v10905_v26, %v10897_v36  ;;  %v16446_v36 = vpack.c.bf16 %v10902_v49, %v10894_v2  ;;  %v10918_v59 = vld [vmem:[#allocation2 + $0x160] sm:$0xff]  ;;  %v10920_v24 = vld [vmem:[#allocation2 + $0x170] sm:$0xff]  ;;  %v10929_v2 = vld [vmem:[#allocation2 + $0x1b8] sm:$0xff] }
 0x8df   :  { %v10854_v34 = vadd.f32 %v16423_v52, %v10748_v25  ;;  %v10750_v1 = vpop.f32.mrb[19].mxu0  ;;  %17138 = vst [vmem:[#allocation24_spill] sm:$0xff] %v16430_v40  ;;  %v16432_v60 = vmax.f32 %v10858_v9, 0.0  ;;  %v10904_v25 = vld [vmem:[#allocation2 + $0xf0] sm:$0xff]  ;;  %v16458_v49 = vpack.c.bf16 %v10921_v44, %v10913_v22 }
 0x8e0   :  { %v10867_v10 = vmax.f32 %v10859_v13, 0.0  ;;  %v10855_v58 = vadd.f32 %v16423_v52, %v10750_v1  ;;  %17140 = vst [vmem:[#allocation28_spill] sm:$0xff] %v16435_v29  ;;  %17141 = vst [vmem:[#allocation25_spill] sm:$0xff] %v16437_v48  ;;  %v10911_v1 = vld [vmem:[#allocation2 + $0x128] sm:$0xff]  ;;  %v16448_v26 = vpack.c.bf16 %v10904_v25, %v10896_v46  ;;  %v10912_v9 = vld [vmem:[#allocation2 + $0x130] sm:$0xff] }
 0x8e1   :  { %v10862_v61 = vadd.f32 %v10854_v34, %v17139_v14  ;;  %17143 = vst [vmem:[#allocation29_spill] sm:$0xff] %v16446_v36  ;;  %v10927_v34 = vld [vmem:[#allocation2 + $0x1a8] sm:$0xff]  ;;  %17146 = vst [vmem:[#allocation48_spill] sm:$0xff] %v16458_v49  ;;  %v10937_v25 = vld [vmem:[#allocation2 + $0x1f8] sm:$0xff] }
 0x8e2   :  { %v10863_v13 = vadd.f32 %v10855_v58, %v17142_v16  ;;  %11194 = vmatprep.mubr.f32.mxu0 %v10867_v10  ;;  %11271 = vmatprep.mubr.f32.mxu1 %v10867_v10  ;;  %17144 = vst [vmem:[#allocation46_spill] sm:$0xff] %v16448_v26  ;;  %v10910_v16 = vld [vmem:[#allocation2 + $0x120] sm:$0xff]  ;;  %v16456_v58 = vpack.c.bf16 %v10919_v31, %v10911_v1  ;;  %v10935_v46 = vld [vmem:[#allocation2 + $0x1e8] sm:$0xff]  ;;  %v10928_v44 = vld [vmem:[#allocation2 + $0x1b0] sm:$0xff] }
 0x8e3   :  { %11195 = vmatmul.mubr.f32.vlgmr.msra.gmra.mrb[20].mxu0 %v16432_v60  ;;  %11272 = vmatmul.mubr.f32.vlgmr.msra.gmra.mrb[20].mxu1 %v16432_v60  ;;  %v16450_v62 = vmax.f32 %v10862_v61, 0.0  ;;  %v16464_v61 = vpack.c.bf16 %v10918_v59, %v10910_v16  ;;  %v10934_v1 = vld [vmem:[#allocation2 + $0x1e0] sm:$0xff]  ;;  %v16468_v31 = vpack.c.bf16 %v10935_v46, %v10927_v34  ;;  %v16470_v22 = vpack.c.bf16 %v10937_v25, %v10929_v2  ;;  %v10945_v16 = vld [vmem:[#allocation2 + $0x238] sm:$0xff]  ;;  %v10944_v25 = vld [vmem:[#allocation2 + $0x230] sm:$0xff] }
 0x8e4   :  { %v16442_v14 = vmax.f32 %v10863_v13, 0.0  ;;  %12413 = vmatpush1.bf16.msra.mxu0 %v16428_v8  ;;  %12477 = vmatpush1.bf16.msra.mxu1 %v16430_v40  ;;  %17145 = vst [vmem:[#allocation47_spill] sm:$0xff] %v16456_v58  ;;  %v16466_v13 = vpack.c.bf16 %v10920_v24, %v10912_v9  ;;  %v10943_v40 = vld [vmem:[#allocation2 + $0x228] sm:$0xff]  ;;  %v10953_v59 = vld [vmem:[#allocation2 + $0x278] sm:$0xff]  ;;  %v10942_v24 = vld [vmem:[#allocation2 + $0x220] sm:$0xff] }
 0x8e5   :  { %12415 = vmatprep.subr.bf16.mxu0 %v16435_v29  ;;  %12479 = vmatprep.subr.bf16.mxu1 %v16437_v48  ;;  %17147 = vst [vmem:[#allocation49_spill] sm:$0xff] %v16464_v61  ;;  %v10926_v48 = vld [vmem:[#allocation2 + $0x1a0] sm:$0xff]  ;;  %17149 = vst [vmem:[#allocation51_spill] sm:$0xff] %v16468_v31  ;;  %v10936_v29 = vld [vmem:[#allocation2 + $0x1f0] sm:$0xff]  ;;  %v16484_v2 = vpack.c.bf16 %v10953_v59, %v10945_v16 }
 0x8e6   :  { %11200 = vmatprep.mubr.f32.mxu0 %v16442_v14  ;;  %11277 = vmatprep.mubr.f32.mxu1 %v16442_v14  ;;  %17148 = vst [vmem:[#allocation50_spill] sm:$0xff] %v16466_v13  ;;  %17150 = vst [vmem:[#allocation52_spill] sm:$0xff] %v16470_v22  ;;  %v16476_v9 = vpack.c.bf16 %v10934_v1, %v10926_v48  ;;  %v10950_v34 = vld [vmem:[#allocation2 + $0x260] sm:$0xff]  ;;  %v10960_v16 = vld [vmem:[#allocation2 + $0x2b0] sm:$0xff] }
 0x8e7   :  { %11201 = vmatmul.mubr.f32.gmra.mrb[22].mxu0 %v16450_v62  ;;  %11278 = vmatmul.mubr.f32.gmra.mrb[22].mxu1 %v16450_v62  ;;  %17154 = vst [vmem:[#allocation56_spill] sm:$0xff] %v16484_v2  ;;  %v10958_v1 = vld [vmem:[#allocation2 + $0x2a0] sm:$0xff]  ;;  %v10968_v59 = vld [vmem:[#allocation2 + $0x2f0] sm:$0xff] }
 0x8e8   :  { %12417 = vmatpush1.bf16.msra.mxu0 %v16446_v36  ;;  %12481 = vmatpush1.bf16.msra.mxu1 %v16448_v26  ;;  %v10951_v26 = vld [vmem:[#allocation2 + $0x268] sm:$0xff]  ;;  %17151 = vst [vmem:[#allocation53_spill] sm:$0xff] %v16476_v9  ;;  %v10961_v36 = vld [vmem:[#allocation2 + $0x2b8] sm:$0xff] }
 0x8e9   :  { %11348 = vmatprep.mubr.f32.mxu0 %v10867_v10  ;;  %11425 = vmatprep.mubr.f32.mxu1 %v10867_v10  ;;  %v16478_v10 = vpack.c.bf16 %v10936_v29, %v10928_v44  ;;  %v16482_v46 = vpack.c.bf16 %v10951_v26, %v10943_v40  ;;  %v16488_v29 = vpack.c.bf16 %v10950_v34, %v10942_v24  ;;  %v10966_v44 = vld [vmem:[#allocation2 + $0x2e0] sm:$0xff] }
 0x8ea   :  { %12419 = vmatprep.subr.bf16.mxu0 %v16456_v58  ;;  %12483 = vmatprep.subr.bf16.mxu1 %v16458_v49  ;;  %v10952_v49 = vld [vmem:[#allocation2 + $0x270] sm:$0xff]  ;;  %v10959_v58 = vld [vmem:[#allocation2 + $0x2a8] sm:$0xff]  ;;  %v16502_v24 = vpack.c.bf16 %v10968_v59, %v10960_v16  ;;  %v10974_v34 = vld [vmem:[#allocation2 + $0x320] sm:$0xff] }
 0x8eb   :  { %17152 = vst [vmem:[#allocation54_spill] sm:$0xff] %v16478_v10  ;;  %17153 = vst [vmem:[#allocation55_spill] sm:$0xff] %v16482_v46  ;;  %v16490_v48 = vpack.c.bf16 %v10952_v49, %v10944_v25  ;;  %v16500_v49 = vpack.c.bf16 %v10966_v44, %v10958_v1  ;;  %v10982_v25 = vld [vmem:[#allocation2 + $0x360] sm:$0xff] }
 0x8ec   :  { %12421 = vmatpush1.bf16.msra.mxu0 %v16464_v61  ;;  %12485 = vmatpush1.bf16.msra.mxu1 %v16466_v13  ;;  %v10967_v61 = vld [vmem:[#allocation2 + $0x2e8] sm:$0xff]  ;;  %v10969_v13 = vld [vmem:[#allocation2 + $0x2f8] sm:$0xff]  ;;  %17155 = vst [vmem:[#allocation57_spill] sm:$0xff] %v16488_v29  ;;  %17160 = vst [vmem:[#allocation62_spill] sm:$0xff] %v16502_v24  ;;  %v16512_v1 = vpack.c.bf16 %v10982_v25, %v10974_v34 }
 0x8ed   :  { %12423 = vmatprep.subr.bf16.mxu0 %v16468_v31  ;;  %12487 = vmatprep.subr.bf16.mxu1 %v16470_v22  ;;  %17156 = vst [vmem:[#allocation58_spill] sm:$0xff] %v16490_v48  ;;  %v16494_v40 = vpack.c.bf16 %v10967_v61, %v10959_v58  ;;  %v16496_v26 = vpack.c.bf16 %v10969_v13, %v10961_v36  ;;  %v10975_v22 = vld [vmem:[#allocation2 + $0x328] sm:$0xff]  ;;  %v10977_v31 = vld [vmem:[#allocation2 + $0x338] sm:$0xff]  ;;  %17159 = vst [vmem:[#allocation61_spill] sm:$0xff] %v16500_v49 }
 0x8ee   :  { %v10976_v61 = vld [vmem:[#allocation2 + $0x330] sm:$0xff]  ;;  %17163 = vst [vmem:[#allocation65_spill] sm:$0xff] %v16512_v1  ;;  %v10990_v16 = vld [vmem:[#allocation2 + $0x3a0] sm:$0xff] }
 0x8ef   :  { %17157 = vst [vmem:[#allocation59_spill] sm:$0xff] %v16494_v40  ;;  %17158 = vst [vmem:[#allocation60_spill] sm:$0xff] %v16496_v26  ;;  %v10984_v13 = vld [vmem:[#allocation2 + $0x370] sm:$0xff]  ;;  %v10998_v59 = vld [vmem:[#allocation2 + $0x3e0] sm:$0xff] }
 0x8f0   :  { %12425 = vmatpush1.bf16.msra.mxu0 %v16476_v9  ;;  %12489 = vmatpush1.bf16.msra.mxu1 %v16478_v10  ;;  %v10983_v9 = vld [vmem:[#allocation2 + $0x368] sm:$0xff]  ;;  %v10985_v10 = vld [vmem:[#allocation2 + $0x378] sm:$0xff]  ;;  %v16514_v44 = vpack.c.bf16 %v10984_v13, %v10976_v61  ;;  %v16524_v34 = vpack.c.bf16 %v10998_v59, %v10990_v16  ;;  %v11006_v61 = vld [vmem:[#allocation2 + $0x420] sm:$0xff] }
 0x8f1   :  { %12427 = vmatprep.subr.bf16.mxu0 %v16482_v46  ;;  %12491 = vmatprep.subr.bf16.mxu1 %v16484_v2  ;;  %v16506_v36 = vpack.c.bf16 %v10983_v9, %v10975_v22  ;;  %v16508_v58 = vpack.c.bf16 %v10985_v10, %v10977_v31  ;;  %v10991_v2 = vld [vmem:[#allocation2 + $0x3a8] sm:$0xff]  ;;  %v10993_v46 = vld [vmem:[#allocation2 + $0x3b8] sm:$0xff]  ;;  %v10992_v9 = vld [vmem:[#allocation2 + $0x3b0] sm:$0xff] }
 0x8f2   :  { %17164 = vst [vmem:[#allocation66_spill] sm:$0xff] %v16514_v44  ;;  %v11000_v10 = vld [vmem:[#allocation2 + $0x3f0] sm:$0xff]  ;;  %17167 = vst [vmem:[#allocation69_spill] sm:$0xff] %v16524_v34  ;;  %v11014_v13 = vld [vmem:[#allocation2 + $0x460] sm:$0xff] }
 0x8f3   :  { %17161 = vst [vmem:[#allocation63_spill] sm:$0xff] %v16506_v36  ;;  %17162 = vst [vmem:[#allocation64_spill] sm:$0xff] %v16508_v58  ;;  %v16526_v25 = vpack.c.bf16 %v11000_v10, %v10992_v9  ;;  %v16536_v16 = vpack.c.bf16 %v11014_v13, %v11006_v61  ;;  %v11022_v9 = vld [vmem:[#allocation2 + $0x4a0] sm:$0xff] }
 0x8f4   :  { %12429 = vmatpush1.bf16.msra.mxu0 %v16488_v29  ;;  %12493 = vmatpush1.bf16.msra.mxu1 %v16490_v48  ;;  %v10999_v29 = vld [vmem:[#allocation2 + $0x3e8] sm:$0xff]  ;;  %v11001_v48 = vld [vmem:[#allocation2 + $0x3f8] sm:$0xff]  ;;  %v11030_v10 = vld [vmem:[#allocation2 + $0x4e0] sm:$0xff] }
 0x8f5   :  { %12431 = vmatprep.subr.bf16.mxu0 %v16494_v40  ;;  %12495 = vmatprep.subr.bf16.mxu1 %v16496_v26  ;;  %v16518_v31 = vpack.c.bf16 %v10999_v29, %v10991_v2  ;;  %v16520_v22 = vpack.c.bf16 %v11001_v48, %v10993_v46  ;;  %v11007_v26 = vld [vmem:[#allocation2 + $0x428] sm:$0xff]  ;;  %v11009_v40 = vld [vmem:[#allocation2 + $0x438] sm:$0xff]  ;;  %17168 = vst [vmem:[#allocation70_spill] sm:$0xff] %v16526_v25  ;;  %v11008_v29 = vld [vmem:[#allocation2 + $0x430] sm:$0xff] }
 0x8f6   :  { %v11016_v48 = vld [vmem:[#allocation2 + $0x470] sm:$0xff]  ;;  %17171 = vst [vmem:[#allocation73_spill] sm:$0xff] %v16536_v16  ;;  %v16548_v61 = vpack.c.bf16 %v11030_v10, %v11022_v9 }
 0x8f7   :  { %17165 = vst [vmem:[#allocation67_spill] sm:$0xff] %v16518_v31  ;;  %17166 = vst [vmem:[#allocation68_spill] sm:$0xff] %v16520_v22  ;;  %v16538_v59 = vpack.c.bf16 %v11016_v48, %v11008_v29  ;;  %v11038_v29 = vld [vmem:[#allocation2 + $0x520] sm:$0xff] }
 0x8f8   :  { %12433 = vmatpush1.bf16.msra.mxu0 %v16500_v49  ;;  %12497 = vmatpush1.bf16.msra.mxu1 %v16502_v24  ;;  %v11015_v49 = vld [vmem:[#allocation2 + $0x468] sm:$0xff]  ;;  %v11017_v24 = vld [vmem:[#allocation2 + $0x478] sm:$0xff]  ;;  %17175 = vst [vmem:[#allocation77_spill] sm:$0xff] %v16548_v61  ;;  %v11046_v48 = vld [vmem:[#allocation2 + $0x560] sm:$0xff] }
 0x8f9   :  { %12435 = vmatprep.subr.bf16.mxu0 %v16506_v36  ;;  %12499 = vmatprep.subr.bf16.mxu1 %v16508_v58  ;;  %v16530_v46 = vpack.c.bf16 %v11015_v49, %v11007_v26  ;;  %v16532_v2 = vpack.c.bf16 %v11017_v24, %v11009_v40  ;;  %v11023_v58 = vld [vmem:[#allocation2 + $0x4a8] sm:$0xff]  ;;  %v11025_v36 = vld [vmem:[#allocation2 + $0x4b8] sm:$0xff]  ;;  %17172 = vst [vmem:[#allocation74_spill] sm:$0xff] %v16538_v59  ;;  %v11024_v49 = vld [vmem:[#allocation2 + $0x4b0] sm:$0xff] }
 0x8fa   :  { %v11032_v24 = vld [vmem:[#allocation2 + $0x4f0] sm:$0xff]  ;;  %v16560_v9 = vpack.c.bf16 %v11046_v48, %v11038_v29 }
 0x8fb   :  { %17169 = vst [vmem:[#allocation71_spill] sm:$0xff] %v16530_v46  ;;  %17170 = vst [vmem:[#allocation72_spill] sm:$0xff] %v16532_v2  ;;  %v16550_v13 = vpack.c.bf16 %v11032_v24, %v11024_v49  ;;  %v11054_v49 = vld [vmem:[#allocation2 + $0x5a0] sm:$0xff] }
 0x8fc   :  { %12437 = vmatpush1.bf16.msra.mxu0 %v16512_v1  ;;  %12501 = vmatpush1.bf16.msra.mxu1 %v16514_v44  ;;  %v11031_v1 = vld [vmem:[#allocation2 + $0x4e8] sm:$0xff]  ;;  %v11033_v44 = vld [vmem:[#allocation2 + $0x4f8] sm:$0xff]  ;;  %17179 = vst [vmem:[#allocation81_spill] sm:$0xff] %v16560_v9  ;;  %v11062_v24 = vld [vmem:[#allocation2 + $0x5e0] sm:$0xff] }
 0x8fd   :  { %12439 = vmatprep.subr.bf16.mxu0 %v16518_v31  ;;  %12503 = vmatprep.subr.bf16.mxu1 %v16520_v22  ;;  %v16542_v40 = vpack.c.bf16 %v11031_v1, %v11023_v58  ;;  %v16544_v26 = vpack.c.bf16 %v11033_v44, %v11025_v36  ;;  %v11039_v22 = vld [vmem:[#allocation2 + $0x528] sm:$0xff]  ;;  %v11041_v31 = vld [vmem:[#allocation2 + $0x538] sm:$0xff]  ;;  %17176 = vst [vmem:[#allocation78_spill] sm:$0xff] %v16550_v13  ;;  %v11040_v1 = vld [vmem:[#allocation2 + $0x530] sm:$0xff] }
 0x8fe   :  { %v11048_v44 = vld [vmem:[#allocation2 + $0x570] sm:$0xff]  ;;  %v16572_v29 = vpack.c.bf16 %v11062_v24, %v11054_v49 }
 0x8ff   :  { %17173 = vst [vmem:[#allocation75_spill] sm:$0xff] %v16542_v40  ;;  %17174 = vst [vmem:[#allocation76_spill] sm:$0xff] %v16544_v26  ;;  %v16562_v10 = vpack.c.bf16 %v11048_v44, %v11040_v1  ;;  %v11070_v1 = vld [vmem:[#allocation2 + $0x620] sm:$0xff] }
 0x900   :  { %12441 = vmatpush1.bf16.msra.mxu0 %v16524_v34  ;;  %12505 = vmatpush1.bf16.msra.mxu1 %v16526_v25  ;;  %v11047_v34 = vld [vmem:[#allocation2 + $0x568] sm:$0xff]  ;;  %v11049_v25 = vld [vmem:[#allocation2 + $0x578] sm:$0xff]  ;;  %17183 = vst [vmem:[#allocation85_spill] sm:$0xff] %v16572_v29  ;;  %v11078_v44 = vld [vmem:[#allocation2 + $0x660] sm:$0xff] }
 0x901   :  { %12443 = vmatprep.subr.bf16.mxu0 %v16530_v46  ;;  %12507 = vmatprep.subr.bf16.mxu1 %v16532_v2  ;;  %v16554_v36 = vpack.c.bf16 %v11047_v34, %v11039_v22  ;;  %v16556_v58 = vpack.c.bf16 %v11049_v25, %v11041_v31  ;;  %v11055_v2 = vld [vmem:[#allocation2 + $0x5a8] sm:$0xff]  ;;  %v11057_v46 = vld [vmem:[#allocation2 + $0x5b8] sm:$0xff]  ;;  %17180 = vst [vmem:[#allocation82_spill] sm:$0xff] %v16562_v10  ;;  %v11056_v34 = vld [vmem:[#allocation2 + $0x5b0] sm:$0xff] }
 0x902   :  { %v11064_v25 = vld [vmem:[#allocation2 + $0x5f0] sm:$0xff]  ;;  %v16584_v49 = vpack.c.bf16 %v11078_v44, %v11070_v1 }
 0x903   :  { %17177 = vst [vmem:[#allocation79_spill] sm:$0xff] %v16554_v36  ;;  %17178 = vst [vmem:[#allocation80_spill] sm:$0xff] %v16556_v58  ;;  %v16574_v48 = vpack.c.bf16 %v11064_v25, %v11056_v34  ;;  %v11086_v34 = vld [vmem:[#allocation2 + $0x6a0] sm:$0xff] }
 0x904   :  { %12445 = vmatpush1.bf16.msra.mxu0 %v16536_v16  ;;  %12509 = vmatpush1.bf16.msra.mxu1 %v16538_v59  ;;  %v11063_v16 = vld [vmem:[#allocation2 + $0x5e8] sm:$0xff]  ;;  %v11065_v59 = vld [vmem:[#allocation2 + $0x5f8] sm:$0xff]  ;;  %17187 = vst [vmem:[#allocation89_spill] sm:$0xff] %v16584_v49  ;;  %v11094_v25 = vld [vmem:[#allocation2 + $0x6e0] sm:$0xff] }
 0x905   :  { %12447 = vmatprep.subr.bf16.mxu0 %v16542_v40  ;;  %12511 = vmatprep.subr.bf16.mxu1 %v16544_v26  ;;  %v16566_v31 = vpack.c.bf16 %v11063_v16, %v11055_v2  ;;  %v16568_v22 = vpack.c.bf16 %v11065_v59, %v11057_v46  ;;  %v11071_v26 = vld [vmem:[#allocation2 + $0x628] sm:$0xff]  ;;  %v11073_v40 = vld [vmem:[#allocation2 + $0x638] sm:$0xff]  ;;  %17184 = vst [vmem:[#allocation86_spill] sm:$0xff] %v16574_v48  ;;  %v11072_v16 = vld [vmem:[#allocation2 + $0x630] sm:$0xff] }
 0x906   :  { %v11080_v59 = vld [vmem:[#allocation2 + $0x670] sm:$0xff]  ;;  %v16596_v1 = vpack.c.bf16 %v11094_v25, %v11086_v34 }
 0x907   :  { %17181 = vst [vmem:[#allocation83_spill] sm:$0xff] %v16566_v31  ;;  %17182 = vst [vmem:[#allocation84_spill] sm:$0xff] %v16568_v22  ;;  %v16586_v24 = vpack.c.bf16 %v11080_v59, %v11072_v16  ;;  %v11102_v16 = vld [vmem:[#allocation2 + $0x720] sm:$0xff] }
 0x908   :  { %12449 = vmatpush1.bf16.msra.mxu0 %v16548_v61  ;;  %12513 = vmatpush1.bf16.msra.mxu1 %v16550_v13  ;;  %v11079_v61 = vld [vmem:[#allocation2 + $0x668] sm:$0xff]  ;;  %v11081_v13 = vld [vmem:[#allocation2 + $0x678] sm:$0xff]  ;;  %v11110_v59 = vld [vmem:[#allocation2 + $0x760] sm:$0xff] }
 0x909   :  { %12451 = vmatprep.subr.bf16.mxu0 %v16554_v36  ;;  %12515 = vmatprep.subr.bf16.mxu1 %v16556_v58  ;;  %v16578_v46 = vpack.c.bf16 %v11079_v61, %v11071_v26  ;;  %v16580_v2 = vpack.c.bf16 %v11081_v13, %v11073_v40  ;;  %v11087_v58 = vld [vmem:[#allocation2 + $0x6a8] sm:$0xff]  ;;  %v11089_v36 = vld [vmem:[#allocation2 + $0x6b8] sm:$0xff]  ;;  %17188 = vst [vmem:[#allocation90_spill] sm:$0xff] %v16586_v24  ;;  %v11088_v61 = vld [vmem:[#allocation2 + $0x6b0] sm:$0xff] }
 0x90a   :  { %v11096_v13 = vld [vmem:[#allocation2 + $0x6f0] sm:$0xff]  ;;  %v16608_v34 = vpack.c.bf16 %v11110_v59, %v11102_v16 }
 0x90b   :  { %17185 = vst [vmem:[#allocation87_spill] sm:$0xff] %v16578_v46  ;;  %17186 = vst [vmem:[#allocation88_spill] sm:$0xff] %v16580_v2  ;;  %v16598_v44 = vpack.c.bf16 %v11096_v13, %v11088_v61  ;;  %v11118_v61 = vld [vmem:[#allocation2 + $0x7a0] sm:$0xff]  ;;  %v11128_v13 = vld [vmem:[#allocation2 + $0x7f0] sm:$0xff] }
 0x90c   :  { %12453 = vmatpush1.bf16.msra.mxu0 %v16560_v9  ;;  %12517 = vmatpush1.bf16.msra.mxu1 %v16562_v10  ;;  %v11095_v9 = vld [vmem:[#allocation2 + $0x6e8] sm:$0xff]  ;;  %v11097_v10 = vld [vmem:[#allocation2 + $0x6f8] sm:$0xff] }
 0x90d   :  { %12455 = vmatprep.subr.bf16.mxu0 %v16566_v31  ;;  %12519 = vmatprep.subr.bf16.mxu1 %v16568_v22  ;;  %v16590_v40 = vpack.c.bf16 %v11095_v9, %v11087_v58  ;;  %v16592_v26 = vpack.c.bf16 %v11097_v10, %v11089_v36  ;;  %v11103_v22 = vld [vmem:[#allocation2 + $0x728] sm:$0xff]  ;;  %v11105_v31 = vld [vmem:[#allocation2 + $0x738] sm:$0xff]  ;;  %v11104_v9 = vld [vmem:[#allocation2 + $0x730] sm:$0xff] }
 0x90e   :  { %v11112_v10 = vld [vmem:[#allocation2 + $0x770] sm:$0xff] }
 0x90f   :  { %v16610_v25 = vpack.c.bf16 %v11112_v10, %v11104_v9 }
 0x910   :  { %12457 = vmatpush1.bf16.msra.mxu0 %v16572_v29  ;;  %12521 = vmatpush1.bf16.msra.mxu1 %v16574_v48  ;;  %v11111_v29 = vld [vmem:[#allocation2 + $0x768] sm:$0xff]  ;;  %v11113_v48 = vld [vmem:[#allocation2 + $0x778] sm:$0xff] }
 0x911   :  { %12459 = vmatprep.subr.bf16.mxu0 %v16578_v46  ;;  %12523 = vmatprep.subr.bf16.mxu1 %v16580_v2  ;;  %v16602_v36 = vpack.c.bf16 %v11111_v29, %v11103_v22  ;;  %v16604_v58 = vpack.c.bf16 %v11113_v48, %v11105_v31  ;;  %v11119_v2 = vld [vmem:[#allocation2 + $0x7a8] sm:$0xff]  ;;  %v11121_v46 = vld [vmem:[#allocation2 + $0x7b8] sm:$0xff]  ;;  %v11126_v29 = vld [vmem:[#allocation2 + $0x7e0] sm:$0xff] }
 0x912   :  { %v11120_v48 = vld [vmem:[#allocation2 + $0x7b0] sm:$0xff]  ;;  %v16620_v16 = vpack.c.bf16 %v11126_v29, %v11118_v61 }
 0x913   :  { %v16622_v59 = vpack.c.bf16 %v11128_v13, %v11120_v48  ;;  %v17223_v13 = vld [vmem:[#allocation24_spill] sm:$0xff] }
 0x914   :  { %12461 = vmatpush1.bf16.msra.mxu0 %v16584_v49  ;;  %12525 = vmatpush1.bf16.msra.mxu1 %v16586_v24  ;;  %v11127_v49 = vld [vmem:[#allocation2 + $0x7e8] sm:$0xff]  ;;  %v11129_v24 = vld [vmem:[#allocation2 + $0x7f8] sm:$0xff] }
 0x915   :  { %12463 = vmatprep.subr.bf16.mxu0 %v16590_v40  ;;  %12527 = vmatprep.subr.bf16.mxu1 %v16592_v26  ;;  %v16614_v31 = vpack.c.bf16 %v11127_v49, %v11119_v2  ;;  %v16616_v22 = vpack.c.bf16 %v11129_v24, %v11121_v46  ;;  %v17189_v49 = vld [vmem:[#allocation26_spill] sm:$0xff] }
 0x918   :  { %12465 = vmatpush1.bf16.msra.mxu0 %v16596_v1  ;;  %12529 = vmatpush1.bf16.msra.mxu1 %v16598_v44 }
 0x919   :  { %12467 = vmatprep.subr.bf16.mxu0 %v16602_v36  ;;  %12531 = vmatprep.subr.bf16.mxu1 %v16604_v58 }
 0x91c   :  { %12469 = vmatpush1.bf16.msra.mxu0 %v16608_v34  ;;  %12533 = vmatpush1.bf16.msra.mxu1 %v16610_v25 }
 0x91d   :  { %12471 = vmatprep.subr.bf16.mxu0 %v16614_v31  ;;  %12535 = vmatprep.subr.bf16.mxu1 %v16616_v22 }
 0x91f   :  { %v16626_v9 = vpop.f32.mrb[16].mxu1 }
 0x920   :  { %12473 = vmatpush1.bf16.msra.mxu0 %v16620_v16  ;;  %12537 = vmatpush1.bf16.msra.mxu1 %v16622_v59  ;;  %v10821_v46 = vpop.f32.mrb[17].mxu1 }
 0x921   :  { %v10853_v2 = vadd.f32 %v16418_v37, %v10821_v46  ;;  %12539 = vmatprep.subr.bf16.mxu0 %v15957_v55  ;;  %12603 = vmatprep.subr.bf16.mxu1 %v16290_v32  ;;  %v17190_v55 = vld [vmem:[#allocation19_spill] sm:$0xff]  ;;  %v17225_v46 = vld [vmem:[#allocation25_spill] sm:$0xff] }
 0x922   :  { %v17208_v32 = vld [vmem:[#allocation11_spill] sm:$0xff] }
 0x923   :  { %v10861_v24 = vadd.f32 %v10853_v2, %v17189_v49  ;;  %11349 = vmatmul.mubr.f32.vlgmr.msra.gmra.mrb[24].mxu0 %v16432_v60  ;;  %11426 = vmatmul.mubr.f32.vlgmr.msra.gmra.mrb[24].mxu1 %v16432_v60  ;;  %v16636_v10 = vpop.f32.mrb[18].mxu1  ;;  %v17220_v60 = vld [vmem:[#allocation27_spill] sm:$0xff]  ;;  %v17226_v2 = vld [vmem:[#allocation29_spill] sm:$0xff]  ;;  %v17227_v49 = vld [vmem:[#allocation46_spill] sm:$0xff] }
 0x924   :  { %11354 = vmatprep.mubr.f32.mxu0 %v16442_v14  ;;  %11431 = vmatprep.mubr.f32.mxu1 %v16442_v14  ;;  %v16640_v61 = vpop.f32.mrb[19].mxu1  ;;  %v17221_v14 = vld [vmem:[#allocation16_spill] sm:$0xff] }
 0x925   :  { %v16642_v29 = vmax.f32 %v10861_v24, 0.0  ;;  %12541 = vmatpush1.bf16.msra.mxu0 %v15984_v3  ;;  %12605 = vmatpush1.bf16.msra.mxu1 %v16302_v5  ;;  %v17191_v3 = vld [vmem:[#allocation12_spill] sm:$0xff]  ;;  %v17228_v24 = vld [vmem:[#allocation47_spill] sm:$0xff] }
 0x926   :  { %12543 = vmatprep.subr.bf16.mxu0 %v16011_v30  ;;  %12607 = vmatprep.subr.bf16.mxu1 %v16304_v19  ;;  %v17192_v30 = vld [vmem:[#allocation22_spill] sm:$0xff]  ;;  %v17209_v5 = vld [vmem:[#allocation40_spill] sm:$0xff]  ;;  %v10852_v19 = vadd.f32 %v16418_v37, %v16626_v9 }
 0x927   :  { %11355 = vmatmul.mubr.f32.gmra.mrb[26].mxu0 %v16450_v62  ;;  %11432 = vmatmul.mubr.f32.gmra.mrb[26].mxu1 %v16450_v62  ;;  %v17222_v62 = vld [vmem:[#allocation45_spill] sm:$0xff]  ;;  %v17224_v9 = vld [vmem:[#allocation28_spill] sm:$0xff] }
 0x928   :  { %11518 = vmatprep.mubr.f32.mxu0 %v16642_v29  ;;  %11595 = vmatprep.mubr.f32.mxu1 %v16642_v29 }
 0x929   :  { %12545 = vmatpush1.bf16.msra.mxu0 %v16021_v21  ;;  %12609 = vmatpush1.bf16.msra.mxu1 %v16310_v0  ;;  %v17193_v21 = vld [vmem:[#allocation34_spill] sm:$0xff] }
 0x92a   :  { %12547 = vmatprep.subr.bf16.mxu0 %v16039_v18  ;;  %12611 = vmatprep.subr.bf16.mxu1 %v16313_v12  ;;  %v17194_v18 = vld [vmem:[#allocation8_spill] sm:$0xff]  ;;  %v17210_v0 = vld [vmem:[#allocation14_spill] sm:$0xff]  ;;  %v17211_v12 = vld [vmem:[#allocation41_spill] sm:$0xff] }
 0x92d   :  { %12549 = vmatpush1.bf16.msra.mxu0 %v16048_v4  ;;  %12613 = vmatpush1.bf16.msra.mxu1 %v16318_v39  ;;  %v17195_v4 = vld [vmem:[#allocation38_spill] sm:$0xff]  ;;  %v10857_v39 = vadd.f32 %v16423_v52, %v16640_v61 }
 0x92e   :  { %12551 = vmatprep.subr.bf16.mxu0 %v16066_v27  ;;  %12615 = vmatprep.subr.bf16.mxu1 %v16321_v33  ;;  %v17196_v27 = vld [vmem:[#allocation9_spill] sm:$0xff]  ;;  %v17212_v33 = vld [vmem:[#allocation10_spill] sm:$0xff] }
 0x92f   :  { %v17231_v61 = vld [vmem:[#allocation50_spill] sm:$0xff] }
 0x931   :  { %12553 = vmatpush1.bf16.msra.mxu0 %v16069_v56  ;;  %12617 = vmatpush1.bf16.msra.mxu1 %v16324_v47  ;;  %v17197_v56 = vld [vmem:[#allocation20_spill] sm:$0xff]  ;;  %v17213_v47 = vld [vmem:[#allocation42_spill] sm:$0xff] }
 0x932   :  { %12555 = vmatprep.subr.bf16.mxu0 %v16080_v50  ;;  %12619 = vmatprep.subr.bf16.mxu1 %v16327_v54  ;;  %v17198_v50 = vld [vmem:[#allocation21_spill] sm:$0xff]  ;;  %v17214_v54 = vld [vmem:[#allocation23_spill] sm:$0xff] }
 0x935   :  { %12557 = vmatpush1.bf16.msra.mxu0 %v16092_v43  ;;  %12621 = vmatpush1.bf16.msra.mxu1 %v16330_v7  ;;  %v17199_v43 = vld [vmem:[#allocation18_spill] sm:$0xff]  ;;  %v10860_v7 = vadd.f32 %v10852_v19, %v17214_v54  ;;  %v17253_v19 = vld [vmem:[#allocation72_spill] sm:$0xff] }
 0x936   :  { %12559 = vmatprep.subr.bf16.mxu0 %v16122_v23  ;;  %12623 = vmatprep.subr.bf16.mxu1 %v16333_v45  ;;  %v17200_v23 = vld [vmem:[#allocation35_spill] sm:$0xff]  ;;  %v10856_v45 = vadd.f32 %v16423_v52, %v16636_v10  ;;  %v17230_v10 = vld [vmem:[#allocation49_spill] sm:$0xff]  ;;  %v17259_v54 = vld [vmem:[#allocation78_spill] sm:$0xff] }
 0x938   :  { %v10864_v37 = vadd.f32 %v10856_v45, %v17220_v60  ;;  %v17261_v45 = vld [vmem:[#allocation80_spill] sm:$0xff]  ;;  %v17268_v60 = vld [vmem:[#allocation87_spill] sm:$0xff] }
 0x939   :  { %12561 = vmatpush1.bf16.msra.mxu0 %v16129_v11  ;;  %12625 = vmatpush1.bf16.msra.mxu1 %v16341_v41  ;;  %v17201_v11 = vld [vmem:[#allocation15_spill] sm:$0xff]  ;;  %v17215_v41 = vld [vmem:[#allocation13_spill] sm:$0xff] }
 0x93a   :  { %12563 = vmatprep.subr.bf16.mxu0 %v16141_v42  ;;  %12627 = vmatprep.subr.bf16.mxu1 %v16345_v35  ;;  %v17202_v42 = vld [vmem:[#allocation32_spill] sm:$0xff]  ;;  %v17216_v35 = vld [vmem:[#allocation43_spill] sm:$0xff]  ;;  %v16729_v52 = vmax.f32 %v10864_v37, 0.0 }
 0x93b   :  { %v17269_v37 = vld [vmem:[#allocation88_spill] sm:$0xff] }
 0x93d   :  { %12565 = vmatpush1.bf16.msra.mxu0 %v16166_v6  ;;  %12629 = vmatpush1.bf16.msra.mxu1 %v16353_v57  ;;  %v17203_v6 = vld [vmem:[#allocation37_spill] sm:$0xff]  ;;  %v17217_v57 = vld [vmem:[#allocation30_spill] sm:$0xff] }
 0x93e   :  { %12567 = vmatprep.subr.bf16.mxu0 %v16168_v38  ;;  %12631 = vmatprep.subr.bf16.mxu1 %v16357_v28  ;;  %v17204_v38 = vld [vmem:[#allocation31_spill] sm:$0xff]  ;;  %v10865_v28 = vadd.f32 %v10857_v39, %v17217_v57 }
 0x93f   :  { %v17256_v39 = vld [vmem:[#allocation75_spill] sm:$0xff] }
 0x940   :  { %v16723_v48 = vmax.f32 %v10865_v28, 0.0  ;;  %v17264_v57 = vld [vmem:[#allocation83_spill] sm:$0xff]  ;;  %v17265_v28 = vld [vmem:[#allocation84_spill] sm:$0xff] }
 0x941   :  { %12569 = vmatpush1.bf16.msra.mxu0 %v16187_v17  ;;  %12633 = vmatpush1.bf16.msra.mxu1 %v16363_v20  ;;  %v17205_v17 = vld [vmem:[#allocation17_spill] sm:$0xff]  ;;  %v17218_v20 = vld [vmem:[#allocation36_spill] sm:$0xff] }
 0x942   :  { %12571 = vmatprep.subr.bf16.mxu0 %v16196_v53  ;;  %12635 = vmatprep.subr.bf16.mxu1 %v16366_v63  ;;  %v17206_v53 = vld [vmem:[#allocation33_spill] sm:$0xff]  ;;  %v17219_v63 = vld [vmem:[#allocation44_spill] sm:$0xff] }
 0x945   :  { %12573 = vmatpush1.bf16.msra.mxu0 %v16205_v15  ;;  %12637 = vmatpush1.bf16.msra.mxu1 %v16369_v51  ;;  %v17207_v15 = vld [vmem:[#allocation39_spill] sm:$0xff]  ;;  %v16718_v51 = vmax.f32 %v10860_v7, 0.0 }
 0x946   :  { %12575 = vmatprep.subr.bf16.mxu0 %v17190_v55  ;;  %12639 = vmatprep.subr.bf16.mxu1 %v17191_v3  ;;  %v17232_v55 = vld [vmem:[#allocation51_spill] sm:$0xff]  ;;  %v17233_v3 = vld [vmem:[#allocation52_spill] sm:$0xff] }
 0x947   :  { %v17260_v7 = vld [vmem:[#allocation79_spill] sm:$0xff] }
 0x949   :  { %12577 = vmatpush1.bf16.msra.mxu0 %v17192_v30  ;;  %12641 = vmatpush1.bf16.msra.mxu1 %v17193_v21  ;;  %v17234_v30 = vld [vmem:[#allocation53_spill] sm:$0xff]  ;;  %v17235_v21 = vld [vmem:[#allocation54_spill] sm:$0xff] }
 0x94a   :  { %12579 = vmatprep.subr.bf16.mxu0 %v17194_v18  ;;  %12643 = vmatprep.subr.bf16.mxu1 %v17195_v4  ;;  %v17237_v18 = vld [vmem:[#allocation56_spill] sm:$0xff]  ;;  %v17238_v4 = vld [vmem:[#allocation57_spill] sm:$0xff] }
 0x94d   :  { %12581 = vmatpush1.bf16.msra.mxu0 %v17196_v27  ;;  %12645 = vmatpush1.bf16.msra.mxu1 %v17197_v56  ;;  %v17239_v27 = vld [vmem:[#allocation58_spill] sm:$0xff]  ;;  %v17240_v56 = vld [vmem:[#allocation59_spill] sm:$0xff] }
 0x94e   :  { %12583 = vmatprep.subr.bf16.mxu0 %v17198_v50  ;;  %12647 = vmatprep.subr.bf16.mxu1 %v17199_v43  ;;  %v17241_v50 = vld [vmem:[#allocation60_spill] sm:$0xff]  ;;  %v17242_v43 = vld [vmem:[#allocation61_spill] sm:$0xff] }
 0x951   :  { %12585 = vmatpush1.bf16.msra.mxu0 %v17200_v23  ;;  %12649 = vmatpush1.bf16.msra.mxu1 %v17201_v11  ;;  %v17243_v23 = vld [vmem:[#allocation62_spill] sm:$0xff]  ;;  %v17244_v11 = vld [vmem:[#allocation63_spill] sm:$0xff] }
 0x952   :  { %12587 = vmatprep.subr.bf16.mxu0 %v17202_v42  ;;  %12651 = vmatprep.subr.bf16.mxu1 %v17203_v6  ;;  %v17245_v42 = vld [vmem:[#allocation64_spill] sm:$0xff]  ;;  %v17246_v6 = vld [vmem:[#allocation65_spill] sm:$0xff] }
 0x955   :  { %12589 = vmatpush1.bf16.msra.mxu0 %v17204_v38  ;;  %12653 = vmatpush1.bf16.msra.mxu1 %v17205_v17  ;;  %v17247_v38 = vld [vmem:[#allocation66_spill] sm:$0xff]  ;;  %v17248_v17 = vld [vmem:[#allocation67_spill] sm:$0xff] }
 0x956   :  { %12591 = vmatprep.subr.bf16.mxu0 %v17206_v53  ;;  %12655 = vmatprep.subr.bf16.mxu1 %v17207_v15  ;;  %v17249_v53 = vld [vmem:[#allocation68_spill] sm:$0xff]  ;;  %v17250_v15 = vld [vmem:[#allocation69_spill] sm:$0xff] }
 0x959   :  { %12593 = vmatpush1.bf16.msra.mxu0 %v17208_v32  ;;  %12657 = vmatpush1.bf16.msra.mxu1 %v17209_v5  ;;  %v17251_v32 = vld [vmem:[#allocation70_spill] sm:$0xff]  ;;  %v17252_v5 = vld [vmem:[#allocation71_spill] sm:$0xff] }
 0x95a   :  { %12595 = vmatprep.subr.bf16.mxu0 %v17210_v0  ;;  %12659 = vmatprep.subr.bf16.mxu1 %v17211_v12  ;;  %v17254_v0 = vld [vmem:[#allocation73_spill] sm:$0xff]  ;;  %v17255_v12 = vld [vmem:[#allocation74_spill] sm:$0xff] }
 0x95d   :  { %12597 = vmatpush1.bf16.msra.mxu0 %v17212_v33  ;;  %12661 = vmatpush1.bf16.msra.mxu1 %v17213_v47  ;;  %v17257_v33 = vld [vmem:[#allocation76_spill] sm:$0xff]  ;;  %v17258_v47 = vld [vmem:[#allocation77_spill] sm:$0xff] }
 0x95e   :  { %12599 = vmatprep.subr.bf16.mxu0 %v17215_v41  ;;  %12663 = vmatprep.subr.bf16.mxu1 %v17216_v35  ;;  %v17262_v41 = vld [vmem:[#allocation81_spill] sm:$0xff]  ;;  %v17263_v35 = vld [vmem:[#allocation82_spill] sm:$0xff] }
 0x961   :  { %12601 = vmatpush1.bf16.msra.mxu0 %v17218_v20  ;;  %12665 = vmatpush1.bf16.msra.mxu1 %v17219_v63  ;;  %v17266_v20 = vld [vmem:[#allocation85_spill] sm:$0xff]  ;;  %v17267_v63 = vld [vmem:[#allocation86_spill] sm:$0xff] }
 0x962   :  { %12667 = vmatprep.subr.bf16.mxu0 %v17221_v14  ;;  %12731 = vmatprep.subr.bf16.mxu1 %v17222_v62  ;;  %v17270_v14 = vld [vmem:[#allocation89_spill] sm:$0xff]  ;;  %v17271_v62 = vld [vmem:[#allocation90_spill] sm:$0xff] }
 0x964   :  { %11519 = vmatmul.mubr.f32.vlgmr.msra.gmra.mrb[28].mxu0 %v16718_v51  ;;  %11596 = vmatmul.mubr.f32.vlgmr.msra.gmra.mrb[28].mxu1 %v16718_v51 }
 0x965   :  { %11524 = vmatprep.mubr.f32.mxu0 %v16723_v48  ;;  %11601 = vmatprep.mubr.f32.mxu1 %v16723_v48 }
 0x966   :  { %12669 = vmatpush1.bf16.msra.mxu0 %v16428_v8  ;;  %12733 = vmatpush1.bf16.msra.mxu1 %v17223_v13  ;;  %v17229_v8 = vld [vmem:[#allocation48_spill] sm:$0xff] }
 0x967   :  { %12671 = vmatprep.subr.bf16.mxu0 %v17224_v9  ;;  %12735 = vmatprep.subr.bf16.mxu1 %v17225_v46 }
 0x968   :  { %11525 = vmatmul.mubr.f32.gmra.mrb[30].mxu0 %v16729_v52  ;;  %11602 = vmatmul.mubr.f32.gmra.mrb[30].mxu1 %v16729_v52 }
 0x969   :  { %11672 = vmatprep.mubr.f32.mxu0 %v16642_v29  ;;  %11749 = vmatprep.mubr.f32.mxu1 %v16642_v29  ;;  %v17236_v29 = vld [vmem:[#allocation55_spill] sm:$0xff] }
 0x96a   :  { %12673 = vmatpush1.bf16.msra.mxu0 %v17226_v2  ;;  %12737 = vmatpush1.bf16.msra.mxu1 %v17227_v49 }
 0x96b   :  { %12675 = vmatprep.subr.bf16.mxu0 %v17228_v24  ;;  %12739 = vmatprep.subr.bf16.mxu1 %v17229_v8 }
 0x96e   :  { %12677 = vmatpush1.bf16.msra.mxu0 %v17230_v10  ;;  %12741 = vmatpush1.bf16.msra.mxu1 %v17231_v61 }
 0x96f   :  { %12679 = vmatprep.subr.bf16.mxu0 %v17232_v55  ;;  %12743 = vmatprep.subr.bf16.mxu1 %v17233_v3 }
 0x972   :  { %12681 = vmatpush1.bf16.msra.mxu0 %v17234_v30  ;;  %12745 = vmatpush1.bf16.msra.mxu1 %v17235_v21 }
 0x973   :  { %12683 = vmatprep.subr.bf16.mxu0 %v17236_v29  ;;  %12747 = vmatprep.subr.bf16.mxu1 %v17237_v18 }
 0x976   :  { %12685 = vmatpush1.bf16.msra.mxu0 %v17238_v4  ;;  %12749 = vmatpush1.bf16.msra.mxu1 %v17239_v27 }
 0x977   :  { %12687 = vmatprep.subr.bf16.mxu0 %v17240_v56  ;;  %12751 = vmatprep.subr.bf16.mxu1 %v17241_v50 }
 0x97a   :  { %12689 = vmatpush1.bf16.msra.mxu0 %v17242_v43  ;;  %12753 = vmatpush1.bf16.msra.mxu1 %v17243_v23 }
 0x97b   :  { %12691 = vmatprep.subr.bf16.mxu0 %v17244_v11  ;;  %12755 = vmatprep.subr.bf16.mxu1 %v17245_v42 }
 0x97e   :  { %12693 = vmatpush1.bf16.msra.mxu0 %v17246_v6  ;;  %12757 = vmatpush1.bf16.msra.mxu1 %v17247_v38 }
 0x97f   :  { %12695 = vmatprep.subr.bf16.mxu0 %v17248_v17  ;;  %12759 = vmatprep.subr.bf16.mxu1 %v17249_v53 }
 0x982   :  { %12697 = vmatpush1.bf16.msra.mxu0 %v17250_v15  ;;  %12761 = vmatpush1.bf16.msra.mxu1 %v17251_v32 }
 0x983   :  { %12699 = vmatprep.subr.bf16.mxu0 %v17252_v5  ;;  %12763 = vmatprep.subr.bf16.mxu1 %v17253_v19 }
 0x986   :  { %12701 = vmatpush1.bf16.msra.mxu0 %v17254_v0  ;;  %12765 = vmatpush1.bf16.msra.mxu1 %v17255_v12 }
 0x987   :  { %12703 = vmatprep.subr.bf16.mxu0 %v17256_v39  ;;  %12767 = vmatprep.subr.bf16.mxu1 %v17257_v33 }
 0x98a   :  { %12705 = vmatpush1.bf16.msra.mxu0 %v17258_v47  ;;  %12769 = vmatpush1.bf16.msra.mxu1 %v17259_v54 }
 0x98b   :  { %12707 = vmatprep.subr.bf16.mxu0 %v17260_v7  ;;  %12771 = vmatprep.subr.bf16.mxu1 %v17261_v45 }
 0x98e   :  { %12709 = vmatpush1.bf16.msra.mxu0 %v17262_v41  ;;  %12773 = vmatpush1.bf16.msra.mxu1 %v17263_v35 }
 0x98f   :  { %12711 = vmatprep.subr.bf16.mxu0 %v17264_v57  ;;  %12775 = vmatprep.subr.bf16.mxu1 %v17265_v28 }
 0x992   :  { %12713 = vmatpush1.bf16.msra.mxu0 %v17266_v20  ;;  %12777 = vmatpush1.bf16.msra.mxu1 %v17267_v63 }
 0x993   :  { %12715 = vmatprep.subr.bf16.mxu0 %v17268_v60  ;;  %12779 = vmatprep.subr.bf16.mxu1 %v17269_v37 }
 0x996   :  { %12717 = vmatpush1.bf16.msra.mxu0 %v17270_v14  ;;  %12781 = vmatpush1.bf16.msra.mxu1 %v17271_v62 }
 0x997   :  { %12719 = vmatprep.subr.bf16.mxu0 %v16590_v40  ;;  %12783 = vmatprep.subr.bf16.mxu1 %v16592_v26 }
 0x99a   :  { %12721 = vmatpush1.bf16.msra.mxu0 %v16596_v1  ;;  %12785 = vmatpush1.bf16.msra.mxu1 %v16598_v44 }
 0x99b   :  { %12723 = vmatprep.subr.bf16.mxu0 %v16602_v36  ;;  %12787 = vmatprep.subr.bf16.mxu1 %v16604_v58 }
 0x99e   :  { %12725 = vmatpush1.bf16.msra.mxu0 %v16608_v34  ;;  %12789 = vmatpush1.bf16.msra.mxu1 %v16610_v25 }
 0x99f   :  { %12727 = vmatprep.subr.bf16.mxu0 %v16614_v31  ;;  %12791 = vmatprep.subr.bf16.mxu1 %v16616_v22 }
 0x9a2   :  { %12729 = vmatpush1.bf16.msra.mxu0 %v16620_v16  ;;  %12793 = vmatpush1.bf16.msra.mxu1 %v16622_v59 }
 0x9a5   :  { %11673 = vmatmul.mubr.f32.vlgmr.msra.gmra.mrb[32].mxu0 %v16718_v51  ;;  %11750 = vmatmul.mubr.f32.vlgmr.msra.gmra.mrb[32].mxu1 %v16718_v51 }
 0x9a6   :  { %11678 = vmatprep.mubr.f32.mxu0 %v16723_v48  ;;  %11755 = vmatprep.mubr.f32.mxu1 %v16723_v48 }
 0x9a9   :  { %11679 = vmatmul.mubr.f32.gmra.mrb[34].mxu0 %v16729_v52  ;;  %11756 = vmatmul.mubr.f32.gmra.mrb[34].mxu1 %v16729_v52 }
 0x9b6   :  { %v11196_v40 = vpop.f32.mrb[20].mxu0  ;;  %v11273_v26 = vpop.f32.mrb[20].mxu1 }
 0x9b7   :  { %11438 = vst [vmem:[#allocation5] sm:$0xff] %v11196_v40  ;;  %11440 = vst [vmem:[#allocation5 + $0x10] sm:$0xff] %v11273_v26  ;;  %v11198_v1 = vpop.f32.mrb[21].mxu0  ;;  %v11275_v44 = vpop.f32.mrb[21].mxu1 }
 0x9b8   :  { %11439 = vst [vmem:[#allocation5 + $0x8] sm:$0xff] %v11198_v1  ;;  %11441 = vst [vmem:[#allocation5 + $0x18] sm:$0xff] %v11275_v44 }
 0x9ba   :  { %v11202_v36 = vpop.f32.mrb[22].mxu0  ;;  %v11279_v58 = vpop.f32.mrb[22].mxu1 }
 0x9bb   :  { %11446 = vst [vmem:[#allocation5 + $0x80] sm:$0xff] %v11202_v36  ;;  %11448 = vst [vmem:[#allocation5 + $0x90] sm:$0xff] %v11279_v58  ;;  %v11204_v34 = vpop.f32.mrb[23].mxu0  ;;  %v11281_v25 = vpop.f32.mrb[23].mxu1 }
 0x9bc   :  { %11447 = vst [vmem:[#allocation5 + $0x88] sm:$0xff] %v11204_v34  ;;  %11449 = vst [vmem:[#allocation5 + $0x98] sm:$0xff] %v11281_v25 }
 0x9f6   :  { %v11350_v31 = vpop.f32.mrb[24].mxu0  ;;  %v11427_v22 = vpop.f32.mrb[24].mxu1 }
 0x9f7   :  { %11442 = vst [vmem:[#allocation5 + $0x20] sm:$0xff] %v11350_v31  ;;  %11444 = vst [vmem:[#allocation5 + $0x30] sm:$0xff] %v11427_v22  ;;  %v11352_v16 = vpop.f32.mrb[25].mxu0  ;;  %v11429_v59 = vpop.f32.mrb[25].mxu1 }
 0x9f8   :  { %11443 = vst [vmem:[#allocation5 + $0x28] sm:$0xff] %v11352_v16  ;;  %11445 = vst [vmem:[#allocation5 + $0x38] sm:$0xff] %v11429_v59 }
 0x9fa   :  { %v11356_v51 = vpop.f32.mrb[26].mxu0  ;;  %v11433_v48 = vpop.f32.mrb[26].mxu1 }
 0x9fb   :  { %11450 = vst [vmem:[#allocation5 + $0xa0] sm:$0xff] %v11356_v51  ;;  %11452 = vst [vmem:[#allocation5 + $0xb0] sm:$0xff] %v11433_v48  ;;  %v11358_v52 = vpop.f32.mrb[27].mxu0  ;;  %v11435_v13 = vpop.f32.mrb[27].mxu1 }
 0x9fc   :  { %11451 = vst [vmem:[#allocation5 + $0xa8] sm:$0xff] %v11358_v52  ;;  %11453 = vst [vmem:[#allocation5 + $0xb8] sm:$0xff] %v11435_v13 }
 0xa37   :  { %v11520_v9 = vpop.f32.mrb[28].mxu0  ;;  %v11597_v46 = vpop.f32.mrb[28].mxu1 }
 0xa38   :  { %11762 = vst [vmem:[#allocation5 + $0x40] sm:$0xff] %v11520_v9  ;;  %11764 = vst [vmem:[#allocation5 + $0x50] sm:$0xff] %v11597_v46  ;;  %v11522_v2 = vpop.f32.mrb[29].mxu0  ;;  %v11599_v49 = vpop.f32.mrb[29].mxu1 }
 0xa39   :  { %11763 = vst [vmem:[#allocation5 + $0x48] sm:$0xff] %v11522_v2  ;;  %11765 = vst [vmem:[#allocation5 + $0x58] sm:$0xff] %v11599_v49 }
 0xa3b   :  { %v11526_v24 = vpop.f32.mrb[30].mxu0  ;;  %v11603_v8 = vpop.f32.mrb[30].mxu1 }
 0xa3c   :  { %11770 = vst [vmem:[#allocation5 + $0xc0] sm:$0xff] %v11526_v24  ;;  %11772 = vst [vmem:[#allocation5 + $0xd0] sm:$0xff] %v11603_v8  ;;  %v11528_v10 = vpop.f32.mrb[31].mxu0  ;;  %v11605_v61 = vpop.f32.mrb[31].mxu1 }
 0xa3d   :  { %11771 = vst [vmem:[#allocation5 + $0xc8] sm:$0xff] %v11528_v10  ;;  %11773 = vst [vmem:[#allocation5 + $0xd8] sm:$0xff] %v11605_v61 }
 0xa78   :  { %v11674_v55 = vpop.f32.mrb[32].mxu0  ;;  %v11751_v3 = vpop.f32.mrb[32].mxu1 }
 0xa79   :  { %11766 = vst [vmem:[#allocation5 + $0x60] sm:$0xff] %v11674_v55  ;;  %11768 = vst [vmem:[#allocation5 + $0x70] sm:$0xff] %v11751_v3  ;;  %v11676_v30 = vpop.f32.mrb[33].mxu0  ;;  %v11753_v21 = vpop.f32.mrb[33].mxu1 }
 0xa7a   :  { %11767 = vst [vmem:[#allocation5 + $0x68] sm:$0xff] %v11676_v30  ;;  %11769 = vst [vmem:[#allocation5 + $0x78] sm:$0xff] %v11753_v21 }
 0xa7c   :  { %v11680_v29 = vpop.f32.mrb[34].mxu0  ;;  %v11757_v18 = vpop.f32.mrb[34].mxu1 }
 0xa7d   :  { %11774 = vst [vmem:[#allocation5 + $0xe0] sm:$0xff] %v11680_v29  ;;  %11776 = vst [vmem:[#allocation5 + $0xf0] sm:$0xff] %v11757_v18  ;;  %v11682_v4 = vpop.f32.mrb[35].mxu0  ;;  %v11759_v27 = vpop.f32.mrb[35].mxu1 }
 0xa7e   :  { %11775 = vst [vmem:[#allocation5 + $0xe8] sm:$0xff] %v11682_v4  ;;  %11777 = vst [vmem:[#allocation5 + $0xf8] sm:$0xff] %v11759_v27 }
 0xa7f   :  { %13199 = shalt.err (!%p13196_p12)
}
 0xa80   :  { %s13200_s4 = scalar_lea.hbm %s16820_s5, 4096 }
 0xa81   :  { %p13201_p13 = scmp.ne.s32.totalorder %s16820_s5, %s13200_s4  ;;  %p13204_p0 = scmp.lt.u32.totalorder %s13200_s4, %s16820_s5 }
 0xa83   :  { %p13206_p1 = pnand %p13204_p0, %p13201_p13 }
 0xa85   :  { %13209 = shalt.err (!%p13206_p1)
}
 0xa86   :  { %s13236_s19 = smov 2048   ;;  %s13237_s20 = smov 128  }
 0xa87   :  { %11789 = dma.vmem_to_hbm [thread:$0]  %s11784_s30, 4096, %s16820_s5, [#allocation4], %s13236_s19, %s13236_s19, %s13237_s20  }
 0xa88   :  { %13212 = dma.done.wait [#allocation4], 4096  }
 0xa89   :  { %13213 = vsyncadd [#allocation4], 4294963200 }
 0xa8a   :  { %11793 = vsyncpa [#allocation3], 1 }
 0xa8b   :  { %11794 = vsyncpa [#allocation4], 1 }

</bundles_post_ra>
